<compile_context>
chip_gen: v7x
topology: tpu7x:2x2x1
jax: 0.10.0
libtpu: 0.0.40
codegen_flags: <defaults>
</compile_context>

<pallas_src>
import jax
import jax.numpy as jnp
from jax.experimental import pallas as pl
from jax.experimental.pallas import tpu as pltpu

EPS = 1e-8
# TODO(synk): the custom LeakyReLU class is not provided in the reference source;
# assuming negative_slope=0.2 (StyleGAN2 convention).
LRELU_SLOPE = 0.2
UPSAMPLE_INPUT = True
# TODO(synk): ToRGB's output upsample path uses an undefined `Blur` module; the block
# is instantiated with upsample_output=False, so rgb is returned at feature resolution.
UPSAMPLE_OUTPUT = False


def _round_up(v, m):
    return ((v + m - 1) // m) * m


def _make_genblock_kernel(H, W, P, Cin, Cout, slope):
    Wp = W + 2                    # width padded by 1 on each side ('same' 3x3 pad)
    Ninner = H * Wp               # flat pixel rows per image
    taps = [(dh, dw) for dh in (-1, 0, 1) for dw in (-1, 0, 1)]   # matches w[.,.,kh,kw]

    def kernel(x_ref, ntf_ref, s1_ref, sdv_ref, cm_ref,
               w1_ref, w2_ref, nprm_ref,
               xout_ref,
               pad1_scr, pad2_scr):
        style1 = s1_ref[0]                      # (1, Cin)   A1(s)+1
        sdv = sdv_ref[0]                        # (3, Cout)  [A2(s)+1, d1, d2]
        style2 = sdv[0:1, :]
        d1 = sdv[1:2, :]
        d2 = sdv[2:3, :]
        cm = cm_ref[...]                        # (Ninner, 1) zeros at width-pad columns
        ntf = ntf_ref[0]                        # (Ninner, 1) transposed noise
        nprm = nprm_ref[...]                    # (4, Cout)  [b1w, b1b, b2w, b2b]

        # per-pixel noise: B1(n) / B2(n) (Linear(1, Cout))
        noise1 = ntf * nprm[0:1, :] + nprm[1:2, :]
        noise2 = ntf * nprm[2:3, :] + nprm[3:4, :]

        # Zero ONLY the halo rows of the pad scratches (the interior is fully
        # overwritten every step, and width-pad columns are zero via the
        # wrapper padding / cm mask).  Done every step (not init-once) so it
        # stays correct when the batch axis is sharded across cores.
        pad1_scr[pl.ds(0, P), :] = jnp.zeros((P, Cin), jnp.float32)
        pad1_scr[pl.ds(P + Ninner, P), :] = jnp.zeros((P, Cin), jnp.float32)
        pad2_scr[pl.ds(0, P), :] = jnp.zeros((P, Cout), jnp.float32)
        pad2_scr[pl.ds(P + Ninner, P), :] = jnp.zeros((P, Cout), jnp.float32)

        def conv3x3(pad_scr, w_ref):
            # im2col: one (Ninner, 9*C) LHS from 9 statically-shifted reads of
            # the halo-padded scratch, then a single bf16 MXU matmul (f32 acc).
            parts = [pad_scr[pl.ds(P + dh * Wp + dw, Ninner), :] for dh, dw in taps]
            lhs = jnp.concatenate(parts, axis=1).astype(jnp.bfloat16)
            return jnp.dot(lhs, w_ref[...], preferred_element_type=jnp.float32)

        # ---- conv1: modulate input, 3x3 'same' conv, demod, +noise, LeakyReLU ----
        pad1_scr[pl.ds(P, Ninner), :] = x_ref[0] * style1
        x1 = conv3x3(pad1_scr, w1_ref) * d1 + noise1
        x1 = jnp.where(x1 >= 0.0, x1, slope * x1)

        # ---- conv2: re-zero pad columns (cm), modulate, 3x3 conv, demod ----
        pad2_scr[pl.ds(P, Ninner), :] = x1 * cm * style2
        x2 = conv3x3(pad2_scr, w2_ref) * d2 + noise2
        x2 = jnp.where(x2 >= 0.0, x2, slope * x2)
        xout_ref[0] = x2

    return kernel


def genblock_forward(params, x, prev, s, n):
    """x: (B, Cin, H0, W0) NCHW; prev: (B, channel, H, W) or None;
       s: (B, lat_dim); n: (B, Hn, Wn, 1).  Returns (x_out NCHW, rgb NCHW)."""
    B, Cin, H0, W0 = x.shape
    if UPSAMPLE_INPUT:
        # nn.Upsample(scale_factor=2, mode='bilinear', align_corners=False)
        # (glue op; jax.image.resize 'bilinear' uses the same half-pixel convention)
        x = jax.image.resize(x, (B, Cin, 2 * H0, 2 * W0), method="bilinear")
    H, W = int(x.shape[2]), int(x.shape[3])

    w1_k = params["w1_k"]          # (9, Cin, Cout)  tap = kh*3+kw
    w2_k = params["w2_k"]          # (9, Cout, Cout)
    wrgb = params["wrgb_k"]        # (Cout, channel)
    Cout = w2_k.shape[-1]
    channel = wrgb.shape[-1]

    Wp = W + 2
    Ninner = H * Wp
    P = _round_up(Wp + 1, 8)       # zero halo rows above/below the flat buffer
    Npad = Ninner + 2 * P

    x = x.astype(jnp.float32)
    s = s.astype(jnp.float32)

    # ---- hoisted batch-invariant / per-batch scalar math (batched XLA GEMMs) ----
    style1 = s @ params["a1w"] + params["a1b"] + 1.0      # (B, Cin)   A1(s)+1
    style2 = s @ params["a2w"] + params["a2b"] + 1.0      # (B, Cout)  A2(s)+1
    stylergb = s @ params["arw"] + params["arb"] + 1.0    # (B, Cout)  rgb.A(s)+1
    wsq1 = jnp.sum(w1_k * w1_k, axis=0)                   # (Cin, Cout)
    wsq2 = jnp.sum(w2_k * w2_k, axis=0)                   # (Cout, Cout)
    d1 = jax.lax.rsqrt((style1 * style1) @ wsq1 + EPS)    # (B, Cout) demod factor conv1
    d2 = jax.lax.rsqrt((style2 * style2) @ wsq2 + EPS)    # (B, Cout) demod factor conv2
    s1_in = style1[:, None, :]                            # (B, 1, Cin)
    sdv = jnp.stack([style2, d1, d2], axis=1)             # (B, 3, Cout)

    # conv weights in im2col layout, bf16 for the MXU (halved DMA + VMEM)
    w1_mat = w1_k.reshape(9 * Cin, Cout).astype(jnp.bfloat16)
    w2_mat = w2_k.reshape(9 * Cout, Cout).astype(jnp.bfloat16)
    # packed noise Linear(1, Cout) params: [b1w, b1b, b2w, b2b]
    nprm = jnp.concatenate([params["b1w"], params["b1b"],
                            params["b2w"], params["b2b"]], axis=0)   # (4, Cout)

    # width-pad by 1 (conv 'same' padding) and flatten (h, w) -> rows
    x_nhwc = jnp.transpose(x, (0, 2, 3, 1))
    x_flat = jnp.pad(x_nhwc, ((0, 0), (0, 0), (1, 1), (0, 0))).reshape(B, Ninner, Cin)

    # noise: reference permutes (0,3,2,1), so output pixel (h,w) receives n[b,w,h,0]
    ncrop = n[:, :H, :W, 0].astype(jnp.float32)
    nt = jnp.transpose(ncrop, (0, 2, 1))[..., None]
    ntf = jnp.pad(nt, ((0, 0), (0, 0), (1, 1), (0, 0))).reshape(B, Ninner, 1)

    # pad-column mask (zeros at the two width-pad columns of every row)
    cm = jnp.pad(jnp.ones((H, W, 1), jnp.float32),
                 ((0, 0), (1, 1), (0, 0))).reshape(Ninner, 1)

    kernel = _make_genblock_kernel(H, W, P, Cin, Cout, LRELU_SLOPE)

    def full(shp):
        return pl.BlockSpec(shp, lambda b, _n=len(shp): (0,) * _n)

    def batched(shp):
        return pl.BlockSpec((1,) + shp, lambda b, _n=len(shp): (b,) + (0,) * _n)

    in_specs = [
        batched((Ninner, Cin)),       # x_flat
        batched((Ninner, 1)),         # noise (flattened, transposed)
        batched((1, Cin)),            # style1
        batched((3, Cout)),           # style2 / d1 / d2
        full((Ninner, 1)),            # pad-column mask
        full((9 * Cin, Cout)),        # conv1 im2col weights (bf16)
        full((9 * Cout, Cout)),       # conv2 im2col weights (bf16)
        full((4, Cout)),              # noise Linear params
    ]
    out_specs = batched((Ninner, Cout))
    out_shape = jax.ShapeDtypeStruct((B, Ninner, Cout), jnp.float32)

    x_out_flat = pl.pallas_call(
        kernel,
        out_shape=out_shape,
        grid_spec=pltpu.PrefetchScalarGridSpec(
            num_scalar_prefetch=0,
            grid=(B,),
            in_specs=in_specs,
            out_specs=out_specs,
            scratch_shapes=[pltpu.VMEM((Npad, Cin), jnp.float32),
                            pltpu.VMEM((Npad, Cout), jnp.float32)]),
        compiler_params=pltpu.CompilerParams(
            # batch steps are independent -> shard across v7x's 2 TensorCores
            dimension_semantics=("parallel",),
            vmem_limit_bytes=32 * 1024 * 1024),
    )(x_flat, ntf, s1_in, sdv, cm, w1_mat, w2_mat, nprm)

    # strip width padding
    x_out_nhwc = x_out_flat.reshape(B, H, Wp, Cout)[:, :, 1:W + 1, :]

    # ToRGB: 1x1 modulated conv (demod=False, no bias) + skip add, as one batched
    # lane-dense XLA GEMM (better MXU shape than B tiny (Ninner,Cout)x(Cout,3) matmuls,
    # and avoids a 3-lane masked-store output from the kernel).
    rgb_nhwc = jnp.einsum('bhwc,cd->bhwd',
                          x_out_nhwc * stylergb[:, None, None, :], wrgb)
    if prev is not None:
        rgb_nhwc = rgb_nhwc + jnp.transpose(prev.astype(jnp.float32), (0, 2, 3, 1))
    # TODO(synk): rgb upsample (Upsample+Blur) path omitted: upsample_output=False and
    #             Blur is undefined in the reference source.

    x_out = jnp.transpose(x_out_nhwc, (0, 3, 1, 2))
    rgb = jnp.transpose(rgb_nhwc, (0, 3, 1, 2))
    return x_out, rgb


def init_params(key, lat_dim, in_dim, out_dim, channel=3):
    ks = jax.random.split(key, 13)

    def kaiming(k, shape, fan_in):
        # nn.init.kaiming_normal_(a=0, mode='fan_in', nonlinearity='leaky_relu')
        return jax.random.normal(k, shape, jnp.float32) * jnp.sqrt(2.0 / fan_in)

    def linear(kw, kb, out_f, in_f):
        bound = 1.0 / float(in_f) ** 0.5
        w = jax.random.uniform(kw, (out_f, in_f), jnp.float32, -bound, bound)
        b = jax.random.uniform(kb, (out_f,), jnp.float32, -bound, bound)
        return w, b

    w1 = kaiming(ks[0], (out_dim, in_dim, 3, 3), in_dim * 9)
    w2 = kaiming(ks[1], (out_dim, out_dim, 3, 3), out_dim * 9)
    wrgb = kaiming(ks[2], (channel, out_dim, 1, 1), out_dim)
    a1w, a1b = linear(ks[3], ks[4], in_dim, lat_dim)
    a2w, a2b = linear(ks[5], ks[6], out_dim, lat_dim)
    arw, arb = linear(ks[7], ks[8], out_dim, lat_dim)
    b1w, b1b = linear(ks[9], ks[10], out_dim, 1)
    b2w, b2b = linear(ks[11], ks[12], out_dim, 1)

    return {
        # conv weights pre-arranged as (tap = kh*3+kw, in_channel, out_channel), f32
        "w1_k": jnp.transpose(w1, (2, 3, 1, 0)).reshape(9, in_dim, out_dim),
        "w2_k": jnp.transpose(w2, (2, 3, 1, 0)).reshape(9, out_dim, out_dim),
        "wrgb_k": jnp.transpose(wrgb[:, :, 0, 0], (1, 0)),     # (out_dim, channel)
        "a1w": a1w.T, "a1b": a1b[None, :],
        "a2w": a2w.T, "a2b": a2b[None, :],
        "arw": arw.T, "arb": arb[None, :],
        "b1w": b1w.T, "b1b": b1b[None, :],
        "b2w": b2w.T, "b2b": b2b[None, :],
    }


if __name__ == "__main__":
    B, lat_dim, in_dim, out_dim, channel = 2, 32, 4, 8, 3
    H0 = W0 = 8                       # upsampled to 16x16 inside the block
    key = jax.random.PRNGKey(0)
    kp, kx, kprev, ks_, kn = jax.random.split(key, 5)

    params = init_params(kp, lat_dim, in_dim, out_dim, channel)
    x = jax.random.normal(kx, (B, in_dim, H0, W0), jnp.float32)                 # NCHW
    prev = jax.random.normal(kprev, (B, channel, 2 * H0, 2 * W0), jnp.float32)  # NCHW
    s = jax.random.normal(ks_, (B, lat_dim), jnp.float32)
    n = jax.random.normal(kn, (B, 2 * H0, 2 * W0, 1), jnp.float32)              # (B,H,W,1)

    fwd = jax.jit(genblock_forward)
    x_out, rgb = fwd(params, x, prev, s, n)
    jax.block_until_ready((x_out, rgb))
    assert x_out.shape == (B, out_dim, 2 * H0, 2 * W0)
    assert rgb.shape == (B, channel, 2 * H0, 2 * W0)
    print("KERNEL_OK")
</pallas_src>

<mosaic_0001>
module attributes {stable_mosaic.version = 11 : i64} {
  func.func @kernel(%arg0: i32, %arg1: memref<1x288x4xf32, #tpu.memory_space<vmem>>, %arg2: memref<1x288x1xf32, #tpu.memory_space<vmem>>, %arg3: memref<1x1x4xf32, #tpu.memory_space<vmem>>, %arg4: memref<1x3x8xf32, #tpu.memory_space<vmem>>, %arg5: memref<288x1xf32, #tpu.memory_space<vmem>>, %arg6: memref<36x8xbf16, #tpu.memory_space<vmem>>, %arg7: memref<72x8xbf16, #tpu.memory_space<vmem>>, %arg8: memref<4x8xf32, #tpu.memory_space<vmem>>, %arg9: memref<1x288x8xf32, #tpu.memory_space<vmem>>, %arg10: memref<336x4xf32, #tpu.memory_space<vmem>>, %arg11: memref<336x8xf32, #tpu.memory_space<vmem>>) attributes {dimension_semantics = [#tpu.dimension_semantics<parallel>], iteration_bounds = array<i64: 2>, scalar_prefetch = 0 : i64, scratch_operands = 2 : i64, tpu.core_type = #tpu.core_type<tc>, window_params = [{transform_indices = @transform_0, window_bounds = array<i64: 1, 288, 4>}, {transform_indices = @transform_1, window_bounds = array<i64: 1, 288, 1>}, {transform_indices = @transform_2, window_bounds = array<i64: 1, 1, 4>}, {transform_indices = @transform_3, window_bounds = array<i64: 1, 3, 8>}, {pipeline_mode = #tpu.pipeline_mode<synchronous>, transform_indices = @transform_4, window_bounds = array<i64: 288, 1>}, {pipeline_mode = #tpu.pipeline_mode<synchronous>, transform_indices = @transform_5, window_bounds = array<i64: 36, 8>}, {pipeline_mode = #tpu.pipeline_mode<synchronous>, transform_indices = @transform_6, window_bounds = array<i64: 72, 8>}, {pipeline_mode = #tpu.pipeline_mode<synchronous>, transform_indices = @transform_7, window_bounds = array<i64: 4, 8>}, {transform_indices = @transform_8, window_bounds = array<i64: 1, 288, 8>}]} {
    %c0 = arith.constant 0 : index
    %c0_0 = arith.constant 0 : index
    %c0_1 = arith.constant 0 : index
    %0 = vector.load %arg3[%c0, %c0_0, %c0_1] : memref<1x1x4xf32, #tpu.memory_space<vmem>>, vector<1x1x4xf32>
    %1 = vector.shape_cast %0 : vector<1x1x4xf32> to vector<1x4xf32>
    %c0_2 = arith.constant 0 : index
    %c0_3 = arith.constant 0 : index
    %c0_4 = arith.constant 0 : index
    %2 = vector.load %arg4[%c0_2, %c0_3, %c0_4] : memref<1x3x8xf32, #tpu.memory_space<vmem>>, vector<1x3x8xf32>
    %3 = vector.shape_cast %2 : vector<1x3x8xf32> to vector<3x8xf32>
    %4 = vector.extract_strided_slice %3 {offsets = [0, 0], sizes = [1, 8], strides = [1, 1]} : vector<3x8xf32> to vector<1x8xf32>
    %5 = vector.extract_strided_slice %3 {offsets = [1, 0], sizes = [1, 8], strides = [1, 1]} : vector<3x8xf32> to vector<1x8xf32>
    %6 = vector.extract_strided_slice %3 {offsets = [2, 0], sizes = [1, 8], strides = [1, 1]} : vector<3x8xf32> to vector<1x8xf32>
    %c0_5 = arith.constant 0 : index
    %c0_6 = arith.constant 0 : index
    %7 = vector.load %arg5[%c0_5, %c0_6] : memref<288x1xf32, #tpu.memory_space<vmem>>, vector<288x1xf32>
    %c0_7 = arith.constant 0 : index
    %c0_8 = arith.constant 0 : index
    %c0_9 = arith.constant 0 : index
    %8 = vector.load %arg2[%c0_7, %c0_8, %c0_9] : memref<1x288x1xf32, #tpu.memory_space<vmem>>, vector<1x288x1xf32>
    %9 = vector.shape_cast %8 : vector<1x288x1xf32> to vector<288x1xf32>
    %c0_10 = arith.constant 0 : index
    %c0_11 = arith.constant 0 : index
    %10 = vector.load %arg8[%c0_10, %c0_11] : memref<4x8xf32, #tpu.memory_space<vmem>>, vector<4x8xf32>
    %11 = vector.extract_strided_slice %10 {offsets = [0, 0], sizes = [1, 8], strides = [1, 1]} : vector<4x8xf32> to vector<1x8xf32>
    %12 = vector.broadcast %9 : vector<288x1xf32> to vector<288x8xf32>
    %13 = vector.broadcast %11 : vector<1x8xf32> to vector<288x8xf32>
    %14 = arith.mulf %12, %13 : vector<288x8xf32>
    %15 = vector.extract_strided_slice %10 {offsets = [1, 0], sizes = [1, 8], strides = [1, 1]} : vector<4x8xf32> to vector<1x8xf32>
    %16 = vector.broadcast %15 : vector<1x8xf32> to vector<288x8xf32>
    %17 = arith.addf %14, %16 : vector<288x8xf32>
    %18 = vector.extract_strided_slice %10 {offsets = [2, 0], sizes = [1, 8], strides = [1, 1]} : vector<4x8xf32> to vector<1x8xf32>
    %19 = vector.broadcast %9 : vector<288x1xf32> to vector<288x8xf32>
    %20 = vector.broadcast %18 : vector<1x8xf32> to vector<288x8xf32>
    %21 = arith.mulf %19, %20 : vector<288x8xf32>
    %22 = vector.extract_strided_slice %10 {offsets = [3, 0], sizes = [1, 8], strides = [1, 1]} : vector<4x8xf32> to vector<1x8xf32>
    %23 = vector.broadcast %22 : vector<1x8xf32> to vector<288x8xf32>
    %24 = arith.addf %21, %23 : vector<288x8xf32>
    %cst = arith.constant 0.000000e+00 : f32
    %25 = vector.broadcast %cst : f32 to vector<24x4xf32>
    %c0_12 = arith.constant 0 : index
    %c0_13 = arith.constant 0 : index
    %26 = vector.load %arg10[%c0_12, %c0_13] : memref<336x4xf32, #tpu.memory_space<vmem>>, vector<24x4xf32>
    tpu.vector_store %arg10[%c0_12, %c0_13], %25 {strides = array<i32>} : memref<336x4xf32, #tpu.memory_space<vmem>>, vector<24x4xf32>,
    %cst_14 = arith.constant 0.000000e+00 : f32
    %27 = vector.broadcast %cst_14 : f32 to vector<24x4xf32>
    %c312 = arith.constant 312 : index
    %c0_15 = arith.constant 0 : index
    %28 = vector.load %arg10[%c312, %c0_15] : memref<336x4xf32, #tpu.memory_space<vmem>>, vector<24x4xf32>
    tpu.vector_store %arg10[%c312, %c0_15], %27 {strides = array<i32>} : memref<336x4xf32, #tpu.memory_space<vmem>>, vector<24x4xf32>,
    %cst_16 = arith.constant 0.000000e+00 : f32
    %29 = vector.broadcast %cst_16 : f32 to vector<24x8xf32>
    %c0_17 = arith.constant 0 : index
    %c0_18 = arith.constant 0 : index
    %30 = vector.load %arg11[%c0_17, %c0_18] : memref<336x8xf32, #tpu.memory_space<vmem>>, vector<24x8xf32>
    tpu.vector_store %arg11[%c0_17, %c0_18], %29 {strides = array<i32>} : memref<336x8xf32, #tpu.memory_space<vmem>>, vector<24x8xf32>,
    %cst_19 = arith.constant 0.000000e+00 : f32
    %31 = vector.broadcast %cst_19 : f32 to vector<24x8xf32>
    %c312_20 = arith.constant 312 : index
    %c0_21 = arith.constant 0 : index
    %32 = vector.load %arg11[%c312_20, %c0_21] : memref<336x8xf32, #tpu.memory_space<vmem>>, vector<24x8xf32>
    tpu.vector_store %arg11[%c312_20, %c0_21], %31 {strides = array<i32>} : memref<336x8xf32, #tpu.memory_space<vmem>>, vector<24x8xf32>,
    %c0_22 = arith.constant 0 : index
    %c0_23 = arith.constant 0 : index
    %c0_24 = arith.constant 0 : index
    %33 = vector.load %arg1[%c0_22, %c0_23, %c0_24] : memref<1x288x4xf32, #tpu.memory_space<vmem>>, vector<1x288x4xf32>
    %34 = vector.shape_cast %33 : vector<1x288x4xf32> to vector<288x4xf32>
    %35 = vector.broadcast %1 : vector<1x4xf32> to vector<288x4xf32>
    %36 = arith.mulf %34, %35 : vector<288x4xf32>
    %c24 = arith.constant 24 : index
    %c0_25 = arith.constant 0 : index
    %37 = vector.load %arg10[%c24, %c0_25] : memref<336x4xf32, #tpu.memory_space<vmem>>, vector<288x4xf32>
    tpu.vector_store %arg10[%c24, %c0_25], %36 {strides = array<i32>} : memref<336x4xf32, #tpu.memory_space<vmem>>, vector<288x4xf32>,
    %c5 = arith.constant 5 : index
    %c0_26 = arith.constant 0 : index
    %38 = vector.load %arg10[%c5, %c0_26] : memref<336x4xf32, #tpu.memory_space<vmem>>, vector<288x4xf32>
    %c6 = arith.constant 6 : index
    %c0_27 = arith.constant 0 : index
    %39 = vector.load %arg10[%c6, %c0_27] : memref<336x4xf32, #tpu.memory_space<vmem>>, vector<288x4xf32>
    %c7 = arith.constant 7 : index
    %c0_28 = arith.constant 0 : index
    %40 = vector.load %arg10[%c7, %c0_28] : memref<336x4xf32, #tpu.memory_space<vmem>>, vector<288x4xf32>
    %c23 = arith.constant 23 : index
    %c0_29 = arith.constant 0 : index
    %41 = vector.load %arg10[%c23, %c0_29] : memref<336x4xf32, #tpu.memory_space<vmem>>, vector<288x4xf32>
    %c24_30 = arith.constant 24 : index
    %c0_31 = arith.constant 0 : index
    %42 = vector.load %arg10[%c24_30, %c0_31] : memref<336x4xf32, #tpu.memory_space<vmem>>, vector<288x4xf32>
    %c25 = arith.constant 25 : index
    %c0_32 = arith.constant 0 : index
    %43 = vector.load %arg10[%c25, %c0_32] : memref<336x4xf32, #tpu.memory_space<vmem>>, vector<288x4xf32>
    %c41 = arith.constant 41 : index
    %c0_33 = arith.constant 0 : index
    %44 = vector.load %arg10[%c41, %c0_33] : memref<336x4xf32, #tpu.memory_space<vmem>>, vector<288x4xf32>
    %c42 = arith.constant 42 : index
    %c0_34 = arith.constant 0 : index
    %45 = vector.load %arg10[%c42, %c0_34] : memref<336x4xf32, #tpu.memory_space<vmem>>, vector<288x4xf32>
    %c43 = arith.constant 43 : index
    %c0_35 = arith.constant 0 : index
    %46 = vector.load %arg10[%c43, %c0_35] : memref<336x4xf32, #tpu.memory_space<vmem>>, vector<288x4xf32>
    %47 = tpu.concatenate %38, %39, %40, %41, %42, %43, %44, %45, %46 in 1 : vector<288x4xf32>, vector<288x4xf32>, vector<288x4xf32>, vector<288x4xf32>, vector<288x4xf32>, vector<288x4xf32>, vector<288x4xf32>, vector<288x4xf32>, vector<288x4xf32> -> vector<288x36xf32>
    %48 = arith.truncf %47 : vector<288x36xf32> to vector<288x36xbf16>
    %c0_36 = arith.constant 0 : index
    %c0_37 = arith.constant 0 : index
    %49 = vector.load %arg6[%c0_36, %c0_37] : memref<36x8xbf16, #tpu.memory_space<vmem>>, vector<36x8xbf16>
    %cst_38 = arith.constant dense<0.000000e+00> : vector<288x8xf32>
    %50 = tpu.matmul %48, %49, %cst_38 {dimension_numbers = #tpu.dot_dimension_numbers<[1], [0], [0], [1], [0, 0, 1, 1], [], []>} : vector<288x36xbf16>, vector<36x8xbf16>, vector<288x8xf32> -> vector<288x8xf32>
    %51 = vector.broadcast %5 : vector<1x8xf32> to vector<288x8xf32>
    %52 = arith.mulf %50, %51 : vector<288x8xf32>
    %53 = arith.addf %52, %17 : vector<288x8xf32>
    %cst_39 = arith.constant 0.000000e+00 : f32
    %54 = vector.broadcast %cst_39 : f32 to vector<288x8xf32>
    %55 = arith.cmpf oge, %53, %54 : vector<288x8xf32>
    %cst_40 = arith.constant 2.000000e-01 : f32
    %56 = vector.broadcast %cst_40 : f32 to vector<288x8xf32>
    %57 = arith.mulf %56, %53 : vector<288x8xf32>
    %58 = arith.select %55, %53, %57 : vector<288x8xi1>, vector<288x8xf32>
    %59 = vector.broadcast %7 : vector<288x1xf32> to vector<288x8xf32>
    %60 = arith.mulf %58, %59 : vector<288x8xf32>
    %61 = vector.broadcast %4 : vector<1x8xf32> to vector<288x8xf32>
    %62 = arith.mulf %60, %61 : vector<288x8xf32>
    %c24_41 = arith.constant 24 : index
    %c0_42 = arith.constant 0 : index
    %63 = vector.load %arg11[%c24_41, %c0_42] : memref<336x8xf32, #tpu.memory_space<vmem>>, vector<288x8xf32>
    tpu.vector_store %arg11[%c24_41, %c0_42], %62 {strides = array<i32>} : memref<336x8xf32, #tpu.memory_space<vmem>>, vector<288x8xf32>,
    %c5_43 = arith.constant 5 : index
    %c0_44 = arith.constant 0 : index
    %64 = vector.load %arg11[%c5_43, %c0_44] : memref<336x8xf32, #tpu.memory_space<vmem>>, vector<288x8xf32>
    %c6_45 = arith.constant 6 : index
    %c0_46 = arith.constant 0 : index
    %65 = vector.load %arg11[%c6_45, %c0_46] : memref<336x8xf32, #tpu.memory_space<vmem>>, vector<288x8xf32>
    %c7_47 = arith.constant 7 : index
    %c0_48 = arith.constant 0 : index
    %66 = vector.load %arg11[%c7_47, %c0_48] : memref<336x8xf32, #tpu.memory_space<vmem>>, vector<288x8xf32>
    %c23_49 = arith.constant 23 : index
    %c0_50 = arith.constant 0 : index
    %67 = vector.load %arg11[%c23_49, %c0_50] : memref<336x8xf32, #tpu.memory_space<vmem>>, vector<288x8xf32>
    %c24_51 = arith.constant 24 : index
    %c0_52 = arith.constant 0 : index
    %68 = vector.load %arg11[%c24_51, %c0_52] : memref<336x8xf32, #tpu.memory_space<vmem>>, vector<288x8xf32>
    %c25_53 = arith.constant 25 : index
    %c0_54 = arith.constant 0 : index
    %69 = vector.load %arg11[%c25_53, %c0_54] : memref<336x8xf32, #tpu.memory_space<vmem>>, vector<288x8xf32>
    %c41_55 = arith.constant 41 : index
    %c0_56 = arith.constant 0 : index
    %70 = vector.load %arg11[%c41_55, %c0_56] : memref<336x8xf32, #tpu.memory_space<vmem>>, vector<288x8xf32>
    %c42_57 = arith.constant 42 : index
    %c0_58 = arith.constant 0 : index
    %71 = vector.load %arg11[%c42_57, %c0_58] : memref<336x8xf32, #tpu.memory_space<vmem>>, vector<288x8xf32>
    %c43_59 = arith.constant 43 : index
    %c0_60 = arith.constant 0 : index
    %72 = vector.load %arg11[%c43_59, %c0_60] : memref<336x8xf32, #tpu.memory_space<vmem>>, vector<288x8xf32>
    %73 = tpu.concatenate %64, %65, %66, %67, %68, %69, %70, %71, %72 in 1 : vector<288x8xf32>, vector<288x8xf32>, vector<288x8xf32>, vector<288x8xf32>, vector<288x8xf32>, vector<288x8xf32>, vector<288x8xf32>, vector<288x8xf32>, vector<288x8xf32> -> vector<288x72xf32>
    %74 = arith.truncf %73 : vector<288x72xf32> to vector<288x72xbf16>
    %c0_61 = arith.constant 0 : index
    %c0_62 = arith.constant 0 : index
    %75 = vector.load %arg7[%c0_61, %c0_62] : memref<72x8xbf16, #tpu.memory_space<vmem>>, vector<72x8xbf16>
    %cst_63 = arith.constant dense<0.000000e+00> : vector<288x8xf32>
    %76 = tpu.matmul %74, %75, %cst_63 {dimension_numbers = #tpu.dot_dimension_numbers<[1], [0], [0], [1], [0, 0, 1, 1], [], []>} : vector<288x72xbf16>, vector<72x8xbf16>, vector<288x8xf32> -> vector<288x8xf32>
    %77 = vector.broadcast %6 : vector<1x8xf32> to vector<288x8xf32>
    %78 = arith.mulf %76, %77 : vector<288x8xf32>
    %79 = arith.addf %78, %24 : vector<288x8xf32>
    %cst_64 = arith.constant 0.000000e+00 : f32
    %80 = vector.broadcast %cst_64 : f32 to vector<288x8xf32>
    %81 = arith.cmpf oge, %79, %80 : vector<288x8xf32>
    %cst_65 = arith.constant 2.000000e-01 : f32
    %82 = vector.broadcast %cst_65 : f32 to vector<288x8xf32>
    %83 = arith.mulf %82, %79 : vector<288x8xf32>
    %84 = arith.select %81, %79, %83 : vector<288x8xi1>, vector<288x8xf32>
    %c0_66 = arith.constant 0 : index
    %c0_67 = arith.constant 0 : index
    %c0_68 = arith.constant 0 : index
    %85 = vector.load %arg9[%c0_66, %c0_67, %c0_68] : memref<1x288x8xf32, #tpu.memory_space<vmem>>, vector<1x288x8xf32>
    %86 = vector.shape_cast %85 : vector<1x288x8xf32> to vector<288x8xf32>
    %87 = vector.shape_cast %84 : vector<288x8xf32> to vector<1x288x8xf32>
    tpu.vector_store %arg9[%c0_66, %c0_67, %c0_68], %87 {strides = array<i32>} : memref<1x288x8xf32, #tpu.memory_space<vmem>>, vector<1x288x8xf32>,
    return
  }
  func.func @transform_0(%arg0: i32) -> (i32, i32, i32) {
    %c0_i32 = arith.constant 0 : i32
    %c0_i32_0 = arith.constant 0 : i32
    %c0_i32_1 = arith.constant 0 : i32
    return %arg0, %c0_i32, %c0_i32_0 : i32, i32, i32
  }
  func.func @transform_1(%arg0: i32) -> (i32, i32, i32) {
    %c0_i32 = arith.constant 0 : i32
    %c0_i32_0 = arith.constant 0 : i32
    %c0_i32_1 = arith.constant 0 : i32
    return %arg0, %c0_i32, %c0_i32_0 : i32, i32, i32
  }
  func.func @transform_2(%arg0: i32) -> (i32, i32, i32) {
    %c0_i32 = arith.constant 0 : i32
    %c0_i32_0 = arith.constant 0 : i32
    %c0_i32_1 = arith.constant 0 : i32
    return %arg0, %c0_i32, %c0_i32_0 : i32, i32, i32
  }
  func.func @transform_3(%arg0: i32) -> (i32, i32, i32) {
    %c0_i32 = arith.constant 0 : i32
    %c0_i32_0 = arith.constant 0 : i32
    %c0_i32_1 = arith.constant 0 : i32
    return %arg0, %c0_i32, %c0_i32_0 : i32, i32, i32
  }
  func.func @transform_4(%arg0: i32) -> (i32, i32) {
    %c0_i32 = arith.constant 0 : i32
    %c0_i32_0 = arith.constant 0 : i32
    %c0_i32_1 = arith.constant 0 : i32
    return %c0_i32, %c0_i32_0 : i32, i32
  }
  func.func @transform_5(%arg0: i32) -> (i32, i32) {
    %c0_i32 = arith.constant 0 : i32
    %c0_i32_0 = arith.constant 0 : i32
    %c0_i32_1 = arith.constant 0 : i32
    return %c0_i32, %c0_i32_0 : i32, i32
  }
  func.func @transform_6(%arg0: i32) -> (i32, i32) {
    %c0_i32 = arith.constant 0 : i32
    %c0_i32_0 = arith.constant 0 : i32
    %c0_i32_1 = arith.constant 0 : i32
    return %c0_i32, %c0_i32_0 : i32, i32
  }
  func.func @transform_7(%arg0: i32) -> (i32, i32) {
    %c0_i32 = arith.constant 0 : i32
    %c0_i32_0 = arith.constant 0 : i32
    %c0_i32_1 = arith.constant 0 : i32
    return %c0_i32, %c0_i32_0 : i32, i32
  }
  func.func @transform_8(%arg0: i32) -> (i32, i32, i32) {
    %c0_i32 = arith.constant 0 : i32
    %c0_i32_0 = arith.constant 0 : i32
    %c0_i32_1 = arith.constant 0 : i32
    return %arg0, %c0_i32, %c0_i32_0 : i32, i32, i32
  }
}

</mosaic_0001>

<bundles_post_ra>
// kernel: genblock_forward.1
= control target key start
LH: loop header
LB: loop body
LE: loop exit
PB: predicated region body
PF: predicated region fallthrough
CT: control target
= control target key end

     0   :  { %s7247_s27 = smov 0   ;;  %s10648_s0 = inlined_call_operand.vmem [shape: f32[2,288,4], index: 0, kind: input, shape index: {}]   ;;  %s10649_s1 = inlined_call_operand.vmem [shape: f32[2,288,1], index: 1, kind: input, shape index: {}]   ;;  %s10650_s2 = inlined_call_operand.vmem [shape: f32[2,1,4], index: 2, kind: input, shape index: {}]   ;;  %s10651_s3 = inlined_call_operand.vmem [shape: f32[2,3,8], index: 3, kind: input, shape index: {}]   ;;  %s10652_s4 = inlined_call_operand.vmem [shape: f32[288,1], index: 4, kind: input, shape index: {}]   ;;  %s10653_s5 = inlined_call_operand.vmem [shape: bf16[36,8], index: 5, kind: input, shape index: {}]   ;;  %s10654_s6 = inlined_call_operand.vmem [shape: bf16[72,8], index: 6, kind: input, shape index: {}]   ;;  %s10655_s7 = inlined_call_operand.vmem [shape: f32[4,8], index: 7, kind: input, shape index: {}]   ;;  %s10656_s8 = inlined_call_operand.vmem [shape: f32[2,288,8], index: 8, kind: output, shape index: {}]  }
   0x1 LB: > { %s5515_s28 = sadd.s32 4294967295, %s7186_s27   ;;  %p5519_p0 = scmp.ge.s32.totalorder %s7186_s27, 1  ;;  %s7186_s27 = sphi %s7247_s27, %s18_s27  }
   0x2   : > { %p289_p1 = scmp.lt.s32.totalorder %s7186_s27, 3 }
   0x4   : > { %p290_p2 = pnand %p5519_p0, %p289_p1 }
   0x6   : > { %293 = sbr.rel (%p290_p2) target bundleno = 1373 (0x55d), region = 52 }
   0xd   : > { %p335_p3 = scmp.lt.s32.totalorder %s5515_s28, 1  ;;  %v613_v0 = vlaneseq  ;;  %vm773_vm0 = vcmask 31744   ;;  %v7188_v1 = vmov 0   ;;  %v7189_v2 = vmov 0.0   ;;  %v7275_v5 = vld [vmem:[%s10655_s7] sm:$0xf] }
   0xe   : > { %5729 = vset.pattern.permute.xlu1 %v7188_v1  ;;  %5728 = vset.pattern.permute.xlu0 %v7188_v1  ;;  %774 = vst.msk [vmem:[#allocation2] sm:$0xff] %vm773_vm0, %v7189_v2  ;;  %775 = vst.msk [vmem:[#allocation2 + $0x8] sm:$0xff] %vm773_vm0, %v7189_v2  ;;  %s7190_s23 = smov 4   ;;  %vm780_vm1 = vcmask 64512   ;;  %s7191_s24 = smov 8   ;;  %vm2628_vm2 = vcmask 1041408  }
   0xf   : > { %776 = vst.msk [vmem:[#allocation2 + $0x10] sm:$0xff] %vm773_vm0, %v7189_v2  ;;  %777 = vst.msk [vmem:[#allocation2 + $0x138] sm:$0xff] %vm773_vm0, %v7189_v2  ;;  %s11157_s28 = smov (!%p335_p3, %s5515_s28), 1  ;;  %v7267_v3 = vshrl.u32 %v613_v0, 7  ;;  %s7192_s25 = smov 12   ;;  %vm2313_vm3 = vcmask 97280  }
  0x10   : > { %778 = vst.msk [vmem:[#allocation2 + $0x140] sm:$0xff] %vm773_vm0, %v7189_v2  ;;  %779 = vst.msk [vmem:[#allocation2 + $0x148] sm:$0xff] %vm773_vm0, %v7189_v2  ;;  %s7269_s29 = smul.u32 288, %s11157_s28  ;;  %s5522_s10 = sshll.u32 %s11157_s28, 2  ;;  %vm2350_vm4 = vcmask 130048   ;;  %vm2387_vm5 = vcmask 162816  }
  0x11   : > { %10802 = vst [vmem:[#allocation4_spill] sm:$0xff] %v7267_v3  ;;  %v695_v4 = vsub.s32 2, %v7267_v3  ;;  %s7286_s16 = scalar_lea.vmem %s10651_s3, %s5522_s10  ;;  %s347_s19 = scalar_lea.vmem %s10650_s2, %s11157_s28  ;;  %781 = vst.msk [vmem:[#allocation3] sm:$0xff] %vm780_vm1, %v7189_v2  ;;  %vm2424_vm6 = vcmask 195584   ;;  %vm2461_vm7 = vcmask 228352   ;;  %vm2498_vm8 = vcmask 261120  }
  0x12   : > { %s7281_s13 = scalar_lea.vmem %s10649_s1, %s7269_s29  ;;  %v359_v7 = vld [vmem:[%s7286_s16] sm:$0x7]  ;;  %s7307_s22 = scalar_lea.vmem %s10648_s0, %s7269_s29  ;;  %782 = vst.msk [vmem:[#allocation3 + $0x8] sm:$0xff] %vm780_vm1, %v7189_v2  ;;  %783 = vst.msk [vmem:[#allocation3 + $0x10] sm:$0xff] %vm780_vm1, %v7189_v2  ;;  %vm2573_vm9 = vcmask 293888  }
  0x13   : > { %v7289_v6 = vrot.slane %v7275_v5, %v695_v4  ;;  %v398_v8 = vld [vmem:[%s7281_s13 + $0x10] sm:$0xff]  ;;  %v396_v9 = vld [vmem:[%s7281_s13] sm:$0xff]  ;;  %v7294_v10 = vrot.slane %v359_v7, %v695_v4  ;;  %v399_v11 = vld [vmem:[%s7281_s13 + $0x18] sm:$0xff]  ;;  %784 = vst.msk [vmem:[#allocation3 + $0x138] sm:$0xff] %vm780_vm1, %v7189_v2  ;;  %s7193_s26 = smov 16   ;;  %s7194_s28 = smov 20  }
  0x14   : > { %445 = vperm.xlu1 %5729, %v398_v8   ;;  %435 = vperm.xlu0 %5728, %v396_v9   ;;  %v397_v12 = vld [vmem:[%s7281_s13 + $0x8] sm:$0xff]  ;;  %v400_v14 = vld [vmem:[%s7281_s13 + $0x20] sm:$0xff]  ;;  %v403_v15 = vld [vmem:[%s7281_s13 + $0x38] sm:$0xff]  ;;  %785 = vst.msk [vmem:[#allocation3 + $0x140] sm:$0xff] %vm780_vm1, %v7189_v2  ;;  %s7195_s30 = smov 24   ;;  %s7196_s9 = smov 28  }
  0x15   : > { %10803 = vst [vmem:[#allocation5_spill] sm:$0xff] %v7289_v6  ;;  %10804 = vst [vmem:[#allocation6_spill] sm:$0xff] %v7294_v10  ;;  %v401_v13 = vld [vmem:[%s7281_s13 + $0x28] sm:$0xff]  ;;  %v402_v16 = vld [vmem:[%s7281_s13 + $0x30] sm:$0xff]  ;;  %s7197_s14 = smov 32   ;;  %s7198_s20 = smov 40  }
  0x16   : > { %v7311_v17 = vld [vmem:[%s347_s19] ss:$0 sm:$0xff]  ;;  %v405_v18 = vld [vmem:[%s7281_s13 + $0x48] sm:$0xff]  ;;  %v789_v22 = vld [vmem:[%s7307_s22 + $0x10] sm:$0xff]  ;;  %786 = vst.msk [vmem:[#allocation3 + $0x148] sm:$0xff] %vm780_vm1, %v7189_v2  ;;  %s10443_s11 = scalar_lea.vmem %s10656_s8, %s7269_s29 }
  0x17   : > { %v404_v19 = vld [vmem:[%s7281_s13 + $0x40] sm:$0xff]  ;;  %v788_v21 = vld [vmem:[%s7307_s22 + $0x8] sm:$0xff]  ;;  %v790_v25 = vld [vmem:[%s7307_s22 + $0x18] sm:$0xff]  ;;  %v831_v26 = vmul.f32 %v7311_v17, %v789_v22 }
  0x18   : > { %450 = vperm.xlu1 %5729, %v399_v11   ;;  %440 = vperm.xlu0 %5728, %v397_v12   ;;  %v787_v20 = vld [vmem:[%s7307_s22] sm:$0xff]  ;;  %v830_v24 = vmul.f32 %v7311_v17, %v788_v21  ;;  %v792_v28 = vld [vmem:[%s7307_s22 + $0x28] sm:$0xff]  ;;  %v832_v29 = vmul.f32 %v7311_v17, %v790_v25  ;;  %v793_v32 = vld [vmem:[%s7307_s22 + $0x30] sm:$0xff] }
  0x19   : > { %v829_v23 = vmul.f32 %v7311_v17, %v787_v20  ;;  %v791_v27 = vld [vmem:[%s7307_s22 + $0x20] sm:$0xff]  ;;  %v834_v31 = vmul.f32 %v7311_v17, %v792_v28  ;;  %v794_v33 = vld [vmem:[%s7307_s22 + $0x38] sm:$0xff]  ;;  %v406_v36 = vld [vmem:[%s7281_s13 + $0x50] sm:$0xff]  ;;  %867 = vst.msk [vmem:[#allocation2 + $0x28] sm:$0xff] %vm773_vm0, %v831_v26  ;;  %v835_v37 = vmul.f32 %v7311_v17, %v793_v32 }
  0x1a   : > { %v833_v30 = vmul.f32 %v7311_v17, %v791_v27  ;;  %v795_v34 = vld [vmem:[%s7307_s22 + $0x40] sm:$0xff]  ;;  %v407_v35 = vld [vmem:[%s7281_s13 + $0x58] sm:$0xff]  ;;  %866 = vst.msk [vmem:[#allocation2 + $0x20] sm:$0xff] %vm773_vm0, %v830_v24  ;;  %v836_v38 = vmul.f32 %v7311_v17, %v794_v33  ;;  %v796_v39 = vld [vmem:[%s7307_s22 + $0x48] sm:$0xff] }
  0x1b   : > { %865 = vst.msk [vmem:[#allocation2 + $0x18] sm:$0xff] %vm773_vm0, %v829_v23  ;;  %v837_v40 = vmul.f32 %v7311_v17, %v795_v34  ;;  %v797_v41 = vld [vmem:[%s7307_s22 + $0x50] sm:$0xff]  ;;  %v798_v42 = vld [vmem:[%s7307_s22 + $0x58] sm:$0xff]  ;;  %868 = vst.msk [vmem:[#allocation2 + $0x30] sm:$0xff] %vm773_vm0, %v832_v29  ;;  %v838_v43 = vmul.f32 %v7311_v17, %v796_v39 }
  0x1c   : > { %460 = vperm.xlu1 %5729, %v401_v13   ;;  %455 = vperm.xlu0 %5728, %v400_v14   ;;  %869 = vst.msk [vmem:[#allocation2 + $0x38] sm:$0xff] %vm773_vm0, %v833_v30  ;;  %870 = vst.msk [vmem:[#allocation2 + $0x40] sm:$0xff] %vm773_vm0, %v834_v31  ;;  %v839_v44 = vmul.f32 %v7311_v17, %v797_v41  ;;  %v840_v45 = vmul.f32 %v7311_v17, %v798_v42  ;;  %v799_v46 = vld [vmem:[%s7307_s22 + $0x60] sm:$0xff]  ;;  %v800_v47 = vld [vmem:[%s7307_s22 + $0x68] sm:$0xff] }
  0x1d   : > { %v801_v48 = vld [vmem:[%s7307_s22 + $0x70] sm:$0xff]  ;;  %871 = vst.msk [vmem:[#allocation2 + $0x48] sm:$0xff] %vm773_vm0, %v835_v37  ;;  %872 = vst.msk [vmem:[#allocation2 + $0x50] sm:$0xff] %vm773_vm0, %v836_v38  ;;  %v841_v49 = vmul.f32 %v7311_v17, %v799_v46  ;;  %v842_v50 = vmul.f32 %v7311_v17, %v800_v47  ;;  %v802_v51 = vld [vmem:[%s7307_s22 + $0x78] sm:$0xff] }
  0x1e   : > { %873 = vst.msk [vmem:[#allocation2 + $0x58] sm:$0xff] %vm773_vm0, %v837_v40  ;;  %v843_v52 = vmul.f32 %v7311_v17, %v801_v48  ;;  %v803_v53 = vld [vmem:[%s7307_s22 + $0x80] sm:$0xff]  ;;  %v804_v54 = vld [vmem:[%s7307_s22 + $0x88] sm:$0xff]  ;;  %874 = vst.msk [vmem:[#allocation2 + $0x60] sm:$0xff] %vm773_vm0, %v838_v43  ;;  %v844_v55 = vmul.f32 %v7311_v17, %v802_v51 }
  0x1f   : > { %875 = vst.msk [vmem:[#allocation2 + $0x68] sm:$0xff] %vm773_vm0, %v839_v44  ;;  %876 = vst.msk [vmem:[#allocation2 + $0x70] sm:$0xff] %vm773_vm0, %v840_v45  ;;  %v845_v56 = vmul.f32 %v7311_v17, %v803_v53  ;;  %v846_v57 = vmul.f32 %v7311_v17, %v804_v54  ;;  %v805_v58 = vld [vmem:[%s7307_s22 + $0x90] sm:$0xff]  ;;  %v806_v59 = vld [vmem:[%s7307_s22 + $0x98] sm:$0xff] }
  0x20   : > { %470 = vperm.xlu1 %5729, %v403_v15   ;;  %465 = vperm.xlu0 %5728, %v402_v16   ;;  %v807_v60 = vld [vmem:[%s7307_s22 + $0xa0] sm:$0xff]  ;;  %v409_v61 = vld [vmem:[%s7281_s13 + $0x68] sm:$0xff]  ;;  %877 = vst.msk [vmem:[#allocation2 + $0x78] sm:$0xff] %vm773_vm0, %v841_v49  ;;  %878 = vst.msk [vmem:[#allocation2 + $0x80] sm:$0xff] %vm773_vm0, %v842_v50  ;;  %v847_v63 = vmul.f32 %v7311_v17, %v805_v58  ;;  %v848_v0 = vmul.f32 %v7311_v17, %v806_v59 }
  0x21   : > { %v408_v62 = vld [vmem:[%s7281_s13 + $0x60] sm:$0xff]  ;;  %879 = vst.msk [vmem:[#allocation2 + $0x88] sm:$0xff] %vm773_vm0, %v843_v52  ;;  %v808_v1 = vld [vmem:[%s7307_s22 + $0xa8] sm:$0xff]  ;;  %v849_v4 = vmul.f32 %v7311_v17, %v807_v60  ;;  %v809_v7 = vld [vmem:[%s7307_s22 + $0xb0] sm:$0xff] }
  0x22   : > { %v810_v8 = vld [vmem:[%s7307_s22 + $0xb8] sm:$0xff]  ;;  %880 = vst.msk [vmem:[#allocation2 + $0x90] sm:$0xff] %vm773_vm0, %v844_v55  ;;  %881 = vst.msk [vmem:[#allocation2 + $0x98] sm:$0xff] %vm773_vm0, %v845_v56  ;;  %v850_v9 = vmul.f32 %v7311_v17, %v808_v1  ;;  %v851_v11 = vmul.f32 %v7311_v17, %v809_v7  ;;  %v811_v13 = vld [vmem:[%s7307_s22 + $0xc0] sm:$0xff] }
  0x23   : > { %882 = vst.msk [vmem:[#allocation2 + $0xa0] sm:$0xff] %vm773_vm0, %v846_v57  ;;  %v852_v12 = vmul.f32 %v7311_v17, %v810_v8  ;;  %v812_v14 = vld [vmem:[%s7307_s22 + $0xc8] sm:$0xff]  ;;  %v813_v15 = vld [vmem:[%s7307_s22 + $0xd0] sm:$0xff]  ;;  %883 = vst.msk [vmem:[#allocation2 + $0xa8] sm:$0xff] %vm773_vm0, %v847_v63  ;;  %v853_v16 = vmul.f32 %v7311_v17, %v811_v13 }
  0x24   : > { %480 = vperm.xlu1 %5729, %v405_v18   ;;  %475 = vperm.xlu0 %5728, %v404_v19   ;;  %884 = vst.msk [vmem:[#allocation2 + $0xb0] sm:$0xff] %vm773_vm0, %v848_v0  ;;  %885 = vst.msk [vmem:[#allocation2 + $0xb8] sm:$0xff] %vm773_vm0, %v849_v4  ;;  %v854_v18 = vmul.f32 %v7311_v17, %v812_v14  ;;  %v814_v19 = vld [vmem:[%s7307_s22 + $0xd8] sm:$0xff]  ;;  %v855_v20 = vmul.f32 %v7311_v17, %v813_v15  ;;  %v815_v21 = vld [vmem:[%s7307_s22 + $0xe0] sm:$0xff] }
  0x25   : > { %v816_v22 = vld [vmem:[%s7307_s22 + $0xe8] sm:$0xff]  ;;  %886 = vst.msk [vmem:[#allocation2 + $0xc0] sm:$0xff] %vm773_vm0, %v850_v9  ;;  %887 = vst.msk [vmem:[#allocation2 + $0xc8] sm:$0xff] %vm773_vm0, %v851_v11  ;;  %v856_v23 = vmul.f32 %v7311_v17, %v814_v19  ;;  %v857_v24 = vmul.f32 %v7311_v17, %v815_v21  ;;  %v411_v26 = vld [vmem:[%s7281_s13 + $0x78] sm:$0xff] }
  0x26   : > { %888 = vst.msk [vmem:[#allocation2 + $0xd0] sm:$0xff] %vm773_vm0, %v852_v12  ;;  %v858_v25 = vmul.f32 %v7311_v17, %v816_v22  ;;  %889 = vst.msk [vmem:[#allocation2 + $0xd8] sm:$0xff] %vm773_vm0, %v853_v16  ;;  %v410_v27 = vld [vmem:[%s7281_s13 + $0x70] sm:$0xff]  ;;  %v413_v28 = vld [vmem:[%s7281_s13 + $0x88] sm:$0xff] }
  0x27   : > { %890 = vst.msk [vmem:[#allocation2 + $0xe0] sm:$0xff] %vm773_vm0, %v854_v18  ;;  %891 = vst.msk [vmem:[#allocation2 + $0xe8] sm:$0xff] %vm773_vm0, %v855_v20  ;;  %v412_v29 = vld [vmem:[%s7281_s13 + $0x80] sm:$0xff]  ;;  %v817_v30 = vld [vmem:[%s7307_s22 + $0xf0] sm:$0xff] }
  0x28   : > { %490 = vperm.xlu1 %5729, %v407_v35   ;;  %485 = vperm.xlu0 %5728, %v406_v36   ;;  %892 = vst.msk [vmem:[#allocation2 + $0xf0] sm:$0xff] %vm773_vm0, %v856_v23  ;;  %893 = vst.msk [vmem:[#allocation2 + $0xf8] sm:$0xff] %vm773_vm0, %v857_v24  ;;  %v818_v31 = vld [vmem:[%s7307_s22 + $0xf8] sm:$0xff]  ;;  %v819_v32 = vld [vmem:[%s7307_s22 + $0x100] sm:$0xff]  ;;  %v859_v35 = vmul.f32 %v7311_v17, %v817_v30 }
  0x29   : > { %894 = vst.msk [vmem:[#allocation2 + $0x100] sm:$0xff] %vm773_vm0, %v858_v25  ;;  %v415_v33 = vld [vmem:[%s7281_s13 + $0x98] sm:$0xff]  ;;  %v414_v34 = vld [vmem:[%s7281_s13 + $0x90] sm:$0xff]  ;;  %v860_v36 = vmul.f32 %v7311_v17, %v818_v31  ;;  %v820_v37 = vld [vmem:[%s7307_s22 + $0x108] sm:$0xff]  ;;  %v861_v38 = vmul.f32 %v7311_v17, %v819_v32 }
  0x2a   : > { %v862_v39 = vmul.f32 %v7311_v17, %v820_v37  ;;  %895 = vst.msk [vmem:[#allocation2 + $0x108] sm:$0xff] %vm773_vm0, %v859_v35  ;;  %v417_v40 = vld [vmem:[%s7281_s13 + $0xa8] sm:$0xff]  ;;  %v416_v41 = vld [vmem:[%s7281_s13 + $0xa0] sm:$0xff]  ;;  %v419_v42 = vld [vmem:[%s7281_s13 + $0xb8] sm:$0xff] }
  0x2b   : > { %896 = vst.msk [vmem:[#allocation2 + $0x110] sm:$0xff] %vm773_vm0, %v860_v36  ;;  %897 = vst.msk [vmem:[#allocation2 + $0x118] sm:$0xff] %vm773_vm0, %v861_v38  ;;  %v418_v43 = vld [vmem:[%s7281_s13 + $0xb0] sm:$0xff]  ;;  %v421_v44 = vld [vmem:[%s7281_s13 + $0xc8] sm:$0xff] }
  0x2c   : > { %500 = vperm.xlu1 %5729, %v409_v61   ;;  %495 = vperm.xlu0 %5728, %v408_v62   ;;  %898 = vst.msk [vmem:[#allocation2 + $0x120] sm:$0xff] %vm773_vm0, %v862_v39  ;;  %v420_v45 = vld [vmem:[%s7281_s13 + $0xc0] sm:$0xff]  ;;  %v821_v46 = vld [vmem:[%s7307_s22 + $0x110] sm:$0xff]  ;;  %v822_v47 = vld [vmem:[%s7307_s22 + $0x118] sm:$0xff]  ;;  %s7199_s22 = smov 48  }
  0x2d   : > { %v863_v48 = vmul.f32 %v7311_v17, %v821_v46  ;;  %v864_v49 = vmul.f32 %v7311_v17, %v822_v47  ;;  %v423_v50 = vld [vmem:[%s7281_s13 + $0xd8] sm:$0xff]  ;;  %v422_v51 = vld [vmem:[%s7281_s13 + $0xd0] sm:$0xff]  ;;  %v425_v52 = vld [vmem:[%s7281_s13 + $0xe8] sm:$0xff]  ;;  %v735_v17 = vsub.s32 3, %v7267_v3 }
  0x2e   : > { %v424_v53 = vld [vmem:[%s7281_s13 + $0xe0] sm:$0xff]  ;;  %v427_v54 = vld [vmem:[%s7281_s13 + $0xf8] sm:$0xff]  ;;  %v426_v55 = vld [vmem:[%s7281_s13 + $0xf0] sm:$0xff] }
  0x2f   : > { %899 = vst.msk [vmem:[#allocation2 + $0x128] sm:$0xff] %vm773_vm0, %v863_v48  ;;  %900 = vst.msk [vmem:[#allocation2 + $0x130] sm:$0xff] %vm773_vm0, %v864_v49  ;;  %v7447_v56 = vrot.slane %v7275_v5, %v735_v17  ;;  %v429_v57 = vld [vmem:[%s7281_s13 + $0x108] sm:$0xff]  ;;  %v428_v58 = vld [vmem:[%s7281_s13 + $0x100] sm:$0xff] }
  0x30   : > { %510 = vperm.xlu1 %5729, %v411_v26   ;;  %505 = vperm.xlu0 %5728, %v410_v27   ;;  %v431_v59 = vld [vmem:[%s7281_s13 + $0x118] sm:$0xff]  ;;  %v430_v60 = vld [vmem:[%s7281_s13 + $0x110] sm:$0xff]  ;;  %v937_v61 = vld [vmem:[#allocation2 + $0x6] sm:$0xff] }
  0x31   : > { %10805 = vst [vmem:[#allocation7_spill] sm:$0xff] %v7447_v56  ;;  %v938_v62 = vld [vmem:[#allocation2 + $0xe] sm:$0xff]  ;;  %v939_v63 = vld [vmem:[#allocation2 + $0x16] sm:$0xff]  ;;  %v940_v0 = vld [vmem:[#allocation2 + $0x1e] sm:$0xff] }
  0x32   : > { %v5730_v1 = vpack.i.bf16 %v938_v62, %v937_v61  ;;  %v5735_v4 = vpack.i.bf16 %v940_v0, %v939_v63  ;;  %v941_v7 = vld [vmem:[#allocation2 + $0x26] sm:$0xff]  ;;  %v942_v8 = vld [vmem:[#allocation2 + $0x2e] sm:$0xff]  ;;  %v943_v9 = vld [vmem:[#allocation2 + $0x36] sm:$0xff] }
  0x33   : > { %v944_v11 = vld [vmem:[#allocation2 + $0x3e] sm:$0xff]  ;;  %v5740_v5 = vpack.i.bf16 %v942_v8, %v941_v7  ;;  %v945_v13 = vld [vmem:[#allocation2 + $0x46] sm:$0xff]  ;;  %v946_v14 = vld [vmem:[#allocation2 + $0x4e] sm:$0xff] }
  0x34   : > { %520 = vperm.xlu1 %5729, %v413_v28   ;;  %515 = vperm.xlu0 %5728, %v412_v29   ;;  %v5745_v12 = vpack.i.bf16 %v944_v11, %v943_v9  ;;  %v947_v15 = vld [vmem:[#allocation2 + $0x56] sm:$0xff]  ;;  %v948_v16 = vld [vmem:[#allocation2 + $0x5e] sm:$0xff]  ;;  %v5750_v18 = vpack.i.bf16 %v946_v14, %v945_v13  ;;  %v949_v20 = vld [vmem:[#allocation2 + $0x66] sm:$0xff] }
  0x35   : > { %v5755_v19 = vpack.i.bf16 %v948_v16, %v947_v15  ;;  %v950_v21 = vld [vmem:[#allocation2 + $0x6e] sm:$0xff]  ;;  %v951_v22 = vld [vmem:[#allocation2 + $0x76] sm:$0xff]  ;;  %v952_v23 = vld [vmem:[#allocation2 + $0x7e] sm:$0xff] }
  0x36   : > { %v5760_v24 = vpack.i.bf16 %v950_v21, %v949_v20  ;;  %v5765_v25 = vpack.i.bf16 %v952_v23, %v951_v22  ;;  %v953_v26 = vld [vmem:[#allocation2 + $0x86] sm:$0xff]  ;;  %v954_v27 = vld [vmem:[#allocation2 + $0x8e] sm:$0xff]  ;;  %v955_v28 = vld [vmem:[#allocation2 + $0x96] sm:$0xff] }
  0x37   : > { %v956_v29 = vld [vmem:[#allocation2 + $0x9e] sm:$0xff]  ;;  %v5770_v30 = vpack.i.bf16 %v954_v27, %v953_v26  ;;  %v957_v32 = vld [vmem:[#allocation2 + $0xa6] sm:$0xff]  ;;  %v962_v39 = vld [vmem:[#allocation2 + $0xce] sm:$0xff] }
  0x38   : > { %530 = vperm.xlu1 %5729, %v415_v33   ;;  %525 = vperm.xlu0 %5728, %v414_v34   ;;  %v5775_v31 = vpack.i.bf16 %v956_v29, %v955_v28  ;;  %v958_v33 = vld [vmem:[#allocation2 + $0xae] sm:$0xff]  ;;  %v959_v34 = vld [vmem:[#allocation2 + $0xb6] sm:$0xff]  ;;  %v960_v35 = vld [vmem:[#allocation2 + $0xbe] sm:$0xff] }
  0x39   : > { %v5780_v36 = vpack.i.bf16 %v958_v33, %v957_v32  ;;  %v5785_v37 = vpack.i.bf16 %v960_v35, %v959_v34  ;;  %v961_v38 = vld [vmem:[#allocation2 + $0xc6] sm:$0xff]  ;;  %v967_v46 = vld [vmem:[#allocation2 + $0xf6] sm:$0xff]  ;;  %v968_v47 = vld [vmem:[#allocation2 + $0xfe] sm:$0xff] }
  0x3a   : > { %v5805_v49 = vpack.i.bf16 %v968_v47, %v967_v46  ;;  %v973_v17 = vld [vmem:[#allocation2 + $0x7] sm:$0xff]  ;;  %v978_v63 = vld [vmem:[#allocation2 + $0x2f] sm:$0xff]  ;;  %v979_v0 = vld [vmem:[#allocation2 + $0x37] sm:$0xff] }
  0x3b   : > { %v977_v62 = vld [vmem:[#allocation2 + $0x27] sm:$0xff]  ;;  %v982_v9 = vld [vmem:[#allocation2 + $0x4f] sm:$0xff]  ;;  %v983_v11 = vld [vmem:[#allocation2 + $0x57] sm:$0xff] }
  0x3c   : > { %540 = vperm.xlu1 %5729, %v417_v40   ;;  %535 = vperm.xlu0 %5728, %v416_v41   ;;  %v963_v40 = vld [vmem:[#allocation2 + $0xd6] sm:$0xff]  ;;  %v964_v41 = vld [vmem:[#allocation2 + $0xde] sm:$0xff]  ;;  %v981_v8 = vld [vmem:[#allocation2 + $0x47] sm:$0xff] }
  0x3d   : > { %v7496_v2 = vpack.i.bf16 %v982_v9, %v981_v8  ;;  %v985_v13 = vld [vmem:[#allocation2 + $0x67] sm:$0xff]  ;;  %v986_v14 = vld [vmem:[#allocation2 + $0x6f] sm:$0xff]  ;;  %v987_v15 = vld [vmem:[#allocation2 + $0x77] sm:$0xff] }
  0x3e   : > { %v988_v16 = vld [vmem:[#allocation2 + $0x7f] sm:$0xff]  ;;  %v989_v20 = vld [vmem:[#allocation2 + $0x87] sm:$0xff]  ;;  %v990_v21 = vld [vmem:[#allocation2 + $0x8f] sm:$0xff] }
  0x3f   : > { %v991_v22 = vld [vmem:[#allocation2 + $0x97] sm:$0xff]  ;;  %v992_v23 = vld [vmem:[#allocation2 + $0x9f] sm:$0xff]  ;;  %v993_v26 = vld [vmem:[#allocation2 + $0xa7] sm:$0xff] }
  0x40   : > { %550 = vperm.xlu1 %5729, %v419_v42   ;;  %545 = vperm.xlu0 %5728, %v418_v43   ;;  %v5790_v42 = vpack.i.bf16 %v962_v39, %v961_v38  ;;  %v5795_v43 = vpack.i.bf16 %v964_v41, %v963_v40  ;;  %v994_v27 = vld [vmem:[#allocation2 + $0xaf] sm:$0xff]  ;;  %v995_v28 = vld [vmem:[#allocation2 + $0xb7] sm:$0xff]  ;;  %v996_v29 = vld [vmem:[#allocation2 + $0xbf] sm:$0xff] }
  0x41   : > { %v997_v32 = vld [vmem:[#allocation2 + $0xc7] sm:$0xff]  ;;  %v998_v33 = vld [vmem:[#allocation2 + $0xcf] sm:$0xff]  ;;  %v999_v34 = vld [vmem:[#allocation2 + $0xd7] sm:$0xff] }
  0x42   : > { %v1000_v35 = vld [vmem:[#allocation2 + $0xdf] sm:$0xff]  ;;  %v5880_v38 = vpack.i.bf16 %v998_v33, %v997_v32  ;;  %v1001_v40 = vld [vmem:[#allocation2 + $0xe7] sm:$0xff]  ;;  %v1002_v41 = vld [vmem:[#allocation2 + $0xef] sm:$0xff] }
  0x43   : > { %v5885_v39 = vpack.i.bf16 %v1000_v35, %v999_v34  ;;  %v5890_v46 = vpack.i.bf16 %v1002_v41, %v1001_v40  ;;  %v1019_v33 = vld [vmem:[#allocation2 + $0x58] sm:$0xff]  ;;  %v1020_v34 = vld [vmem:[#allocation2 + $0x60] sm:$0xff]  ;;  %v1021_v35 = vld [vmem:[#allocation2 + $0x68] sm:$0xff] }
  0x44   : > { %560 = vperm.xlu1 %5729, %v421_v44   ;;  %555 = vperm.xlu0 %5728, %v420_v45   ;;  %v965_v44 = vld [vmem:[#allocation2 + $0xe6] sm:$0xff]  ;;  %v966_v45 = vld [vmem:[#allocation2 + $0xee] sm:$0xff]  ;;  %v6020_v41 = vpack.i.bf16 %v1020_v34, %v1019_v33  ;;  %v1035_v33 = vld [vmem:[#allocation2 + $0xd8] sm:$0xff] }
  0x45   : > { %v5800_v48 = vpack.i.bf16 %v966_v45, %v965_v44  ;;  %v1036_v34 = vld [vmem:[#allocation2 + $0xe0] sm:$0xff] }
  0x48   : > { %570 = vperm.xlu1 %5729, %v423_v50   ;;  %565 = vperm.xlu0 %5728, %v422_v51   ;;  %v969_v50 = vld [vmem:[#allocation2 + $0x106] sm:$0xff]  ;;  %v970_v51 = vld [vmem:[#allocation2 + $0x10e] sm:$0xff] }
  0x4c   : > { %580 = vperm.xlu1 %5729, %v425_v52   ;;  %575 = vperm.xlu0 %5728, %v424_v53   ;;  %v971_v52 = vld [vmem:[#allocation2 + $0x116] sm:$0xff]  ;;  %v972_v53 = vld [vmem:[#allocation2 + $0x11e] sm:$0xff] }
  0x50   : > { %590 = vperm.xlu1 %5729, %v427_v54   ;;  %585 = vperm.xlu0 %5728, %v426_v55   ;;  %v5810_v54 = vpack.i.bf16 %v970_v51, %v969_v50  ;;  %v5815_v55 = vpack.i.bf16 %v972_v53, %v971_v52  ;;  %v1007_v50 = vld [vmem:[#allocation2 + $0x117] sm:$0xff]  ;;  %v1008_v51 = vld [vmem:[#allocation2 + $0x11f] sm:$0xff] }
  0x54   : > { %600 = vperm.xlu1 %5729, %v429_v57   ;;  %595 = vperm.xlu0 %5728, %v428_v58   ;;  %v974_v57 = vld [vmem:[#allocation2 + $0xf] sm:$0xff]  ;;  %v975_v58 = vld [vmem:[#allocation2 + $0x17] sm:$0xff] }
  0x58   : > { %610 = vperm.xlu1 %5729, %v431_v59   ;;  %605 = vperm.xlu0 %5728, %v430_v60   ;;  %v976_v59 = vld [vmem:[#allocation2 + $0x1f] sm:$0xff]  ;;  %v5820_v60 = vpack.i.bf16 %v974_v57, %v973_v17 }
  0x59   : > { %v7471_v61 = vpack.i.bf16 %v976_v59, %v975_v58 }
  0x5c   : > { %5731 = vrot.lane.b32.xlu0 %v5730_v1, %s7190_s23  ;;  %5736 = vrot.lane.b32.xlu1 %v5735_v4, %s7190_s23  ;;  %v980_v1 = vld [vmem:[#allocation2 + $0x3f] sm:$0xff]  ;;  %v7488_v4 = vpack.i.bf16 %v978_v63, %v977_v62 }
  0x5d   : > { %v7490_v7 = vpack.i.bf16 %v980_v1, %v979_v0 }
  0x60   : > { %5741 = vrot.lane.b32.xlu0 %v5740_v5, %s7190_s23  ;;  %5746 = vrot.lane.b32.xlu1 %v5745_v12, %s7190_s23  ;;  %v984_v5 = vld [vmem:[#allocation2 + $0x5f] sm:$0xff] }
  0x61   : > { %v7498_v12 = vpack.i.bf16 %v984_v5, %v983_v11 }
  0x64   : > { %5751 = vrot.lane.b32.xlu0 %v5750_v18, %s7190_s23  ;;  %5756 = vrot.lane.b32.xlu1 %v5755_v19, %s7190_s23  ;;  %v7504_v18 = vpack.i.bf16 %v986_v14, %v985_v13  ;;  %v7506_v19 = vpack.i.bf16 %v988_v16, %v987_v15  ;;  %v1011_v16 = vld [vmem:[#allocation2 + $0x18] sm:$0xff] }
  0x68   : > { %5761 = vrot.lane.b32.xlu0 %v5760_v24, %s7190_s23  ;;  %5766 = vrot.lane.b32.xlu1 %v5765_v25, %s7190_s23  ;;  %v5860_v24 = vpack.i.bf16 %v990_v21, %v989_v20  ;;  %v5865_v25 = vpack.i.bf16 %v992_v23, %v991_v22  ;;  %v1014_v20 = vld [vmem:[#allocation2 + $0x30] sm:$0xff] }
  0x6c   : > { %5771 = vrot.lane.b32.xlu0 %v5770_v30, %s7190_s23  ;;  %5776 = vrot.lane.b32.xlu1 %v5775_v31, %s7190_s23  ;;  %v5870_v30 = vpack.i.bf16 %v994_v27, %v993_v26  ;;  %v5875_v31 = vpack.i.bf16 %v996_v29, %v995_v28  ;;  %v1016_v26 = vld [vmem:[#allocation2 + $0x40] sm:$0xff]  ;;  %v1017_v27 = vld [vmem:[#allocation2 + $0x48] sm:$0xff]  ;;  %v1018_v28 = vld [vmem:[#allocation2 + $0x50] sm:$0xff] }
  0x6d   : > { %v6015_v32 = vpack.i.bf16 %v1018_v28, %v1017_v27 }
  0x70   : > { %5781 = vrot.lane.b32.xlu0 %v5780_v36, %s7190_s23  ;;  %5786 = vrot.lane.b32.xlu1 %v5785_v37, %s7190_s23 }
  0x74   : > { %5791 = vrot.lane.b32.xlu0 %v5790_v42, %s7190_s23  ;;  %5796 = vrot.lane.b32.xlu1 %v5795_v43, %s7190_s23  ;;  %v1003_v42 = vld [vmem:[#allocation2 + $0xf7] sm:$0xff]  ;;  %v1004_v43 = vld [vmem:[#allocation2 + $0xff] sm:$0xff] }
  0x75   : > { %v5895_v47 = vpack.i.bf16 %v1004_v43, %v1003_v42  ;;  %v1023_v43 = vld [vmem:[#allocation2 + $0x78] sm:$0xff] }
  0x78   : > { %5801 = vrot.lane.b32.xlu0 %v5800_v48, %s7190_s23  ;;  %5806 = vrot.lane.b32.xlu1 %v5805_v49, %s7190_s23  ;;  %v1005_v48 = vld [vmem:[#allocation2 + $0x107] sm:$0xff]  ;;  %v1006_v49 = vld [vmem:[#allocation2 + $0x10f] sm:$0xff] }
  0x7c   : > { %5811 = vrot.lane.b32.xlu0 %v5810_v54, %s7190_s23  ;;  %5816 = vrot.lane.b32.xlu1 %v5815_v55, %s7190_s23  ;;  %v5900_v54 = vpack.i.bf16 %v1006_v49, %v1005_v48  ;;  %v5905_v55 = vpack.i.bf16 %v1008_v51, %v1007_v50  ;;  %v1026_v48 = vld [vmem:[#allocation2 + $0x90] sm:$0xff] }
  0x80   : > { %5821 = vrot.lane.b32.xlu0 %v5820_v60, %s7191_s24  ;;  %5826 = vrot.lane.b32.xlu1 %v7471_v61, %s7191_s24 }
  0x84   : > { %5831 = vrot.lane.b32.xlu0 %v7488_v4, %s7191_s24  ;;  %5836 = vrot.lane.b32.xlu1 %v7490_v7, %s7191_s24 }
  0x88   : > { %5841 = vrot.lane.b32.xlu0 %v7496_v2, %s7191_s24  ;;  %5846 = vrot.lane.b32.xlu1 %v7498_v12, %s7191_s24 }
  0x8c   : > { %5851 = vrot.lane.b32.xlu0 %v7504_v18, %s7191_s24  ;;  %5856 = vrot.lane.b32.xlu1 %v7506_v19, %s7191_s24 }
  0x90   : > { %5861 = vrot.lane.b32.xlu0 %v5860_v24, %s7191_s24  ;;  %5866 = vrot.lane.b32.xlu1 %v5865_v25, %s7191_s24 }
  0x93   : > { %v7514_v36 = vpop.permute.xlu1 %445  ;;  %v7516_v37 = vpop.permute.xlu0 %435 }
  0x94   : > { %10806 = vst [vmem:[#allocation8_spill] sm:$0xff] %v7514_v36  ;;  %10807 = vst [vmem:[#allocation9_spill] sm:$0xff] %v7516_v37  ;;  %5871 = vrot.lane.b32.xlu0 %v5870_v30, %s7191_s24  ;;  %5876 = vrot.lane.b32.xlu1 %v5875_v31, %s7191_s24  ;;  %v1097_v36 = vld [vmem:[#allocation2 + $0x8a] sm:$0xff] }
  0x97   : > { %v7520_v44 = vpop.permute.xlu1 %450  ;;  %v7522_v45 = vpop.permute.xlu0 %440 }
  0x98   : > { %10808 = vst [vmem:[#allocation10_spill] sm:$0xff] %v7520_v44  ;;  %10809 = vst [vmem:[#allocation11_spill] sm:$0xff] %v7522_v45  ;;  %5881 = vrot.lane.b32.xlu0 %v5880_v38, %s7191_s24  ;;  %5886 = vrot.lane.b32.xlu1 %v5885_v39, %s7191_s24 }
  0x9b   : > { %v7526_v52 = vpop.permute.xlu1 %460  ;;  %v7528_v53 = vpop.permute.xlu0 %455 }
  0x9c   : > { %10810 = vst [vmem:[#allocation12_spill] sm:$0xff] %v7526_v52  ;;  %10811 = vst [vmem:[#allocation13_spill] sm:$0xff] %v7528_v53  ;;  %5891 = vrot.lane.b32.xlu0 %v5890_v46, %s7191_s24  ;;  %5896 = vrot.lane.b32.xlu1 %v5895_v47, %s7191_s24  ;;  %v1090_v52 = vld [vmem:[#allocation2 + $0x52] sm:$0xff]  ;;  %v1092_v53 = vld [vmem:[#allocation2 + $0x62] sm:$0xff] }
  0x9f   : > { %v7532_v17 = vpop.permute.xlu1 %470  ;;  %v7534_v57 = vpop.permute.xlu0 %465 }
  0xa0   : > { %10812 = vst [vmem:[#allocation14_spill] sm:$0xff] %v7532_v17  ;;  %10813 = vst [vmem:[#allocation15_spill] sm:$0xff] %v7534_v57  ;;  %5901 = vrot.lane.b32.xlu0 %v5900_v54, %s7191_s24  ;;  %5906 = vrot.lane.b32.xlu1 %v5905_v55, %s7191_s24  ;;  %v1089_v57 = vld [vmem:[#allocation2 + $0x4a] sm:$0xff] }
  0xa3   : > { %v7538_v58 = vpop.permute.xlu1 %480  ;;  %v7540_v59 = vpop.permute.xlu0 %475 }
  0xa4   : > { %10814 = vst [vmem:[#allocation16_spill] sm:$0xff] %v7538_v58  ;;  %10815 = vst [vmem:[#allocation17_spill] sm:$0xff] %v7540_v59  ;;  %5911 = vrot.lane.b32.xlu0 %v7471_v61, %s7192_s25  ;;  %5916 = vrot.lane.b32.xlu1 %v7488_v4, %s7192_s25  ;;  %v1088_v58 = vld [vmem:[#allocation2 + $0x42] sm:$0xff] }
  0xa7   : > { %v7546_v60 = vpop.permute.xlu1 %490  ;;  %v7548_v62 = vpop.permute.xlu0 %485 }
  0xa8   : > { %10816 = vst [vmem:[#allocation18_spill] sm:$0xff] %v7546_v60  ;;  %10817 = vst [vmem:[#allocation19_spill] sm:$0xff] %v7548_v62  ;;  %5921 = vrot.lane.b32.xlu0 %v7490_v7, %s7192_s25  ;;  %5926 = vrot.lane.b32.xlu1 %v7496_v2, %s7192_s25  ;;  %v1009_v2 = vld [vmem:[#allocation2 + $0x127] sm:$0xff]  ;;  %v1086_v62 = vld [vmem:[#allocation2 + $0x32] sm:$0xff] }
  0xa9   : > { %v1087_v60 = vld [vmem:[#allocation2 + $0x3a] sm:$0xff] }
  0xaa   : > { %v6275_v17 = vpack.i.bf16 %v1088_v58, %v1087_v60 }
  0xab   : > { %v7554_v63 = vpop.permute.xlu1 %500  ;;  %v7556_v0 = vpop.permute.xlu0 %495 }
  0xac   : > { %10818 = vst [vmem:[#allocation20_spill] sm:$0xff] %v7554_v63  ;;  %10819 = vst [vmem:[#allocation21_spill] sm:$0xff] %v7556_v0  ;;  %5931 = vrot.lane.b32.xlu0 %v7498_v12, %s7192_s25  ;;  %5936 = vrot.lane.b32.xlu1 %v7504_v18, %s7192_s25  ;;  %v1010_v12 = vld [vmem:[#allocation2 + $0x12f] sm:$0xff]  ;;  %v1012_v18 = vld [vmem:[#allocation2 + $0x20] sm:$0xff] }
  0xad   : > { %v5995_v15 = vpack.i.bf16 %v1010_v12, %v1009_v2  ;;  %v6000_v23 = vpack.i.bf16 %v1012_v18, %v1011_v16  ;;  %v1028_v2 = vld [vmem:[#allocation2 + $0xa0] sm:$0xff]  ;;  %v1029_v12 = vld [vmem:[#allocation2 + $0xa8] sm:$0xff] }
  0xaf   : > { %v7562_v61 = vpop.permute.xlu1 %510  ;;  %v7564_v1 = vpop.permute.xlu0 %505 }
  0xb0   : > { %10820 = vst [vmem:[#allocation22_spill] sm:$0xff] %v7562_v61  ;;  %10821 = vst [vmem:[#allocation23_spill] sm:$0xff] %v7564_v1  ;;  %5941 = vrot.lane.b32.xlu0 %v7506_v19, %s7192_s25  ;;  %5946 = vrot.lane.b32.xlu1 %v5860_v24, %s7192_s25  ;;  %v1013_v19 = vld [vmem:[#allocation2 + $0x28] sm:$0xff] }
  0xb1   : > { %v6005_v24 = vpack.i.bf16 %v1014_v20, %v1013_v19 }
  0xb3   : > { %v7569_v4 = vpop.permute.xlu1 %520  ;;  %v7571_v7 = vpop.permute.xlu0 %515 }
  0xb4   : > { %10822 = vst [vmem:[#allocation24_spill] sm:$0xff] %v7569_v4  ;;  %10823 = vst [vmem:[#allocation25_spill] sm:$0xff] %v7571_v7  ;;  %5951 = vrot.lane.b32.xlu0 %v5865_v25, %s7192_s25  ;;  %5956 = vrot.lane.b32.xlu1 %v5870_v30, %s7192_s25  ;;  %v1015_v25 = vld [vmem:[#allocation2 + $0x38] sm:$0xff]  ;;  %v1080_v4 = vld [vmem:[#allocation2 + $0x121] sm:$0xff] }
  0xb5   : > { %v1079_v7 = vld [vmem:[#allocation2 + $0x119] sm:$0xff] }
  0xb7   : > { %v7575_v8 = vpop.permute.xlu1 %530  ;;  %v7577_v9 = vpop.permute.xlu0 %525 }
  0xb8   : > { %10824 = vst [vmem:[#allocation26_spill] sm:$0xff] %v7575_v8  ;;  %10825 = vst [vmem:[#allocation27_spill] sm:$0xff] %v7577_v9  ;;  %5961 = vrot.lane.b32.xlu0 %v5875_v31, %s7192_s25  ;;  %5966 = vrot.lane.b32.xlu1 %v5880_v38, %s7192_s25  ;;  %v6010_v31 = vpack.i.bf16 %v1016_v26, %v1015_v25  ;;  %v1022_v38 = vld [vmem:[#allocation2 + $0x70] sm:$0xff]  ;;  %v1033_v25 = vld [vmem:[#allocation2 + $0xc8] sm:$0xff] }
  0xb9   : > { %v6025_v42 = vpack.i.bf16 %v1022_v38, %v1021_v35  ;;  %v1034_v26 = vld [vmem:[#allocation2 + $0xd0] sm:$0xff]  ;;  %v1037_v35 = vld [vmem:[#allocation2 + $0xe8] sm:$0xff] }
  0xba   : > { %v1038_v38 = vld [vmem:[#allocation2 + $0xf0] sm:$0xff] }
  0xbb   : > { %v7581_v11 = vpop.permute.xlu1 %540  ;;  %v7583_v5 = vpop.permute.xlu0 %535 }
  0xbc   : > { %10826 = vst [vmem:[#allocation28_spill] sm:$0xff] %v7581_v11  ;;  %10827 = vst [vmem:[#allocation29_spill] sm:$0xff] %v7583_v5  ;;  %5971 = vrot.lane.b32.xlu0 %v5885_v39, %s7192_s25  ;;  %5976 = vrot.lane.b32.xlu1 %v5890_v46, %s7192_s25  ;;  %v1024_v46 = vld [vmem:[#allocation2 + $0x80] sm:$0xff]  ;;  %v1078_v5 = vld [vmem:[#allocation2 + $0x111] sm:$0xff] }
  0xbd   : > { %v6030_v51 = vpack.i.bf16 %v1024_v46, %v1023_v43  ;;  %v6060_v43 = vpack.i.bf16 %v1036_v34, %v1035_v33  ;;  %v6065_v46 = vpack.i.bf16 %v1038_v38, %v1037_v35  ;;  %v1047_v33 = vld [vmem:[#allocation2 + $0x19] sm:$0xff]  ;;  %v1048_v34 = vld [vmem:[#allocation2 + $0x21] sm:$0xff]  ;;  %v1049_v35 = vld [vmem:[#allocation2 + $0x29] sm:$0xff] }
  0xbe   : > { %v1050_v38 = vld [vmem:[#allocation2 + $0x31] sm:$0xff]  ;;  %v1075_v11 = vld [vmem:[#allocation2 + $0xf9] sm:$0xff] }
  0xbf   : > { %v7587_v13 = vpop.permute.xlu1 %550  ;;  %v7589_v14 = vpop.permute.xlu0 %545 }
  0xc0   : > { %10828 = vst [vmem:[#allocation30_spill] sm:$0xff] %v7587_v13  ;;  %10829 = vst [vmem:[#allocation31_spill] sm:$0xff] %v7589_v14  ;;  %5981 = vrot.lane.b32.xlu0 %v5895_v47, %s7192_s25  ;;  %5986 = vrot.lane.b32.xlu1 %v5900_v54, %s7192_s25  ;;  %v1025_v47 = vld [vmem:[#allocation2 + $0x88] sm:$0xff] }
  0xc1   : > { %v6035_v54 = vpack.i.bf16 %v1026_v48, %v1025_v47  ;;  %v1039_v47 = vld [vmem:[#allocation2 + $0xf8] sm:$0xff]  ;;  %v1040_v48 = vld [vmem:[#allocation2 + $0x100] sm:$0xff] }
  0xc3   : > { %v7593_v21 = vpop.permute.xlu1 %560  ;;  %v7595_v22 = vpop.permute.xlu0 %555 }
  0xc4   : > { %10830 = vst [vmem:[#allocation32_spill] sm:$0xff] %v7593_v21  ;;  %10831 = vst [vmem:[#allocation33_spill] sm:$0xff] %v7595_v22  ;;  %5991 = vrot.lane.b32.xlu0 %v5905_v55, %s7192_s25  ;;  %5996 = vrot.lane.b32.xlu1 %v5995_v15, %s7192_s25  ;;  %v1027_v55 = vld [vmem:[#allocation2 + $0x98] sm:$0xff]  ;;  %v1030_v15 = vld [vmem:[#allocation2 + $0xb0] sm:$0xff] }
  0xc5   : > { %v6040_v19 = vpack.i.bf16 %v1028_v2, %v1027_v55  ;;  %v6045_v20 = vpack.i.bf16 %v1030_v15, %v1029_v12  ;;  %v6070_v12 = vpack.i.bf16 %v1040_v48, %v1039_v47  ;;  %v6090_v47 = vpack.i.bf16 %v1048_v34, %v1047_v33  ;;  %v1057_v33 = vld [vmem:[#allocation2 + $0x69] sm:$0xff]  ;;  %v1058_v34 = vld [vmem:[#allocation2 + $0x71] sm:$0xff] }
  0xc6   : > { %v7653_v48 = vpack.i.bf16 %v1050_v38, %v1049_v35  ;;  %v1073_v21 = vld [vmem:[#allocation2 + $0xe9] sm:$0xff] }
  0xc7   : > { %v7599_v29 = vpop.permute.xlu1 %570  ;;  %v7601_v30 = vpop.permute.xlu0 %565 }
  0xc8   : > { %10832 = vst [vmem:[#allocation34_spill] sm:$0xff] %v7599_v29  ;;  %10833 = vst [vmem:[#allocation35_spill] sm:$0xff] %v7601_v30  ;;  %6001 = vrot.lane.b32.xlu0 %v6000_v23, %s7193_s26  ;;  %6006 = vrot.lane.b32.xlu1 %v6005_v24, %s7193_s26  ;;  %v1031_v23 = vld [vmem:[#allocation2 + $0xb8] sm:$0xff]  ;;  %v1032_v24 = vld [vmem:[#allocation2 + $0xc0] sm:$0xff] }
  0xc9   : > { %v1072_v30 = vld [vmem:[#allocation2 + $0xe1] sm:$0xff] }
  0xcb   : > { %v7605_v39 = vpop.permute.xlu1 %580  ;;  %v7607_v40 = vpop.permute.xlu0 %575 }
  0xcc   : > { %10834 = vst [vmem:[#allocation36_spill] sm:$0xff] %v7605_v39  ;;  %10835 = vst [vmem:[#allocation37_spill] sm:$0xff] %v7607_v40  ;;  %6011 = vrot.lane.b32.xlu0 %v6010_v31, %s7193_s26  ;;  %6016 = vrot.lane.b32.xlu1 %v6015_v32, %s7193_s26  ;;  %v6050_v31 = vpack.i.bf16 %v1032_v24, %v1031_v23  ;;  %v6055_v32 = vpack.i.bf16 %v1034_v26, %v1033_v25  ;;  %v1045_v23 = vld [vmem:[#allocation2 + $0x128] sm:$0xff]  ;;  %v1046_v24 = vld [vmem:[#allocation2 + $0x130] sm:$0xff] }
  0xcf   : > { %v7611_v49 = vpop.permute.xlu1 %590  ;;  %v7613_v50 = vpop.permute.xlu0 %585 }
  0xd0   : > { %10836 = vst [vmem:[#allocation38_spill] sm:$0xff] %v7611_v49  ;;  %10837 = vst [vmem:[#allocation39_spill] sm:$0xff] %v7613_v50  ;;  %6021 = vrot.lane.b32.xlu0 %v6020_v41, %s7193_s26  ;;  %6026 = vrot.lane.b32.xlu1 %v6025_v42, %s7193_s26  ;;  %v1070_v50 = vld [vmem:[#allocation2 + $0xd1] sm:$0xff] }
  0xd3   : > { %v7617_v16 = vpop.permute.xlu1 %600  ;;  %v7619_v18 = vpop.permute.xlu0 %595 }
  0xd4   : > { %10838 = vst [vmem:[#allocation40_spill] sm:$0xff] %v7617_v16  ;;  %10839 = vst [vmem:[#allocation41_spill] sm:$0xff] %v7619_v18  ;;  %6031 = vrot.lane.b32.xlu0 %v6030_v51, %s7193_s26  ;;  %6036 = vrot.lane.b32.xlu1 %v6035_v54, %s7193_s26  ;;  %v1041_v51 = vld [vmem:[#allocation2 + $0x108] sm:$0xff]  ;;  %v1042_v54 = vld [vmem:[#allocation2 + $0x110] sm:$0xff] }
  0xd5   : > { %v6075_v15 = vpack.i.bf16 %v1042_v54, %v1041_v51  ;;  %v1051_v51 = vld [vmem:[#allocation2 + $0x39] sm:$0xff]  ;;  %v1052_v54 = vld [vmem:[#allocation2 + $0x41] sm:$0xff] }
  0xd7   : > { %v7623_v27 = vpop.permute.xlu1 %610  ;;  %v7625_v28 = vpop.permute.xlu0 %605 }
  0xd8   : > { %10840 = vst [vmem:[#allocation42_spill] sm:$0xff] %v7623_v27  ;;  %10841 = vst [vmem:[#allocation43_spill] sm:$0xff] %v7625_v28  ;;  %6041 = vrot.lane.b32.xlu0 %v6040_v19, %s7193_s26  ;;  %6046 = vrot.lane.b32.xlu1 %v6045_v20, %s7193_s26  ;;  %v1043_v19 = vld [vmem:[#allocation2 + $0x118] sm:$0xff]  ;;  %v1044_v20 = vld [vmem:[#allocation2 + $0x120] sm:$0xff] }
  0xd9   : > { %v1066_v27 = vld [vmem:[#allocation2 + $0xb1] sm:$0xff] }
  0xdb   : > { %v7629_v41 = vpop.permute.xlu0 %5731  ;;  %v7631_v42 = vpop.permute.xlu1 %5736 }
  0xdc   : > { %6051 = vrot.lane.b32.xlu0 %v6050_v31, %s7193_s26  ;;  %6056 = vrot.lane.b32.xlu1 %v6055_v32, %s7193_s26  ;;  %v6080_v31 = vpack.i.bf16 %v1044_v20, %v1043_v19  ;;  %v6085_v32 = vpack.i.bf16 %v1046_v24, %v1045_v23  ;;  %v7660_v23 = vpack.i.bf16 %v1052_v54, %v1051_v51  ;;  %v1059_v51 = vld [vmem:[#allocation2 + $0x79] sm:$0xff]  ;;  %v1060_v54 = vld [vmem:[#allocation2 + $0x81] sm:$0xff] }
  0xdd   : > { %v7684_v28 = vpack.i.bf16 %v1060_v54, %v1059_v51  ;;  %v1067_v54 = vld [vmem:[#allocation2 + $0xb9] sm:$0xff] }
  0xdf   : > { %v7635_v55 = vpop.permute.xlu0 %5741  ;;  %v7637_v2 = vpop.permute.xlu1 %5746 }
  0xe0   : > { %6061 = vrot.lane.b32.xlu0 %v6060_v43, %s7193_s26  ;;  %6066 = vrot.lane.b32.xlu1 %v6065_v46, %s7193_s26 }
  0xe3   : > { %v7641_v25 = vpop.permute.xlu0 %5751  ;;  %v7643_v26 = vpop.permute.xlu1 %5756 }
  0xe4   : > { %6071 = vrot.lane.b32.xlu0 %v6070_v12, %s7193_s26  ;;  %6076 = vrot.lane.b32.xlu1 %v6075_v15, %s7193_s26  ;;  %v1053_v12 = vld [vmem:[#allocation2 + $0x49] sm:$0xff]  ;;  %v1054_v15 = vld [vmem:[#allocation2 + $0x51] sm:$0xff] }
  0xe5   : > { %v7664_v24 = vpack.i.bf16 %v1054_v15, %v1053_v12  ;;  %v1061_v12 = vld [vmem:[#allocation2 + $0x89] sm:$0xff]  ;;  %v1062_v15 = vld [vmem:[#allocation2 + $0x91] sm:$0xff] }
  0xe7   : > { %v7647_v43 = vpop.permute.xlu0 %5761  ;;  %v7649_v46 = vpop.permute.xlu1 %5766 }
  0xe8   : > { %6081 = vrot.lane.b32.xlu0 %v6080_v31, %s7193_s26  ;;  %6086 = vrot.lane.b32.xlu1 %v6085_v32, %s7193_s26  ;;  %v1055_v31 = vld [vmem:[#allocation2 + $0x59] sm:$0xff]  ;;  %v1056_v32 = vld [vmem:[#allocation2 + $0x61] sm:$0xff] }
  0xe9   : > { %v7672_v10 = vpack.i.bf16 %v1056_v32, %v1055_v31  ;;  %v7688_v31 = vpack.i.bf16 %v1062_v15, %v1061_v12  ;;  %v1063_v32 = vld [vmem:[#allocation2 + $0x99] sm:$0xff]  ;;  %v1068_v12 = vld [vmem:[#allocation2 + $0xc1] sm:$0xff]  ;;  %v1069_v15 = vld [vmem:[#allocation2 + $0xc9] sm:$0xff] }
  0xea   : > { %v6140_v29 = vpack.i.bf16 %v1068_v12, %v1067_v54  ;;  %v1076_v54 = vld [vmem:[#allocation2 + $0x101] sm:$0xff]  ;;  %v1077_v12 = vld [vmem:[#allocation2 + $0x109] sm:$0xff] }
  0xeb   : > { %v7655_v19 = vpop.permute.xlu0 %5771  ;;  %v7657_v20 = vpop.permute.xlu1 %5776  ;;  %v6165_v9 = vpack.i.bf16 %v1078_v5, %v1077_v12 }
  0xec   : > { %6091 = vrot.lane.b32.xlu0 %v6090_v47, %s7194_s28  ;;  %6096 = vrot.lane.b32.xlu1 %v7653_v48, %s7194_s28  ;;  %v7676_v47 = vpack.i.bf16 %v1058_v34, %v1057_v33  ;;  %v1064_v33 = vld [vmem:[#allocation2 + $0xa1] sm:$0xff]  ;;  %v1065_v34 = vld [vmem:[#allocation2 + $0xa9] sm:$0xff] }
  0xed   : > { %v6130_v49 = vpack.i.bf16 %v1064_v33, %v1063_v32  ;;  %v7698_v51 = vpack.i.bf16 %v1066_v27, %v1065_v34  ;;  %v6145_v32 = vpack.i.bf16 %v1070_v50, %v1069_v15  ;;  %v1071_v33 = vld [vmem:[#allocation2 + $0xd9] sm:$0xff]  ;;  %v1074_v27 = vld [vmem:[#allocation2 + $0xf1] sm:$0xff]  ;;  %v6160_v15 = vpack.i.bf16 %v1076_v54, %v1075_v11 }
  0xee   : > { %v6150_v13 = vpack.i.bf16 %v1072_v30, %v1071_v33  ;;  %v6155_v14 = vpack.i.bf16 %v1074_v27, %v1073_v21  ;;  %v1081_v30 = vld [vmem:[#allocation2 + $0x129] sm:$0xff]  ;;  %v1082_v33 = vld [vmem:[#allocation2 + $0x131] sm:$0xff]  ;;  %v6170_v27 = vpack.i.bf16 %v1080_v4, %v1079_v7 }
  0xef   : > { %v7666_v35 = vpop.permute.xlu0 %5781  ;;  %v7668_v38 = vpop.permute.xlu1 %5786  ;;  %v6175_v61 = vpack.i.bf16 %v1082_v33, %v1081_v30  ;;  %v1083_v33 = vld [vmem:[#allocation2 + $0x139] sm:$0xff] }
  0xf0   : > { %6101 = vrot.lane.b32.xlu0 %v7660_v23, %s7194_s28  ;;  %6106 = vrot.lane.b32.xlu1 %v7664_v24, %s7194_s28 }
  0xf3   : > { %v7678_v56 = vpop.permute.xlu0 %5791  ;;  %v7680_v6 = vpop.permute.xlu1 %5796 }
  0xf4   : > { %6111 = vrot.lane.b32.xlu0 %v7672_v10, %s7194_s28  ;;  %6116 = vrot.lane.b32.xlu1 %v7676_v47, %s7194_s28 }
  0xf7   : > { %v7690_v16 = vpop.permute.xlu0 %5801  ;;  %v7692_v18 = vpop.permute.xlu1 %5806 }
  0xf8   : > { %6121 = vrot.lane.b32.xlu0 %v7684_v28, %s7194_s28  ;;  %6126 = vrot.lane.b32.xlu1 %v7688_v31, %s7194_s28 }
  0xfb   : > { %v7700_v39 = vpop.permute.xlu0 %5811  ;;  %v7702_v40 = vpop.permute.xlu1 %5816 }
  0xfc   : > { %6131 = vrot.lane.b32.xlu0 %v6130_v49, %s7194_s28  ;;  %6136 = vrot.lane.b32.xlu1 %v7698_v51, %s7194_s28 }
  0xff   : > { %v7707_v34 = vpop.permute.xlu0 %5821  ;;  %v7709_v22 = vpop.permute.xlu1 %5826 }
 0x100   : > { %6141 = vrot.lane.b32.xlu0 %v6140_v29, %s7194_s28  ;;  %6146 = vrot.lane.b32.xlu1 %v6145_v32, %s7194_s28 }
 0x103   : > { %v7713_v8 = vpop.permute.xlu0 %5831  ;;  %v7715_v50 = vpop.permute.xlu1 %5836 }
 0x104   : > { %6151 = vrot.lane.b32.xlu0 %v6150_v13, %s7194_s28  ;;  %6156 = vrot.lane.b32.xlu1 %v6155_v14, %s7194_s28 }
 0x107   : > { %v7719_v1 = vpop.permute.xlu0 %5841  ;;  %v7721_v21 = vpop.permute.xlu1 %5846 }
 0x108   : > { %6161 = vrot.lane.b32.xlu0 %v6160_v15, %s7194_s28  ;;  %6166 = vrot.lane.b32.xlu1 %v6165_v9, %s7194_s28 }
 0x10b   : > { %v7725_v0 = vpop.permute.xlu0 %5851  ;;  %v7727_v11 = vpop.permute.xlu1 %5856 }
 0x10c   : > { %6171 = vrot.lane.b32.xlu0 %v6170_v27, %s7194_s28  ;;  %6176 = vrot.lane.b32.xlu1 %v6175_v61, %s7194_s28  ;;  %s7200_s28 = smov 56  }
 0x10f   : > { %v7731_v5 = vpop.permute.xlu0 %5861  ;;  %v7733_v54 = vpop.permute.xlu1 %5866 }
 0x110   : > { %6181 = vrot.lane.b32.xlu0 %v7653_v48, %s7195_s30  ;;  %6186 = vrot.lane.b32.xlu1 %v7660_v23, %s7195_s30 }
 0x113   : > { %v7739_v4 = vpop.permute.xlu0 %5871  ;;  %v7741_v7 = vpop.permute.xlu1 %5876 }
 0x114   : > { %10842 = vst [vmem:[#allocation44_spill] sm:$0xff] %v7741_v7  ;;  %6191 = vrot.lane.b32.xlu0 %v7664_v24, %s7195_s30  ;;  %6196 = vrot.lane.b32.xlu1 %v7672_v10, %s7195_s30 }
 0x117   : > { %v7747_v12 = vpop.permute.xlu0 %5881  ;;  %v7749_v30 = vpop.permute.xlu1 %5886 }
 0x118   : > { %10843 = vst [vmem:[#allocation45_spill] sm:$0xff] %v7747_v12  ;;  %10844 = vst [vmem:[#allocation46_spill] sm:$0xff] %v7749_v30  ;;  %6201 = vrot.lane.b32.xlu0 %v7676_v47, %s7195_s30  ;;  %6206 = vrot.lane.b32.xlu1 %v7684_v28, %s7195_s30  ;;  %v922_v12 = vld [vmem:[#allocation2 + $0xad] sm:$0xff] }
 0x11b   : > { %v7755_v48 = vpop.permute.xlu0 %5891  ;;  %v7757_v23 = vpop.permute.xlu1 %5896 }
 0x11c   : > { %10845 = vst [vmem:[#allocation47_spill] sm:$0xff] %v7755_v48  ;;  %10846 = vst [vmem:[#allocation48_spill] sm:$0xff] %v7757_v23  ;;  %6211 = vrot.lane.b32.xlu0 %v7688_v31, %s7195_s30  ;;  %6216 = vrot.lane.b32.xlu1 %v6130_v49, %s7195_s30 }
 0x11f   : > { %v7762_v10 = vpop.permute.xlu0 %5901  ;;  %v7764_v24 = vpop.permute.xlu1 %5906 }
 0x120   : > { %10847 = vst [vmem:[#allocation49_spill] sm:$0xff] %v7762_v10  ;;  %6221 = vrot.lane.b32.xlu0 %v7698_v51, %s7195_s30  ;;  %6226 = vrot.lane.b32.xlu1 %v6140_v29, %s7195_s30  ;;  %v1084_v51 = vld [vmem:[#allocation2 + $0x141] sm:$0xff] }
 0x123   : > { %v7769_v47 = vpop.permute.xlu0 %5911  ;;  %v7771_v28 = vpop.permute.xlu1 %5916 }
 0x124   : > { %10848 = vst [vmem:[#allocation50_spill] sm:$0xff] %v7769_v47  ;;  %10849 = vst [vmem:[#allocation51_spill] sm:$0xff] %v7771_v28  ;;  %6231 = vrot.lane.b32.xlu0 %v6145_v32, %s7195_s30  ;;  %6236 = vrot.lane.b32.xlu1 %v6150_v13, %s7195_s30  ;;  %v6265_v32 = vpack.i.bf16 %v1084_v51, %v1083_v33  ;;  %v1085_v13 = vld [vmem:[#allocation2 + $0x2a] sm:$0xff]  ;;  %v6280_v51 = vpack.i.bf16 %v1090_v52, %v1089_v57  ;;  %v1099_v52 = vld [vmem:[#allocation2 + $0x9a] sm:$0xff] }
 0x125   : > { %v1100_v57 = vld [vmem:[#allocation2 + $0xa2] sm:$0xff] }
 0x126   : > { %v6305_v3 = vpack.i.bf16 %v1100_v57, %v1099_v52 }
 0x127   : > { %v7775_v31 = vpop.permute.xlu0 %5921  ;;  %v7777_v49 = vpop.permute.xlu1 %5926 }
 0x128   : > { %10850 = vst [vmem:[#allocation52_spill] sm:$0xff] %v7775_v31  ;;  %10851 = vst [vmem:[#allocation53_spill] sm:$0xff] %v7777_v49  ;;  %6241 = vrot.lane.b32.xlu0 %v6155_v14, %s7195_s30  ;;  %6246 = vrot.lane.b32.xlu1 %v6160_v15, %s7195_s30  ;;  %v6270_v15 = vpack.i.bf16 %v1086_v62, %v1085_v13  ;;  %v1094_v62 = vld [vmem:[#allocation2 + $0x72] sm:$0xff]  ;;  %v1095_v13 = vld [vmem:[#allocation2 + $0x7a] sm:$0xff]  ;;  %v5758_v31 = vunpack.i.l.bf16 %v7643_v26 }
 0x12b   : > { %v7781_v63 = vpop.permute.xlu0 %5931  ;;  %v7783_v29 = vpop.permute.xlu1 %5936 }
 0x12c   : > { %10852 = vst [vmem:[#allocation54_spill] sm:$0xff] %v7781_v63  ;;  %10853 = vst [vmem:[#allocation55_spill] sm:$0xff] %v7783_v29  ;;  %6251 = vrot.lane.b32.xlu0 %v6165_v9, %s7195_s30  ;;  %6256 = vrot.lane.b32.xlu1 %v6170_v27, %s7195_s30  ;;  %v1091_v9 = vld [vmem:[#allocation2 + $0x5a] sm:$0xff]  ;;  %v5753_v29 = vunpack.i.l.bf16 %v7641_v25  ;;  %v5759_v63 = vunpack.i.h.bf16 %v7643_v26  ;;  %v365_v26 = vld [vmem:[%s10652_s4 + $0x28] sm:$0xff] }
 0x12d   : > { %v6285_v45 = vpack.i.bf16 %v1092_v53, %v1091_v9 }
 0x12f   : > { %v7787_v59 = vpop.permute.xlu0 %5941  ;;  %v7789_v14 = vpop.permute.xlu1 %5946 }
 0x130   : > { %10854 = vst [vmem:[#allocation56_spill] sm:$0xff] %v7787_v59  ;;  %10855 = vst [vmem:[#allocation57_spill] sm:$0xff] %v7789_v14  ;;  %6261 = vrot.lane.b32.xlu0 %v6175_v61, %s7195_s30  ;;  %6266 = vrot.lane.b32.xlu1 %v6265_v32, %s7195_s30  ;;  %v1093_v61 = vld [vmem:[#allocation2 + $0x6a] sm:$0xff]  ;;  %v1096_v32 = vld [vmem:[#allocation2 + $0x82] sm:$0xff]  ;;  %v5754_v59 = vunpack.i.h.bf16 %v7641_v25 }
 0x131   : > { %v6290_v44 = vpack.i.bf16 %v1094_v62, %v1093_v61  ;;  %v6295_v37 = vpack.i.bf16 %v1096_v32, %v1095_v13  ;;  %v1103_v61 = vld [vmem:[#allocation2 + $0xba] sm:$0xff]  ;;  %v1104_v62 = vld [vmem:[#allocation2 + $0xc2] sm:$0xff] }
 0x132   : > { %v909_v14 = vld [vmem:[#allocation2 + $0x45] sm:$0xff] }
 0x133   : > { %v7793_v27 = vpop.permute.xlu0 %5951  ;;  %v7795_v33 = vpop.permute.xlu1 %5956  ;;  %v364_v25 = vld [vmem:[%s10652_s4 + $0x20] sm:$0xff] }
 0x134   : > { %10856 = vst [vmem:[#allocation58_spill] sm:$0xff] %v7793_v27  ;;  %10857 = vst [vmem:[#allocation59_spill] sm:$0xff] %v7795_v33  ;;  %6271 = vrot.lane.b32.xlu0 %v6270_v15, %s7196_s9  ;;  %6276 = vrot.lane.b32.xlu1 %v6275_v17, %s7196_s9  ;;  %v1098_v15 = vld [vmem:[#allocation2 + $0x92] sm:$0xff]  ;;  %v5748_v27 = vunpack.i.l.bf16 %v7637_v2 }
 0x135   : > { %v6300_v9 = vpack.i.bf16 %v1098_v15, %v1097_v36  ;;  %v1107_v36 = vld [vmem:[#allocation2 + $0xda] sm:$0xff]  ;;  %v1108_v15 = vld [vmem:[#allocation2 + $0xe2] sm:$0xff] }
 0x137   : > { %v7799_v58 = vpop.permute.xlu0 %5961  ;;  %v7801_v60 = vpop.permute.xlu1 %5966 }
 0x138   : > { %10858 = vst [vmem:[#allocation60_spill] sm:$0xff] %v7799_v58  ;;  %10859 = vst [vmem:[#allocation61_spill] sm:$0xff] %v7801_v60  ;;  %6281 = vrot.lane.b32.xlu0 %v6280_v51, %s7196_s9  ;;  %6286 = vrot.lane.b32.xlu1 %v6285_v45, %s7196_s9  ;;  %v1101_v60 = vld [vmem:[#allocation2 + $0xaa] sm:$0xff]  ;;  %v1102_v51 = vld [vmem:[#allocation2 + $0xb2] sm:$0xff] }
 0x139   : > { %v6310_v32 = vpack.i.bf16 %v1102_v51, %v1101_v60  ;;  %v1111_v60 = vld [vmem:[#allocation2 + $0xfa] sm:$0xff]  ;;  %v1112_v51 = vld [vmem:[#allocation2 + $0x102] sm:$0xff]  ;;  %v1113_v58 = vld [vmem:[#allocation2 + $0x10a] sm:$0xff] }
 0x13b   : > { %v7805_v17 = vpop.permute.xlu0 %5971  ;;  %v7807_v53 = vpop.permute.xlu1 %5976 }
 0x13c   : > { %10860 = vst [vmem:[#allocation62_spill] sm:$0xff] %v7805_v17  ;;  %10861 = vst [vmem:[#allocation63_spill] sm:$0xff] %v7807_v53  ;;  %6291 = vrot.lane.b32.xlu0 %v6290_v44, %s7196_s9  ;;  %6296 = vrot.lane.b32.xlu1 %v6295_v37, %s7196_s9  ;;  %v6315_v53 = vpack.i.bf16 %v1104_v62, %v1103_v61  ;;  %v1105_v17 = vld [vmem:[#allocation2 + $0xca] sm:$0xff]  ;;  %v1106_v44 = vld [vmem:[#allocation2 + $0xd2] sm:$0xff] }
 0x13d   : > { %v6320_v57 = vpack.i.bf16 %v1106_v44, %v1105_v17  ;;  %v1115_v17 = vld [vmem:[#allocation2 + $0x11a] sm:$0xff]  ;;  %v1116_v44 = vld [vmem:[#allocation2 + $0x122] sm:$0xff] }
 0x13f   : > { %v7811_v45 = vpop.permute.xlu0 %5981  ;;  %v7813_v13 = vpop.permute.xlu1 %5986 }
 0x140   : > { %10862 = vst [vmem:[#allocation64_spill] sm:$0xff] %v7811_v45  ;;  %10863 = vst [vmem:[#allocation65_spill] sm:$0xff] %v7813_v13  ;;  %6301 = vrot.lane.b32.xlu0 %v6300_v9, %s7196_s9  ;;  %6306 = vrot.lane.b32.xlu1 %v6305_v3, %s7196_s9  ;;  %v6325_v13 = vpack.i.bf16 %v1108_v15, %v1107_v36  ;;  %v1109_v45 = vld [vmem:[#allocation2 + $0xea] sm:$0xff]  ;;  %v1110_v9 = vld [vmem:[#allocation2 + $0xf2] sm:$0xff] }
 0x141   : > { %v6330_v62 = vpack.i.bf16 %v1110_v9, %v1109_v45  ;;  %v1119_v45 = vld [vmem:[#allocation2 + $0x13a] sm:$0xff]  ;;  %v1120_v9 = vld [vmem:[#allocation2 + $0x142] sm:$0xff] }
 0x143   : > { %v7817_v37 = vpop.permute.xlu0 %5991  ;;  %v7819_v52 = vpop.permute.xlu1 %5996 }
 0x144   : > { %10864 = vst [vmem:[#allocation66_spill] sm:$0xff] %v7817_v37  ;;  %6311 = vrot.lane.b32.xlu0 %v6310_v32, %s7196_s9  ;;  %6316 = vrot.lane.b32.xlu1 %v6315_v53, %s7196_s9  ;;  %v6335_v37 = vpack.i.bf16 %v1112_v51, %v1111_v60  ;;  %v1114_v32 = vld [vmem:[#allocation2 + $0x112] sm:$0xff] }
 0x145   : > { %v6340_v15 = vpack.i.bf16 %v1114_v32, %v1113_v58  ;;  %v7170_v58 = vld [vmem:[%s10653_s5] sm:$0xff]  }
 0x146   : > { %v1124_v32 = vld [vmem:[#allocation2 + $0x43] sm:$0xff]  ;;  %5615 = vmatprep.subr.bf16.mxu0 %v7170_v58 }
 0x147   : > { %v7823_v3 = vpop.permute.xlu0 %6001  ;;  %v7825_v61 = vpop.permute.xlu1 %6006  ;;  %5616 = vmatpush3.bf16.msra.mxu0 %v7170_v58  ;;  %v7172_v58 = vld [vmem:[%s10653_s5 + $0x10] ss:$0 sps:$4 sm:$0x33]  }
 0x148   : > { %10865 = vst [vmem:[#allocation67_spill] sm:$0xff] %v7823_v3  ;;  %10866 = vst [vmem:[#allocation68_spill] sm:$0xff] %v7825_v61  ;;  %6321 = vrot.lane.b32.xlu0 %v6320_v57, %s7196_s9  ;;  %6326 = vrot.lane.b32.xlu1 %v6325_v13, %s7196_s9  ;;  %v6345_v61 = vpack.i.bf16 %v1116_v44, %v1115_v17  ;;  %v1117_v3 = vld [vmem:[#allocation2 + $0x12a] sm:$0xff]  ;;  %v1118_v57 = vld [vmem:[#allocation2 + $0x132] sm:$0xff] }
 0x149   : > { %v6350_v51 = vpack.i.bf16 %v1118_v57, %v1117_v3  ;;  %v1126_v57 = vld [vmem:[#allocation2 + $0x53] sm:$0xff] }
 0x14b   : > { %v7829_v53 = vpop.permute.xlu0 %6011  ;;  %v7831_v36 = vpop.permute.xlu1 %6016 }
 0x14c   : > { %10867 = vst [vmem:[#allocation69_spill] sm:$0xff] %v7829_v53  ;;  %10868 = vst [vmem:[#allocation70_spill] sm:$0xff] %v7831_v36  ;;  %6331 = vrot.lane.b32.xlu0 %v6330_v62, %s7196_s9  ;;  %6336 = vrot.lane.b32.xlu1 %v6335_v37, %s7196_s9  ;;  %v6355_v36 = vpack.i.bf16 %v1120_v9, %v1119_v45  ;;  %v1121_v53 = vld [vmem:[#allocation2 + $0x2b] sm:$0xff]  ;;  %v1122_v62 = vld [vmem:[#allocation2 + $0x33] sm:$0xff] }
 0x14d   : > { %v1123_v37 = vld [vmem:[#allocation2 + $0x3b] sm:$0xff]  ;;  %v7171_v45 = vld [vmem:[%s10653_s5 + $0x8] sm:$0xff]  }
 0x14e   : > { %v6365_v3 = vpack.i.bf16 %v1124_v32, %v1123_v37  ;;  %v1127_v9 = vld [vmem:[#allocation2 + $0x5b] sm:$0xff]  ;;  %5617 = vmatprep.subr.bf16.mxu0 %v7171_v45  ;;  %v1132_v32 = vld [vmem:[#allocation2 + $0x83] sm:$0xff] }
 0x14f   : > { %v7835_v13 = vpop.permute.xlu0 %6021  ;;  %v7837_v60 = vpop.permute.xlu1 %6026  ;;  %5618 = vmatpush3.bf16.msra.mxu0 %v7171_v45  ;;  %v1131_v37 = vld [vmem:[#allocation2 + $0x7b] sm:$0xff] }
 0x150   : > { %10869 = vst [vmem:[#allocation71_spill] sm:$0xff] %v7835_v13  ;;  %10870 = vst [vmem:[#allocation72_spill] sm:$0xff] %v7837_v60  ;;  %6341 = vrot.lane.b32.xlu0 %v6340_v15, %s7196_s9  ;;  %6346 = vrot.lane.b32.xlu1 %v6345_v61, %s7196_s9  ;;  %v6360_v15 = vpack.i.bf16 %v1122_v62, %v1121_v53  ;;  %v1125_v61 = vld [vmem:[#allocation2 + $0x4b] sm:$0xff]  ;;  %v1128_v60 = vld [vmem:[#allocation2 + $0x63] sm:$0xff] }
 0x151   : > { %v6370_v53 = vpack.i.bf16 %v1126_v57, %v1125_v61  ;;  %v1130_v62 = vld [vmem:[#allocation2 + $0x73] sm:$0xff]  ;;  %5703 = vmatprep.subr.msk.bf16.mxu0 %vm2628_vm2, %v7172_v58  ;;  %v2630_v57 = vsel %vm2628_vm2, %v7172_v58, 0  ;;  %v1135_v45 = vld [vmem:[#allocation2 + $0x9b] sm:$0xff] }
 0x152   : > { %v1134_v61 = vld [vmem:[#allocation2 + $0x93] sm:$0xff] }
 0x153   : > { %v7844_v17 = vpop.permute.xlu0 %6031  ;;  %v7846_v44 = vpop.permute.xlu1 %6036  ;;  %5620 = vmatpush3.bf16.msra.mxu0 %v2630_v57 }
 0x154   : > { %10871 = vst [vmem:[#allocation73_spill] sm:$0xff] %v7844_v17  ;;  %10872 = vst [vmem:[#allocation74_spill] sm:$0xff] %v7846_v44  ;;  %6351 = vrot.lane.b32.xlu0 %v6350_v51, %s7196_s9  ;;  %6356 = vrot.lane.b32.xlu1 %v6355_v36, %s7196_s9  ;;  %v6375_v36 = vpack.i.bf16 %v1128_v60, %v1127_v9  ;;  %v1129_v51 = vld [vmem:[#allocation2 + $0x6b] sm:$0xff]  ;;  %v6385_v60 = vpack.i.bf16 %v1132_v32, %v1131_v37  ;;  %v1136_v9 = vld [vmem:[#allocation2 + $0xa3] sm:$0xff]  ;;  %s7201_s9 = smov 64  }
 0x155   : > { %v1140_v37 = vld [vmem:[#allocation2 + $0xc3] sm:$0xff] }
 0x157   : > { %v7853_v13 = vpop.permute.xlu0 %6041  ;;  %v7855_v17 = vpop.permute.xlu1 %6046 }
 0x158   : > { %10873 = vst [vmem:[#allocation75_spill] sm:$0xff] %v7853_v13  ;;  %10874 = vst [vmem:[#allocation76_spill] sm:$0xff] %v7855_v17  ;;  %6361 = vrot.lane.b32.xlu0 %v6360_v15, %s7197_s14  ;;  %6366 = vrot.lane.b32.xlu1 %v6365_v3, %s7197_s14  ;;  %v6380_v15 = vpack.i.bf16 %v1130_v62, %v1129_v51  ;;  %v1133_v3 = vld [vmem:[#allocation2 + $0x8b] sm:$0xff]  ;;  %v1138_v62 = vld [vmem:[#allocation2 + $0xb3] sm:$0xff] }
 0x159   : > { %v1137_v51 = vld [vmem:[#allocation2 + $0xab] sm:$0xff] }
 0x15a   : > { %v6400_v57 = vpack.i.bf16 %v1138_v62, %v1137_v51  ;;  %v1147_v51 = vld [vmem:[#allocation2 + $0xfb] sm:$0xff]  ;;  %v1148_v62 = vld [vmem:[#allocation2 + $0x103] sm:$0xff] }
 0x15b   : > { %v7862_v13 = vpop.permute.xlu0 %6051  ;;  %v7864_v17 = vpop.permute.xlu1 %6056 }
 0x15c   : > { %10875 = vst [vmem:[#allocation77_spill] sm:$0xff] %v7862_v13  ;;  %10876 = vst [vmem:[#allocation78_spill] sm:$0xff] %v7864_v17  ;;  %6371 = vrot.lane.b32.xlu0 %v6370_v53, %s7197_s14  ;;  %6376 = vrot.lane.b32.xlu1 %v6375_v36, %s7197_s14  ;;  %v6390_v17 = vpack.i.bf16 %v1134_v61, %v1133_v3  ;;  %v6395_v53 = vpack.i.bf16 %v1136_v9, %v1135_v45  ;;  %v1139_v36 = vld [vmem:[#allocation2 + $0xbb] sm:$0xff]  ;;  %v1144_v61 = vld [vmem:[#allocation2 + $0xe3] sm:$0xff] }
 0x15d   : > { %v1143_v3 = vld [vmem:[#allocation2 + $0xdb] sm:$0xff]  ;;  %v1149_v13 = vld [vmem:[#allocation2 + $0x10b] sm:$0xff] }
 0x15f   : > { %v7868_v44 = vpop.permute.xlu0 %6061  ;;  %v7870_v33 = vpop.permute.xlu1 %6066 }
 0x160   : > { %10877 = vst [vmem:[#allocation79_spill] sm:$0xff] %v7868_v44  ;;  %10878 = vst [vmem:[#allocation80_spill] sm:$0xff] %v7870_v33  ;;  %6381 = vrot.lane.b32.xlu0 %v6380_v15, %s7197_s14  ;;  %6386 = vrot.lane.b32.xlu1 %v6385_v60, %s7197_s14  ;;  %v6405_v33 = vpack.i.bf16 %v1140_v37, %v1139_v36  ;;  %v1141_v44 = vld [vmem:[#allocation2 + $0xcb] sm:$0xff]  ;;  %v1142_v15 = vld [vmem:[#allocation2 + $0xd3] sm:$0xff] }
 0x161   : > { %v6410_v9 = vpack.i.bf16 %v1142_v15, %v1141_v44  ;;  %v1151_v44 = vld [vmem:[#allocation2 + $0x11b] sm:$0xff]  ;;  %v1152_v15 = vld [vmem:[#allocation2 + $0x123] sm:$0xff] }
 0x163   : > { %v7874_v32 = vpop.permute.xlu0 %6071  ;;  %v7876_v58 = vpop.permute.xlu1 %6076 }
 0x164   : > { %10879 = vst [vmem:[#allocation81_spill] sm:$0xff] %v7874_v32  ;;  %10880 = vst [vmem:[#allocation82_spill] sm:$0xff] %v7876_v58  ;;  %6391 = vrot.lane.b32.xlu0 %v6390_v17, %s7197_s14  ;;  %6396 = vrot.lane.b32.xlu1 %v6395_v53, %s7197_s14  ;;  %v6415_v58 = vpack.i.bf16 %v1144_v61, %v1143_v3  ;;  %v1145_v32 = vld [vmem:[#allocation2 + $0xeb] sm:$0xff]  ;;  %v1146_v17 = vld [vmem:[#allocation2 + $0xf3] sm:$0xff] }
 0x165   : > { %v6420_v37 = vpack.i.bf16 %v1146_v17, %v1145_v32  ;;  %v1155_v32 = vld [vmem:[#allocation2 + $0x13b] sm:$0xff]  ;;  %v1156_v17 = vld [vmem:[#allocation2 + $0x143] sm:$0xff] }
 0x167   : > { %v7880_v60 = vpop.permute.xlu0 %6081  ;;  %v7882_v45 = vpop.permute.xlu1 %6086 }
 0x168   : > { %10881 = vst [vmem:[#allocation83_spill] sm:$0xff] %v7880_v60  ;;  %6401 = vrot.lane.b32.xlu0 %v6400_v57, %s7197_s14  ;;  %6406 = vrot.lane.b32.xlu1 %v6405_v33, %s7197_s14  ;;  %v6425_v60 = vpack.i.bf16 %v1148_v62, %v1147_v51  ;;  %v1150_v57 = vld [vmem:[#allocation2 + $0x113] sm:$0xff] }
 0x169   : > { %v6430_v61 = vpack.i.bf16 %v1150_v57, %v1149_v13  ;;  %v901_v57 = vld [vmem:[#allocation2 + $0x5] sm:$0xff] }
 0x16b   : > { %v7886_v53 = vpop.permute.xlu0 %6091  ;;  %v7888_v36 = vpop.permute.xlu1 %6096 }
 0x16c   : > { %10882 = vst [vmem:[#allocation84_spill] sm:$0xff] %v7886_v53  ;;  %10883 = vst [vmem:[#allocation85_spill] sm:$0xff] %v7888_v36  ;;  %6411 = vrot.lane.b32.xlu0 %v6410_v9, %s7197_s14  ;;  %6416 = vrot.lane.b32.xlu1 %v6415_v58, %s7197_s14  ;;  %v6435_v36 = vpack.i.bf16 %v1152_v15, %v1151_v44  ;;  %v1153_v53 = vld [vmem:[#allocation2 + $0x12b] sm:$0xff]  ;;  %v1154_v9 = vld [vmem:[#allocation2 + $0x133] sm:$0xff]  ;;  %v5734_v44 = vunpack.i.h.bf16 %v7629_v41  ;;  %v5733_v15 = vunpack.i.l.bf16 %v7629_v41  ;;  %v5743_v41 = vunpack.i.l.bf16 %v7635_v55 }
 0x16d   : > { %v6440_v62 = vpack.i.bf16 %v1154_v9, %v1153_v53  ;;  %v5739_v9 = vunpack.i.h.bf16 %v7631_v42 }
 0x16e   : > { %v7945_v49 = vsel %vm773_vm0, %v901_v57, %v5733_v15  ;;  %v914_v57 = vld [vmem:[#allocation2 + $0x6d] sm:$0xff]  ;;  %v5763_v15 = vunpack.i.l.bf16 %v7647_v43 }
 0x16f   : > { %v7892_v33 = vpop.permute.xlu0 %6101  ;;  %v7894_v3 = vpop.permute.xlu1 %6106 }
 0x170   : > { %10884 = vst [vmem:[#allocation86_spill] sm:$0xff] %v7892_v33  ;;  %10885 = vst [vmem:[#allocation87_spill] sm:$0xff] %v7894_v3  ;;  %6421 = vrot.lane.b32.xlu0 %v6420_v37, %s7197_s14  ;;  %6426 = vrot.lane.b32.xlu1 %v6425_v60, %s7197_s14  ;;  %v6445_v3 = vpack.i.bf16 %v1156_v17, %v1155_v32  ;;  %v360_v60 = vld [vmem:[%s10652_s4] sm:$0xff]  ;;  %v361_v37 = vld [vmem:[%s10652_s4 + $0x8] sm:$0xff]  ;;  %v5738_v32 = vunpack.i.l.bf16 %v7631_v42 }
 0x171   : > { %v903_v17 = vld [vmem:[#allocation2 + $0x15] sm:$0xff]  ;;  %v908_v42 = vld [vmem:[#allocation2 + $0x3d] sm:$0xff] }
 0x172   : > { %v7953_v28 = vsel %vm773_vm0, %v903_v17, %v5738_v32  ;;  %v916_v17 = vld [vmem:[#allocation2 + $0x7d] sm:$0xff] }
 0x173   : > { %v7898_v58 = vpop.permute.xlu0 %6111  ;;  %v7900_v51 = vpop.permute.xlu1 %6116 }
 0x174   : > { %10886 = vst [vmem:[#allocation88_spill] sm:$0xff] %v7898_v58  ;;  %10887 = vst [vmem:[#allocation89_spill] sm:$0xff] %v7900_v51  ;;  %6431 = vrot.lane.b32.xlu0 %v6430_v61, %s7197_s14  ;;  %6436 = vrot.lane.b32.xlu1 %v6435_v36, %s7197_s14  ;;  %v902_v61 = vld [vmem:[#allocation2 + $0xd] sm:$0xff]  ;;  %v907_v58 = vld [vmem:[#allocation2 + $0x35] sm:$0xff] }
 0x175   : > { %v7978_v23 = vsel %vm773_vm0, %v907_v58, %v5748_v27  ;;  %v5774_v27 = vunpack.i.h.bf16 %v7655_v19  ;;  %v5819_v58 = vunpack.i.h.bf16 %v7702_v40 }
 0x177   : > { %v7904_v33 = vpop.permute.xlu0 %6121  ;;  %v7906_v13 = vpop.permute.xlu1 %6126 }
 0x178   : > { %10888 = vst [vmem:[#allocation90_spill] sm:$0xff] %v7904_v33  ;;  %10889 = vst [vmem:[#allocation91_spill] sm:$0xff] %v7906_v13  ;;  %6441 = vrot.lane.b32.xlu0 %v6440_v62, %s7197_s14  ;;  %6446 = vrot.lane.b32.xlu1 %v6445_v3, %s7197_s14  ;;  %v362_v3 = vld [vmem:[%s10652_s4 + $0x10] sm:$0xff]  ;;  %v363_v62 = vld [vmem:[%s10652_s4 + $0x18] sm:$0xff]  ;;  %v5749_v13 = vunpack.i.h.bf16 %v7637_v2  ;;  %v5764_v2 = vunpack.i.h.bf16 %v7647_v43 }
 0x17a   : > { %v7970_v32 = vsel %vm773_vm0, %v908_v42, %v5749_v13 }
 0x17b   : > { %v7916_v53 = vpop.permute.xlu0 %6131  ;;  %v7918_v36 = vpop.permute.xlu1 %6136 }
 0x17c   : > { %10890 = vst [vmem:[#allocation92_spill] sm:$0xff] %v7916_v53  ;;  %10891 = vst [vmem:[#allocation93_spill] sm:$0xff] %v7918_v36  ;;  %2995 = vperm.xlu0 %5728, %v360_v60   ;;  %3000 = vperm.xlu1 %5729, %v361_v37   ;;  %v904_v60 = vld [vmem:[#allocation2 + $0x1d] sm:$0xff]  ;;  %v906_v36 = vld [vmem:[#allocation2 + $0x2d] sm:$0xff]  ;;  %v5744_v53 = vunpack.i.h.bf16 %v7635_v55  ;;  %v7942_v55 = vsel %vm773_vm0, %v902_v61, %v5734_v44  ;;  %v5769_v61 = vunpack.i.h.bf16 %v7649_v46 }
 0x17d   : > { %v905_v37 = vld [vmem:[#allocation2 + $0x25] sm:$0xff]  ;;  %v7956_v44 = vsel %vm773_vm0, %v904_v60, %v5739_v9  ;;  %v5768_v60 = vunpack.i.l.bf16 %v7649_v46 }
 0x17e   : > { %v7967_v47 = vsel %vm773_vm0, %v905_v37, %v5743_v41  ;;  %v913_v9 = vld [vmem:[#allocation2 + $0x65] sm:$0xff]  ;;  %v915_v41 = vld [vmem:[#allocation2 + $0x75] sm:$0xff]  ;;  %v7993_v37 = vsel %vm773_vm0, %v914_v57, %v5764_v2  ;;  %v5908_v57 = vunpack.i.l.bf16 %v7764_v24 }
 0x17f   : > { %v7933_v33 = vpop.permute.xlu0 %6141  ;;  %v7935_v51 = vpop.permute.xlu1 %6146  ;;  %v8012_v42 = vsel %vm773_vm0, %v915_v41, %v5768_v60  ;;  %v935_v2 = vld [vmem:[#allocation2 + $0x115] sm:$0xff] }
 0x180   : > { %10892 = vst [vmem:[#allocation94_spill] sm:$0xff] %v7933_v33  ;;  %10893 = vst [vmem:[#allocation95_spill] sm:$0xff] %v7935_v51  ;;  %3005 = vperm.xlu0 %5728, %v362_v3   ;;  %v910_v33 = vld [vmem:[#allocation2 + $0x4d] sm:$0xff]  ;;  %v912_v51 = vld [vmem:[#allocation2 + $0x5d] sm:$0xff]  ;;  %3010 = vperm.xlu1 %5729, %v363_v62   ;;  %v7964_v62 = vsel %vm773_vm0, %v906_v36, %v5744_v53  ;;  %v7984_v36 = vsel %vm773_vm0, %v909_v14, %v5753_v29 }
 0x181   : > { %v911_v3 = vld [vmem:[#allocation2 + $0x55] sm:$0xff]  ;;  %v7981_v53 = vsel %vm773_vm0, %v910_v33, %v5754_v59  ;;  %v7987_v13 = vsel %vm773_vm0, %v912_v51, %v5759_v63  ;;  %v5773_v59 = vunpack.i.l.bf16 %v7655_v19  ;;  %v8001_v63 = vsel %vm773_vm0, %v913_v9, %v5763_v15  ;;  %v918_v33 = vld [vmem:[#allocation2 + $0x8d] sm:$0xff] }
 0x182   : > { %v7990_v46 = vsel %vm773_vm0, %v911_v3, %v5758_v31  ;;  %v366_v29 = vld [vmem:[%s10652_s4 + $0x30] sm:$0xff]  ;;  %v8004_v14 = vsel %vm773_vm0, %v916_v17, %v5769_v61  ;;  %v917_v31 = vld [vmem:[#allocation2 + $0x85] sm:$0xff]  ;;  %v5818_v51 = vunpack.i.l.bf16 %v7702_v40  ;;  %v367_v19 = vld [vmem:[%s10652_s4 + $0x38] sm:$0xff]  ;;  %v5909_v3 = vunpack.i.h.bf16 %v7764_v24 }
 0x183   : > { %v7973_v43 = vpop.permute.xlu0 %6151  ;;  %v7975_v10 = vpop.permute.xlu1 %6156  ;;  %v5779_v40 = vunpack.i.h.bf16 %v7657_v20  ;;  %v5999_v9 = vunpack.i.h.bf16 %v7819_v52  ;;  %v5998_v17 = vunpack.i.l.bf16 %v7819_v52  ;;  %v8025_v60 = vsel %vm773_vm0, %v918_v33, %v5774_v27 }
 0x184   : > { %10894 = vst [vmem:[#allocation96_spill] sm:$0xff] %v7973_v43  ;;  %10895 = vst [vmem:[#allocation97_spill] sm:$0xff] %v7975_v10  ;;  %3015 = vperm.xlu0 %5728, %v364_v25   ;;  %3020 = vperm.xlu1 %5729, %v365_v26   ;;  %v936_v25 = vld [vmem:[#allocation2 + $0x11d] sm:$0xff]  ;;  %v5778_v26 = vunpack.i.l.bf16 %v7657_v20  ;;  %v8028_v41 = vsel %vm773_vm0, %v917_v31, %v5773_v59  ;;  %v6089_v24 = vunpack.i.h.bf16 %v7882_v45  ;;  %v5784_v52 = vunpack.i.h.bf16 %v7666_v35  ;;  %v369_v31 = vld [vmem:[%s10652_s4 + $0x48] sm:$0xff] }
 0x185   : > { %v368_v20 = vld [vmem:[%s10652_s4 + $0x40] sm:$0xff]  ;;  %v2276_v27 = vsel %vm773_vm0, %v936_v25, %v5819_v58  ;;  %v2275_v59 = vsel %vm773_vm0, %v935_v2, %v5818_v51  ;;  %v5788_v33 = vunpack.i.l.bf16 %v7668_v38 }
 0x186   : > { %v920_v10 = vld [vmem:[#allocation2 + $0x9d] sm:$0xff]  ;;  %v2312_v43 = vsel %vm780_vm1, %v2276_v27, %v5909_v3 }
 0x187   : > { %v8016_v15 = vpop.permute.xlu0 %6161  ;;  %v8018_v61 = vpop.permute.xlu1 %6166  ;;  %v2349_v51 = vsel %vm2313_vm3, %v2312_v43, %v5999_v9  ;;  %v8051_v7 = vsel %vm773_vm0, %v920_v10, %v5779_v40  ;;  %v924_v3 = vld [vmem:[#allocation2 + $0xbd] sm:$0xff]  ;;  %v370_v43 = vld [vmem:[%s10652_s4 + $0x50] sm:$0xff]  ;;  %v5793_v9 = vunpack.i.l.bf16 %v7678_v56  ;;  %v8073_v40 = vsel %vm773_vm0, %v922_v12, %v5784_v52 }
 0x188   : > { %10896 = vst [vmem:[#allocation98_spill] sm:$0xff] %v8016_v15  ;;  %10897 = vst [vmem:[#allocation99_spill] sm:$0xff] %v8018_v61  ;;  %3025 = vperm.xlu0 %5728, %v366_v29   ;;  %v6088_v15 = vunpack.i.l.bf16 %v7882_v45  ;;  %3030 = vperm.xlu1 %5729, %v367_v19   ;;  %v919_v61 = vld [vmem:[#allocation2 + $0x95] sm:$0xff]  ;;  %v5783_v29 = vunpack.i.l.bf16 %v7666_v35  ;;  %v5789_v45 = vunpack.i.h.bf16 %v7668_v38  ;;  %v2311_v19 = vsel %vm780_vm1, %v2275_v59, %v5908_v57  ;;  %v921_v35 = vld [vmem:[#allocation2 + $0xa5] sm:$0xff] }
 0x189   : > { %v2348_v58 = vsel %vm2313_vm3, %v2311_v19, %v5998_v17  ;;  %v8054_v38 = vsel %vm773_vm0, %v919_v61, %v5778_v26  ;;  %v923_v57 = vld [vmem:[#allocation2 + $0xb5] sm:$0xff]  ;;  %v2386_v59 = vsel %vm2350_vm4, %v2349_v51, %v6089_v24  ;;  %v925_v17 = vld [vmem:[#allocation2 + $0xc5] sm:$0xff]  ;;  %v926_v24 = vld [vmem:[#allocation2 + $0xcd] sm:$0xff] }
 0x18a   : > { %v2385_v27 = vsel %vm2350_vm4, %v2348_v58, %v6088_v15  ;;  %v371_v15 = vld [vmem:[%s10652_s4 + $0x58] sm:$0xff]  ;;  %v8076_v26 = vsel %vm773_vm0, %v921_v35, %v5783_v29  ;;  %v8085_v51 = vsel %vm773_vm0, %v924_v3, %v5789_v45  ;;  %v8088_v12 = vsel %vm773_vm0, %v923_v57, %v5788_v33  ;;  %v929_v29 = vld [vmem:[#allocation2 + $0xe5] sm:$0xff]  ;;  %v930_v35 = vld [vmem:[#allocation2 + $0xed] sm:$0xff] }
 0x18b   : > { %v8046_v48 = vpop.permute.xlu0 %6171  ;;  %v6177_v30 = vpop.permute.xlu1 %6176  ;;  %v928_v52 = vld [vmem:[#allocation2 + $0xdd] sm:$0xff]  ;;  %v5814_v45 = vunpack.i.h.bf16 %v7700_v39  ;;  %v5813_v3 = vunpack.i.l.bf16 %v7700_v39  ;;  %v373_v39 = vld [vmem:[%s10652_s4 + $0x68] sm:$0xff] }
 0x18c   : > { %10898 = vst [vmem:[#allocation100_spill] sm:$0xff] %v8046_v48  ;;  %v6179_v2 = vunpack.i.h.bf16 %v6177_v30  ;;  %v6178_v25 = vunpack.i.l.bf16 %v6177_v30  ;;  %3035 = vperm.xlu0 %5728, %v368_v20   ;;  %3040 = vperm.xlu1 %5729, %v369_v31   ;;  %v5794_v30 = vunpack.i.h.bf16 %v7678_v56  ;;  %v927_v20 = vld [vmem:[#allocation2 + $0xd5] sm:$0xff]  ;;  %v5799_v56 = vunpack.i.h.bf16 %v7680_v6  ;;  %v372_v33 = vld [vmem:[%s10652_s4 + $0x60] sm:$0xff] }
 0x18d   : > { %v5798_v31 = vunpack.i.l.bf16 %v7680_v6  ;;  %v932_v6 = vld [vmem:[#allocation2 + $0xfd] sm:$0xff]  ;;  %v5808_v48 = vunpack.i.l.bf16 %v7692_v18 }
 0x18e   : > { %v8064_v10 = vsel %vm2387_vm5, %v2385_v27, %v6178_v25  ;;  %v8067_v61 = vsel %vm2387_vm5, %v2386_v59, %v6179_v2  ;;  %v5804_v2 = vunpack.i.h.bf16 %v7690_v16  ;;  %v5803_v25 = vunpack.i.l.bf16 %v7690_v16  ;;  %v931_v27 = vld [vmem:[#allocation2 + $0xf5] sm:$0xff] }
 0x18f   : > { %10899 = vst [vmem:[#allocation101_spill] sm:$0xff] %v8064_v10  ;;  %10900 = vst [vmem:[#allocation102_spill] sm:$0xff] %v8067_v61  ;;  %v8080_v19 = vpop.permute.xlu0 %6181  ;;  %v8082_v58 = vpop.permute.xlu1 %6186  ;;  %v5809_v59 = vunpack.i.h.bf16 %v7692_v18  ;;  %v8100_v57 = vsel %vm773_vm0, %v926_v24, %v5794_v30  ;;  %v8103_v16 = vsel %vm773_vm0, %v925_v17, %v5793_v9  ;;  %v934_v61 = vld [vmem:[#allocation2 + $0x10d] sm:$0xff]  ;;  %v5824_v10 = vunpack.i.h.bf16 %v7707_v34 }
 0x190   : > { %10901 = vst [vmem:[#allocation103_spill] sm:$0xff] %v8080_v19  ;;  %10902 = vst [vmem:[#allocation104_spill] sm:$0xff] %v8082_v58  ;;  %3045 = vperm.xlu0 %5728, %v370_v43   ;;  %3050 = vperm.xlu1 %5729, %v371_v15   ;;  %v933_v43 = vld [vmem:[#allocation2 + $0x105] sm:$0xff]  ;;  %v5823_v18 = vunpack.i.l.bf16 %v7707_v34  ;;  %v8111_v15 = vsel %vm773_vm0, %v928_v52, %v5799_v56  ;;  %v8114_v19 = vsel %vm773_vm0, %v927_v20, %v5798_v31 }
 0x191   : > { %v5829_v30 = vunpack.i.h.bf16 %v7709_v22  ;;  %v5828_v9 = vunpack.i.l.bf16 %v7709_v22  ;;  %v8123_v34 = vsel %vm773_vm0, %v930_v35, %v5804_v2  ;;  %v8126_v58 = vsel %vm773_vm0, %v929_v29, %v5803_v25  ;;  %v374_v29 = vld [vmem:[%s10652_s4 + $0x70] sm:$0xff]  ;;  %v375_v25 = vld [vmem:[%s10652_s4 + $0x78] sm:$0xff] }
 0x192   : > { %v5834_v56 = vunpack.i.h.bf16 %v7713_v8  ;;  %v5833_v52 = vunpack.i.l.bf16 %v7713_v8  ;;  %v8131_v20 = vsel %vm773_vm0, %v932_v6, %v5809_v59  ;;  %v8134_v22 = vsel %vm773_vm0, %v931_v27, %v5808_v48 }
 0x193   : > { %v8118_v17 = vpop.permute.xlu0 %6191  ;;  %v8120_v24 = vpop.permute.xlu1 %6196  ;;  %v8137_v31 = vsel %vm773_vm0, %v934_v61, %v5814_v45  ;;  %v8140_v35 = vsel %vm773_vm0, %v933_v43, %v5813_v3  ;;  %v8147_v8 = vsel %vm780_vm1, %v7942_v55, %v5824_v10  ;;  %v8151_v2 = vsel %vm780_vm1, %v7945_v49, %v5823_v18 }
 0x194   : > { %3055 = vperm.xlu0 %5728, %v372_v33   ;;  %3060 = vperm.xlu1 %5729, %v373_v39   ;;  %v5839_v48 = vunpack.i.h.bf16 %v7715_v50  ;;  %v5838_v61 = vunpack.i.l.bf16 %v7715_v50  ;;  %v8160_v27 = vsel %vm780_vm1, %v7953_v28, %v5828_v9  ;;  %v8164_v55 = vsel %vm780_vm1, %v7956_v44, %v5829_v30 }
 0x195   : > { %v5844_v10 = vunpack.i.h.bf16 %v7719_v1  ;;  %v5843_v49 = vunpack.i.l.bf16 %v7719_v1  ;;  %v8174_v50 = vsel %vm780_vm1, %v7967_v47, %v5833_v52  ;;  %v8178_v28 = vsel %vm780_vm1, %v7964_v62, %v5834_v56  ;;  %v376_v47 = vld [vmem:[%s10652_s4 + $0x80] sm:$0xff] }
 0x196   : > { %v5849_v45 = vunpack.i.h.bf16 %v7721_v21  ;;  %v5848_v44 = vunpack.i.l.bf16 %v7721_v21  ;;  %v5854_v3 = vunpack.i.h.bf16 %v7725_v0  ;;  %v5853_v1 = vunpack.i.l.bf16 %v7725_v0 }
 0x197   : > { %v8168_v6 = vpop.permute.xlu0 %6201  ;;  %v8170_v59 = vpop.permute.xlu1 %6206  ;;  %v5859_v33 = vunpack.i.h.bf16 %v7727_v11  ;;  %v5858_v43 = vunpack.i.l.bf16 %v7727_v11  ;;  %v8191_v62 = vsel %vm780_vm1, %v7978_v23, %v5838_v61  ;;  %v8195_v21 = vsel %vm780_vm1, %v7970_v32, %v5839_v48  ;;  %v377_v11 = vld [vmem:[%s10652_s4 + $0x88] sm:$0xff]  ;;  %v10905_v48 = vld [vmem:[#allocation44_spill] sm:$0xff] }
 0x198   : > { %3065 = vperm.xlu0 %5728, %v374_v29   ;;  %3070 = vperm.xlu1 %5729, %v375_v25   ;;  %v5864_v18 = vunpack.i.h.bf16 %v7731_v5  ;;  %v5863_v0 = vunpack.i.l.bf16 %v7731_v5  ;;  %v8204_v39 = vsel %vm780_vm1, %v7984_v36, %v5843_v49  ;;  %v8208_v23 = vsel %vm780_vm1, %v7981_v53, %v5844_v10  ;;  %v10906_v10 = vld [vmem:[#allocation45_spill] sm:$0xff] }
 0x199   : > { %v5869_v30 = vunpack.i.h.bf16 %v7733_v54  ;;  %v5868_v32 = vunpack.i.l.bf16 %v7733_v54  ;;  %v8218_v5 = vsel %vm780_vm1, %v7990_v46, %v5848_v44  ;;  %v8222_v36 = vsel %vm780_vm1, %v7987_v13, %v5849_v45 }
 0x19a   : > { %v5874_v52 = vunpack.i.h.bf16 %v7739_v4  ;;  %v5873_v53 = vunpack.i.l.bf16 %v7739_v4  ;;  %v8228_v54 = vsel %vm780_vm1, %v8001_v63, %v5853_v1  ;;  %v8232_v29 = vsel %vm780_vm1, %v7993_v37, %v5854_v3  ;;  %v378_v4 = vld [vmem:[%s10652_s4 + $0x90] sm:$0xff] }
 0x19b   : > { %v8212_v9 = vpop.permute.xlu0 %6211  ;;  %v8214_v56 = vpop.permute.xlu1 %6216  ;;  %v8236_v46 = vsel %vm780_vm1, %v8012_v42, %v5858_v43  ;;  %v8240_v13 = vsel %vm780_vm1, %v8004_v14, %v5859_v33  ;;  %v8247_v63 = vsel %vm780_vm1, %v8028_v41, %v5863_v0  ;;  %v8251_v37 = vsel %vm780_vm1, %v8025_v60, %v5864_v18  ;;  %v379_v14 = vld [vmem:[%s10652_s4 + $0x98] sm:$0xff]  ;;  %v10909_v1 = vld [vmem:[#allocation46_spill] sm:$0xff]  ;;  %v10911_v0 = vld [vmem:[#allocation48_spill] sm:$0xff] }
 0x19c   : > { %10903 = vst [vmem:[#allocation105_spill] sm:$0xff] %v8212_v9  ;;  %10904 = vst [vmem:[#allocation106_spill] sm:$0xff] %v8214_v56  ;;  %3075 = vperm.xlu0 %5728, %v376_v47   ;;  %3080 = vperm.xlu1 %5729, %v377_v11   ;;  %v5879_v42 = vunpack.i.h.bf16 %v10905_v48  ;;  %v5878_v61 = vunpack.i.l.bf16 %v10905_v48  ;;  %v8260_v25 = vsel %vm780_vm1, %v8054_v38, %v5868_v32  ;;  %v5884_v49 = vunpack.i.h.bf16 %v10906_v10  ;;  %v10910_v43 = vld [vmem:[#allocation47_spill] sm:$0xff]  ;;  %v381_v48 = vld [vmem:[%s10652_s4 + $0xa8] sm:$0xff] }
 0x19d   : > { %v8264_v41 = vsel %vm780_vm1, %v8051_v7, %v5869_v30  ;;  %v5883_v60 = vunpack.i.l.bf16 %v10906_v10  ;;  %v8274_v3 = vsel %vm780_vm1, %v8076_v26, %v5873_v53  ;;  %v8278_v38 = vsel %vm780_vm1, %v8073_v40, %v5874_v52  ;;  %v380_v26 = vld [vmem:[%s10652_s4 + $0xa0] sm:$0xff]  ;;  %v10912_v52 = vld [vmem:[#allocation49_spill] sm:$0xff] }
 0x19e   : > { %v5889_v33 = vunpack.i.h.bf16 %v10909_v1  ;;  %v5888_v7 = vunpack.i.l.bf16 %v10909_v1  ;;  %v5894_v47 = vunpack.i.h.bf16 %v10910_v43  ;;  %v5893_v18 = vunpack.i.l.bf16 %v10910_v43 }
 0x19f   : > { %v8268_v45 = vpop.permute.xlu0 %6221  ;;  %v8270_v44 = vpop.permute.xlu1 %6226  ;;  %v5899_v11 = vunpack.i.h.bf16 %v10911_v0  ;;  %v5898_v30 = vunpack.i.l.bf16 %v10911_v0  ;;  %v8291_v40 = vsel %vm780_vm1, %v8088_v12, %v5878_v61  ;;  %v8295_v32 = vsel %vm780_vm1, %v8085_v51, %v5879_v42  ;;  %v10913_v61 = vld [vmem:[#allocation50_spill] sm:$0xff] }
 0x1a0   : > { %10907 = vst [vmem:[#allocation44_spill] sm:$0xff] %v8268_v45  ;;  %10908 = vst [vmem:[#allocation45_spill] sm:$0xff] %v8270_v44  ;;  %3085 = vperm.xlu0 %5728, %v378_v4   ;;  %3090 = vperm.xlu1 %5729, %v379_v14   ;;  %v5904_v53 = vunpack.i.h.bf16 %v10912_v52  ;;  %v5903_v4 = vunpack.i.l.bf16 %v10912_v52  ;;  %v8304_v14 = vsel %vm780_vm1, %v8103_v16, %v5883_v60  ;;  %v5914_v10 = vunpack.i.h.bf16 %v10913_v61  ;;  %v10916_v60 = vld [vmem:[#allocation51_spill] sm:$0xff] }
 0x1a1   : > { %v8308_v12 = vsel %vm780_vm1, %v8100_v57, %v5884_v49  ;;  %v5913_v51 = vunpack.i.l.bf16 %v10913_v61  ;;  %v8318_v43 = vsel %vm780_vm1, %v8114_v19, %v5888_v7  ;;  %v8322_v16 = vsel %vm780_vm1, %v8111_v15, %v5889_v33  ;;  %v382_v33 = vld [vmem:[%s10652_s4 + $0xb0] sm:$0xff]  ;;  %v10917_v7 = vld [vmem:[#allocation52_spill] sm:$0xff] }
 0x1a2   : > { %v5919_v0 = vunpack.i.h.bf16 %v10916_v60  ;;  %v5918_v57 = vunpack.i.l.bf16 %v10916_v60  ;;  %v8328_v49 = vsel %vm780_vm1, %v8126_v58, %v5893_v18  ;;  %v8332_v52 = vsel %vm780_vm1, %v8123_v34, %v5894_v47 }
 0x1a3   : > { %v8312_v42 = vpop.permute.xlu0 %6231  ;;  %v8314_v1 = vpop.permute.xlu1 %6236  ;;  %v8336_v19 = vsel %vm780_vm1, %v8134_v22, %v5898_v30  ;;  %v8340_v15 = vsel %vm780_vm1, %v8131_v20, %v5899_v11  ;;  %v8347_v58 = vsel %vm780_vm1, %v8140_v35, %v5903_v4  ;;  %v8351_v34 = vsel %vm780_vm1, %v8137_v31, %v5904_v53  ;;  %v383_v20 = vld [vmem:[%s10652_s4 + $0xb8] sm:$0xff]  ;;  %v10918_v11 = vld [vmem:[#allocation53_spill] sm:$0xff] }
 0x1a4   : > { %10914 = vst [vmem:[#allocation46_spill] sm:$0xff] %v8312_v42  ;;  %10915 = vst [vmem:[#allocation47_spill] sm:$0xff] %v8314_v1  ;;  %3095 = vperm.xlu0 %5728, %v380_v26   ;;  %3100 = vperm.xlu1 %5729, %v381_v48   ;;  %v5924_v22 = vunpack.i.h.bf16 %v10917_v7  ;;  %v5923_v47 = vunpack.i.l.bf16 %v10917_v7  ;;  %v8360_v18 = vsel %vm2313_vm3, %v8147_v8, %v5914_v10  ;;  %v5929_v30 = vunpack.i.h.bf16 %v10918_v11  ;;  %v10921_v48 = vld [vmem:[#allocation54_spill] sm:$0xff]  ;;  %v10922_v10 = vld [vmem:[#allocation55_spill] sm:$0xff] }
 0x1a5   : > { %v8364_v35 = vsel %vm2313_vm3, %v8151_v2, %v5913_v51  ;;  %v5928_v31 = vunpack.i.l.bf16 %v10918_v11  ;;  %v8374_v4 = vsel %vm2313_vm3, %v8160_v27, %v5918_v57  ;;  %v8378_v8 = vsel %vm2313_vm3, %v8164_v55, %v5919_v0  ;;  %v10923_v7 = vld [vmem:[#allocation56_spill] sm:$0xff]  ;;  %v10924_v57 = vld [vmem:[#allocation57_spill] sm:$0xff] }
 0x1a6   : > { %v5934_v61 = vunpack.i.h.bf16 %v10921_v48  ;;  %v5933_v2 = vunpack.i.l.bf16 %v10921_v48  ;;  %v5939_v51 = vunpack.i.h.bf16 %v10922_v10  ;;  %v5938_v60 = vunpack.i.l.bf16 %v10922_v10  ;;  %v384_v27 = vld [vmem:[%s10652_s4 + $0xc0] sm:$0xff] }
 0x1a7   : > { %v8368_v26 = vpop.permute.xlu0 %6241  ;;  %v8370_v53 = vpop.permute.xlu1 %6246  ;;  %v5944_v11 = vunpack.i.h.bf16 %v10923_v7  ;;  %v8391_v55 = vsel %vm2313_vm3, %v8178_v28, %v5924_v22  ;;  %v8395_v0 = vsel %vm2313_vm3, %v8174_v50, %v5923_v47  ;;  %v5948_v48 = vunpack.i.l.bf16 %v10924_v57  ;;  %v10925_v22 = vld [vmem:[#allocation58_spill] sm:$0xff] }
 0x1a8   : > { %10919 = vst [vmem:[#allocation48_spill] sm:$0xff] %v8368_v26  ;;  %10920 = vst [vmem:[#allocation49_spill] sm:$0xff] %v8370_v53  ;;  %3105 = vperm.xlu0 %5728, %v382_v33   ;;  %v5943_v53 = vunpack.i.l.bf16 %v10923_v7  ;;  %3110 = vperm.xlu1 %5729, %v383_v20   ;;  %v5949_v33 = vunpack.i.h.bf16 %v10924_v57  ;;  %v385_v20 = vld [vmem:[%s10652_s4 + $0xc8] sm:$0xff]  ;;  %v8404_v10 = vsel %vm2313_vm3, %v8191_v62, %v5928_v31  ;;  %v5954_v7 = vunpack.i.h.bf16 %v10925_v22  ;;  %v10928_v31 = vld [vmem:[#allocation59_spill] sm:$0xff] }
 0x1a9   : > { %v8408_v28 = vsel %vm2313_vm3, %v8195_v21, %v5929_v30  ;;  %v5953_v50 = vunpack.i.l.bf16 %v10925_v22  ;;  %v8418_v57 = vsel %vm2313_vm3, %v8208_v23, %v5934_v61  ;;  %v8422_v62 = vsel %vm2313_vm3, %v8204_v39, %v5933_v2  ;;  %v386_v61 = vld [vmem:[%s10652_s4 + $0xd0] sm:$0xff]  ;;  %v10929_v2 = vld [vmem:[#allocation60_spill] sm:$0xff] }
 0x1aa   : > { %v5959_v1 = vunpack.i.h.bf16 %v10928_v31  ;;  %v5958_v21 = vunpack.i.l.bf16 %v10928_v31  ;;  %v8428_v30 = vsel %vm2313_vm3, %v8218_v5, %v5938_v60  ;;  %v8432_v22 = vsel %vm2313_vm3, %v8222_v36, %v5939_v51  ;;  %v10930_v60 = vld [vmem:[#allocation61_spill] sm:$0xff] }
 0x1ab   : > { %v8412_v47 = vpop.permute.xlu0 %6251  ;;  %v8414_v26 = vpop.permute.xlu1 %6256  ;;  %v8436_v23 = vsel %vm2313_vm3, %v8232_v29, %v5944_v11  ;;  %v8440_v39 = vsel %vm2313_vm3, %v8228_v54, %v5943_v53  ;;  %v8447_v5 = vsel %vm2313_vm3, %v8236_v46, %v5948_v48  ;;  %v8451_v36 = vsel %vm2313_vm3, %v8240_v13, %v5949_v33  ;;  %v387_v54 = vld [vmem:[%s10652_s4 + $0xd8] sm:$0xff] }
 0x1ac   : > { %10926 = vst [vmem:[#allocation50_spill] sm:$0xff] %v8412_v47  ;;  %10927 = vst [vmem:[#allocation51_spill] sm:$0xff] %v8414_v26  ;;  %3115 = vperm.xlu0 %5728, %v384_v27   ;;  %3120 = vperm.xlu1 %5729, %v385_v20   ;;  %v5964_v29 = vunpack.i.h.bf16 %v10929_v2  ;;  %v5963_v51 = vunpack.i.l.bf16 %v10929_v2  ;;  %v8460_v53 = vsel %vm2313_vm3, %v8251_v37, %v5954_v7  ;;  %v5969_v11 = vunpack.i.h.bf16 %v10930_v60  ;;  %v10932_v20 = vld [vmem:[#allocation62_spill] sm:$0xff] }
 0x1ad   : > { %v8464_v46 = vsel %vm2313_vm3, %v8247_v63, %v5953_v50  ;;  %v5968_v13 = vunpack.i.l.bf16 %v10930_v60  ;;  %v8474_v48 = vsel %vm2313_vm3, %v8260_v25, %v5958_v21  ;;  %v8478_v37 = vsel %vm2313_vm3, %v8264_v41, %v5959_v1  ;;  %v10933_v50 = vld [vmem:[#allocation63_spill] sm:$0xff]  ;;  %v10934_v60 = vld [vmem:[#allocation64_spill] sm:$0xff]  ;;  %v10935_v21 = vld [vmem:[#allocation65_spill] sm:$0xff] }
 0x1ae   : > { %v5974_v7 = vunpack.i.h.bf16 %v10932_v20  ;;  %v5973_v63 = vunpack.i.l.bf16 %v10932_v20  ;;  %v5979_v31 = vunpack.i.h.bf16 %v10933_v50  ;;  %v5978_v2 = vunpack.i.l.bf16 %v10933_v50  ;;  %v388_v25 = vld [vmem:[%s10652_s4 + $0xe0] sm:$0xff] }
 0x1af   : > { %v8468_v27 = vpop.permute.xlu0 %6261  ;;  %v8470_v33 = vpop.permute.xlu1 %6266  ;;  %v5983_v26 = vunpack.i.l.bf16 %v10934_v60  ;;  %v8491_v41 = vsel %vm2313_vm3, %v8278_v38, %v5964_v29  ;;  %v8495_v1 = vsel %vm2313_vm3, %v8274_v3, %v5963_v51  ;;  %v5988_v20 = vunpack.i.l.bf16 %v10935_v21  ;;  %v10936_v29 = vld [vmem:[#allocation66_spill] sm:$0xff] }
 0x1b0   : > { %10931 = vst [vmem:[#allocation52_spill] sm:$0xff] %v8468_v27  ;;  %3125 = vperm.xlu0 %5728, %v386_v61   ;;  %v5984_v27 = vunpack.i.h.bf16 %v10934_v60  ;;  %3130 = vperm.xlu1 %5729, %v387_v54   ;;  %v5989_v61 = vunpack.i.h.bf16 %v10935_v21  ;;  %v389_v54 = vld [vmem:[%s10652_s4 + $0xe8] sm:$0xff]  ;;  %v8504_v50 = vsel %vm2313_vm3, %v8291_v40, %v5968_v13  ;;  %v8508_v38 = vsel %vm2313_vm3, %v8295_v32, %v5969_v11  ;;  %v10937_v13 = vld [vmem:[#allocation67_spill] sm:$0xff] }
 0x1b1   : > { %v5994_v60 = vunpack.i.h.bf16 %v10936_v29  ;;  %v5993_v3 = vunpack.i.l.bf16 %v10936_v29  ;;  %v8518_v21 = vsel %vm2313_vm3, %v8308_v12, %v5974_v7  ;;  %v8522_v40 = vsel %vm2313_vm3, %v8304_v14, %v5973_v63  ;;  %v390_v7 = vld [vmem:[%s10652_s4 + $0xf0] sm:$0xff]  ;;  %v10938_v63 = vld [vmem:[#allocation68_spill] sm:$0xff] }
 0x1b2   : > { %v6004_v42 = vunpack.i.h.bf16 %v10937_v13  ;;  %v6003_v32 = vunpack.i.l.bf16 %v10937_v13  ;;  %v8528_v11 = vsel %vm2313_vm3, %v8318_v43, %v5978_v2  ;;  %v8532_v29 = vsel %vm2313_vm3, %v8322_v16, %v5979_v31  ;;  %v10939_v31 = vld [vmem:[#allocation69_spill] sm:$0xff] }
 0x1b3   : > { %v8512_v51 = vpop.permute.xlu0 %6271  ;;  %v8514_v47 = vpop.permute.xlu1 %6276  ;;  %v8536_v12 = vsel %vm2313_vm3, %v8332_v52, %v5984_v27  ;;  %v8540_v14 = vsel %vm2313_vm3, %v8328_v49, %v5983_v26  ;;  %v8547_v43 = vsel %vm2313_vm3, %v8336_v19, %v5988_v20  ;;  %v8551_v16 = vsel %vm2313_vm3, %v8340_v15, %v5989_v61  ;;  %v391_v49 = vld [vmem:[%s10652_s4 + $0xf8] sm:$0xff] }
 0x1b4   : > { %3135 = vperm.xlu0 %5728, %v388_v25   ;;  %3140 = vperm.xlu1 %5729, %v389_v54   ;;  %v6009_v52 = vunpack.i.h.bf16 %v10938_v63  ;;  %v6008_v27 = vunpack.i.l.bf16 %v10938_v63  ;;  %v8560_v26 = vsel %vm2313_vm3, %v8351_v34, %v5994_v60  ;;  %v8564_v19 = vsel %vm2313_vm3, %v8347_v58, %v5993_v3  ;;  %v10940_v54 = vld [vmem:[#allocation70_spill] sm:$0xff]  ;;  %v10941_v3 = vld [vmem:[#allocation71_spill] sm:$0xff] }
 0x1b5   : > { %v6014_v2 = vunpack.i.h.bf16 %v10939_v31  ;;  %v6013_v15 = vunpack.i.l.bf16 %v10939_v31  ;;  %v8574_v20 = vsel %vm2350_vm4, %v8364_v35, %v6003_v32  ;;  %v8578_v34 = vsel %vm2350_vm4, %v8360_v18, %v6004_v42  ;;  %v10942_v31 = vld [vmem:[#allocation72_spill] sm:$0xff]  ;;  %v10943_v32 = vld [vmem:[#allocation73_spill] sm:$0xff] }
 0x1b6   : > { %v6019_v60 = vunpack.i.h.bf16 %v10940_v54  ;;  %v6018_v58 = vunpack.i.l.bf16 %v10940_v54  ;;  %v6024_v13 = vunpack.i.h.bf16 %v10941_v3  ;;  %v6023_v63 = vunpack.i.l.bf16 %v10941_v3  ;;  %v392_v35 = vld [vmem:[%s10652_s4 + $0x100] sm:$0xff] }
 0x1b7   : > { %v8568_v25 = vpop.permute.xlu0 %6281  ;;  %v8570_v61 = vpop.permute.xlu1 %6286  ;;  %v6029_v44 = vunpack.i.h.bf16 %v10942_v31  ;;  %v6028_v45 = vunpack.i.l.bf16 %v10942_v31  ;;  %v8591_v42 = vsel %vm2350_vm4, %v8374_v4, %v6008_v27  ;;  %v8595_v18 = vsel %vm2350_vm4, %v8378_v8, %v6009_v52  ;;  %v10944_v27 = vld [vmem:[#allocation74_spill] sm:$0xff] }
 0x1b8   : > { %3145 = vperm.xlu0 %5728, %v390_v7   ;;  %3150 = vperm.xlu1 %5729, %v391_v49   ;;  %v6034_v7 = vunpack.i.h.bf16 %v10943_v32  ;;  %v6033_v54 = vunpack.i.l.bf16 %v10943_v32  ;;  %v393_v49 = vld [vmem:[%s10652_s4 + $0x108] sm:$0xff]  ;;  %v8604_v3 = vsel %vm2350_vm4, %v8395_v0, %v6013_v15  ;;  %v8608_v4 = vsel %vm2350_vm4, %v8391_v55, %v6014_v2  ;;  %v10945_v15 = vld [vmem:[#allocation75_spill] sm:$0xff] }
 0x1b9   : > { %v6039_v31 = vunpack.i.h.bf16 %v10944_v27  ;;  %v6038_v8 = vunpack.i.l.bf16 %v10944_v27  ;;  %v8618_v32 = vsel %vm2350_vm4, %v8404_v10, %v6018_v58  ;;  %v8622_v0 = vsel %vm2350_vm4, %v8408_v28, %v6019_v60  ;;  %v394_v60 = vld [vmem:[%s10652_s4 + $0x110] sm:$0xff]  ;;  %v10946_v58 = vld [vmem:[#allocation76_spill] sm:$0xff] }
 0x1ba   : > { %v6044_v9 = vunpack.i.h.bf16 %v10945_v15  ;;  %v6043_v55 = vunpack.i.l.bf16 %v10945_v15  ;;  %v8628_v2 = vsel %vm2350_vm4, %v8422_v62, %v6023_v63  ;;  %v8632_v27 = vsel %vm2350_vm4, %v8418_v57, %v6024_v13  ;;  %v10947_v13 = vld [vmem:[#allocation77_spill] sm:$0xff] }
 0x1bb   : > { %v8612_v52 = vpop.permute.xlu0 %6291  ;;  %v8614_v56 = vpop.permute.xlu1 %6296  ;;  %v8636_v10 = vsel %vm2350_vm4, %v8428_v30, %v6028_v45  ;;  %v8640_v28 = vsel %vm2350_vm4, %v8432_v22, %v6029_v44  ;;  %v8647_v62 = vsel %vm2350_vm4, %v8440_v39, %v6033_v54  ;;  %v8651_v57 = vsel %vm2350_vm4, %v8436_v23, %v6034_v7  ;;  %v395_v44 = vld [vmem:[%s10652_s4 + $0x118] sm:$0xff] }
 0x1bc   : > { %3155 = vperm.xlu0 %5728, %v392_v35   ;;  %3160 = vperm.xlu1 %5729, %v393_v49   ;;  %v6049_v45 = vunpack.i.h.bf16 %v10946_v58  ;;  %v6048_v30 = vunpack.i.l.bf16 %v10946_v58  ;;  %v8660_v22 = vsel %vm2350_vm4, %v8447_v5, %v6038_v8  ;;  %v8664_v39 = vsel %vm2350_vm4, %v8451_v36, %v6039_v31  ;;  %v10950_v49 = vld [vmem:[#allocation78_spill] sm:$0xff]  ;;  %v10951_v31 = vld [vmem:[#allocation79_spill] sm:$0xff] }
 0x1bd   : > { %v6054_v63 = vunpack.i.h.bf16 %v10947_v13  ;;  %v6053_v23 = vunpack.i.l.bf16 %v10947_v13  ;;  %v8674_v54 = vsel %vm2350_vm4, %v8464_v46, %v6043_v55  ;;  %v8678_v5 = vsel %vm2350_vm4, %v8460_v53, %v6044_v9  ;;  %v10952_v13 = vld [vmem:[#allocation80_spill] sm:$0xff]  ;;  %v10953_v53 = vld [vmem:[#allocation81_spill] sm:$0xff] }
 0x1be   : > { %v6059_v8 = vunpack.i.h.bf16 %v10950_v49  ;;  %v6058_v36 = vunpack.i.l.bf16 %v10950_v49  ;;  %v6064_v15 = vunpack.i.h.bf16 %v10951_v31  ;;  %v6063_v58 = vunpack.i.l.bf16 %v10951_v31 }
 0x1bf   : > { %v8668_v35 = vpop.permute.xlu0 %6301  ;;  %v8670_v7 = vpop.permute.xlu1 %6306  ;;  %v8688_v46 = vsel %vm2350_vm4, %v8474_v48, %v6048_v30  ;;  %v8692_v9 = vsel %vm2350_vm4, %v8478_v37, %v6049_v45  ;;  %v6074_v55 = vunpack.i.h.bf16 %v10953_v53  ;;  %v8698_v49 = vsel %vm2350_vm4, %v8495_v1, %v6053_v23  ;;  %v10955_v23 = vld [vmem:[#allocation83_spill] sm:$0xff] }
 0x1c0   : > { %10948 = vst [vmem:[#allocation53_spill] sm:$0xff] %v8668_v35  ;;  %10949 = vst [vmem:[#allocation54_spill] sm:$0xff] %v8670_v7  ;;  %3165 = vperm.xlu0 %5728, %v394_v60   ;;  %v6069_v35 = vunpack.i.h.bf16 %v10952_v13  ;;  %v6068_v7 = vunpack.i.l.bf16 %v10952_v13  ;;  %3170 = vperm.xlu1 %5729, %v395_v44   ;;  %v6073_v60 = vunpack.i.l.bf16 %v10953_v53  ;;  %v8702_v31 = vsel %vm2350_vm4, %v8491_v41, %v6054_v63  ;;  %v10954_v44 = vld [vmem:[#allocation82_spill] sm:$0xff] }
 0x1c1   : > { %v6079_v13 = vunpack.i.h.bf16 %v10954_v44  ;;  %v6078_v48 = vunpack.i.l.bf16 %v10954_v44  ;;  %v8712_v45 = vsel %vm2350_vm4, %v8504_v50, %v6058_v36  ;;  %v8716_v1 = vsel %vm2350_vm4, %v8508_v38, %v6059_v8  ;;  %v10961_v36 = vld [vmem:[#allocation84_spill] sm:$0xff] }
 0x1c2   : > { %v6084_v53 = vunpack.i.h.bf16 %v10955_v23  ;;  %v6083_v41 = vunpack.i.l.bf16 %v10955_v23  ;;  %v8722_v63 = vsel %vm2350_vm4, %v8522_v40, %v6063_v58  ;;  %v8726_v44 = vsel %vm2350_vm4, %v8518_v21, %v6064_v15 }
 0x1c3   : > { %v8706_v30 = vpop.permute.xlu0 %6311  ;;  %v8708_v37 = vpop.permute.xlu1 %6316  ;;  %10956 = vst [vmem:[#allocation55_spill] sm:$0xff] %v8726_v44  ;;  %v8730_v50 = vsel %vm2350_vm4, %v8528_v11, %v6068_v7  ;;  %v8734_v38 = vsel %vm2350_vm4, %v8532_v29, %v6069_v35  ;;  %v8738_v8 = vsel %vm2350_vm4, %v8540_v14, %v6073_v60  ;;  %v8742_v40 = vsel %vm2350_vm4, %v8536_v12, %v6074_v55  ;;  %v10964_v35 = vld [vmem:[#allocation85_spill] sm:$0xff]  ;;  %v10967_v60 = vld [vmem:[#allocation86_spill] sm:$0xff] }
 0x1c4   : > { %10957 = vst [vmem:[#allocation56_spill] sm:$0xff] %v8730_v50  ;;  %10958 = vst [vmem:[#allocation57_spill] sm:$0xff] %v8734_v38  ;;  %v6094_v58 = vunpack.i.h.bf16 %v10961_v36  ;;  %v6093_v21 = vunpack.i.l.bf16 %v10961_v36  ;;  %v8748_v11 = vsel %vm2350_vm4, %v8547_v43, %v6078_v48  ;;  %v8752_v29 = vsel %vm2350_vm4, %v8551_v16, %v6079_v13  ;;  %v10968_v48 = vld [vmem:[#allocation87_spill] sm:$0xff] }
 0x1c5   : > { %10959 = vst [vmem:[#allocation58_spill] sm:$0xff] %v8738_v8  ;;  %10960 = vst [vmem:[#allocation59_spill] sm:$0xff] %v8742_v40  ;;  %v6099_v7 = vunpack.i.h.bf16 %v10964_v35  ;;  %v6098_v14 = vunpack.i.l.bf16 %v10964_v35  ;;  %v8762_v55 = vsel %vm2350_vm4, %v8564_v19, %v6083_v41  ;;  %v8766_v43 = vsel %vm2350_vm4, %v8560_v26, %v6084_v53  ;;  %v10969_v35 = vld [vmem:[#allocation88_spill] sm:$0xff]  ;;  %v10970_v26 = vld [vmem:[#allocation89_spill] sm:$0xff] }
 0x1c6   : > { %10962 = vst [vmem:[#allocation60_spill] sm:$0xff] %v8748_v11  ;;  %10963 = vst [vmem:[#allocation61_spill] sm:$0xff] %v8752_v29  ;;  %v6104_v16 = vunpack.i.h.bf16 %v10967_v60  ;;  %v6103_v13 = vunpack.i.l.bf16 %v10967_v60  ;;  %v6109_v23 = vunpack.i.h.bf16 %v10968_v48  ;;  %v6108_v36 = vunpack.i.l.bf16 %v10968_v48 }
 0x1c7   : > { %v8756_v15 = vpop.permute.xlu0 %6321  ;;  %v8758_v12 = vpop.permute.xlu1 %6326  ;;  %10965 = vst [vmem:[#allocation62_spill] sm:$0xff] %v8762_v55  ;;  %10966 = vst [vmem:[#allocation63_spill] sm:$0xff] %v8766_v43  ;;  %v6114_v29 = vunpack.i.h.bf16 %v10969_v35  ;;  %v6113_v11 = vunpack.i.l.bf16 %v10969_v35  ;;  %v2388_v19 = vsel %vm2387_vm5, %v8574_v20, %v6093_v21  ;;  %v2389_v41 = vsel %vm2387_vm5, %v8578_v34, %v6094_v58  ;;  %v10971_v55 = vld [vmem:[#allocation90_spill] sm:$0xff]  ;;  %v10973_v21 = vld [vmem:[#allocation91_spill] sm:$0xff] }
 0x1c8   : > { %v6119_v53 = vunpack.i.h.bf16 %v10970_v26  ;;  %v6118_v43 = vunpack.i.l.bf16 %v10970_v26  ;;  %v2390_v60 = vsel %vm2387_vm5, %v8591_v42, %v6098_v14  ;;  %v2391_v48 = vsel %vm2387_vm5, %v8595_v18, %v6099_v7 }
 0x1c9   : > { %v6124_v40 = vunpack.i.h.bf16 %v10971_v55  ;;  %v6123_v35 = vunpack.i.l.bf16 %v10971_v55  ;;  %v2392_v34 = vsel %vm2387_vm5, %v8604_v3, %v6103_v13  ;;  %v2393_v58 = vsel %vm2387_vm5, %v8608_v4, %v6104_v16  ;;  %v10974_v55 = vld [vmem:[#allocation104_spill] sm:$0xff] }
 0x1ca   : > { %v6129_v26 = vunpack.i.h.bf16 %v10973_v21  ;;  %v6128_v42 = vunpack.i.l.bf16 %v10973_v21  ;;  %v8798_v18 = vsel %vm2387_vm5, %v8618_v32, %v6108_v36  ;;  %v8802_v7 = vsel %vm2387_vm5, %v8622_v0, %v6109_v23  ;;  %v10978_v23 = vld [vmem:[#allocation92_spill] sm:$0xff] }
 0x1cb   : > { %v8786_v8 = vpop.permute.xlu0 %6331  ;;  %v8788_v20 = vpop.permute.xlu1 %6336  ;;  %v8806_v14 = vsel %vm2387_vm5, %v8628_v2, %v6113_v11  ;;  %v8810_v3 = vsel %vm2387_vm5, %v8632_v27, %v6114_v29  ;;  %v8814_v4 = vsel %vm2387_vm5, %v8636_v10, %v6118_v43  ;;  %v8818_v32 = vsel %vm2387_vm5, %v8640_v28, %v6119_v53  ;;  %v10975_v11 = vld [vmem:[#allocation103_spill] sm:$0xff] }
 0x1cc   : > { %10972 = vst [vmem:[#allocation64_spill] sm:$0xff] %v8788_v20  ;;  %v6189_v0 = vunpack.i.h.bf16 %v10974_v55  ;;  %v6188_v16 = vunpack.i.l.bf16 %v10974_v55  ;;  %v8824_v2 = vsel %vm2387_vm5, %v8647_v62, %v6123_v35  ;;  %v8828_v27 = vsel %vm2387_vm5, %v8651_v57, %v6124_v40  ;;  %v10979_v35 = vld [vmem:[#allocation93_spill] sm:$0xff] }
 0x1cd   : > { %v6184_v29 = vunpack.i.h.bf16 %v10975_v11  ;;  %v6183_v10 = vunpack.i.l.bf16 %v10975_v11  ;;  %v8838_v13 = vsel %vm2387_vm5, %v8660_v22, %v6128_v42  ;;  %v8842_v62 = vsel %vm2387_vm5, %v8664_v39, %v6129_v26 }
 0x1ce   : > { %v6269_v57 = vunpack.i.h.bf16 %v8470_v33  ;;  %v6268_v40 = vunpack.i.l.bf16 %v8470_v33  ;;  %v6133_v53 = vunpack.i.l.bf16 %v10978_v23  ;;  %v2427_v11 = vsel %vm2424_vm6, %v2390_v60, %v6188_v16 }
 0x1cf   : > { %v8832_v43 = vpop.permute.xlu0 %6341  ;;  %v8834_v28 = vpop.permute.xlu1 %6346  ;;  %v2428_v22 = vsel %vm2424_vm6, %v2391_v48, %v6189_v0  ;;  %v6194_v42 = vunpack.i.h.bf16 %v8118_v17  ;;  %v6193_v39 = vunpack.i.l.bf16 %v8118_v17  ;;  %v6199_v26 = vunpack.i.h.bf16 %v8120_v24  ;;  %v10982_v48 = vld [vmem:[#allocation102_spill] sm:$0xff] }
 0x1d0   : > { %10976 = vst [vmem:[#allocation65_spill] sm:$0xff] %v8832_v43  ;;  %10977 = vst [vmem:[#allocation66_spill] sm:$0xff] %v8834_v28  ;;  %v6198_v33 = vunpack.i.l.bf16 %v8120_v24  ;;  %v2425_v21 = vsel %vm2424_vm6, %v2388_v19, %v6183_v10  ;;  %v2426_v55 = vsel %vm2424_vm6, %v2389_v41, %v6184_v29  ;;  %v10981_v43 = vld [vmem:[#allocation101_spill] sm:$0xff]  ;;  %v2460_v0 = vsel %vm2424_vm6, %v10982_v48, %v6269_v57 }
 0x1d1   : > { %v2459_v60 = vsel %vm2424_vm6, %v10981_v43, %v6268_v40  ;;  %v6274_v20 = vunpack.i.h.bf16 %v8512_v51  ;;  %v6273_v38 = vunpack.i.l.bf16 %v8512_v51  ;;  %v6279_v24 = vunpack.i.h.bf16 %v8514_v47 }
 0x1d2   : > { %v2429_v19 = vsel %vm2424_vm6, %v2392_v34, %v6193_v39  ;;  %v2430_v41 = vsel %vm2424_vm6, %v2393_v58, %v6194_v42  ;;  %v6204_v43 = vunpack.i.h.bf16 %v8168_v6  ;;  %v6284_v51 = vunpack.i.h.bf16 %v8568_v25 }
 0x1d3   : > { %v8856_v36 = vpop.permute.xlu0 %6351  ;;  %v6357_v28 = vpop.permute.xlu1 %6356  ;;  %v6283_v57 = vunpack.i.l.bf16 %v8568_v25 }
 0x1d4   : > { %10980 = vst [vmem:[#allocation67_spill] sm:$0xff] %v8856_v36  ;;  %v6359_v16 = vunpack.i.h.bf16 %v6357_v28  ;;  %v6358_v17 = vunpack.i.l.bf16 %v6357_v28  ;;  %v6278_v36 = vunpack.i.l.bf16 %v8514_v47  ;;  %v6203_v28 = vunpack.i.l.bf16 %v8168_v6 }
 0x1d6   : > { %v8871_v29 = vsel %vm2461_vm7, %v2459_v60, %v6358_v17  ;;  %v8874_v10 = vsel %vm2461_vm7, %v2460_v0, %v6359_v16  ;;  %v2464_v42 = vsel %vm2461_vm7, %v2427_v11, %v6278_v36  ;;  %v2465_v60 = vsel %vm2461_vm7, %v2428_v22, %v6279_v24 }
 0x1d7   : > { %v6362_v40 = vpop.permute.xlu0 %6361  ;;  %v6367_v47 = vpop.permute.xlu1 %6366  ;;  %v2462_v0 = vsel %vm2461_vm7, %v2425_v21, %v6273_v38  ;;  %v2463_v16 = vsel %vm2461_vm7, %v2426_v55, %v6274_v20  ;;  %v2466_v38 = vsel %vm2461_vm7, %v2429_v19, %v6283_v57  ;;  %v2467_v20 = vsel %vm2461_vm7, %v2430_v41, %v6284_v51 }
 0x1d8   : > { %v6364_v48 = vunpack.i.h.bf16 %v6362_v40  ;;  %v6363_v34 = vunpack.i.l.bf16 %v6362_v40  ;;  %v6369_v39 = vunpack.i.h.bf16 %v6367_v47  ;;  %v6368_v58 = vunpack.i.l.bf16 %v6367_v47 }
 0x1d9   : > { %v6289_v40 = vunpack.i.h.bf16 %v8570_v61  ;;  %v6288_v47 = vunpack.i.l.bf16 %v8570_v61  ;;  %v6294_v24 = vunpack.i.h.bf16 %v8612_v52  ;;  %v8897_v61 = vsel %vm2387_vm5, %v8674_v54, %v6133_v53 }
 0x1da   : > { %v2501_v6 = vsel %vm2498_vm8, %v2464_v42, %v6368_v58  ;;  %v2502_v17 = vsel %vm2498_vm8, %v2465_v60, %v6369_v39  ;;  %v2499_v25 = vsel %vm2498_vm8, %v2462_v0, %v6363_v34  ;;  %v2500_v50 = vsel %vm2498_vm8, %v2463_v16, %v6364_v48 }
 0x1db   : > { %v6372_v44 = vpop.permute.xlu0 %6371  ;;  %v6377_v36 = vpop.permute.xlu1 %6376  ;;  %v2535_v11 = vpack.c.bf16 %v2500_v50, %v2499_v25  ;;  %v2536_v22 = vpack.c.bf16 %v2502_v17, %v2501_v6  ;;  %v6293_v34 = vunpack.i.l.bf16 %v8612_v52  ;;  %v2431_v50 = vsel %vm2424_vm6, %v8798_v18, %v6198_v33 }
 0x1dc   : > { %v6374_v21 = vunpack.i.h.bf16 %v6372_v44  ;;  %v6373_v55 = vunpack.i.l.bf16 %v6372_v44  ;;  %v6379_v39 = vunpack.i.h.bf16 %v6377_v36  ;;  %v6378_v48 = vunpack.i.l.bf16 %v6377_v36 }
 0x1dd   : > { %5621 = vmatprep.mubr.msk.bf16.mxu0 %vm2573_vm9, %v2535_v11  ;;  %v2432_v52 = vsel %vm2424_vm6, %v8802_v7, %v6199_v26  ;;  %v2433_v44 = vsel %vm2424_vm6, %v8806_v14, %v6203_v28  ;;  %v2434_v51 = vsel %vm2424_vm6, %v8810_v3, %v6204_v43  ;;  %v2468_v18 = vsel %vm2461_vm7, %v2431_v50, %v6288_v47 }
 0x1de   : > { %v2503_v19 = vsel %vm2498_vm8, %v2466_v38, %v6373_v55  ;;  %v2504_v41 = vsel %vm2498_vm8, %v2467_v20, %v6374_v21  ;;  %5622 = vmatmul.mubr.msk.bf16.vlgmr.msra.gmra.mrb[0].mxu0 %vm2573_vm9, %v2536_v22  ;;  %v2469_v33 = vsel %vm2461_vm7, %v2432_v52, %v6289_v40  ;;  %v2470_v60 = vsel %vm2461_vm7, %v2433_v44, %v6293_v34  ;;  %v10985_v40 = vld [vmem:[#allocation105_spill] sm:$0xff]  ;;  %v10989_v52 = vld [vmem:[#allocation95_spill] sm:$0xff] }
 0x1df   : > { %v6382_v54 = vpop.permute.xlu0 %6381  ;;  %v6387_v53 = vpop.permute.xlu1 %6386  ;;  %v2537_v57 = vpack.c.bf16 %v2504_v41, %v2503_v19  ;;  %v2471_v0 = vsel %vm2461_vm7, %v2434_v51, %v6294_v24  ;;  %v2505_v7 = vsel %vm2498_vm8, %v2468_v18, %v6378_v48  ;;  %v2506_v14 = vsel %vm2498_vm8, %v2469_v33, %v6379_v39  ;;  %v10986_v22 = vld [vmem:[#allocation53_spill] sm:$0xff]  ;;  %v10988_v48 = vld [vmem:[#allocation94_spill] sm:$0xff] }
 0x1e0   : > { %v6384_v58 = vunpack.i.h.bf16 %v6382_v54  ;;  %v6383_v42 = vunpack.i.l.bf16 %v6382_v54  ;;  %v10983_v3 = vunpack.i.h.bf16 %v10978_v23  ;;  %v10984_v43 = vunpack.i.l.bf16 %v10979_v35 }
 0x1e1   : > { %5625 = vmatprep.mubr.msk.bf16.mxu0 %vm2573_vm9, %v2537_v57  ;;  %v6209_v17 = vunpack.i.h.bf16 %v8170_v59  ;;  %v6208_v25 = vunpack.i.l.bf16 %v8170_v59  ;;  %v6214_v23 = vunpack.i.h.bf16 %v10985_v40  ;;  %v6213_v47 = vunpack.i.l.bf16 %v10985_v40 }
 0x1e2   : > { %v8921_v26 = vsel %vm2387_vm5, %v8678_v5, %v10983_v3  ;;  %v8927_v28 = vsel %vm2387_vm5, %v8688_v46, %v10984_v43  ;;  %v2507_v16 = vsel %vm2498_vm8, %v2470_v60, %v6383_v42  ;;  %v2508_v6 = vsel %vm2498_vm8, %v2471_v0, %v6384_v58  ;;  %v10990_v0 = vld [vmem:[#allocation106_spill] sm:$0xff]  ;;  %v10991_v3 = vld [vmem:[#allocation44_spill] sm:$0xff] }
 0x1e3   : > { %v6392_v5 = vpop.permute.xlu0 %6391  ;;  %v8935_v36 = vpop.permute.xlu1 %6396  ;;  %v6299_v11 = vunpack.i.h.bf16 %v8614_v56  ;;  %v6298_v46 = vunpack.i.l.bf16 %v8614_v56  ;;  %v6304_v38 = vunpack.i.h.bf16 %v10986_v22  ;;  %v2538_v20 = vpack.c.bf16 %v2506_v14, %v2505_v7 }
 0x1e4   : > { %v6303_v21 = vunpack.i.l.bf16 %v10986_v22  ;;  %v6389_v55 = vunpack.i.h.bf16 %v6387_v53  ;;  %v6388_v24 = vunpack.i.l.bf16 %v6387_v53  ;;  %v2539_v34 = vpack.c.bf16 %v2508_v6, %v2507_v16 }
 0x1e5   : > { %v10987_v59 = vunpack.i.h.bf16 %v10979_v35  ;;  %v6143_v50 = vunpack.i.l.bf16 %v10988_v48  ;;  %v6394_v19 = vunpack.i.h.bf16 %v6392_v5  ;;  %v6393_v41 = vunpack.i.l.bf16 %v6392_v5 }
 0x1e6   : > { %5626 = vmatmul.mubr.msk.bf16.gmra.mrb[4].mxu0 %vm2573_vm9, %v2538_v20  ;;  %v6144_v56 = vunpack.i.h.bf16 %v10988_v48  ;;  %v6149_v44 = vunpack.i.h.bf16 %v10989_v52  ;;  %v2435_v51 = vsel %vm2424_vm6, %v8814_v4, %v6208_v25  ;;  %v2436_v35 = vsel %vm2424_vm6, %v8818_v32, %v6209_v17  ;;  %v10992_v25 = vld [vmem:[#allocation54_spill] sm:$0xff] }
 0x1e7   : > { %v8945_v39 = vsel %vm2387_vm5, %v8692_v9, %v10987_v59  ;;  %v8955_v54 = vpop.permute.xlu1 %6406  ;;  %5629 = vmatprep.mubr.msk.bf16.mxu0 %vm2573_vm9, %v2539_v34  ;;  %v2437_v9 = vsel %vm2424_vm6, %v8824_v2, %v6213_v47  ;;  %v2438_v53 = vsel %vm2424_vm6, %v8828_v27, %v6214_v23  ;;  %v2472_v57 = vsel %vm2461_vm7, %v2435_v51, %v6298_v46  ;;  %v6402_v6 = vpop.permute.xlu0 %6401  ;;  %v10995_v51 = vld [vmem:[#allocation97_spill] sm:$0xff] }
 0x1e8   : > { %v2473_v18 = vsel %vm2461_vm7, %v2436_v35, %v6299_v11  ;;  %v2474_v33 = vsel %vm2461_vm7, %v2437_v9, %v6303_v21  ;;  %v2475_v4 = vsel %vm2461_vm7, %v2438_v53, %v6304_v38  ;;  %v2509_v32 = vsel %vm2498_vm8, %v2472_v57, %v6388_v24  ;;  %v10996_v53 = vld [vmem:[#allocation46_spill] sm:$0xff] }
 0x1e9   : > { %v2510_v58 = vsel %vm2498_vm8, %v2473_v18, %v6389_v55  ;;  %v2408_v42 = vsel %vm2387_vm5, %v8698_v49, %v6143_v50  ;;  %v6148_v2 = vunpack.i.l.bf16 %v10989_v52  ;;  %v2511_v60 = vsel %vm2498_vm8, %v2474_v33, %v6393_v41  ;;  %v10994_v52 = vld [vmem:[#allocation45_spill] sm:$0xff] }
 0x1ea   : > { %v2512_v27 = vsel %vm2498_vm8, %v2475_v4, %v6394_v19  ;;  %v6219_v7 = vunpack.i.h.bf16 %v10990_v0  ;;  %v6218_v14 = vunpack.i.l.bf16 %v10990_v0  ;;  %v6224_v43 = vunpack.i.h.bf16 %v10991_v3 }
 0x1eb   : > { %v6223_v16 = vunpack.i.l.bf16 %v10991_v3  ;;  %v8977_v17 = vpop.permute.xlu1 %6416  ;;  %v6309_v40 = vunpack.i.h.bf16 %v10992_v25  ;;  %v6308_v49 = vunpack.i.l.bf16 %v10992_v25  ;;  %v6314_v23 = vunpack.i.h.bf16 %v8706_v30  ;;  %v6412_v33 = vpop.permute.xlu0 %6411 }
 0x1ec   : > { %v2540_v47 = vpack.c.bf16 %v2510_v58, %v2509_v32  ;;  %v6313_v5 = vunpack.i.l.bf16 %v8706_v30  ;;  %v6399_v11 = vunpack.i.h.bf16 %v8935_v36  ;;  %v6398_v46 = vunpack.i.l.bf16 %v8935_v36  ;;  %v10993_v30 = vld [vmem:[#allocation96_spill] sm:$0xff] }
 0x1ed   : > { %v2541_v22 = vpack.c.bf16 %v2512_v27, %v2511_v60  ;;  %v2409_v38 = vsel %vm2387_vm5, %v8702_v31, %v6144_v56  ;;  %v8989_v20 = vsel %vm2387_vm5, %v8712_v45, %v6148_v2  ;;  %v6404_v21 = vunpack.i.h.bf16 %v6402_v6 }
 0x1ee   : > { %v6403_v55 = vunpack.i.l.bf16 %v6402_v6  ;;  %5630 = vmatmul.mubr.msk.bf16.gmra.mrb[8].mxu0 %vm2573_vm9, %v2540_v47  ;;  %v8994_v24 = vsel %vm2387_vm5, %v8716_v1, %v6149_v44  ;;  %v6154_v34 = vunpack.i.h.bf16 %v10993_v30  ;;  %v2439_v36 = vsel %vm2424_vm6, %v8838_v13, %v6218_v14 }
 0x1ef   : > { %v2440_v31 = vsel %vm2424_vm6, %v8842_v62, %v6219_v7  ;;  %v9001_v59 = vpop.permute.xlu1 %6426  ;;  %5633 = vmatprep.mubr.msk.bf16.mxu0 %vm2573_vm9, %v2541_v22  ;;  %v2441_v45 = vsel %vm2424_vm6, %v8897_v61, %v6223_v16  ;;  %v2442_v48 = vsel %vm2424_vm6, %v8921_v26, %v6224_v43  ;;  %v2476_v1 = vsel %vm2461_vm7, %v2439_v36, %v6308_v49 }
 0x1f0   : > { %v2477_v50 = vsel %vm2461_vm7, %v2440_v31, %v6309_v40  ;;  %v2478_v19 = vsel %vm2461_vm7, %v2441_v45, %v6313_v5  ;;  %v2479_v13 = vsel %vm2461_vm7, %v2442_v48, %v6314_v23  ;;  %v2513_v62 = vsel %vm2498_vm8, %v2476_v1, %v6398_v46  ;;  %v10997_v40 = vld [vmem:[#allocation47_spill] sm:$0xff]  ;;  %v10998_v31 = vld [vmem:[#allocation48_spill] sm:$0xff]  ;;  %v6422_v1 = vpop.permute.xlu0 %6421 }
 0x1f1   : > { %v2514_v41 = vsel %vm2498_vm8, %v2477_v50, %v6399_v11  ;;  %v6153_v56 = vunpack.i.l.bf16 %v10993_v30  ;;  %v6228_v44 = vunpack.i.l.bf16 %v10994_v52  ;;  %v2515_v61 = vsel %vm2498_vm8, %v2478_v19, %v6403_v55 }
 0x1f2   : > { %v2516_v26 = vsel %vm2498_vm8, %v2479_v13, %v6404_v21  ;;  %v6159_v35 = vunpack.i.h.bf16 %v10995_v51  ;;  %v6229_v9 = vunpack.i.h.bf16 %v10994_v52  ;;  %v6234_v57 = vunpack.i.h.bf16 %v10996_v53 }
 0x1f3   : > { %v6233_v18 = vunpack.i.l.bf16 %v10996_v53  ;;  %v9022_v4 = vpop.permute.xlu1 %6436  ;;  %v6319_v32 = vunpack.i.h.bf16 %v8708_v37  ;;  %v6318_v58 = vunpack.i.l.bf16 %v8708_v37  ;;  %v6324_v2 = vunpack.i.h.bf16 %v8756_v15  ;;  %v11000_v53 = vld [vmem:[#allocation56_spill] sm:$0xff] }
 0x1f4   : > { %v2542_v60 = vpack.c.bf16 %v2514_v41, %v2513_v62  ;;  %v6323_v27 = vunpack.i.l.bf16 %v8756_v15  ;;  %v6409_v0 = vunpack.i.h.bf16 %v8955_v54  ;;  %v6408_v7 = vunpack.i.l.bf16 %v8955_v54 }
 0x1f5   : > { %v2543_v14 = vpack.c.bf16 %v2516_v26, %v2515_v61  ;;  %v6158_v3 = vunpack.i.l.bf16 %v10995_v51  ;;  %v2443_v43 = vsel %vm2424_vm6, %v8927_v28, %v6228_v44  ;;  %v6414_v16 = vunpack.i.h.bf16 %v6412_v33  ;;  %v10999_v26 = vld [vmem:[#allocation55_spill] sm:$0xff] }
 0x1f6   : > { %v6413_v6 = vunpack.i.l.bf16 %v6412_v33  ;;  %5634 = vmatmul.mubr.msk.bf16.gmra.mrb[12].mxu0 %vm2573_vm9, %v2542_v60  ;;  %v2444_v37 = vsel %vm2424_vm6, %v8945_v39, %v6229_v9  ;;  %v2445_v25 = vsel %vm2424_vm6, %v2408_v42, %v6233_v18  ;;  %v2446_v15 = vsel %vm2424_vm6, %v2409_v38, %v6234_v57  ;;  %v11001_v57 = vld [vmem:[#allocation57_spill] sm:$0xff] }
 0x1f7   : > { %v6239_v49 = vunpack.i.h.bf16 %v10997_v40  ;;  %v6447_v54 = vpop.permute.xlu1 %6446  ;;  %5637 = vmatprep.mubr.msk.bf16.mxu0 %vm2573_vm9, %v2543_v14  ;;  %v2480_v23 = vsel %vm2461_vm7, %v2443_v43, %v6318_v58  ;;  %v2481_v28 = vsel %vm2461_vm7, %v2444_v37, %v6319_v32  ;;  %v2482_v11 = vsel %vm2461_vm7, %v2445_v25, %v6323_v27  ;;  %v11004_v43 = vld [vmem:[#allocation50_spill] sm:$0xff]  ;;  %v6432_v37 = vpop.permute.xlu0 %6431  ;;  %v11005_v25 = vld [vmem:[#allocation64_spill] sm:$0xff] }
 0x1f8   : > { %v6449_v47 = vunpack.i.h.bf16 %v6447_v54  ;;  %v6448_v5 = vunpack.i.l.bf16 %v6447_v54  ;;  %v2483_v46 = vsel %vm2461_vm7, %v2446_v15, %v6324_v2  ;;  %v2517_v39 = vsel %vm2498_vm8, %v2480_v23, %v6408_v7  ;;  %v11002_v2 = vld [vmem:[#allocation98_spill] sm:$0xff]  ;;  %v11003_v7 = vld [vmem:[#allocation49_spill] sm:$0xff] }
 0x1f9   : > { %v2518_v42 = vsel %vm2498_vm8, %v2481_v28, %v6409_v0  ;;  %v2519_v22 = vsel %vm2498_vm8, %v2482_v11, %v6413_v6  ;;  %v2520_v38 = vsel %vm2498_vm8, %v2483_v46, %v6414_v16  ;;  %v6238_v36 = vunpack.i.l.bf16 %v10997_v40  ;;  %v11007_v46 = vld [vmem:[#allocation99_spill] sm:$0xff] }
 0x1fa   : > { %v9050_v21 = vsel %vm2498_vm8, %v8871_v29, %v6448_v5  ;;  %v9054_v55 = vsel %vm2498_vm8, %v8874_v10, %v6449_v47  ;;  %v6244_v45 = vunpack.i.h.bf16 %v10998_v31  ;;  %v6243_v48 = vunpack.i.l.bf16 %v10998_v31 }
 0x1fb   : > { %v2552_v50 = vpack.c.bf16 %v9054_v55, %v9050_v21  ;;  %v6329_v19 = vunpack.i.h.bf16 %v8758_v12  ;;  %v6328_v13 = vunpack.i.l.bf16 %v8758_v12  ;;  %v6334_v29 = vunpack.i.h.bf16 %v8786_v8 }
 0x1fc   : > { %v2544_v62 = vpack.c.bf16 %v2518_v42, %v2517_v39  ;;  %v6333_v10 = vunpack.i.l.bf16 %v8786_v8  ;;  %v6419_v41 = vunpack.i.h.bf16 %v8977_v17  ;;  %v6418_v52 = vunpack.i.l.bf16 %v8977_v17 }
 0x1fd   : > { %v2545_v44 = vpack.c.bf16 %v2520_v38, %v2519_v22  ;;  %v2412_v61 = vsel %vm2387_vm5, %v8722_v63, %v6153_v56  ;;  %v2413_v51 = vsel %vm2387_vm5, %v10999_v26, %v6154_v34  ;;  %v6424_v9 = vunpack.i.h.bf16 %v6422_v1 }
 0x1fe   : > { %v6423_v12 = vunpack.i.l.bf16 %v6422_v1  ;;  %5638 = vmatmul.mubr.msk.bf16.gmra.mrb[16].mxu0 %vm2573_vm9, %v2544_v62  ;;  %v2414_v8 = vsel %vm2387_vm5, %v11000_v53, %v6158_v3  ;;  %v2415_v18 = vsel %vm2387_vm5, %v11001_v57, %v6159_v35  ;;  %v2447_v17 = vsel %vm2424_vm6, %v8989_v20, %v6238_v36  ;;  %v11008_v36 = vld [vmem:[#allocation58_spill] sm:$0xff]  ;;  %v11011_v53 = vld [vmem:[#allocation51_spill] sm:$0xff] }
 0x1ff   : > { %v2448_v63 = vsel %vm2424_vm6, %v8994_v24, %v6239_v49  ;;  %5641 = vmatprep.mubr.msk.bf16.mxu0 %vm2573_vm9, %v2545_v44  ;;  %v2449_v30 = vsel %vm2424_vm6, %v2412_v61, %v6243_v48  ;;  %v2450_v34 = vsel %vm2424_vm6, %v2413_v51, %v6244_v45  ;;  %v2484_v56 = vsel %vm2461_vm7, %v2447_v17, %v6328_v13  ;;  %v11006_v49 = vld [vmem:[#allocation65_spill] sm:$0xff]  ;;  %v11009_v45 = vld [vmem:[#allocation59_spill] sm:$0xff]  ;;  %v11010_v61 = vld [vmem:[#allocation100_spill] sm:$0xff] }
 0x200   : > { %v2485_v33 = vsel %vm2461_vm7, %v2448_v63, %v6329_v19  ;;  %v2486_v32 = vsel %vm2461_vm7, %v2449_v30, %v6333_v10  ;;  %v2487_v35 = vsel %vm2461_vm7, %v2450_v34, %v6334_v29  ;;  %v2521_v58 = vsel %vm2498_vm8, %v2484_v56, %v6418_v52  ;;  %v6442_v30 = vpop.permute.xlu0 %6441  ;;  %v11013_v34 = vld [vmem:[#allocation66_spill] sm:$0xff] }
 0x201   : > { %v2522_v20 = vsel %vm2498_vm8, %v2485_v33, %v6419_v41  ;;  %v6164_v24 = vunpack.i.h.bf16 %v11002_v2  ;;  %v6163_v60 = vunpack.i.l.bf16 %v11002_v2  ;;  %v2523_v27 = vsel %vm2498_vm8, %v2486_v32, %v6423_v12  ;;  %v11014_v32 = vld [vmem:[#allocation67_spill] sm:$0xff] }
 0x202   : > { %v2524_v0 = vsel %vm2498_vm8, %v2487_v35, %v6424_v9  ;;  %v6249_v14 = vunpack.i.h.bf16 %v11003_v7  ;;  %v6248_v3 = vunpack.i.l.bf16 %v11003_v7  ;;  %v6254_v16 = vunpack.i.h.bf16 %v11004_v43  ;;  %v11016_v7 = vld [vmem:[#allocation61_spill] sm:$0xff] }
 0x203   : > { %v6253_v6 = vunpack.i.l.bf16 %v11004_v43  ;;  %v6339_v15 = vunpack.i.h.bf16 %v11005_v25  ;;  %v6338_v40 = vunpack.i.l.bf16 %v11005_v25  ;;  %v6344_v54 = vunpack.i.h.bf16 %v11006_v49 }
 0x204   : > { %v2546_v23 = vpack.c.bf16 %v2522_v20, %v2521_v58  ;;  %v6343_v28 = vunpack.i.l.bf16 %v11006_v49  ;;  %v6429_v47 = vunpack.i.h.bf16 %v9001_v59  ;;  %v6428_v5 = vunpack.i.l.bf16 %v9001_v59 }
 0x205   : > { %v2547_v11 = vpack.c.bf16 %v2524_v0, %v2523_v27  ;;  %v6169_v39 = vunpack.i.h.bf16 %v11007_v46  ;;  %v6168_v42 = vunpack.i.l.bf16 %v11007_v46  ;;  %v6434_v22 = vunpack.i.h.bf16 %v6432_v37  ;;  %v11015_v27 = vld [vmem:[#allocation60_spill] sm:$0xff] }
 0x206   : > { %v6433_v38 = vunpack.i.l.bf16 %v6432_v37  ;;  %5642 = vmatmul.mubr.msk.bf16.gmra.mrb[20].mxu0 %vm2573_vm9, %v2546_v23  ;;  %v2416_v31 = vsel %vm2387_vm5, %v11008_v36, %v6163_v60  ;;  %v2417_v48 = vsel %vm2387_vm5, %v11009_v45, %v6164_v24  ;;  %v2451_v1 = vsel %vm2424_vm6, %v2414_v8, %v6248_v3  ;;  %v11018_v37 = vld [vmem:[#allocation63_spill] sm:$0xff]  ;;  %v9166_v45 = vpop.permute.xlu0 %2995 }
 0x207   : > { %v2452_v19 = vsel %vm2424_vm6, %v2415_v18, %v6249_v14  ;;  %5645 = vmatprep.mubr.msk.bf16.mxu0 %vm2573_vm9, %v2547_v11  ;;  %v2453_v59 = vsel %vm2424_vm6, %v2416_v31, %v6253_v6  ;;  %v2454_v13 = vsel %vm2424_vm6, %v2417_v48, %v6254_v16  ;;  %v2488_v29 = vsel %vm2461_vm7, %v2451_v1, %v6338_v40  ;;  %v11012_v18 = vld [vmem:[#allocation52_spill] sm:$0xff]  ;;  %v11017_v16 = vld [vmem:[#allocation62_spill] sm:$0xff]  ;;  %v9168_v48 = vpop.permute.xlu1 %3000 }
 0x208   : > { %v2489_v62 = vsel %vm2461_vm7, %v2452_v19, %v6339_v15  ;;  %v2490_v10 = vsel %vm2461_vm7, %v2453_v59, %v6343_v28  ;;  %v2491_v41 = vsel %vm2461_vm7, %v2454_v13, %v6344_v54  ;;  %v2525_v52 = vsel %vm2498_vm8, %v2488_v29, %v6428_v5  ;;  %v3322_v36 = vld [vmem:[#allocation3 + $0xe] sm:$0xff] }
 0x209   : > { %v2526_v44 = vsel %vm2498_vm8, %v2489_v62, %v6429_v47  ;;  %v6174_v26 = vunpack.i.h.bf16 %v11010_v61  ;;  %v6173_v51 = vunpack.i.l.bf16 %v11010_v61  ;;  %v2527_v9 = vsel %vm2498_vm8, %v2490_v10, %v6433_v38  ;;  %v3321_v38 = vld [vmem:[#allocation3 + $0x6] sm:$0xff]  ;;  %v11019_v59 = vld [vmem:[#allocation4_spill] sm:$0xff] }
 0x20a   : > { %v2528_v12 = vsel %vm2498_vm8, %v2491_v41, %v6434_v22  ;;  %v6259_v8 = vunpack.i.h.bf16 %v11011_v53  ;;  %v6258_v57 = vunpack.i.l.bf16 %v11011_v53  ;;  %v6264_v17 = vunpack.i.h.bf16 %v11012_v18  ;;  %v9170_v1 = vpop.permute.xlu0 %3005  ;;  %v11020_v41 = vld [vmem:[#allocation8_spill] sm:$0xff]  ;;  %v11023_v53 = vld [vmem:[#allocation11_spill] sm:$0xff] }
 0x20b   : > { %v6263_v63 = vunpack.i.l.bf16 %v11012_v18  ;;  %v6349_v56 = vunpack.i.h.bf16 %v11013_v34  ;;  %v6348_v33 = vunpack.i.l.bf16 %v11013_v34  ;;  %v6354_v35 = vunpack.i.h.bf16 %v11014_v32  ;;  %v9172_v19 = vpop.permute.xlu1 %3010 }
 0x20c   : > { %v2548_v58 = vpack.c.bf16 %v2526_v44, %v2525_v52  ;;  %v6353_v20 = vunpack.i.l.bf16 %v11014_v32  ;;  %v6439_v2 = vunpack.i.h.bf16 %v9022_v4  ;;  %v6438_v24 = vunpack.i.l.bf16 %v9022_v4  ;;  %v11021_v44 = vld [vmem:[#allocation9_spill] sm:$0xff] }
 0x20d   : > { %v2549_v60 = vpack.c.bf16 %v2528_v12, %v2527_v9  ;;  %v2418_v0 = vsel %vm2387_vm5, %v11015_v27, %v6168_v42  ;;  %v2419_v14 = vsel %vm2387_vm5, %v11016_v7, %v6169_v39  ;;  %v6444_v3 = vunpack.i.h.bf16 %v6442_v30 }
 0x20e   : > { %v6443_v43 = vunpack.i.l.bf16 %v6442_v30  ;;  %5646 = vmatmul.mubr.msk.bf16.gmra.mrb[24].mxu0 %vm2573_vm9, %v2548_v58  ;;  %v2420_v6 = vsel %vm2387_vm5, %v11017_v16, %v6173_v51  ;;  %v2421_v25 = vsel %vm2387_vm5, %v11018_v37, %v6174_v26  ;;  %v2455_v15 = vsel %vm2424_vm6, %v2418_v0, %v6258_v57  ;;  %v9175_v29 = vpop.permute.xlu0 %3015  ;;  %v11022_v26 = vld [vmem:[#allocation10_spill] sm:$0xff]  ;;  %v11024_v57 = vld [vmem:[#allocation13_spill] sm:$0xff]  ;;  %v11026_v30 = vld [vmem:[#allocation15_spill] sm:$0xff] }
 0x20f   : > { %v2456_v4 = vsel %vm2424_vm6, %v2419_v14, %v6259_v8  ;;  %5649 = vmatprep.mubr.msk.bf16.mxu0 %vm2573_vm9, %v2549_v60  ;;  %v2457_v40 = vsel %vm2424_vm6, %v2420_v6, %v6263_v63  ;;  %v2458_v49 = vsel %vm2424_vm6, %v2421_v25, %v6264_v17  ;;  %v2492_v54 = vsel %vm2461_vm7, %v2455_v15, %v6348_v33  ;;  %v9177_v21 = vpop.permute.xlu1 %3020  ;;  %v11025_v17 = vld [vmem:[#allocation12_spill] sm:$0xff]  ;;  %v11031_v16 = vld [vmem:[#allocation19_spill] sm:$0xff] }
 0x210   : > { %v2493_v23 = vsel %vm2461_vm7, %v2456_v4, %v6349_v56  ;;  %v2494_v28 = vsel %vm2461_vm7, %v2457_v40, %v6353_v20  ;;  %v2495_v47 = vsel %vm2461_vm7, %v2458_v49, %v6354_v35  ;;  %v2529_v5 = vsel %vm2498_vm8, %v2492_v54, %v6438_v24  ;;  %v7179_v56 = vld [vmem:[%s7286_s16] sm:$0x7]  ;;  %v11027_v35 = vld [vmem:[#allocation14_spill] sm:$0xff]  ;;  %v11028_v20 = vld [vmem:[#allocation17_spill] sm:$0xff] }
 0x211   : > { %v2530_v11 = vsel %vm2498_vm8, %v2493_v23, %v6439_v2  ;;  %v2531_v46 = vsel %vm2498_vm8, %v2494_v28, %v6443_v43  ;;  %v2532_v39 = vsel %vm2498_vm8, %v2495_v47, %v6444_v3  ;;  %v6450_v31 = vpack.i.bf16 %v3322_v36, %v3321_v38  ;;  %v11029_v24 = vld [vmem:[#allocation16_spill] sm:$0xff]  ;;  %v11030_v3 = vld [vmem:[#allocation18_spill] sm:$0xff]  ;;  %v11033_v40 = vld [vmem:[#allocation21_spill] sm:$0xff] }
 0x212   : > { %v2550_v42 = vpack.c.bf16 %v2530_v11, %v2529_v5  ;;  %v2551_v22 = vpack.c.bf16 %v2532_v39, %v2531_v46  ;;  %v615_v13 = vsub.s32 0, %v11019_v59  ;;  %v655_v55 = vsub.s32 1, %v11019_v59  ;;  %v9185_v10 = vpop.permute.xlu0 %3025  ;;  %v11032_v15 = vld [vmem:[#allocation20_spill] sm:$0xff]  ;;  %v11034_v47 = vld [vmem:[#allocation22_spill] sm:$0xff]  ;;  %v11035_v11 = vld [vmem:[#allocation23_spill] sm:$0xff] }
 0x213   : > { %6451 = vrot.lane.b32.xlu0 %v6450_v31, %s7191_s24  ;;  %v9193_v9 = vpop.permute.xlu1 %3030  ;;  %v11037_v36 = vld [vmem:[#allocation25_spill] sm:$0xff]  ;;  %v11038_v59 = vld [vmem:[#allocation27_spill] sm:$0xff] }
 0x214   : > { %v9206_v33 = vrot.slane %v7179_v56, %v655_v55  ;;  %v9208_v32 = vrot.slane %v7179_v56, %v615_v13  ;;  %v11042_v56 = vld [vmem:[#allocation31_spill] sm:$0xff] }
 0x216   : > { %5650 = vmatmul.mubr.msk.bf16.gmra.mrb[28].mxu0 %vm2573_vm9, %v2550_v42  ;;  %v9216_v27 = vpop.permute.xlu0 %3035 }
 0x217   : > { %5653 = vmatprep.mubr.msk.bf16.mxu0 %vm2573_vm9, %v2551_v22  ;;  %v9233_v54 = vpop.permute.xlu1 %3040  ;;  %v11036_v22 = vld [vmem:[#allocation24_spill] sm:$0xff] }
 0x21e   : > { %5654 = vmatmul.mubr.msk.bf16.gmra.mrb[32].mxu0 %vm2573_vm9, %v2552_v50  ;;  %v7178_v50 = vld [vmem:[%s10655_s7] sm:$0xf] }
 0x21f   : > { %v9183_v62 = vrot.slane %v7178_v50, %v615_v13  ;;  %v9195_v12 = vrot.slane %v7178_v50, %v655_v55  ;;  %v11039_v50 = vld [vmem:[#allocation26_spill] sm:$0xff] }
 0x221   : > { %v619_v52 = vmul.f32 %v9183_v62, %v11020_v41  ;;  %v617_v61 = vmul.f32 %v9183_v62, %v11021_v44  ;;  %v620_v51 = vmul.f32 %v9183_v62, %v11022_v26  ;;  %v618_v8 = vmul.f32 %v9183_v62, %v11023_v53 }
 0x222   : > { %v621_v18 = vmul.f32 %v9183_v62, %v11024_v57  ;;  %v622_v63 = vmul.f32 %v9183_v62, %v11025_v17  ;;  %v623_v34 = vmul.f32 %v9183_v62, %v11026_v30  ;;  %v624_v58 = vmul.f32 %v9183_v62, %v11027_v35 }
 0x223   : > { %v625_v2 = vmul.f32 %v9183_v62, %v11028_v20  ;;  %v626_v60 = vmul.f32 %v9183_v62, %v11029_v24  ;;  %v659_v0 = vadd.f32 %v9195_v12, %v619_v52  ;;  %v657_v7 = vadd.f32 %v9195_v12, %v617_v61  ;;  %v11040_v61 = vld [vmem:[#allocation29_spill] sm:$0xff] }
 0x224   : > { %v660_v14 = vadd.f32 %v9195_v12, %v620_v51  ;;  %v628_v43 = vmul.f32 %v9183_v62, %v11030_v3  ;;  %v627_v6 = vmul.f32 %v9183_v62, %v11031_v16  ;;  %v658_v37 = vadd.f32 %v9195_v12, %v618_v8 }
 0x225   : > { %v9227_v25 = vadd.f32 %v9195_v12, %v621_v18  ;;  %v630_v4 = vmul.f32 %v9183_v62, %v11032_v15  ;;  %v629_v49 = vmul.f32 %v9183_v62, %v11033_v40  ;;  %v9236_v23 = vadd.f32 %v9195_v12, %v623_v34 }
 0x226   : > { %v9239_v28 = vadd.f32 %v9195_v12, %v622_v63  ;;  %v632_v5 = vmul.f32 %v9183_v62, %v11034_v47  ;;  %v631_v46 = vmul.f32 %v9183_v62, %v11035_v11  ;;  %v9246_v39 = vadd.f32 %v9195_v12, %v624_v58  ;;  %v11041_v63 = vld [vmem:[#allocation28_spill] sm:$0xff] }
 0x227   : > { %v9249_v42 = vadd.f32 %v9195_v12, %v625_v2  ;;  %v634_v38 = vmul.f32 %v9183_v62, %v11036_v22  ;;  %v633_v31 = vmul.f32 %v9183_v62, %v11037_v36  ;;  %v635_v13 = vmul.f32 %v9183_v62, %v11038_v59  ;;  %v9274_v2 = vpop.permute.xlu0 %3045  ;;  %v9292_v59 = vpop.permute.xlu1 %3050  ;;  %v11045_v47 = vld [vmem:[#allocation32_spill] sm:$0xff] }
 0x228   : > { %v9258_v55 = vadd.f32 %v9195_v12, %v626_v60  ;;  %v636_v52 = vmul.f32 %v9183_v62, %v11039_v50  ;;  %v637_v51 = vmul.f32 %v9183_v62, %v11040_v61  ;;  %v9265_v8 = vadd.f32 %v9195_v12, %v627_v6  ;;  %v11043_v61 = vld [vmem:[#allocation30_spill] sm:$0xff]  ;;  %v11044_v50 = vld [vmem:[#allocation33_spill] sm:$0xff] }
 0x229   : > { %v9268_v18 = vadd.f32 %v9195_v12, %v628_v43  ;;  %v638_v34 = vmul.f32 %v9183_v62, %v11041_v63  ;;  %v639_v58 = vmul.f32 %v9183_v62, %v11042_v56  ;;  %v9277_v60 = vadd.f32 %v9195_v12, %v629_v49 }
 0x22a   : > { %v9280_v22 = vadd.f32 %v9195_v12, %v630_v4  ;;  %v640_v6 = vmul.f32 %v9183_v62, %v11043_v61  ;;  %v641_v43 = vmul.f32 %v9183_v62, %v11044_v50  ;;  %v9287_v63 = vadd.f32 %v9195_v12, %v631_v46 }
 0x22b   : > { %v9290_v56 = vadd.f32 %v9195_v12, %v632_v5  ;;  %v9296_v4 = vadd.f32 %v9195_v12, %v635_v13  ;;  %v9299_v61 = vadd.f32 %v9195_v12, %v633_v31  ;;  %v9302_v50 = vadd.f32 %v9195_v12, %v634_v38 }
 0x22c   : > { %v642_v46 = vmul.f32 %v9183_v62, %v11045_v47  ;;  %v9308_v11 = vadd.f32 %v9195_v12, %v636_v52  ;;  %v9315_v3 = vadd.f32 %v9195_v12, %v639_v58  ;;  %v9318_v38 = vadd.f32 %v9195_v12, %v638_v34 }
 0x22d   : > { %v9322_v20 = vadd.f32 %v9195_v12, %v640_v6  ;;  %v9325_v52 = vadd.f32 %v9195_v12, %v641_v43 }
 0x2b1   : > { %v5623_v36 = vpop.f32.mrb[0].mxu0 }
 0x2b2   : > { %v2815_v49 = vmul.f32 %v5623_v36, %v9206_v33  ;;  %v2666_v15 = vpop.f32.mrb[1].mxu0  ;;  %v9311_v36 = vadd.f32 %v9195_v12, %v637_v51  ;;  %v11046_v51 = vld [vmem:[#allocation35_spill] sm:$0xff] }
 0x2b3   : > { %v2813_v5 = vmul.f32 %v9206_v33, %v2666_v15  ;;  %v5624_v40 = vpop.f32.mrb[2].mxu0 }
 0x2b4   : > { %v2851_v13 = vadd.f32 %v2815_v49, %v659_v0  ;;  %v2816_v24 = vmul.f32 %v5624_v40, %v9206_v33  ;;  %v2669_v31 = vpop.f32.mrb[3].mxu0  ;;  %v643_v0 = vmul.f32 %v9183_v62, %v11046_v51  ;;  %v9329_v40 = vpop.permute.xlu0 %3055 }
 0x2b5   : > { %v2849_v47 = vadd.f32 %v2813_v5, %v657_v7  ;;  %v2814_v15 = vmul.f32 %v9206_v33, %v2669_v31  ;;  %v9332_v7 = vadd.f32 %v9195_v12, %v642_v46  ;;  %v11047_v5 = vld [vmem:[#allocation34_spill] sm:$0xff]  ;;  %v9336_v31 = vpop.permute.xlu1 %3060 }
 0x2b6   : > { %vm2887_vm10 = vcmp.ge.f32.partialorder %v2851_v13, 0.0  ;;  %v2923_v58 = vmul.f32 0.2, %v2851_v13  ;;  %v2852_v49 = vadd.f32 %v2816_v24, %v660_v14  ;;  %v644_v6 = vmul.f32 %v9183_v62, %v11047_v5 }
 0x2b7   : > { %vm2885_vm11 = vcmp.ge.f32.partialorder %v2849_v47, 0.0  ;;  %v2921_v34 = vmul.f32 0.2, %v2849_v47  ;;  %v2850_v16 = vadd.f32 %v2814_v15, %v658_v37  ;;  %v9342_v30 = vadd.f32 %v9195_v12, %v643_v0 }
 0x2b8   : > { %v2959_v43 = vsel %vm2887_vm10, %v2851_v13, %v2923_v58  ;;  %vm2888_vm12 = vcmp.ge.f32.partialorder %v2852_v49, 0.0  ;;  %v2924_v17 = vmul.f32 0.2, %v2852_v49 }
 0x2b9   : > { %v3175_v51 = vmul.f32 %v9170_v1, %v2959_v43  ;;  %v2957_v35 = vsel %vm2885_vm11, %v2849_v47, %v2921_v34  ;;  %vm2886_vm13 = vcmp.ge.f32.partialorder %v2850_v16, 0.0  ;;  %v2922_v57 = vmul.f32 0.2, %v2850_v16  ;;  %v5627_v24 = vpop.f32.mrb[4].mxu0  ;;  %v9347_v34 = vpop.permute.xlu0 %3065 }
 0x2ba   : > { %v3173_v14 = vmul.f32 %v9166_v45, %v2957_v35  ;;  %v2960_v37 = vsel %vm2888_vm12, %v2852_v49, %v2924_v17  ;;  %v2819_v46 = vmul.f32 %v5627_v24, %v9206_v33  ;;  %v2682_v15 = vpop.f32.mrb[5].mxu0  ;;  %v11048_v49 = vld [vmem:[#allocation37_spill] sm:$0xff]  ;;  %v9359_v24 = vpop.permute.xlu1 %3070 }
 0x2bb   : > { %v3215_v5 = vmul.f32 %v9208_v32, %v3175_v51  ;;  %v3176_v13 = vmul.f32 %v9172_v19, %v2960_v37  ;;  %v2958_v58 = vsel %vm2886_vm13, %v2850_v16, %v2922_v57  ;;  %v2817_v1 = vmul.f32 %v9206_v33, %v2682_v15  ;;  %v5628_v47 = vpop.f32.mrb[6].mxu0 }
 0x2bc   : > { %v3213_v43 = vmul.f32 %v9208_v32, %v3173_v14  ;;  %v3174_v45 = vmul.f32 %v9168_v48, %v2958_v58  ;;  %v2855_v17 = vadd.f32 %v2819_v46, %v9236_v23  ;;  %v2820_v35 = vmul.f32 %v5628_v47, %v9206_v33  ;;  %v2685_v0 = vpop.f32.mrb[7].mxu0  ;;  %v11049_v46 = vld [vmem:[#allocation36_spill] sm:$0xff] }
 0x2bd   : > { %v645_v51 = vmul.f32 %v9183_v62, %v11048_v49  ;;  %3251 = vst.msk [vmem:[#allocation3 + $0x28] sm:$0xff] %vm780_vm1, %v3215_v5  ;;  %v3216_v19 = vmul.f32 %v9208_v32, %v3176_v13  ;;  %v2853_v57 = vadd.f32 %v2817_v1, %v9227_v25  ;;  %v2818_v16 = vmul.f32 %v9206_v33, %v2685_v0 }
 0x2be   : > { %3249 = vst.msk [vmem:[#allocation3 + $0x18] sm:$0xff] %vm780_vm1, %v3213_v43  ;;  %v3214_v48 = vmul.f32 %v9208_v32, %v3174_v45  ;;  %vm2891_vm14 = vcmp.ge.f32.partialorder %v2855_v17, 0.0  ;;  %v2927_v23 = vmul.f32 0.2, %v2855_v17  ;;  %v2856_v14 = vadd.f32 %v2820_v35, %v9246_v39  ;;  %v9373_v45 = vpop.permute.xlu0 %3075 }
 0x2bf   : > { %3252 = vst.msk [vmem:[#allocation3 + $0x30] sm:$0xff] %vm780_vm1, %v3216_v19  ;;  %vm2889_vm15 = vcmp.ge.f32.partialorder %v2853_v57, 0.0  ;;  %v2925_v5 = vmul.f32 0.2, %v2853_v57  ;;  %v2854_v37 = vadd.f32 %v2818_v16, %v9239_v28  ;;  %v9367_v25 = vadd.f32 %v9195_v12, %v644_v6 }
 0x2c0   : > { %v646_v15 = vmul.f32 %v9183_v62, %v11049_v46  ;;  %3250 = vst.msk [vmem:[#allocation3 + $0x20] sm:$0xff] %vm780_vm1, %v3214_v48  ;;  %v2963_v13 = vsel %vm2891_vm14, %v2855_v17, %v2927_v23  ;;  %vm2892_vm0 = vcmp.ge.f32.partialorder %v2856_v14, 0.0  ;;  %v2928_v58 = vmul.f32 0.2, %v2856_v14  ;;  %v9383_v23 = vpop.permute.xlu1 %3080 }
 0x2c1   : > { %v3179_v1 = vmul.f32 %v9185_v10, %v2963_v13  ;;  %v2961_v39 = vsel %vm2889_vm15, %v2853_v57, %v2925_v5  ;;  %vm2890_vm2 = vcmp.ge.f32.partialorder %v2854_v37, 0.0  ;;  %v2926_v47 = vmul.f32 0.2, %v2854_v37  ;;  %v5631_v43 = vpop.f32.mrb[8].mxu0 }
 0x2c2   : > { %v3177_v28 = vmul.f32 %v9175_v29, %v2961_v39  ;;  %v2964_v6 = vsel %vm2892_vm0, %v2856_v14, %v2928_v58  ;;  %v2823_v35 = vmul.f32 %v5631_v43, %v9206_v33  ;;  %v2698_v0 = vpop.f32.mrb[9].mxu0  ;;  %v9378_v19 = vadd.f32 %v9195_v12, %v645_v51  ;;  %v11050_v43 = vld [vmem:[#allocation39_spill] sm:$0xff] }
 0x2c3   : > { %v3219_v17 = vmul.f32 %v9208_v32, %v3179_v1  ;;  %v3180_v16 = vmul.f32 %v9193_v9, %v2964_v6  ;;  %v2962_v10 = vsel %vm2890_vm2, %v2854_v37, %v2926_v47  ;;  %v2821_v57 = vmul.f32 %v9206_v33, %v2698_v0  ;;  %v5632_v48 = vpop.f32.mrb[10].mxu0  ;;  %v9403_v0 = vpop.permute.xlu0 %3085 }
 0x2c4   : > { %v3217_v5 = vmul.f32 %v9208_v32, %v3177_v28  ;;  %v3178_v29 = vmul.f32 %v9177_v21, %v2962_v10  ;;  %v2859_v14 = vadd.f32 %v2823_v35, %v9265_v8  ;;  %v2824_v13 = vmul.f32 %v5632_v48, %v9206_v33  ;;  %v2701_v51 = vpop.f32.mrb[11].mxu0 }
 0x2c5   : > { %3255 = vst.msk [vmem:[#allocation3 + $0x48] sm:$0xff] %vm780_vm1, %v3219_v17  ;;  %v3220_v58 = vmul.f32 %v9208_v32, %v3180_v16  ;;  %v2857_v9 = vadd.f32 %v2821_v57, %v9249_v42  ;;  %v2822_v37 = vmul.f32 %v9206_v33, %v2701_v51  ;;  %v9394_v1 = vadd.f32 %v9195_v12, %v646_v15 }
 0x2c6   : > { %3253 = vst.msk [vmem:[#allocation3 + $0x38] sm:$0xff] %vm780_vm1, %v3217_v5  ;;  %v3218_v21 = vmul.f32 %v9208_v32, %v3178_v29  ;;  %vm2895_vm3 = vcmp.ge.f32.partialorder %v2859_v14, 0.0  ;;  %v2931_v8 = vmul.f32 0.2, %v2859_v14  ;;  %v2860_v39 = vadd.f32 %v2824_v13, %v9268_v18  ;;  %v3326_v47 = vld [vmem:[#allocation3 + $0x2e] sm:$0xff]  ;;  %v3323_v29 = vld [vmem:[#allocation3 + $0x16] sm:$0xff]  ;;  %v9407_v13 = vpop.permute.xlu1 %3090 }
 0x2c7   : > { %v647_v28 = vmul.f32 %v9183_v62, %v11050_v43  ;;  %3256 = vst.msk [vmem:[#allocation3 + $0x50] sm:$0xff] %vm780_vm1, %v3220_v58  ;;  %vm2893_vm5 = vcmp.ge.f32.partialorder %v2857_v9, 0.0  ;;  %v2929_v42 = vmul.f32 0.2, %v2857_v9  ;;  %v2858_v6 = vadd.f32 %v2822_v37, %v9258_v55  ;;  %v3325_v15 = vld [vmem:[#allocation3 + $0x26] sm:$0xff]  ;;  %v3324_v35 = vld [vmem:[#allocation3 + $0x1e] sm:$0xff] }
 0x2c8   : > { %3254 = vst.msk [vmem:[#allocation3 + $0x40] sm:$0xff] %vm780_vm1, %v3218_v21  ;;  %v2967_v17 = vsel %vm2895_vm3, %v2859_v14, %v2931_v8  ;;  %vm2896_vm7 = vcmp.ge.f32.partialorder %v2860_v39, 0.0  ;;  %v2932_v16 = vmul.f32 0.2, %v2860_v39  ;;  %v6460_v18 = vpack.i.bf16 %v3326_v47, %v3325_v15 }
 0x2c9   : > { %v3183_v10 = vmul.f32 %v9274_v2, %v2967_v17  ;;  %v2965_v57 = vsel %vm2893_vm5, %v2857_v9, %v2929_v42  ;;  %vm2894_vm9 = vcmp.ge.f32.partialorder %v2858_v6, 0.0  ;;  %v2930_v48 = vmul.f32 0.2, %v2858_v6  ;;  %v5635_v5 = vpop.f32.mrb[12].mxu0  ;;  %v11051_v17 = vld [vmem:[#allocation38_spill] sm:$0xff] }
 0x2ca   : > { %v3181_v55 = vmul.f32 %v9216_v27, %v2965_v57  ;;  %v2968_v51 = vsel %vm2896_vm7, %v2860_v39, %v2932_v16  ;;  %v2827_v58 = vmul.f32 %v5635_v5, %v9206_v33  ;;  %6461 = vrot.lane.b32.xlu0 %v6460_v18, %s7191_s24  ;;  %v6455_v14 = vpack.i.bf16 %v3324_v35, %v3323_v29  ;;  %v2714_v37 = vpop.f32.mrb[13].mxu0 }
 0x2cb   : > { %v3223_v21 = vmul.f32 %v9208_v32, %v3183_v10  ;;  %v3184_v2 = vmul.f32 %v9292_v59, %v2968_v51  ;;  %v2966_v9 = vsel %vm2894_vm9, %v2858_v6, %v2930_v48  ;;  %v2825_v8 = vmul.f32 %v9206_v33, %v2714_v37  ;;  %v5636_v47 = vpop.f32.mrb[14].mxu0  ;;  %v9426_v10 = vpop.permute.xlu0 %3095 }
 0x2cc   : > { %v3221_v42 = vmul.f32 %v9208_v32, %v3181_v55  ;;  %v3182_v15 = vmul.f32 %v9233_v54, %v2966_v9  ;;  %v2863_v27 = vadd.f32 %v2827_v58, %v9287_v63  ;;  %6456 = vrot.lane.b32.xlu1 %v6455_v14, %s7191_s24  ;;  %v2828_v39 = vmul.f32 %v5636_v47, %v9206_v33  ;;  %v2717_v35 = vpop.f32.mrb[15].mxu0  ;;  %v9436_v58 = vpop.permute.xlu1 %3100 }
 0x2cd   : > { %v648_v16 = vmul.f32 %v9183_v62, %v11051_v17  ;;  %3259 = vst.msk [vmem:[#allocation3 + $0x68] sm:$0xff] %vm780_vm1, %v3223_v21  ;;  %v3224_v59 = vmul.f32 %v9208_v32, %v3184_v2  ;;  %v2861_v6 = vadd.f32 %v2825_v8, %v9277_v60  ;;  %v2826_v18 = vmul.f32 %v9206_v33, %v2717_v35 }
 0x2ce   : > { %3257 = vst.msk [vmem:[#allocation3 + $0x58] sm:$0xff] %vm780_vm1, %v3221_v42  ;;  %v3222_v54 = vmul.f32 %v9208_v32, %v3182_v15  ;;  %vm2899_vm10 = vcmp.ge.f32.partialorder %v2863_v27, 0.0  ;;  %v2935_v63 = vmul.f32 0.2, %v2863_v27  ;;  %v2864_v57 = vadd.f32 %v2828_v39, %v9290_v56  ;;  %v3330_v48 = vld [vmem:[#allocation3 + $0x4e] sm:$0xff] }
 0x2cf   : > { %3260 = vst.msk [vmem:[#allocation3 + $0x70] sm:$0xff] %vm780_vm1, %v3224_v59  ;;  %vm2897_vm11 = vcmp.ge.f32.partialorder %v2861_v6, 0.0  ;;  %v2933_v5 = vmul.f32 0.2, %v2861_v6  ;;  %v2862_v29 = vadd.f32 %v2826_v18, %v9280_v22  ;;  %v3329_v60 = vld [vmem:[#allocation3 + $0x46] sm:$0xff]  ;;  %v3328_v55 = vld [vmem:[#allocation3 + $0x3e] sm:$0xff]  ;;  %v9434_v51 = vadd.f32 %v9195_v12, %v647_v28  ;;  %v9446_v18 = vpop.permute.xlu0 %3105 }
 0x2d0   : > { %3258 = vst.msk [vmem:[#allocation3 + $0x60] sm:$0xff] %vm780_vm1, %v3222_v54  ;;  %v2971_v14 = vsel %vm2899_vm10, %v2863_v27, %v2935_v63  ;;  %vm2900_vm12 = vcmp.ge.f32.partialorder %v2864_v57, 0.0  ;;  %v2936_v37 = vmul.f32 0.2, %v2864_v57  ;;  %v6470_v56 = vpack.i.bf16 %v3330_v48, %v3329_v60  ;;  %v3327_v22 = vld [vmem:[#allocation3 + $0x36] sm:$0xff] }
 0x2d1   : > { %v3187_v21 = vmul.f32 %v9347_v34, %v2971_v14  ;;  %v2969_v2 = vsel %vm2897_vm11, %v2861_v6, %v2933_v5  ;;  %vm2898_vm13 = vcmp.ge.f32.partialorder %v2862_v29, 0.0  ;;  %v2934_v9 = vmul.f32 0.2, %v2862_v29  ;;  %v5639_v8 = vpop.f32.mrb[16].mxu0 }
 0x2d2   : > { %v3185_v47 = vmul.f32 %v9329_v40, %v2969_v2  ;;  %v2972_v42 = vsel %vm2900_vm12, %v2864_v57, %v2936_v37  ;;  %v2831_v28 = vmul.f32 %v5639_v8, %v9206_v33  ;;  %6471 = vrot.lane.b32.xlu0 %v6470_v56, %s7191_s24  ;;  %v6465_v15 = vpack.i.bf16 %v3328_v55, %v3327_v22  ;;  %v2730_v39 = vpop.f32.mrb[17].mxu0  ;;  %v9460_v55 = vpop.permute.xlu1 %3110  ;;  %v11052_v56 = vld [vmem:[#allocation41_spill] sm:$0xff] }
 0x2d3   : > { %v3227_v27 = vmul.f32 %v9208_v32, %v3187_v21  ;;  %v3188_v35 = vmul.f32 %v9359_v24, %v2972_v42  ;;  %v2970_v59 = vsel %vm2898_vm13, %v2862_v29, %v2934_v9  ;;  %v2829_v34 = vmul.f32 %v9206_v33, %v2730_v39  ;;  %v5640_v6 = vpop.f32.mrb[18].mxu0 }
 0x2d4   : > { %v3225_v54 = vmul.f32 %v9208_v32, %v3185_v47  ;;  %v3186_v40 = vmul.f32 %v9336_v31, %v2970_v59  ;;  %v2867_v63 = vadd.f32 %v2831_v28, %v9296_v4  ;;  %6466 = vrot.lane.b32.xlu1 %v6465_v15, %s7191_s24  ;;  %v2832_v57 = vmul.f32 %v5640_v6, %v9206_v33  ;;  %v2733_v48 = vpop.f32.mrb[19].mxu0 }
 0x2d5   : > { %3263 = vst.msk [vmem:[#allocation3 + $0x88] sm:$0xff] %vm780_vm1, %v3227_v27  ;;  %v3228_v24 = vmul.f32 %v9208_v32, %v3188_v35  ;;  %v2865_v5 = vadd.f32 %v2829_v34, %v9299_v61  ;;  %v2830_v29 = vmul.f32 %v9206_v33, %v2733_v48  ;;  %v9458_v60 = vadd.f32 %v9195_v12, %v648_v16  ;;  %v3331_v39 = vld [vmem:[#allocation3 + $0x56] sm:$0xff]  ;;  %v9471_v27 = vpop.permute.xlu0 %3115 }
 0x2d6   : > { %3261 = vst.msk [vmem:[#allocation3 + $0x78] sm:$0xff] %vm780_vm1, %v3225_v54  ;;  %v3226_v4 = vmul.f32 %v9208_v32, %v3186_v40  ;;  %vm2903_vm14 = vcmp.ge.f32.partialorder %v2867_v63, 0.0  ;;  %v2939_v31 = vmul.f32 0.2, %v2867_v63  ;;  %v2868_v14 = vadd.f32 %v2832_v57, %v9308_v11  ;;  %v3334_v37 = vld [vmem:[#allocation3 + $0x6e] sm:$0xff]  ;;  %v9479_v48 = vpop.permute.xlu1 %3120 }
 0x2d7   : > { %v649_v21 = vmul.f32 %v9183_v62, %v11052_v56  ;;  %3264 = vst.msk [vmem:[#allocation3 + $0x90] sm:$0xff] %vm780_vm1, %v3228_v24  ;;  %vm2901_vm15 = vcmp.ge.f32.partialorder %v2865_v5, 0.0  ;;  %v2937_v61 = vmul.f32 0.2, %v2865_v5  ;;  %v2866_v16 = vadd.f32 %v2830_v29, %v9302_v50  ;;  %v3333_v2 = vld [vmem:[#allocation3 + $0x66] sm:$0xff]  ;;  %v3332_v9 = vld [vmem:[#allocation3 + $0x5e] sm:$0xff] }
 0x2d8   : > { %3262 = vst.msk [vmem:[#allocation3 + $0x80] sm:$0xff] %vm780_vm1, %v3226_v4  ;;  %v2975_v8 = vsel %vm2903_vm14, %v2867_v63, %v2939_v31  ;;  %vm2904_vm0 = vcmp.ge.f32.partialorder %v2868_v14, 0.0  ;;  %v2940_v22 = vmul.f32 0.2, %v2868_v14  ;;  %v6480_v47 = vpack.i.bf16 %v3334_v37, %v3333_v2  ;;  %v11053_v31 = vld [vmem:[#allocation40_spill] sm:$0xff] }
 0x2d9   : > { %v3191_v11 = vmul.f32 %v9403_v0, %v2975_v8  ;;  %v2973_v42 = vsel %vm2901_vm15, %v2865_v5, %v2937_v61  ;;  %vm2902_vm2 = vcmp.ge.f32.partialorder %v2866_v16, 0.0  ;;  %v2938_v28 = vmul.f32 0.2, %v2866_v16  ;;  %v5643_v15 = vpop.f32.mrb[20].mxu0 }
 0x2da   : > { %v3189_v35 = vmul.f32 %v9373_v45, %v2973_v42  ;;  %v2976_v50 = vsel %vm2904_vm0, %v2868_v14, %v2940_v22  ;;  %v2835_v59 = vmul.f32 %v5643_v15, %v9206_v33  ;;  %6481 = vrot.lane.b32.xlu0 %v6480_v47, %s7191_s24  ;;  %v6475_v34 = vpack.i.bf16 %v3332_v9, %v3331_v39  ;;  %v2746_v6 = vpop.f32.mrb[21].mxu0 }
 0x2db   : > { %v3231_v54 = vmul.f32 %v9208_v32, %v3191_v11  ;;  %v3192_v0 = vmul.f32 %v9407_v13, %v2976_v50  ;;  %v2974_v40 = vsel %vm2902_vm2, %v2866_v16, %v2938_v28  ;;  %v2833_v63 = vmul.f32 %v9206_v33, %v2746_v6  ;;  %v5644_v57 = vpop.f32.mrb[22].mxu0  ;;  %v3126_v11 = vpop.permute.xlu0 %3125 }
 0x2dc   : > { %v3229_v24 = vmul.f32 %v9208_v32, %v3189_v35  ;;  %v3190_v45 = vmul.f32 %v9383_v23, %v2974_v40  ;;  %v2871_v5 = vadd.f32 %v2835_v59, %v9315_v3  ;;  %6476 = vrot.lane.b32.xlu1 %v6475_v34, %s7191_s24  ;;  %v2836_v29 = vmul.f32 %v5644_v57, %v9206_v33  ;;  %v2749_v4 = vpop.f32.mrb[23].mxu0 }
 0x2dd   : > { %v9488_v13 = vmul.f32 %v9183_v62, %v11053_v31  ;;  %3267 = vst.msk [vmem:[#allocation3 + $0xa8] sm:$0xff] %vm780_vm1, %v3231_v54  ;;  %v3232_v14 = vmul.f32 %v9208_v32, %v3192_v0  ;;  %v2869_v37 = vadd.f32 %v2833_v63, %v9311_v36  ;;  %v2834_v61 = vmul.f32 %v9206_v33, %v2749_v4  ;;  %v3335_v59 = vld [vmem:[#allocation3 + $0x76] sm:$0xff] }
 0x2de   : > { %3265 = vst.msk [vmem:[#allocation3 + $0x98] sm:$0xff] %vm780_vm1, %v3229_v24  ;;  %v3230_v3 = vmul.f32 %v9208_v32, %v3190_v45  ;;  %vm2907_vm3 = vcmp.ge.f32.partialorder %v2871_v5, 0.0  ;;  %v2943_v23 = vmul.f32 0.2, %v2871_v5  ;;  %v2872_v16 = vadd.f32 %v2836_v29, %v9322_v20  ;;  %v3338_v2 = vld [vmem:[#allocation3 + $0x8e] sm:$0xff] }
 0x2df   : > { %3268 = vst.msk [vmem:[#allocation3 + $0xb0] sm:$0xff] %vm780_vm1, %v3232_v14  ;;  %vm2905_vm5 = vcmp.ge.f32.partialorder %v2869_v37, 0.0  ;;  %v2941_v9 = vmul.f32 0.2, %v2869_v37  ;;  %v2870_v8 = vadd.f32 %v2834_v61, %v9318_v38  ;;  %v3337_v22 = vld [vmem:[#allocation3 + $0x86] sm:$0xff]  ;;  %v3336_v47 = vld [vmem:[#allocation3 + $0x7e] sm:$0xff]  ;;  %v9500_v36 = vadd.f32 %v9195_v12, %v649_v21  ;;  %v3131_v38 = vpop.permute.xlu1 %3130 }
 0x2e0   : > { %3266 = vst.msk [vmem:[#allocation3 + $0xa0] sm:$0xff] %vm780_vm1, %v3230_v3  ;;  %v2979_v42 = vsel %vm2907_vm3, %v2871_v5, %v2943_v23  ;;  %vm2908_vm7 = vcmp.ge.f32.partialorder %v2872_v16, 0.0  ;;  %v2944_v28 = vmul.f32 0.2, %v2872_v16  ;;  %v6490_v15 = vpack.i.bf16 %v3338_v2, %v3337_v22  ;;  %v11054_v14 = vld [vmem:[#allocation42_spill] sm:$0xff] }
 0x2e1   : > { %v3195_v20 = vmul.f32 %v9446_v18, %v2979_v42  ;;  %v2977_v39 = vsel %vm2905_vm5, %v2869_v37, %v2941_v9  ;;  %vm2906_vm9 = vcmp.ge.f32.partialorder %v2870_v8, 0.0  ;;  %v2942_v35 = vmul.f32 0.2, %v2870_v8  ;;  %v5647_v50 = vpop.f32.mrb[24].mxu0  ;;  %v11055_v9 = vld [vmem:[#allocation43_spill] sm:$0xff] }
 0x2e2   : > { %v3193_v34 = vmul.f32 %v9426_v10, %v2977_v39  ;;  %v2980_v6 = vsel %vm2908_vm7, %v2872_v16, %v2944_v28  ;;  %v2839_v21 = vmul.f32 %v5647_v50, %v9206_v33  ;;  %6491 = vrot.lane.b32.xlu0 %v6490_v15, %s7191_s24  ;;  %v6485_v54 = vpack.i.bf16 %v3336_v47, %v3335_v59  ;;  %v2762_v0 = vpop.f32.mrb[25].mxu0 }
 0x2e3   : > { %v3235_v40 = vmul.f32 %v9208_v32, %v3195_v20  ;;  %v3196_v63 = vmul.f32 %v9460_v55, %v2980_v6  ;;  %v2978_v18 = vsel %vm2906_vm9, %v2870_v8, %v2942_v35  ;;  %v2837_v57 = vmul.f32 %v9206_v33, %v2762_v0  ;;  %v5648_v24 = vpop.f32.mrb[26].mxu0  ;;  %v9532_v28 = vpop.permute.xlu1 %3140 }
 0x2e4   : > { %v3233_v45 = vmul.f32 %v9208_v32, %v3193_v34  ;;  %v3194_v5 = vmul.f32 %v9436_v58, %v2978_v18  ;;  %v2875_v10 = vadd.f32 %v2839_v21, %v9342_v30  ;;  %6486 = vrot.lane.b32.xlu1 %v6485_v54, %s7191_s24  ;;  %v2840_v29 = vmul.f32 %v5648_v24, %v9206_v33  ;;  %v2765_v4 = vpop.f32.mrb[27].mxu0  ;;  %v9523_v58 = vpop.permute.xlu0 %3135 }
 0x2e5   : > { %v9517_v37 = vmul.f32 %v9183_v62, %v11054_v14  ;;  %3271 = vst.msk [vmem:[#allocation3 + $0xc8] sm:$0xff] %vm780_vm1, %v3235_v40  ;;  %v3236_v55 = vmul.f32 %v9208_v32, %v3196_v63  ;;  %v2873_v61 = vadd.f32 %v2837_v57, %v9325_v52  ;;  %v2838_v3 = vmul.f32 %v9206_v33, %v2765_v4  ;;  %v3339_v59 = vld [vmem:[#allocation3 + $0x96] sm:$0xff] }
 0x2e6   : > { %3269 = vst.msk [vmem:[#allocation3 + $0xb8] sm:$0xff] %vm780_vm1, %v3233_v45  ;;  %v3234_v30 = vmul.f32 %v9208_v32, %v3194_v5  ;;  %vm2911_vm10 = vcmp.ge.f32.partialorder %v2875_v10, 0.0  ;;  %v2947_v23 = vmul.f32 0.2, %v2875_v10  ;;  %v2876_v16 = vadd.f32 %v2840_v29, %v9367_v25  ;;  %v3342_v2 = vld [vmem:[#allocation3 + $0xae] sm:$0xff] }
 0x2e7   : > { %v651_v8 = vmul.f32 %v9183_v62, %v11055_v9  ;;  %3272 = vst.msk [vmem:[#allocation3 + $0xd0] sm:$0xff] %vm780_vm1, %v3236_v55  ;;  %vm2909_vm11 = vcmp.ge.f32.partialorder %v2873_v61, 0.0  ;;  %v2945_v52 = vmul.f32 0.2, %v2873_v61  ;;  %v2874_v22 = vadd.f32 %v2838_v3, %v9332_v7  ;;  %v3341_v47 = vld [vmem:[#allocation3 + $0xa6] sm:$0xff]  ;;  %v3340_v42 = vld [vmem:[#allocation3 + $0x9e] sm:$0xff] }
 0x2e8   : > { %3270 = vst.msk [vmem:[#allocation3 + $0xc0] sm:$0xff] %vm780_vm1, %v3234_v30  ;;  %v2983_v15 = vsel %vm2911_vm10, %v2875_v10, %v2947_v23  ;;  %vm2912_vm12 = vcmp.ge.f32.partialorder %v2876_v16, 0.0  ;;  %v2948_v20 = vmul.f32 0.2, %v2876_v16  ;;  %v6500_v25 = vpack.i.bf16 %v3342_v2, %v3341_v47  ;;  %v3146_v57 = vpop.permute.xlu0 %3145 }
 0x2e9   : > { %v3199_v39 = vmul.f32 %v3126_v11, %v2983_v15  ;;  %v2981_v35 = vsel %vm2909_vm11, %v2873_v61, %v2945_v52  ;;  %vm2910_vm13 = vcmp.ge.f32.partialorder %v2874_v22, 0.0  ;;  %v2946_v62 = vmul.f32 0.2, %v2874_v22  ;;  %v5651_v50 = vpop.f32.mrb[28].mxu0  ;;  %v3151_v61 = vpop.permute.xlu1 %3150 }
 0x2ea   : > { %v3197_v34 = vmul.f32 %v9471_v27, %v2981_v35  ;;  %v2984_v6 = vsel %vm2912_vm12, %v2876_v16, %v2948_v20  ;;  %v2843_v7 = vmul.f32 %v5651_v50, %v9206_v33  ;;  %6501 = vrot.lane.b32.xlu0 %v6500_v25, %s7191_s24  ;;  %v6495_v21 = vpack.i.bf16 %v3340_v42, %v3339_v59  ;;  %v2778_v54 = vpop.f32.mrb[29].mxu0 }
 0x2eb   : > { %v3239_v0 = vmul.f32 %v9208_v32, %v3199_v39  ;;  %v3200_v40 = vmul.f32 %v3131_v38, %v2984_v6  ;;  %v2982_v63 = vsel %vm2910_vm13, %v2874_v22, %v2946_v62  ;;  %v2841_v11 = vmul.f32 %v9206_v33, %v2778_v54  ;;  %v5652_v18 = vpop.f32.mrb[30].mxu0 }
 0x2ec   : > { %v3237_v24 = vmul.f32 %v9208_v32, %v3197_v34  ;;  %v3198_v45 = vmul.f32 %v9479_v48, %v2982_v63  ;;  %v2879_v27 = vadd.f32 %v2843_v7, %v9434_v51  ;;  %6496 = vrot.lane.b32.xlu1 %v6495_v21, %s7191_s24  ;;  %v2844_v5 = vmul.f32 %v5652_v18, %v9206_v33  ;;  %v2781_v10 = vpop.f32.mrb[31].mxu0  ;;  %v3156_v39 = vpop.permute.xlu0 %3155 }
 0x2ed   : > { %3275 = vst.msk [vmem:[#allocation3 + $0xe8] sm:$0xff] %vm780_vm1, %v3239_v0  ;;  %v3240_v38 = vmul.f32 %v9208_v32, %v3200_v40  ;;  %v2877_v29 = vadd.f32 %v2841_v11, %v9378_v19  ;;  %v2842_v4 = vmul.f32 %v9206_v33, %v2781_v10  ;;  %v691_v55 = vadd.f32 %v9195_v12, %v651_v8  ;;  %v3343_v25 = vld [vmem:[#allocation3 + $0xb6] sm:$0xff]  ;;  %v3161_v54 = vpop.permute.xlu1 %3160 }
 0x2ee   : > { %3273 = vst.msk [vmem:[#allocation3 + $0xd8] sm:$0xff] %vm780_vm1, %v3237_v24  ;;  %v3238_v51 = vmul.f32 %v9208_v32, %v3198_v45  ;;  %vm2915_vm14 = vcmp.ge.f32.partialorder %v2879_v27, 0.0  ;;  %v2951_v48 = vmul.f32 0.2, %v2879_v27  ;;  %v2880_v3 = vadd.f32 %v2844_v5, %v9458_v60  ;;  %v3346_v30 = vld [vmem:[#allocation3 + $0xce] sm:$0xff] }
 0x2ef   : > { %3276 = vst.msk [vmem:[#allocation3 + $0xf0] sm:$0xff] %vm780_vm1, %v3240_v38  ;;  %vm2913_vm15 = vcmp.ge.f32.partialorder %v2877_v29, 0.0  ;;  %v2949_v23 = vmul.f32 0.2, %v2877_v29  ;;  %v2878_v19 = vadd.f32 %v2842_v4, %v9394_v1  ;;  %v3345_v16 = vld [vmem:[#allocation3 + $0xc6] sm:$0xff]  ;;  %v3344_v2 = vld [vmem:[#allocation3 + $0xbe] sm:$0xff]  ;;  %v692_v8 = vadd.f32 %v9195_v12, %v9517_v37 }
 0x2f0   : > { %3274 = vst.msk [vmem:[#allocation3 + $0xe0] sm:$0xff] %vm780_vm1, %v3238_v51  ;;  %v2987_v52 = vsel %vm2915_vm14, %v2879_v27, %v2951_v48  ;;  %vm2916_vm0 = vcmp.ge.f32.partialorder %v2880_v3, 0.0  ;;  %v2952_v22 = vmul.f32 0.2, %v2880_v3  ;;  %v6510_v47 = vpack.i.bf16 %v3346_v30, %v3345_v16  ;;  %v3451_v31 = vld [vmem:[#allocation3 + $0xb9] sm:$0xff]  ;;  %v3452_v14 = vld [vmem:[#allocation3 + $0xc1] sm:$0xff] }
 0x2f1   : > { %v3203_v42 = vmul.f32 %v3146_v57, %v2987_v52  ;;  %v2985_v60 = vsel %vm2913_vm15, %v2877_v29, %v2949_v23  ;;  %vm2914_vm2 = vcmp.ge.f32.partialorder %v2878_v19, 0.0  ;;  %v2950_v15 = vmul.f32 0.2, %v2878_v19  ;;  %v5655_v20 = vpop.f32.mrb[32].mxu0  ;;  %v3171_v30 = vpop.permute.xlu1 %3170  ;;  %v3416_v56 = vld [vmem:[#allocation3 + $0xc0] sm:$0xff]  ;;  %v3453_v53 = vld [vmem:[#allocation3 + $0xc9] sm:$0xff] }
 0x2f2   : > { %v3201_v1 = vmul.f32 %v9523_v58, %v2985_v60  ;;  %v2988_v35 = vsel %vm2916_vm0, %v2880_v3, %v2952_v22  ;;  %v2847_v62 = vmul.f32 %v5655_v20, %v9206_v33  ;;  %6511 = vrot.lane.b32.xlu0 %v6510_v47, %s7191_s24  ;;  %v6505_v37 = vpack.i.bf16 %v3344_v2, %v3343_v25  ;;  %v2794_v50 = vpop.f32.mrb[33].mxu0  ;;  %v3357_v20 = vld [vmem:[#allocation3 + $0x7] sm:$0xff]  ;;  %v3358_v25 = vld [vmem:[#allocation3 + $0xf] sm:$0xff]  ;;  %v3487_v9 = vld [vmem:[#allocation3 + $0xba] sm:$0xff] }
 0x2f3   : > { %v3243_v59 = vmul.f32 %v9208_v32, %v3203_v42  ;;  %v3204_v34 = vmul.f32 %v3151_v61, %v2988_v35  ;;  %v2986_v6 = vsel %vm2914_vm2, %v2878_v19, %v2950_v15  ;;  %v2845_v7 = vmul.f32 %v9206_v33, %v2794_v50  ;;  %v5656_v21 = vpop.f32.mrb[34].mxu0  ;;  %v3488_v46 = vld [vmem:[#allocation3 + $0xc2] sm:$0xff] }
 0x2f4   : > { %v3241_v0 = vmul.f32 %v9208_v32, %v3201_v1  ;;  %v3202_v40 = vmul.f32 %v9532_v28, %v2986_v6  ;;  %v2883_v58 = vadd.f32 %v2847_v62, %v691_v55  ;;  %6506 = vrot.lane.b32.xlu1 %v6505_v37, %s7191_s24  ;;  %v2848_v63 = vmul.f32 %v5656_v21, %v9206_v33  ;;  %v2797_v11 = vpop.f32.mrb[35].mxu0  ;;  %v3166_v55 = vpop.permute.xlu0 %3165  ;;  %v3523_v49 = vld [vmem:[#allocation3 + $0xbb] sm:$0xff]  ;;  %v3524_v43 = vld [vmem:[#allocation3 + $0xc3] sm:$0xff] }
 0x2f5   : > { %3279 = vst.msk [vmem:[#allocation3 + $0x108] sm:$0xff] %vm780_vm1, %v3243_v59  ;;  %v3244_v18 = vmul.f32 %v9208_v32, %v3204_v34  ;;  %v2881_v57 = vadd.f32 %v2845_v7, %v9500_v36  ;;  %v690_v24 = vadd.f32 %v9195_v12, %v9488_v13  ;;  %v2846_v45 = vmul.f32 %v9206_v33, %v2797_v11  ;;  %v3347_v3 = vld [vmem:[#allocation3 + $0xd6] sm:$0xff]  ;;  %v3361_v59 = vld [vmem:[#allocation3 + $0x27] sm:$0xff] }
 0x2f6   : > { %3277 = vst.msk [vmem:[#allocation3 + $0xf8] sm:$0xff] %vm780_vm1, %v3241_v0  ;;  %v3242_v28 = vmul.f32 %v9208_v32, %v3202_v40  ;;  %vm2919_vm3 = vcmp.ge.f32.partialorder %v2883_v58, 0.0  ;;  %v2955_v27 = vmul.f32 0.2, %v2883_v58  ;;  %v2884_v5 = vadd.f32 %v2848_v63, %v692_v8  ;;  %v3350_v10 = vld [vmem:[#allocation3 + $0xee] sm:$0xff]  ;;  %v3360_v40 = vld [vmem:[#allocation3 + $0x1f] sm:$0xff] }
 0x2f7   : > { %3280 = vst.msk [vmem:[#allocation3 + $0x110] sm:$0xff] %vm780_vm1, %v3244_v18  ;;  %vm2917_vm5 = vcmp.ge.f32.partialorder %v2881_v57, 0.0  ;;  %v2953_v38 = vmul.f32 0.2, %v2881_v57  ;;  %v2882_v29 = vadd.f32 %v2846_v45, %v690_v24  ;;  %v3349_v4 = vld [vmem:[#allocation3 + $0xe6] sm:$0xff]  ;;  %v3348_v36 = vld [vmem:[#allocation3 + $0xde] sm:$0xff]  ;;  %v6540_v50 = vpack.i.bf16 %v3358_v25, %v3357_v20 }
 0x2f8   : > { %3278 = vst.msk [vmem:[#allocation3 + $0x100] sm:$0xff] %vm780_vm1, %v3242_v28  ;;  %v2991_v12 = vsel %vm2919_vm3, %v2883_v58, %v2955_v27  ;;  %vm2920_vm7 = vcmp.ge.f32.partialorder %v2884_v5, 0.0  ;;  %v2956_v33 = vmul.f32 0.2, %v2884_v5  ;;  %v6520_v13 = vpack.i.bf16 %v3350_v10, %v3349_v4  ;;  %v3362_v34 = vld [vmem:[#allocation3 + $0x2f] sm:$0xff]  ;;  %v3359_v58 = vld [vmem:[#allocation3 + $0x17] sm:$0xff] }
 0x2f9   : > { %v3207_v61 = vmul.f32 %v3166_v55, %v2991_v12  ;;  %v2989_v51 = vsel %vm2917_vm5, %v2881_v57, %v2953_v38  ;;  %vm2918_vm9 = vcmp.ge.f32.partialorder %v2882_v29, 0.0  ;;  %v2954_v48 = vmul.f32 0.2, %v2882_v29  ;;  %v3366_v0 = vld [vmem:[#allocation3 + $0x4f] sm:$0xff]  ;;  %v3369_v18 = vld [vmem:[#allocation3 + $0x67] sm:$0xff]  ;;  %v3364_v24 = vld [vmem:[#allocation3 + $0x3f] sm:$0xff] }
 0x2fa   : > { %v3205_v23 = vmul.f32 %v3156_v39, %v2989_v51  ;;  %v2992_v19 = vsel %vm2920_vm7, %v2884_v5, %v2956_v33  ;;  %6521 = vrot.lane.b32.xlu0 %v6520_v13, %s7191_s24  ;;  %v6515_v16 = vpack.i.bf16 %v3348_v36, %v3347_v3  ;;  %v9590_v7 = vpack.i.bf16 %v3362_v34, %v3361_v59  ;;  %v3370_v57 = vld [vmem:[#allocation3 + $0x6f] sm:$0xff]  ;;  %v3363_v45 = vld [vmem:[#allocation3 + $0x37] sm:$0xff]  ;;  %v3373_v5 = vld [vmem:[#allocation3 + $0x87] sm:$0xff] }
 0x2fb   : > { %v3247_v2 = vmul.f32 %v9208_v32, %v3207_v61  ;;  %v3208_v8 = vmul.f32 %v3171_v30, %v2992_v19  ;;  %v2990_v52 = vsel %vm2918_vm9, %v2882_v29, %v2954_v48  ;;  %v6545_v11 = vpack.i.bf16 %v3360_v40, %v3359_v58  ;;  %v3374_v10 = vld [vmem:[#allocation3 + $0x8f] sm:$0xff]  ;;  %v3368_v38 = vld [vmem:[#allocation3 + $0x5f] sm:$0xff]  ;;  %v3367_v29 = vld [vmem:[#allocation3 + $0x57] sm:$0xff] }
 0x2fc   : > { %v3245_v22 = vmul.f32 %v9208_v32, %v3205_v23  ;;  %v3206_v47 = vmul.f32 %v3161_v54, %v2990_v52  ;;  %6516 = vrot.lane.b32.xlu1 %v6515_v16, %s7191_s24  ;;  %v3365_v54 = vld [vmem:[#allocation3 + $0x47] sm:$0xff]  ;;  %v6570_v28 = vpack.i.bf16 %v3370_v57, %v3369_v18  ;;  %v6555_v27 = vpack.i.bf16 %v3364_v24, %v3363_v45  ;;  %v3378_v12 = vld [vmem:[#allocation3 + $0xaf] sm:$0xff]  ;;  %v3372_v33 = vld [vmem:[#allocation3 + $0x7f] sm:$0xff]  ;;  %v9640_v45 = vpop.permute.xlu0 %6451 }
 0x2fd   : > { %3283 = vst.msk [vmem:[#allocation3 + $0x128] sm:$0xff] %vm780_vm1, %v3247_v2  ;;  %v3248_v42 = vmul.f32 %v9208_v32, %v3208_v8  ;;  %v3351_v1 = vld [vmem:[#allocation3 + $0xf6] sm:$0xff]  ;;  %v9595_v63 = vpack.i.bf16 %v3366_v0, %v3365_v54  ;;  %v6580_v4 = vpack.i.bf16 %v3374_v10, %v3373_v5  ;;  %v6565_v36 = vpack.i.bf16 %v3368_v38, %v3367_v29  ;;  %v3377_v55 = vld [vmem:[#allocation3 + $0xa7] sm:$0xff]  ;;  %v3376_v30 = vld [vmem:[#allocation3 + $0x9f] sm:$0xff] }
 0x2fe   : > { %3281 = vst.msk [vmem:[#allocation3 + $0x118] sm:$0xff] %vm780_vm1, %v3245_v22  ;;  %v3246_v60 = vmul.f32 %v9208_v32, %v3206_v47  ;;  %v3354_v15 = vld [vmem:[#allocation3 + $0x10e] sm:$0xff]  ;;  %v3371_v13 = vld [vmem:[#allocation3 + $0x77] sm:$0xff]  ;;  %v6590_v61 = vpack.i.bf16 %v3378_v12, %v3377_v55  ;;  %v3380_v52 = vld [vmem:[#allocation3 + $0xbf] sm:$0xff]  ;;  %vm5026_vm10 = vcmask 1043456   ;;  %v6955_v17 = vpack.i.bf16 %v3488_v46, %v3487_v9 }
 0x2ff   : > { %3284 = vst.msk [vmem:[#allocation3 + $0x130] sm:$0xff] %vm780_vm1, %v3248_v42  ;;  %v3353_v39 = vld [vmem:[#allocation3 + $0x106] sm:$0xff]  ;;  %v3352_v35 = vld [vmem:[#allocation3 + $0xfe] sm:$0xff]  ;;  %v6575_v51 = vpack.i.bf16 %v3372_v33, %v3371_v13  ;;  %v3382_v3 = vld [vmem:[#allocation3 + $0xcf] sm:$0xff]  ;;  %vm4769_vm11 = vcmask 326656   ;;  %vm4806_vm12 = vcmask 392192  }
 0x300   : > { %3282 = vst.msk [vmem:[#allocation3 + $0x120] sm:$0xff] %vm780_vm1, %v3246_v60  ;;  %v6530_v62 = vpack.i.bf16 %v3354_v15, %v3353_v39  ;;  %v6525_v37 = vpack.i.bf16 %v3352_v35, %v3351_v1  ;;  %v3381_v48 = vld [vmem:[#allocation3 + $0xc7] sm:$0xff]  ;;  %v3375_v23 = vld [vmem:[#allocation3 + $0x97] sm:$0xff]  ;;  %v3386_v8 = vld [vmem:[#allocation3 + $0xef] sm:$0xff]  ;;  %vm4843_vm13 = vcmask 457728   ;;  %vm4880_vm14 = vcmask 523264  }
 0x301   : > { %v6600_v19 = vpack.i.bf16 %v3382_v3, %v3381_v48  ;;  %v6585_v16 = vpack.i.bf16 %v3376_v30, %v3375_v23  ;;  %v3385_v2 = vld [vmem:[#allocation3 + $0xe7] sm:$0xff]  ;;  %v3379_v22 = vld [vmem:[#allocation3 + $0xb7] sm:$0xff]  ;;  %v3390_v15 = vld [vmem:[#allocation3 + $0x10f] sm:$0xff]  ;;  %vm4971_vm15 = vcmask 588800  }
 0x302   : > { %6531 = vrot.lane.b32.xlu0 %v6530_v62, %s7191_s24  ;;  %6526 = vrot.lane.b32.xlu1 %v6525_v37, %s7191_s24  ;;  %v6610_v47 = vpack.i.bf16 %v3386_v8, %v3385_v2  ;;  %v6595_v42 = vpack.i.bf16 %v3380_v52, %v3379_v22  ;;  %v3389_v60 = vld [vmem:[#allocation3 + $0x107] sm:$0xff]  ;;  %v3384_v20 = vld [vmem:[#allocation3 + $0xdf] sm:$0xff]  ;;  %v3383_v25 = vld [vmem:[#allocation3 + $0xd7] sm:$0xff] }
 0x303   : > { %v6620_v39 = vpack.i.bf16 %v3390_v15, %v3389_v60  ;;  %v6605_v1 = vpack.i.bf16 %v3384_v20, %v3383_v25  ;;  %v3388_v35 = vld [vmem:[#allocation3 + $0xff] sm:$0xff]  ;;  %v3387_v62 = vld [vmem:[#allocation3 + $0xf7] sm:$0xff]  ;;  %v7177_v3 = vld [vmem:[%s10654_s6 + $0x20] ss:$0 sps:$4 sm:$0xff]  }
 0x304   : > { %v6615_v37 = vpack.i.bf16 %v3388_v35, %v3387_v62  ;;  %v3400_v54 = vld [vmem:[#allocation3 + $0x40] sm:$0xff]  ;;  %v3399_v58 = vld [vmem:[#allocation3 + $0x38] sm:$0xff]  ;;  %v3398_v24 = vld [vmem:[#allocation3 + $0x30] sm:$0xff]  ;;  %v5028_v52 = vsel %vm5026_vm10, %v7177_v3, 0 }
 0x305   : > { %v3355_v32 = vld [vmem:[#allocation3 + $0x116] sm:$0xff]  ;;  %v7175_v5 = vld [vmem:[%s10654_s6 + $0x10] sm:$0xff]   ;;  %v3469_v22 = vld [vmem:[#allocation3 + $0x2a] sm:$0xff] }
 0x306   : > { %6541 = vrot.lane.b32.xlu0 %v6540_v50, %s7193_s26  ;;  %v3391_v59 = vld [vmem:[#allocation3 + $0x117] sm:$0xff]  ;;  %v3394_v40 = vld [vmem:[#allocation3 + $0x12f] sm:$0xff]  ;;  %v3432_v55 = vld [vmem:[#allocation3 + $0x21] sm:$0xff] }
 0x307   : > { %v3356_v6 = vld [vmem:[#allocation3 + $0x11e] sm:$0xff]  ;;  %v3393_v0 = vld [vmem:[#allocation3 + $0x127] sm:$0xff]  ;;  %v3434_v57 = vld [vmem:[#allocation3 + $0x31] sm:$0xff] }
 0x308   : > { %v6535_v21 = vpack.i.bf16 %v3356_v6, %v3355_v32  ;;  %v3392_v50 = vld [vmem:[#allocation3 + $0x11f] sm:$0xff]  ;;  %v6715_v18 = vpack.i.bf16 %v3394_v40, %v3393_v0  ;;  %v3470_v8 = vld [vmem:[#allocation3 + $0x32] sm:$0xff] }
 0x309   : > { %v6625_v34 = vpack.i.bf16 %v3392_v50, %v3391_v59  ;;  %v3396_v32 = vld [vmem:[#allocation3 + $0x20] sm:$0xff]  ;;  %v3395_v6 = vld [vmem:[#allocation3 + $0x18] sm:$0xff]  ;;  %v6755_v15 = vpack.i.bf16 %v3470_v8, %v3469_v22  ;;  %v3505_v25 = vld [vmem:[#allocation3 + $0x2b] sm:$0xff] }
 0x30a   : > { %6551 = vrot.lane.b32.xlu0 %v9590_v7, %s7193_s26  ;;  %6536 = vrot.lane.b32.xlu1 %v6535_v21, %s7191_s24  ;;  %v6720_v21 = vpack.i.bf16 %v3396_v32, %v3395_v6  ;;  %v3431_v29 = vld [vmem:[#allocation3 + $0x19] sm:$0xff]  ;;  %v3472_v48 = vld [vmem:[#allocation3 + $0x42] sm:$0xff]  ;;  %v3438_v62 = vld [vmem:[#allocation3 + $0x51] sm:$0xff] }
 0x30b   : > { %v6735_v13 = vpack.i.bf16 %v3432_v55, %v3431_v29  ;;  %v3508_v2 = vld [vmem:[#allocation3 + $0x43] sm:$0xff]  ;;  %v3506_v20 = vld [vmem:[#allocation3 + $0x33] sm:$0xff] }
 0x30c   : > { %v6765_v35 = vpack.i.bf16 %v3506_v20, %v3505_v25  ;;  %v3437_v50 = vld [vmem:[#allocation3 + $0x49] sm:$0xff]  ;;  %v3478_v25 = vld [vmem:[#allocation3 + $0x72] sm:$0xff]  ;;  %v3456_v41 = vld [vmem:[#allocation3 + $0xe1] sm:$0xff] }
 0x30d   : > { %v3401_v59 = vld [vmem:[#allocation3 + $0x48] sm:$0xff]  ;;  %v6790_v6 = vpack.i.bf16 %v3438_v62, %v3437_v50  ;;  %v3455_v44 = vld [vmem:[#allocation3 + $0xd9] sm:$0xff] }
 0x30e   : > { %6561 = vrot.lane.b32.xlu0 %v9595_v63, %s7193_s26  ;;  %6546 = vrot.lane.b32.xlu1 %v6545_v11, %s7193_s26  ;;  %v3476_v29 = vld [vmem:[#allocation3 + $0x62] sm:$0xff] }
 0x30f   : > { %v3441_v8 = vld [vmem:[#allocation3 + $0x69] sm:$0xff] }
 0x312   : > { %6571 = vrot.lane.b32.xlu0 %v6570_v28, %s7193_s26  ;;  %6556 = vrot.lane.b32.xlu1 %v6555_v27, %s7193_s26 }
 0x316   : > { %6581 = vrot.lane.b32.xlu0 %v6580_v4, %s7193_s26  ;;  %6566 = vrot.lane.b32.xlu1 %v6565_v36, %s7193_s26 }
 0x31a   : > { %6591 = vrot.lane.b32.xlu0 %v6590_v61, %s7193_s26  ;;  %6576 = vrot.lane.b32.xlu1 %v6575_v51, %s7193_s26 }
 0x31e   : > { %6601 = vrot.lane.b32.xlu0 %v6600_v19, %s7193_s26  ;;  %6586 = vrot.lane.b32.xlu1 %v6585_v16, %s7193_s26 }
 0x322   : > { %6611 = vrot.lane.b32.xlu0 %v6610_v47, %s7193_s26  ;;  %6596 = vrot.lane.b32.xlu1 %v6595_v42, %s7193_s26 }
 0x326   : > { %6621 = vrot.lane.b32.xlu0 %v6620_v39, %s7193_s26  ;;  %6606 = vrot.lane.b32.xlu1 %v6605_v1, %s7193_s26 }
 0x32a   : > { %6631 = vrot.lane.b32.xlu0 %v6545_v11, %s7195_s30  ;;  %6616 = vrot.lane.b32.xlu1 %v6615_v37, %s7193_s26  ;;  %v6730_v11 = vpack.i.bf16 %v3400_v54, %v3399_v58  ;;  %v3473_v54 = vld [vmem:[#allocation3 + $0x4a] sm:$0xff] }
 0x32e   : > { %6641 = vrot.lane.b32.xlu0 %v6555_v27, %s7195_s30  ;;  %6626 = vrot.lane.b32.xlu1 %v6625_v34, %s7193_s26  ;;  %v3397_v27 = vld [vmem:[#allocation3 + $0x28] sm:$0xff] }
 0x32f   : > { %v6725_v38 = vpack.i.bf16 %v3398_v24, %v3397_v27 }
 0x332   : > { %6651 = vrot.lane.b32.xlu0 %v6565_v36, %s7195_s30  ;;  %6636 = vrot.lane.b32.xlu1 %v9590_v7, %s7195_s30  ;;  %v7173_v7 = vld [vmem:[%s10654_s6] sm:$0xff]   ;;  %v3436_v36 = vld [vmem:[#allocation3 + $0x41] sm:$0xff] }
 0x333   : > { %5657 = vmatprep.subr.bf16.mxu1 %v7173_v7 }
 0x334   : > { %5658 = vmatpush3.bf16.msra.mxu1 %v7173_v7 }
 0x336   : > { %6661 = vrot.lane.b32.xlu0 %v6575_v51, %s7195_s30  ;;  %6646 = vrot.lane.b32.xlu1 %v9595_v63, %s7195_s30  ;;  %v7174_v63 = vld [vmem:[%s10654_s6 + $0x8] sm:$0xff]  }
 0x337   : > { %5659 = vmatprep.subr.bf16.mxu1 %v7174_v63  ;;  %v3471_v51 = vld [vmem:[#allocation3 + $0x3a] sm:$0xff] }
 0x338   : > { %5660 = vmatpush3.bf16.msra.mxu1 %v7174_v63  ;;  %v3510_v63 = vld [vmem:[#allocation3 + $0x53] sm:$0xff] }
 0x339   : > { %5661 = vmatprep.subr.bf16.mxu1 %v7175_v5 }
 0x33a   : > { %6671 = vrot.lane.b32.xlu0 %v6585_v16, %s7195_s30  ;;  %6656 = vrot.lane.b32.xlu1 %v6570_v28, %s7195_s30  ;;  %v3433_v28 = vld [vmem:[#allocation3 + $0x29] sm:$0xff]  ;;  %v3507_v16 = vld [vmem:[#allocation3 + $0x3b] sm:$0xff] }
 0x33b   : > { %v6740_v10 = vpack.i.bf16 %v3434_v57, %v3433_v28  ;;  %v6770_v60 = vpack.i.bf16 %v3508_v2, %v3507_v16  ;;  %v3509_v57 = vld [vmem:[#allocation3 + $0x4b] sm:$0xff] }
 0x33c   : > { %5662 = vmatpush3.bf16.msra.mxu1 %v7175_v5  ;;  %v9649_v12 = vpop.permute.xlu0 %6461  ;;  %v6810_v27 = vpack.i.bf16 %v3510_v63, %v3509_v57  ;;  %v3442_v16 = vld [vmem:[#allocation3 + $0x71] sm:$0xff]  ;;  %v3479_v57 = vld [vmem:[#allocation3 + $0x7a] sm:$0xff] }
 0x33d   : > { %v3406_v2 = vld [vmem:[#allocation3 + $0x70] sm:$0xff] }
 0x33e   : > { %6681 = vrot.lane.b32.xlu0 %v6595_v42, %s7195_s30  ;;  %6666 = vrot.lane.b32.xlu1 %v6580_v4, %s7195_s30  ;;  %v3435_v4 = vld [vmem:[#allocation3 + $0x39] sm:$0xff]  ;;  %v9659_v30 = vpop.permute.xlu1 %6456 }
 0x33f   : > { %v6750_v33 = vpack.i.bf16 %v3436_v36, %v3435_v4  ;;  %v3403_v4 = vld [vmem:[#allocation3 + $0x58] sm:$0xff] }
 0x342   : > { %6691 = vrot.lane.b32.xlu0 %v6605_v1, %s7195_s30  ;;  %6676 = vrot.lane.b32.xlu1 %v6590_v61, %s7195_s30  ;;  %v7176_v61 = vld [vmem:[%s10654_s6 + $0x18] sm:$0xff]  }
 0x343   : > { %5663 = vmatprep.subr.bf16.mxu1 %v7176_v61 }
 0x344   : > { %v9661_v23 = vpop.permute.xlu0 %6471  ;;  %5664 = vmatpush3.bf16.msra.mxu1 %v7176_v61  ;;  %v3511_v61 = vld [vmem:[#allocation3 + $0x5b] sm:$0xff] }
 0x345   : > { %5704 = vmatprep.subr.msk.bf16.mxu1 %vm5026_vm10, %v7177_v3 }
 0x346   : > { %6701 = vrot.lane.b32.xlu0 %v6615_v37, %s7195_s30  ;;  %6686 = vrot.lane.b32.xlu1 %v6600_v19, %s7195_s30  ;;  %v6760_v19 = vpack.i.bf16 %v3472_v48, %v3471_v51  ;;  %v3402_v37 = vld [vmem:[#allocation3 + $0x50] sm:$0xff]  ;;  %v3512_v51 = vld [vmem:[#allocation3 + $0x63] sm:$0xff] }
 0x347   : > { %v6775_v7 = vpack.i.bf16 %v3402_v37, %v3401_v59  ;;  %v3514_v59 = vld [vmem:[#allocation3 + $0x73] sm:$0xff] }
 0x348   : > { %5666 = vmatpush3.bf16.msra.mxu1 %v5028_v52  ;;  %v3405_v52 = vld [vmem:[#allocation3 + $0x68] sm:$0xff] }
 0x349   : > { %v6825_v20 = vpack.i.bf16 %v3406_v2, %v3405_v52  ;;  %v3410_v2 = vld [vmem:[#allocation3 + $0x90] sm:$0xff]  ;;  %v3409_v52 = vld [vmem:[#allocation3 + $0x88] sm:$0xff] }
 0x34a   : > { %6711 = vrot.lane.b32.xlu0 %v6625_v34, %s7195_s30  ;;  %6696 = vrot.lane.b32.xlu1 %v6610_v47, %s7195_s30  ;;  %v9665_v47 = vpop.permute.xlu1 %6466 }
 0x34c   : > { %v9667_v42 = vpop.permute.xlu0 %6481 }
 0x34e   : > { %6721 = vrot.lane.b32.xlu0 %v6720_v21, %s7197_s14  ;;  %6706 = vrot.lane.b32.xlu1 %v6620_v39, %s7195_s30  ;;  %v9671_v39 = vpop.permute.xlu1 %6476  ;;  %v3474_v21 = vld [vmem:[#allocation3 + $0x52] sm:$0xff] }
 0x34f   : > { %v6800_v58 = vpack.i.bf16 %v3474_v21, %v3473_v54  ;;  %v3513_v21 = vld [vmem:[#allocation3 + $0x6b] sm:$0xff] }
 0x350   : > { %v6860_v63 = vpack.i.bf16 %v3514_v59, %v3513_v21  ;;  %v3481_v59 = vld [vmem:[#allocation3 + $0x8a] sm:$0xff] }
 0x352   : > { %6731 = vrot.lane.b32.xlu0 %v6730_v11, %s7197_s14  ;;  %6716 = vrot.lane.b32.xlu1 %v6715_v18, %s7195_s30  ;;  %v3439_v11 = vld [vmem:[#allocation3 + $0x59] sm:$0xff]  ;;  %v3440_v18 = vld [vmem:[#allocation3 + $0x61] sm:$0xff] }
 0x353   : > { %v6795_v5 = vpack.i.bf16 %v3440_v18, %v3439_v11  ;;  %v3408_v18 = vld [vmem:[#allocation3 + $0x80] sm:$0xff] }
 0x354   : > { %v9673_v1 = vpop.permute.xlu0 %6491 }
 0x356   : > { %6741 = vrot.lane.b32.xlu0 %v6740_v10, %s7198_s20  ;;  %6726 = vrot.lane.b32.xlu1 %v6725_v38, %s7197_s14  ;;  %v9677_v34 = vpop.permute.xlu1 %6486  ;;  %v3475_v38 = vld [vmem:[#allocation3 + $0x5a] sm:$0xff] }
 0x35a   : > { %6751 = vrot.lane.b32.xlu0 %v6750_v33, %s7199_s22  ;;  %6736 = vrot.lane.b32.xlu1 %v6735_v13, %s7198_s20  ;;  %v6805_v13 = vpack.i.bf16 %v3476_v29, %v3475_v38 }
 0x35c   : > { %v9679_v32 = vpop.permute.xlu0 %6501 }
 0x35d   : > { %11056 = vst [vmem:[#allocation68_spill] sm:$0xff] %v9679_v32 }
 0x35e   : > { %6761 = vrot.lane.b32.xlu0 %v6760_v19, %s7200_s28  ;;  %6746 = vrot.lane.b32.xlu1 %v6740_v10, %s7199_s22  ;;  %v9683_v0 = vpop.permute.xlu1 %6496  ;;  %v3404_v10 = vld [vmem:[#allocation3 + $0x60] sm:$0xff]  ;;  %v6815_v19 = vpack.i.bf16 %v3512_v51, %v3511_v61 }
 0x35f   : > { %11057 = vst [vmem:[#allocation69_spill] sm:$0xff] %v9683_v0 }
 0x362   : > { %6771 = vrot.lane.b32.xlu0 %v6770_v60, %s7201_s9  ;;  %6756 = vrot.lane.b32.xlu1 %v6755_v15, %s7200_s28  ;;  %v6840_v15 = vpack.i.bf16 %v3442_v16, %v3441_v8  ;;  %v3446_v16 = vld [vmem:[#allocation3 + $0x91] sm:$0xff]  ;;  %v3445_v8 = vld [vmem:[#allocation3 + $0x89] sm:$0xff] }
 0x364   : > { %v9685_v40 = vpop.permute.xlu0 %6511 }
 0x365   : > { %11058 = vst [vmem:[#allocation70_spill] sm:$0xff] %v9685_v40  ;;  %v9841_v40 = vld [vmem:[#allocation3 + $0xfb] sm:$0xff] }
 0x366   : > { %6781 = vrot.lane.b32.xlu0 %v6750_v33, %s7198_s20  ;;  %6766 = vrot.lane.b32.xlu1 %v6765_v35, %s7201_s9  ;;  %v9689_v24 = vpop.permute.xlu1 %6506  ;;  %v6820_v33 = vpack.i.bf16 %v3404_v10, %v3403_v4  ;;  %v3477_v35 = vld [vmem:[#allocation3 + $0x6a] sm:$0xff] }
 0x367   : > { %11059 = vst [vmem:[#allocation71_spill] sm:$0xff] %v9689_v24  ;;  %v6850_v50 = vpack.i.bf16 %v3478_v25, %v3477_v35  ;;  %v6890_v25 = vpack.i.bf16 %v3446_v16, %v3445_v8  ;;  %v6875_v35 = vpack.i.bf16 %v3410_v2, %v3409_v52  ;;  %v3411_v16 = vld [vmem:[#allocation3 + $0x98] sm:$0xff] }
 0x368   : > { %v9851_v24 = vld [vmem:[#allocation3 + $0xf8] sm:$0xff] }
 0x36a   : > { %6791 = vrot.lane.b32.xlu0 %v6790_v6, %s7199_s22  ;;  %6776 = vrot.lane.b32.xlu1 %v6775_v7, %s7197_s14  ;;  %v3444_v7 = vld [vmem:[#allocation3 + $0x81] sm:$0xff] }
 0x36c   : > { %v9691_v28 = vpop.permute.xlu0 %6521 }
 0x36d   : > { %11060 = vst [vmem:[#allocation72_spill] sm:$0xff] %v9691_v28  ;;  %v9827_v28 = vld [vmem:[#allocation3 + $0xf3] sm:$0xff] }
 0x36e   : > { %6801 = vrot.lane.b32.xlu0 %v6800_v58, %s7200_s28  ;;  %6786 = vrot.lane.b32.xlu1 %v6790_v6, %s7198_s20  ;;  %v9695_v36 = vpop.permute.xlu1 %6516  ;;  %v3443_v6 = vld [vmem:[#allocation3 + $0x79] sm:$0xff] }
 0x36f   : > { %11061 = vst [vmem:[#allocation73_spill] sm:$0xff] %v9695_v36  ;;  %v6845_v11 = vpack.i.bf16 %v3444_v7, %v3443_v6 }
 0x372   : > { %6811 = vrot.lane.b32.xlu0 %v6810_v27, %s7201_s9  ;;  %6796 = vrot.lane.b32.xlu1 %v6795_v5, %s7199_s22  ;;  %v3480_v27 = vld [vmem:[#allocation3 + $0x82] sm:$0xff] }
 0x373   : > { %v6855_v4 = vpack.i.bf16 %v3480_v27, %v3479_v57  ;;  %v3517_v57 = vld [vmem:[#allocation3 + $0x8b] sm:$0xff] }
 0x374   : > { %v9697_v55 = vpop.permute.xlu0 %6531  ;;  %v9701_v48 = vpop.permute.xlu1 %6526 }
 0x375   : > { %11062 = vst [vmem:[#allocation74_spill] sm:$0xff] %v9697_v55  ;;  %11063 = vst [vmem:[#allocation75_spill] sm:$0xff] %v9701_v48  ;;  %v3457_v48 = vld [vmem:[#allocation3 + $0xe9] sm:$0xff] }
 0x376   : > { %6821 = vrot.lane.b32.xlu0 %v6820_v33, %s7197_s14  ;;  %6806 = vrot.lane.b32.xlu1 %v6805_v13, %s7200_s28  ;;  %v3515_v33 = vld [vmem:[#allocation3 + $0x7b] sm:$0xff]  ;;  %v3516_v13 = vld [vmem:[#allocation3 + $0x83] sm:$0xff] }
 0x378   : > { %v9703_v3 = vpop.permute.xlu0 %6541 }
 0x37a   : > { %6831 = vrot.lane.b32.xlu0 %v6795_v5, %s7198_s20  ;;  %6816 = vrot.lane.b32.xlu1 %v6815_v19, %s7201_s9  ;;  %v3407_v5 = vld [vmem:[#allocation3 + $0x78] sm:$0xff]  ;;  %v6865_v19 = vpack.i.bf16 %v3516_v13, %v3515_v33  ;;  %v3412_v33 = vld [vmem:[#allocation3 + $0xa0] sm:$0xff] }
 0x37b   : > { %v6870_v29 = vpack.i.bf16 %v3408_v18, %v3407_v5  ;;  %v3448_v18 = vld [vmem:[#allocation3 + $0xa1] sm:$0xff]  ;;  %v6920_v52 = vpack.i.bf16 %v3412_v33, %v3411_v16 }
 0x37c   : > { %v9707_v22 = vpop.permute.xlu0 %6551  ;;  %v9709_v60 = vpop.permute.xlu1 %6536  ;;  %v3483_v13 = vld [vmem:[#allocation3 + $0x9a] sm:$0xff] }
 0x37d   : > { %11064 = vst [vmem:[#allocation76_spill] sm:$0xff] %v9709_v60  ;;  %v3491_v60 = vld [vmem:[#allocation3 + $0xda] sm:$0xff] }
 0x37e   : > { %6841 = vrot.lane.b32.xlu0 %v6840_v15, %s7199_s22  ;;  %6826 = vrot.lane.b32.xlu1 %v6825_v20, %s7197_s14 }
 0x380   : > { %v9713_v62 = vpop.permute.xlu0 %6561  ;;  %v9715_v37 = vpop.permute.xlu1 %6546 }
 0x382   : > { %6851 = vrot.lane.b32.xlu0 %v6850_v50, %s7200_s28  ;;  %6836 = vrot.lane.b32.xlu1 %v6840_v15, %s7198_s20  ;;  %v3482_v50 = vld [vmem:[#allocation3 + $0x92] sm:$0xff] }
 0x383   : > { %v6900_v21 = vpack.i.bf16 %v3482_v50, %v3481_v59  ;;  %v3520_v50 = vld [vmem:[#allocation3 + $0xa3] sm:$0xff] }
 0x384   : > { %v9719_v54 = vpop.permute.xlu0 %6571  ;;  %v9721_v58 = vpop.permute.xlu1 %6556 }
 0x386   : > { %6861 = vrot.lane.b32.xlu0 %v6860_v63, %s7201_s9  ;;  %6846 = vrot.lane.b32.xlu1 %v6845_v11, %s7199_s22  ;;  %v3518_v63 = vld [vmem:[#allocation3 + $0x93] sm:$0xff] }
 0x388   : > { %v9725_v10 = vpop.permute.xlu0 %6581  ;;  %v9727_v38 = vpop.permute.xlu1 %6566 }
 0x38a   : > { %6871 = vrot.lane.b32.xlu0 %v6870_v29, %s7197_s14  ;;  %6856 = vrot.lane.b32.xlu1 %v6855_v4, %s7200_s28  ;;  %v6910_v29 = vpack.i.bf16 %v3518_v63, %v3517_v57  ;;  %v3449_v57 = vld [vmem:[#allocation3 + $0xa9] sm:$0xff] }
 0x38c   : > { %v9731_v61 = vpop.permute.xlu0 %6591  ;;  %v9733_v51 = vpop.permute.xlu1 %6576 }
 0x38d   : > { %11065 = vst [vmem:[#allocation77_spill] sm:$0xff] %v9731_v61 }
 0x38e   : > { %6881 = vrot.lane.b32.xlu0 %v6845_v11, %s7198_s20  ;;  %6866 = vrot.lane.b32.xlu1 %v6865_v19, %s7201_s9  ;;  %v3447_v11 = vld [vmem:[#allocation3 + $0x99] sm:$0xff]  ;;  %v3484_v19 = vld [vmem:[#allocation3 + $0xa2] sm:$0xff] }
 0x38f   : > { %v6895_v4 = vpack.i.bf16 %v3448_v18, %v3447_v11  ;;  %v3450_v11 = vld [vmem:[#allocation3 + $0xb1] sm:$0xff] }
 0x390   : > { %v9737_v15 = vpop.permute.xlu0 %6601  ;;  %v9739_v20 = vpop.permute.xlu1 %6586  ;;  %v3414_v18 = vld [vmem:[#allocation3 + $0xb0] sm:$0xff] }
 0x391   : > { %11066 = vst [vmem:[#allocation78_spill] sm:$0xff] %v9737_v15  ;;  %11067 = vst [vmem:[#allocation79_spill] sm:$0xff] %v9739_v20 }
 0x392   : > { %6891 = vrot.lane.b32.xlu0 %v6890_v25, %s7199_s22  ;;  %6876 = vrot.lane.b32.xlu1 %v6875_v35, %s7197_s14  ;;  %v3519_v35 = vld [vmem:[#allocation3 + $0x9b] sm:$0xff] }
 0x393   : > { %v6915_v63 = vpack.i.bf16 %v3520_v50, %v3519_v35 }
 0x394   : > { %v9743_v6 = vpop.permute.xlu0 %6611  ;;  %v9745_v7 = vpop.permute.xlu1 %6596 }
 0x395   : > { %11068 = vst [vmem:[#allocation80_spill] sm:$0xff] %v9743_v6  ;;  %11069 = vst [vmem:[#allocation81_spill] sm:$0xff] %v9745_v7  ;;  %v9821_v6 = vld [vmem:[#allocation3 + $0xf2] sm:$0xff] }
 0x396   : > { %6901 = vrot.lane.b32.xlu0 %v6900_v21, %s7200_s28  ;;  %6886 = vrot.lane.b32.xlu1 %v6890_v25, %s7198_s20  ;;  %v6905_v25 = vpack.i.bf16 %v3484_v19, %v3483_v13  ;;  %v6940_v19 = vpack.i.bf16 %v3450_v11, %v3449_v57  ;;  %v3521_v11 = vld [vmem:[#allocation3 + $0xab] sm:$0xff] }
 0x397   : > { %v9849_v7 = vld [vmem:[#allocation3 + $0xeb] sm:$0xff] }
 0x398   : > { %v9749_v27 = vpop.permute.xlu0 %6621  ;;  %v9751_v5 = vpop.permute.xlu1 %6606 }
 0x399   : > { %11070 = vst [vmem:[#allocation82_spill] sm:$0xff] %v9749_v27  ;;  %11071 = vst [vmem:[#allocation83_spill] sm:$0xff] %v9751_v5  ;;  %v3419_v27 = vld [vmem:[#allocation3 + $0xd8] sm:$0xff]  ;;  %v9835_v5 = vld [vmem:[#allocation3 + $0x102] sm:$0xff] }
 0x39a   : > { %6911 = vrot.lane.b32.xlu0 %v6910_v29, %s7201_s9  ;;  %6896 = vrot.lane.b32.xlu1 %v6895_v4, %s7199_s22  ;;  %v3413_v29 = vld [vmem:[#allocation3 + $0xa8] sm:$0xff] }
 0x39b   : > { %v6925_v16 = vpack.i.bf16 %v3414_v18, %v3413_v29 }
 0x39c   : > { %v9755_v2 = vpop.permute.xlu0 %6631  ;;  %v9757_v8 = vpop.permute.xlu1 %6616 }
 0x39d   : > { %11072 = vst [vmem:[#allocation84_spill] sm:$0xff] %v9757_v8  ;;  %v6634_v32 = vunpack.i.h.bf16 %v9755_v2 }
 0x39e   : > { %6921 = vrot.lane.b32.xlu0 %v6920_v52, %s7197_s14  ;;  %6906 = vrot.lane.b32.xlu1 %v6905_v25, %s7200_s28  ;;  %v3486_v52 = vld [vmem:[#allocation3 + $0xb2] sm:$0xff]  ;;  %v3485_v25 = vld [vmem:[#allocation3 + $0xaa] sm:$0xff] }
 0x3a0   : > { %v9761_v59 = vpop.permute.xlu0 %6641  ;;  %v9763_v21 = vpop.permute.xlu1 %6626 }
 0x3a1   : > { %11073 = vst [vmem:[#allocation85_spill] sm:$0xff] %v9763_v21  ;;  %v3420_v21 = vld [vmem:[#allocation3 + $0xe0] sm:$0xff] }
 0x3a2   : > { %6931 = vrot.lane.b32.xlu0 %v6895_v4, %s7198_s20  ;;  %6916 = vrot.lane.b32.xlu1 %v6915_v63, %s7201_s9  ;;  %v6950_v4 = vpack.i.bf16 %v3486_v52, %v3485_v25  ;;  %v3522_v63 = vld [vmem:[#allocation3 + $0xb3] sm:$0xff] }
 0x3a3   : > { %v6960_v29 = vpack.i.bf16 %v3522_v63, %v3521_v11  ;;  %v3415_v52 = vld [vmem:[#allocation3 + $0xb8] sm:$0xff]  ;;  %v6965_v63 = vpack.i.bf16 %v3524_v43, %v3523_v49  ;;  %v3489_v49 = vld [vmem:[#allocation3 + $0xca] sm:$0xff] }
 0x3a4   : > { %v9767_v33 = vpop.permute.xlu0 %6651  ;;  %v9769_v13 = vpop.permute.xlu1 %6636  ;;  %v3454_v11 = vld [vmem:[#allocation3 + $0xd1] sm:$0xff] }
 0x3a6   : > { %6941 = vrot.lane.b32.xlu0 %v6940_v19, %s7199_s22  ;;  %6926 = vrot.lane.b32.xlu1 %v6925_v16, %s7197_s14  ;;  %v6945_v16 = vpack.i.bf16 %v3452_v14, %v3451_v31 }
 0x3a8   : > { %v9773_v35 = vpop.permute.xlu0 %6661  ;;  %v9775_v50 = vpop.permute.xlu1 %6646 }
 0x3aa   : > { %6951 = vrot.lane.b32.xlu0 %v6950_v4, %s7200_s28  ;;  %6936 = vrot.lane.b32.xlu1 %v6940_v19, %s7198_s20  ;;  %v6970_v19 = vpack.i.bf16 %v3416_v56, %v3415_v52  ;;  %v3417_v56 = vld [vmem:[#allocation3 + $0xc8] sm:$0xff]  ;;  %v6990_v52 = vpack.i.bf16 %v3454_v11, %v3453_v53 }
 0x3ab   : > { %v3525_v53 = vld [vmem:[#allocation3 + $0xcb] sm:$0xff] }
 0x3ac   : > { %v9779_v18 = vpop.permute.xlu0 %6671  ;;  %v9781_v57 = vpop.permute.xlu1 %6656 }
 0x3ad   : > { %11074 = vst [vmem:[#allocation86_spill] sm:$0xff] %v9779_v18 }
 0x3ae   : > { %6961 = vrot.lane.b32.xlu0 %v6960_v29, %s7201_s9  ;;  %6946 = vrot.lane.b32.xlu1 %v6945_v16, %s7199_s22  ;;  %v3418_v29 = vld [vmem:[#allocation3 + $0xd0] sm:$0xff] }
 0x3b0   : > { %v9785_v25 = vpop.permute.xlu0 %6681  ;;  %v9787_v4 = vpop.permute.xlu1 %6666 }
 0x3b1   : > { %11075 = vst [vmem:[#allocation87_spill] sm:$0xff] %v9785_v25  ;;  %v9853_v25 = vld [vmem:[#allocation3 + $0x110] sm:$0xff] }
 0x3b2   : > { %6971 = vrot.lane.b32.xlu0 %v6970_v19, %s7197_s14  ;;  %6956 = vrot.lane.b32.xlu1 %v6955_v17, %s7200_s28  ;;  %v6975_v19 = vpack.i.bf16 %v3418_v29, %v3417_v56  ;;  %v3490_v17 = vld [vmem:[#allocation3 + $0xd2] sm:$0xff] }
 0x3b4   : > { %v9791_v31 = vpop.permute.xlu0 %6691  ;;  %v9793_v14 = vpop.permute.xlu1 %6676 }
 0x3b5   : > { %11076 = vst [vmem:[#allocation88_spill] sm:$0xff] %v9791_v31  ;;  %11077 = vst [vmem:[#allocation89_spill] sm:$0xff] %v9793_v14  ;;  %v6639_v14 = vunpack.i.h.bf16 %v9769_v13 }
 0x3b6   : > { %6981 = vrot.lane.b32.xlu0 %v6945_v16, %s7198_s20  ;;  %6966 = vrot.lane.b32.xlu1 %v6965_v63, %s7201_s9  ;;  %v7000_v16 = vpack.i.bf16 %v3490_v17, %v3489_v49  ;;  %v3526_v63 = vld [vmem:[#allocation3 + $0xd3] sm:$0xff]  ;;  %v3285_v17 = vld [vmem:[#allocation3 + $0x5] sm:$0xff] }
 0x3b7   : > { %v7010_v56 = vpack.i.bf16 %v3526_v63, %v3525_v53  ;;  %v3286_v49 = vld [vmem:[#allocation3 + $0xd] sm:$0xff]  ;;  %v7020_v63 = vpack.i.bf16 %v3420_v21, %v3419_v27  ;;  %v3528_v53 = vld [vmem:[#allocation3 + $0xe3] sm:$0xff] }
 0x3b8   : > { %v9797_v46 = vpop.permute.xlu0 %6701  ;;  %v9799_v9 = vpop.permute.xlu1 %6686  ;;  %v9831_v21 = vld [vmem:[#allocation3 + $0x100] sm:$0xff] }
 0x3b9   : > { %11078 = vst [vmem:[#allocation90_spill] sm:$0xff] %v9797_v46  ;;  %11079 = vst [vmem:[#allocation91_spill] sm:$0xff] %v9799_v9  ;;  %v3422_v46 = vld [vmem:[#allocation3 + $0xf0] sm:$0xff]  ;;  %v9843_v9 = vld [vmem:[#allocation3 + $0x103] sm:$0xff] }
 0x3ba   : > { %6991 = vrot.lane.b32.xlu0 %v6990_v52, %s7199_s22  ;;  %6976 = vrot.lane.b32.xlu1 %v6975_v19, %s7197_s14  ;;  %v6995_v19 = vpack.i.bf16 %v3456_v41, %v3455_v44  ;;  %v3527_v44 = vld [vmem:[#allocation3 + $0xdb] sm:$0xff] }
 0x3bc   : > { %v9803_v43 = vpop.permute.xlu0 %6711  ;;  %v9805_v26 = vpop.permute.xlu1 %6696 }
 0x3bd   : > { %11080 = vst [vmem:[#allocation104_spill] sm:$0xff] %v9803_v43  ;;  %11081 = vst [vmem:[#allocation103_spill] sm:$0xff] %v9805_v26  ;;  %v3492_v43 = vld [vmem:[#allocation3 + $0xe2] sm:$0xff]  ;;  %v3459_v26 = vld [vmem:[#allocation3 + $0xf9] sm:$0xff] }
 0x3be   : > { %7001 = vrot.lane.b32.xlu0 %v7000_v16, %s7200_s28  ;;  %6986 = vrot.lane.b32.xlu1 %v6990_v52, %s7198_s20  ;;  %v6454_v16 = vunpack.i.h.bf16 %v9640_v45  ;;  %v6453_v52 = vunpack.i.l.bf16 %v9640_v45  ;;  %v7005_v41 = vpack.i.bf16 %v3492_v43, %v3491_v60  ;;  %v9825_v45 = vld [vmem:[#allocation3 + $0xea] sm:$0xff]  ;;  %v9833_v43 = vld [vmem:[#allocation3 + $0xfa] sm:$0xff] }
 0x3c0   : > { %v9809_v11 = vpop.permute.xlu0 %6721  ;;  %v9811_v29 = vpop.permute.xlu1 %6706  ;;  %v4626_v60 = vsel %vm780_vm1, %v3286_v49, %v6454_v16  ;;  %v4625_v27 = vsel %vm780_vm1, %v3285_v17, %v6453_v52  ;;  %v3462_v49 = vld [vmem:[#allocation3 + $0x111] sm:$0xff]  ;;  %v6459_v17 = vunpack.i.h.bf16 %v9659_v30  ;;  %v6458_v16 = vunpack.i.l.bf16 %v9659_v30 }
 0x3c1   : > { %11082 = vst [vmem:[#allocation92_spill] sm:$0xff] %v9811_v29  ;;  %v3458_v29 = vld [vmem:[#allocation3 + $0xf1] sm:$0xff]  ;;  %v7050_v52 = vpack.i.bf16 %v9821_v6, %v9825_v45  ;;  %v3288_v45 = vld [vmem:[#allocation3 + $0x1d] sm:$0xff]  ;;  %v6723_v0 = vunpack.i.l.bf16 %v9809_v11 }
 0x3c2   : > { %7011 = vrot.lane.b32.xlu0 %v7010_v56, %s7201_s9  ;;  %6996 = vrot.lane.b32.xlu1 %v6995_v19, %s7199_s22  ;;  %v3421_v56 = vld [vmem:[#allocation3 + $0xe8] sm:$0xff]  ;;  %v7040_v31 = vpack.i.bf16 %v3458_v29, %v3457_v48 }
 0x3c3   : > { %v7025_v15 = vpack.i.bf16 %v3422_v46, %v3421_v56  ;;  %v3461_v29 = vld [vmem:[#allocation3 + $0x109] sm:$0xff]  ;;  %v3287_v56 = vld [vmem:[#allocation3 + $0x15] sm:$0xff] }
 0x3c4   : > { %v9817_v55 = vpop.permute.xlu0 %6731  ;;  %v9819_v8 = vpop.permute.xlu1 %6716  ;;  %v4627_v61 = vsel %vm780_vm1, %v3287_v56, %v6458_v16 }
 0x3c5   : > { %11083 = vst [vmem:[#allocation93_spill] sm:$0xff] %v9819_v8  ;;  %v3460_v8 = vld [vmem:[#allocation3 + $0x101] sm:$0xff] }
 0x3c6   : > { %7021 = vrot.lane.b32.xlu0 %v7020_v63, %s7197_s14  ;;  %7006 = vrot.lane.b32.xlu1 %v7005_v41, %s7200_s28  ;;  %v7015_v41 = vpack.i.bf16 %v3528_v53, %v3527_v44  ;;  %v9859_v46 = vpack.i.bf16 %v3460_v8, %v3459_v26  ;;  %v9867_v53 = vpack.i.bf16 %v3462_v49, %v3461_v29  ;;  %v6543_v26 = vunpack.i.l.bf16 %v9703_v3 }
 0x3c7   : > { %v6549_v8 = vunpack.i.h.bf16 %v9715_v37  ;;  %v4628_v49 = vsel %vm780_vm1, %v3288_v45, %v6459_v17  ;;  %v6548_v29 = vunpack.i.l.bf16 %v9715_v37  ;;  %v6633_v44 = vunpack.i.l.bf16 %v9755_v2 }
 0x3c8   : > { %v9837_v36 = vpop.permute.xlu0 %6741  ;;  %v9839_v63 = vpop.permute.xlu1 %6726  ;;  %v4661_v17 = vsel %vm2350_vm4, %v4625_v27, %v6543_v26 }
 0x3c9   : > { %v6729_v6 = vunpack.i.h.bf16 %v9839_v63  ;;  %v6728_v16 = vunpack.i.l.bf16 %v9839_v63  ;;  %v4664_v2 = vsel %vm2350_vm4, %v4628_v49, %v6549_v8  ;;  %v4697_v20 = vsel %vm2424_vm6, %v4661_v17, %v6633_v44 }
 0x3ca   : > { %7031 = vrot.lane.b32.xlu0 %v6995_v19, %s7198_s20  ;;  %7016 = vrot.lane.b32.xlu1 %v7015_v41, %s7201_s9  ;;  %v9869_v19 = vld [vmem:[#allocation3 + $0x108] sm:$0xff]  ;;  %v6544_v41 = vunpack.i.h.bf16 %v9703_v3  ;;  %v6638_v3 = vunpack.i.l.bf16 %v9769_v13  ;;  %v4663_v13 = vsel %vm2350_vm4, %v4627_v61, %v6548_v29  ;;  %v6743_v27 = vunpack.i.l.bf16 %v9837_v36 }
 0x3cb   : > { %v6744_v61 = vunpack.i.h.bf16 %v9837_v36 }
 0x3cc   : > { %v6752_v30 = vpop.permute.xlu0 %6751  ;;  %v6737_v48 = vpop.permute.xlu1 %6736  ;;  %v4662_v37 = vsel %vm2350_vm4, %v4626_v60, %v6544_v41  ;;  %v4699_v18 = vsel %vm2424_vm6, %v4663_v13, %v6638_v3  ;;  %v4700_v60 = vsel %vm2424_vm6, %v4664_v2, %v6639_v14 }
 0x3cd   : > { %v4698_v63 = vsel %vm2424_vm6, %v4662_v37, %v6634_v32  ;;  %v4735_v44 = vsel %vm2498_vm8, %v4699_v18, %v6728_v16  ;;  %v4736_v41 = vsel %vm2498_vm8, %v4700_v60, %v6729_v6  ;;  %v6753_v26 = vunpack.i.l.bf16 %v6752_v30 }
 0x3ce   : > { %7041 = vrot.lane.b32.xlu0 %v7040_v31, %s7199_s22  ;;  %7026 = vrot.lane.b32.xlu1 %v7025_v15, %s7197_s14  ;;  %v6724_v15 = vunpack.i.h.bf16 %v9809_v11  ;;  %v6754_v11 = vunpack.i.h.bf16 %v6752_v30  ;;  %v6739_v8 = vunpack.i.h.bf16 %v6737_v48  ;;  %v6738_v32 = vunpack.i.l.bf16 %v6737_v48 }
 0x3cf   : > { %v4733_v37 = vsel %vm2498_vm8, %v4697_v20, %v6723_v0  ;;  %v11084_v30 = vpack.i.bf16 %v9827_v28, %v9849_v7  ;;  %v4773_v48 = vsel %vm4769_vm11, %v4736_v41, %v6744_v61  ;;  %v11086_v41 = vpack.i.bf16 %v9835_v5, %v9833_v43 }
 0x3d0   : > { %v6762_v56 = vpop.permute.xlu0 %6761  ;;  %v6747_v45 = vpop.permute.xlu1 %6746  ;;  %v4734_v14 = vsel %vm2498_vm8, %v4698_v63, %v6724_v15  ;;  %v4810_v16 = vsel %vm4806_vm12, %v4773_v48, %v6754_v11  ;;  %v6463_v5 = vunpack.i.l.bf16 %v9649_v12  ;;  %v6644_v48 = vunpack.i.h.bf16 %v9761_v59 }
 0x3d1   : > { %v6763_v49 = vunpack.i.l.bf16 %v6762_v56  ;;  %v6748_v17 = vunpack.i.l.bf16 %v6747_v45  ;;  %v6764_v36 = vunpack.i.h.bf16 %v6762_v56  ;;  %v4771_v56 = vsel %vm4769_vm11, %v4734_v14, %v6739_v8  ;;  %v9933_v8 = vld [vmem:[#allocation3 + $0x112] sm:$0xff] }
 0x3d2   : > { %7051 = vrot.lane.b32.xlu0 %v7050_v52, %s7200_s28  ;;  %7036 = vrot.lane.b32.xlu1 %v7040_v31, %s7198_s20  ;;  %v6749_v52 = vunpack.i.h.bf16 %v6747_v45  ;;  %v4772_v31 = vsel %vm4769_vm11, %v4735_v44, %v6743_v27  ;;  %v4770_v45 = vsel %vm4769_vm11, %v4733_v37, %v6738_v32  ;;  %v11085_v44 = vpack.i.bf16 %v9831_v21, %v9851_v24  ;;  %v9939_v21 = vld [vmem:[#allocation3 + $0x113] sm:$0xff] }
 0x3d3   : > { %v4809_v6 = vsel %vm4806_vm12, %v4772_v31, %v6753_v26  ;;  %v4807_v7 = vsel %vm4806_vm12, %v4770_v45, %v6748_v17  ;;  %v4847_v61 = vsel %vm4843_vm13, %v4810_v16, %v6764_v36  ;;  %v3463_v17 = vld [vmem:[#allocation3 + $0x119] sm:$0xff]  ;;  %v3464_v31 = vld [vmem:[#allocation3 + $0x121] sm:$0xff]  ;;  %v6554_v36 = vunpack.i.h.bf16 %v9707_v22 }
 0x3d4   : > { %v6772_v29 = vpop.permute.xlu0 %6771  ;;  %v6757_v3 = vpop.permute.xlu1 %6756  ;;  %v4846_v13 = vsel %vm4843_vm13, %v4809_v6, %v6763_v49  ;;  %v4808_v63 = vsel %vm4806_vm12, %v4771_v56, %v6749_v52  ;;  %v3497_v52 = vld [vmem:[#allocation3 + $0x10a] sm:$0xff]  ;;  %v6468_v56 = vunpack.i.l.bf16 %v9665_v47  ;;  %v6734_v45 = vunpack.i.h.bf16 %v9817_v55 }
 0x3d5   : > { %v6759_v2 = vunpack.i.h.bf16 %v6757_v3  ;;  %v6758_v18 = vunpack.i.l.bf16 %v6757_v3  ;;  %v6774_v0 = vunpack.i.h.bf16 %v6772_v29  ;;  %v6773_v20 = vunpack.i.l.bf16 %v6772_v29  ;;  %v3289_v16 = vld [vmem:[#allocation3 + $0x25] sm:$0xff] }
 0x3d6   : > { %7061 = vrot.lane.b32.xlu0 %v11084_v30, %s7201_s9  ;;  %7046 = vrot.lane.b32.xlu1 %v9859_v46, %s7199_s22  ;;  %v6464_v3 = vunpack.i.h.bf16 %v9649_v12  ;;  %v9948_v30 = vld [vmem:[#allocation3 + $0x10b] sm:$0xff]  ;;  %v6643_v12 = vunpack.i.l.bf16 %v9761_v59  ;;  %v6733_v59 = vunpack.i.l.bf16 %v9817_v55 }
 0x3d7   : > { %v4844_v26 = vsel %vm4843_vm13, %v4807_v7, %v6758_v18  ;;  %v4845_v11 = vsel %vm4843_vm13, %v4808_v63, %v6759_v2  ;;  %v4883_v32 = vsel %vm4880_vm14, %v4846_v13, %v6773_v20  ;;  %v4884_v49 = vsel %vm4880_vm14, %v4847_v61, %v6774_v0  ;;  %v3290_v20 = vld [vmem:[#allocation3 + $0x2d] sm:$0xff] }
 0x3d8   : > { %v9918_v15 = vpop.permute.xlu0 %6781  ;;  %v6767_v28 = vpop.permute.xlu1 %6766  ;;  %v6553_v2 = vunpack.i.l.bf16 %v9707_v22  ;;  %v7100_v18 = vpack.i.bf16 %v9933_v8, %v3497_v52  ;;  %v4918_v6 = vpack.c.bf16 %v4884_v49, %v4883_v32  ;;  %v11087_v0 = vpack.i.bf16 %v9843_v9, %v9841_v40 }
 0x3d9   : > { %v6769_v60 = vunpack.i.h.bf16 %v6767_v28  ;;  %v6768_v27 = vunpack.i.l.bf16 %v6767_v28  ;;  %v7110_v22 = vpack.i.bf16 %v9939_v21, %v9948_v30  ;;  %v9964_v13 = vpack.i.bf16 %v3464_v31, %v3463_v17  ;;  %v3535_v30 = vld [vmem:[#allocation3 + $0x11b] sm:$0xff] }
 0x3da   : > { %7071 = vrot.lane.b32.xlu0 %v11085_v44, %s7197_s14  ;;  %7056 = vrot.lane.b32.xlu1 %v11086_v41, %s7200_s28  ;;  %v4629_v40 = vsel %vm780_vm1, %v3289_v16, %v6463_v5  ;;  %v6784_v9 = vunpack.i.h.bf16 %v9918_v15  ;;  %v6783_v28 = vunpack.i.l.bf16 %v9918_v15  ;;  %v3291_v44 = vld [vmem:[#allocation3 + $0x35] sm:$0xff]  ;;  %v11088_v15 = vpack.i.bf16 %v9853_v25, %v9869_v19 }
 0x3db   : > { %v4881_v29 = vsel %vm4880_vm14, %v4844_v26, %v6768_v27  ;;  %v4882_v24 = vsel %vm4880_vm14, %v4845_v11, %v6769_v60  ;;  %v4665_v55 = vsel %vm2350_vm4, %v4629_v40, %v6553_v2  ;;  %v6469_v32 = vunpack.i.h.bf16 %v9665_v47 }
 0x3dc   : > { %v6792_v43 = vpop.permute.xlu0 %6791  ;;  %v9943_v14 = vpop.permute.xlu1 %6776  ;;  %v4917_v37 = vpack.c.bf16 %v4882_v24, %v4881_v29  ;;  %v4701_v41 = vsel %vm2424_vm6, %v4665_v55, %v6643_v12  ;;  %v4631_v49 = vsel %vm780_vm1, %v3291_v44, %v6468_v56  ;;  %v6558_v5 = vunpack.i.l.bf16 %v9721_v58  ;;  %v3292_v12 = vld [vmem:[#allocation3 + $0x3d] sm:$0xff] }
 0x3dd   : > { %v6794_v27 = vunpack.i.h.bf16 %v6792_v43  ;;  %v6793_v61 = vunpack.i.l.bf16 %v6792_v43  ;;  %v4737_v24 = vsel %vm2498_vm8, %v4701_v41, %v6733_v59  ;;  %v6648_v2 = vunpack.i.l.bf16 %v9775_v50 }
 0x3de   : > { %7081 = vrot.lane.b32.xlu0 %v9859_v46, %s7198_s20  ;;  %7066 = vrot.lane.b32.xlu1 %v11087_v0, %s7201_s9  ;;  %v4630_v46 = vsel %vm780_vm1, %v3290_v20, %v6464_v3  ;;  %v6559_v3 = vunpack.i.h.bf16 %v9721_v58  ;;  %v4774_v43 = vsel %vm4769_vm11, %v4737_v24, %v6783_v28  ;;  %v6778_v0 = vunpack.i.l.bf16 %v9943_v14  ;;  %v3428_v28 = vld [vmem:[#allocation3 + $0x120] sm:$0xff] }
 0x3df   : > { %5667 = vmatprep.mubr.msk.bf16.mxu1 %vm4971_vm15, %v4917_v37  ;;  %v4666_v60 = vsel %vm2350_vm4, %v4630_v46, %v6554_v36  ;;  %v4811_v25 = vsel %vm4806_vm12, %v4774_v43, %v6793_v61  ;;  %v6649_v36 = vunpack.i.h.bf16 %v9775_v50  ;;  %v4632_v50 = vsel %vm780_vm1, %v3292_v12, %v6469_v32  ;;  %v3465_v43 = vld [vmem:[#allocation3 + $0x129] sm:$0xff]  ;;  %v10041_v12 = vld [vmem:[#allocation3 + $0x133] sm:$0xff] }
 0x3e0   : > { %5668 = vmatmul.mubr.msk.bf16.vlgmr.msra.gmra.mrb[0].mxu1 %vm4971_vm15, %v4918_v6  ;;  %v6802_v7 = vpop.permute.xlu0 %6801  ;;  %v9971_v63 = vpop.permute.xlu1 %6786  ;;  %v4702_v26 = vsel %vm2424_vm6, %v4666_v60, %v6644_v48  ;;  %v6779_v6 = vunpack.i.h.bf16 %v9943_v14  ;;  %v4667_v40 = vsel %vm2350_vm4, %v4631_v49, %v6558_v5  ;;  %v3500_v60 = vld [vmem:[#allocation3 + $0x122] sm:$0xff] }
 0x3e1   : > { %v6804_v11 = vunpack.i.h.bf16 %v6802_v7  ;;  %v6803_v8 = vunpack.i.l.bf16 %v6802_v7  ;;  %v4738_v29 = vsel %vm2498_vm8, %v4702_v26, %v6734_v45  ;;  %v6789_v56 = vunpack.i.h.bf16 %v9971_v63  ;;  %v3499_v7 = vld [vmem:[#allocation3 + $0x11a] sm:$0xff] }
 0x3e2   : > { %7091 = vrot.lane.b32.xlu0 %v9867_v53, %s7199_s22  ;;  %7076 = vrot.lane.b32.xlu1 %v11088_v15, %s7197_s14  ;;  %v4775_v37 = vsel %vm4769_vm11, %v4738_v29, %v6784_v9  ;;  %v6788_v45 = vunpack.i.l.bf16 %v9971_v63  ;;  %v4703_v55 = vsel %vm2424_vm6, %v4667_v40, %v6648_v2  ;;  %v3427_v26 = vld [vmem:[#allocation3 + $0x118] sm:$0xff]  ;;  %v7105_v21 = vpack.i.bf16 %v3500_v60, %v3499_v7  ;;  %v3294_v40 = vld [vmem:[#allocation3 + $0x4d] sm:$0xff] }
 0x3e3   : > { %v4812_v47 = vsel %vm4806_vm12, %v4775_v37, %v6794_v27  ;;  %v4848_v48 = vsel %vm4843_vm13, %v4811_v25, %v6803_v8  ;;  %v4739_v63 = vsel %vm2498_vm8, %v4703_v55, %v6778_v0  ;;  %v7120_v49 = vpack.i.bf16 %v3428_v28, %v3427_v26  ;;  %v3466_v37 = vld [vmem:[#allocation3 + $0x131] sm:$0xff] }
 0x3e4   : > { %v6812_v52 = vpop.permute.xlu0 %6811  ;;  %v6797_v17 = vpop.permute.xlu1 %6796  ;;  %v4849_v58 = vsel %vm4843_vm13, %v4812_v47, %v6804_v11  ;;  %v4776_v11 = vsel %vm4769_vm11, %v4739_v63, %v6788_v45  ;;  %v3430_v25 = vld [vmem:[#allocation3 + $0x130] sm:$0xff]  ;;  %v6478_v0 = vunpack.i.l.bf16 %v9671_v39  ;;  %v3429_v45 = vld [vmem:[#allocation3 + $0x128] sm:$0xff]  ;;  %v6479_v55 = vunpack.i.h.bf16 %v9671_v39 }
 0x3e5   : > { %v6814_v19 = vunpack.i.h.bf16 %v6812_v52  ;;  %v6813_v31 = vunpack.i.l.bf16 %v6812_v52  ;;  %v6799_v9 = vunpack.i.h.bf16 %v6797_v17  ;;  %v6798_v14 = vunpack.i.l.bf16 %v6797_v17  ;;  %v10032_v47 = vld [vmem:[#allocation3 + $0x12a] sm:$0xff]  ;;  %v3295_v60 = vld [vmem:[#allocation3 + $0x55] sm:$0xff] }
 0x3e6   : > { %7101 = vrot.lane.b32.xlu0 %v7100_v18, %s7200_s28  ;;  %7086 = vrot.lane.b32.xlu1 %v9867_v53, %s7198_s20  ;;  %v4668_v53 = vsel %vm2350_vm4, %v4632_v50, %v6559_v3 }
 0x3e7   : > { %v4885_v20 = vsel %vm4880_vm14, %v4848_v48, %v6813_v31  ;;  %v4886_v16 = vsel %vm4880_vm14, %v4849_v58, %v6814_v19  ;;  %v4704_v27 = vsel %vm2424_vm6, %v4668_v53, %v6649_v36  ;;  %v4813_v29 = vsel %vm4806_vm12, %v4776_v11, %v6798_v14  ;;  %v10037_v48 = vld [vmem:[#allocation3 + $0x132] sm:$0xff] }
 0x3e8   : > { %v4919_v59 = vpack.c.bf16 %v4886_v16, %v4885_v20  ;;  %v10007_v18 = vpop.permute.xlu0 %6821  ;;  %v6807_v46 = vpop.permute.xlu1 %6806  ;;  %v4740_v41 = vsel %vm2498_vm8, %v4704_v27, %v6779_v6  ;;  %v6474_v19 = vunpack.i.h.bf16 %v9661_v23  ;;  %v10039_v58 = vld [vmem:[#allocation3 + $0x12b] sm:$0xff]  ;;  %v6473_v6 = vunpack.i.l.bf16 %v9661_v23  ;;  %v3467_v11 = vld [vmem:[#allocation3 + $0x139] sm:$0xff] }
 0x3e9   : > { %v6809_v61 = vunpack.i.h.bf16 %v6807_v46  ;;  %v6808_v44 = vunpack.i.l.bf16 %v6807_v46  ;;  %v4777_v8 = vsel %vm4769_vm11, %v4740_v41, %v6789_v56  ;;  %v7140_v56 = vpack.i.bf16 %v3466_v37, %v3465_v43 }
 0x3ea   : > { %7111 = vrot.lane.b32.xlu0 %v7110_v22, %s7201_s9  ;;  %7096 = vrot.lane.b32.xlu1 %v9964_v13, %s7199_s22  ;;  %v3536_v22 = vld [vmem:[#allocation3 + $0x123] sm:$0xff]  ;;  %v4814_v24 = vsel %vm4806_vm12, %v4777_v8, %v6799_v9  ;;  %v6563_v46 = vunpack.i.l.bf16 %v9713_v62  ;;  %v7125_v53 = vpack.i.bf16 %v3430_v25, %v3429_v45  ;;  %v6654_v9 = vunpack.i.h.bf16 %v9767_v33 }
 0x3eb   : > { %5671 = vmatprep.mubr.msk.bf16.mxu1 %vm4971_vm15, %v4919_v59  ;;  %v4850_v52 = vsel %vm4843_vm13, %v4813_v29, %v6808_v44  ;;  %v4851_v17 = vsel %vm4843_vm13, %v4814_v24, %v6809_v61  ;;  %v7115_v2 = vpack.i.bf16 %v3536_v22, %v3535_v30  ;;  %v6564_v59 = vunpack.i.h.bf16 %v9713_v62  ;;  %v3293_v62 = vld [vmem:[#allocation3 + $0x45] sm:$0xff] }
 0x3ec   : > { %v10024_v15 = vpop.permute.xlu0 %6831  ;;  %v6817_v32 = vpop.permute.xlu1 %6816  ;;  %v6653_v14 = vunpack.i.l.bf16 %v9767_v33  ;;  %v7150_v23 = vpack.i.bf16 %v10037_v48, %v10032_v47  ;;  %v7160_v28 = vpack.i.bf16 %v10041_v12, %v10039_v58  ;;  %v4634_v7 = vsel %vm780_vm1, %v3294_v40, %v6474_v19  ;;  %v3468_v8 = vld [vmem:[#allocation3 + $0x141] sm:$0xff] }
 0x3ed   : > { %v6819_v3 = vunpack.i.h.bf16 %v6817_v32  ;;  %v6818_v5 = vunpack.i.l.bf16 %v6817_v32  ;;  %v6824_v27 = vunpack.i.h.bf16 %v10007_v18  ;;  %v6823_v33 = vunpack.i.l.bf16 %v10007_v18 }
 0x3ee   : > { %7121 = vrot.lane.b32.xlu0 %v7120_v49, %s7197_s14  ;;  %7106 = vrot.lane.b32.xlu1 %v7105_v21, %s7200_s28  ;;  %v4635_v61 = vsel %vm780_vm1, %v3295_v60, %v6478_v0  ;;  %v6834_v44 = vunpack.i.h.bf16 %v10024_v15  ;;  %v6833_v63 = vunpack.i.l.bf16 %v10024_v15  ;;  %v4670_v39 = vsel %vm2350_vm4, %v4634_v7, %v6564_v59  ;;  %v3296_v21 = vld [vmem:[#allocation3 + $0x5d] sm:$0xff] }
 0x3ef   : > { %v4887_v31 = vsel %vm4880_vm14, %v4850_v52, %v6818_v5  ;;  %v4888_v36 = vsel %vm4880_vm14, %v4851_v17, %v6819_v3  ;;  %v4706_v22 = vsel %vm2424_vm6, %v4670_v39, %v6654_v9  ;;  %v4636_v15 = vsel %vm780_vm1, %v3296_v21, %v6479_v55  ;;  %v3504_v0 = vld [vmem:[#allocation3 + $0x142] sm:$0xff] }
 0x3f0   : > { %v4920_v20 = vpack.c.bf16 %v4888_v36, %v4887_v31  ;;  %v6842_v16 = vpop.permute.xlu0 %6841  ;;  %v10045_v50 = vpop.permute.xlu1 %6826  ;;  %v4742_v3 = vsel %vm2498_vm8, %v4706_v22, %v6824_v27  ;;  %v7145_v43 = vpack.i.bf16 %v3468_v8, %v3467_v11  ;;  %v6569_v37 = vunpack.i.h.bf16 %v9727_v38 }
 0x3f1   : > { %v6844_v18 = vunpack.i.h.bf16 %v6842_v16  ;;  %v6843_v49 = vunpack.i.l.bf16 %v6842_v16  ;;  %v6568_v52 = vunpack.i.l.bf16 %v9727_v38  ;;  %v4779_v25 = vsel %vm4769_vm11, %v4742_v3, %v6834_v44 }
 0x3f2   : > { %7131 = vrot.lane.b32.xlu0 %v9964_v13, %s7198_s20  ;;  %7116 = vrot.lane.b32.xlu1 %v7115_v2, %s7201_s9  ;;  %v4633_v13 = vsel %vm780_vm1, %v3293_v62, %v6473_v6  ;;  %v3503_v6 = vld [vmem:[#allocation3 + $0x13a] sm:$0xff]  ;;  %v6658_v16 = vunpack.i.l.bf16 %v9781_v57  ;;  %v6829_v59 = vunpack.i.h.bf16 %v10045_v50 }
 0x3f3   : > { %5672 = vmatmul.mubr.msk.bf16.gmra.mrb[4].mxu1 %vm4971_vm15, %v4920_v20  ;;  %v4669_v32 = vsel %vm2350_vm4, %v4633_v13, %v6563_v46  ;;  %v4816_v36 = vsel %vm4806_vm12, %v4779_v25, %v6844_v18  ;;  %v6659_v20 = vunpack.i.h.bf16 %v9781_v57  ;;  %v6828_v46 = vunpack.i.l.bf16 %v10045_v50 }
 0x3f4   : > { %v6852_v41 = vpop.permute.xlu0 %6851  ;;  %v10067_v26 = vpop.permute.xlu1 %6836  ;;  %v4705_v30 = vsel %vm2424_vm6, %v4669_v32, %v6653_v14  ;;  %v7155_v60 = vpack.i.bf16 %v3504_v0, %v3503_v6  ;;  %v6663_v25 = vunpack.i.l.bf16 %v9773_v35 }
 0x3f5   : > { %v6854_v29 = vunpack.i.h.bf16 %v6852_v41  ;;  %v6853_v24 = vunpack.i.l.bf16 %v6852_v41  ;;  %v4741_v5 = vsel %vm2498_vm8, %v4705_v30, %v6823_v33  ;;  %v6839_v9 = vunpack.i.h.bf16 %v10067_v26 }
 0x3f6   : > { %7141 = vrot.lane.b32.xlu0 %v7140_v56, %s7199_s22  ;;  %7126 = vrot.lane.b32.xlu1 %v7125_v53, %s7197_s14  ;;  %v4778_v17 = vsel %vm4769_vm11, %v4741_v5, %v6833_v63  ;;  %v6838_v57 = vunpack.i.l.bf16 %v10067_v26  ;;  %v3540_v26 = vld [vmem:[#allocation3 + $0x143] sm:$0xff] }
 0x3f7   : > { %v4815_v31 = vsel %vm4806_vm12, %v4778_v17, %v6843_v49  ;;  %v4853_v45 = vsel %vm4843_vm13, %v4816_v36, %v6854_v29  ;;  %v6664_v17 = vunpack.i.h.bf16 %v9773_v35 }
 0x3f8   : > { %v6862_v47 = vpop.permute.xlu0 %6861  ;;  %v6847_v19 = vpop.permute.xlu1 %6846  ;;  %v4852_v38 = vsel %vm4843_vm13, %v4815_v31, %v6853_v24  ;;  %v6484_v24 = vunpack.i.h.bf16 %v9667_v42 }
 0x3f9   : > { %v6864_v2 = vunpack.i.h.bf16 %v6862_v47  ;;  %v6863_v48 = vunpack.i.l.bf16 %v6862_v47  ;;  %v6849_v55 = vunpack.i.h.bf16 %v6847_v19  ;;  %v6848_v27 = vunpack.i.l.bf16 %v6847_v19  ;;  %v3298_v47 = vld [vmem:[#allocation3 + $0x6d] sm:$0xff]  ;;  %v3297_v19 = vld [vmem:[#allocation3 + $0x65] sm:$0xff] }
 0x3fa   : > { %7151 = vrot.lane.b32.xlu0 %v7150_v23, %s7200_s28  ;;  %7136 = vrot.lane.b32.xlu1 %v7140_v56, %s7198_s20  ;;  %v4672_v23 = vsel %vm2350_vm4, %v4636_v15, %v6569_v37  ;;  %v4671_v56 = vsel %vm2350_vm4, %v4635_v61, %v6568_v52  ;;  %v3539_v61 = vld [vmem:[#allocation3 + $0x13b] sm:$0xff]  ;;  %v6483_v15 = vunpack.i.l.bf16 %v9667_v42  ;;  %v6574_v37 = vunpack.i.h.bf16 %v9719_v54 }
 0x3fb   : > { %v4889_v53 = vsel %vm4880_vm14, %v4852_v38, %v6863_v48  ;;  %v4890_v40 = vsel %vm4880_vm14, %v4853_v45, %v6864_v2  ;;  %v4707_v50 = vsel %vm2424_vm6, %v4671_v56, %v6658_v16  ;;  %v4708_v33 = vsel %vm2424_vm6, %v4672_v23, %v6659_v20 }
 0x3fc   : > { %v4921_v14 = vpack.c.bf16 %v4890_v40, %v4889_v53  ;;  %v10096_v7 = vpop.permute.xlu0 %6871  ;;  %v6857_v62 = vpop.permute.xlu1 %6856  ;;  %v4743_v63 = vsel %vm2498_vm8, %v4707_v50, %v6828_v46  ;;  %v4744_v41 = vsel %vm2498_vm8, %v4708_v33, %v6829_v59  ;;  %v7165_v30 = vpack.i.bf16 %v3540_v26, %v3539_v61  ;;  %v3299_v59 = vld [vmem:[#allocation3 + $0x75] sm:$0xff]  ;;  %v3300_v26 = vld [vmem:[#allocation3 + $0x7d] sm:$0xff] }
 0x3fd   : > { %v6859_v13 = vunpack.i.h.bf16 %v6857_v62  ;;  %v6858_v44 = vunpack.i.l.bf16 %v6857_v62  ;;  %v4780_v11 = vsel %vm4769_vm11, %v4743_v63, %v6838_v57  ;;  %v4781_v8 = vsel %vm4769_vm11, %v4744_v41, %v6839_v9 }
 0x3fe   : > { %7161 = vrot.lane.b32.xlu0 %v7160_v28, %s7201_s9  ;;  %7146 = vrot.lane.b32.xlu1 %v7145_v43, %s7199_s22  ;;  %v4817_v18 = vsel %vm4806_vm12, %v4780_v11, %v6848_v27  ;;  %v4818_v58 = vsel %vm4806_vm12, %v4781_v8, %v6849_v55  ;;  %v6573_v52 = vunpack.i.l.bf16 %v9719_v54  ;;  %v6488_v42 = vunpack.i.l.bf16 %v9677_v34 }
 0x3ff   : > { %5675 = vmatprep.mubr.msk.bf16.mxu1 %vm4971_vm15, %v4921_v14  ;;  %v4854_v49 = vsel %vm4843_vm13, %v4817_v18, %v6858_v44  ;;  %v4855_v21 = vsel %vm4843_vm13, %v4818_v58, %v6859_v13  ;;  %v6874_v31 = vunpack.i.h.bf16 %v10096_v7  ;;  %v6873_v36 = vunpack.i.l.bf16 %v10096_v7 }
 0x400   : > { %v6882_v39 = vpop.permute.xlu0 %6881  ;;  %v6867_v32 = vpop.permute.xlu1 %6866  ;;  %v4638_v2 = vsel %vm780_vm1, %v3298_v47, %v6484_v24  ;;  %v4637_v54 = vsel %vm780_vm1, %v3297_v19, %v6483_v15  ;;  %v6489_v57 = vunpack.i.h.bf16 %v9677_v34  ;;  %v4639_v14 = vsel %vm780_vm1, %v3299_v59, %v6488_v42 }
 0x401   : > { %v6869_v12 = vunpack.i.h.bf16 %v6867_v32  ;;  %v6868_v28 = vunpack.i.l.bf16 %v6867_v32  ;;  %v6884_v48 = vunpack.i.h.bf16 %v6882_v39  ;;  %v6883_v6 = vunpack.i.l.bf16 %v6882_v39 }
 0x402   : > { %7156 = vrot.lane.b32.xlu1 %v7155_v60, %s7200_s28  ;;  %v4674_v20 = vsel %vm2350_vm4, %v4638_v2, %v6574_v37  ;;  %v4673_v16 = vsel %vm2350_vm4, %v4637_v54, %v6573_v52  ;;  %v6579_v60 = vunpack.i.h.bf16 %v9733_v51  ;;  %v6578_v23 = vunpack.i.l.bf16 %v9733_v51 }
 0x403   : > { %v4891_v22 = vsel %vm4880_vm14, %v4854_v49, %v6868_v28  ;;  %v4892_v29 = vsel %vm4880_vm14, %v4855_v21, %v6869_v12  ;;  %v4709_v46 = vsel %vm2424_vm6, %v4673_v16, %v6663_v25  ;;  %v4710_v53 = vsel %vm2424_vm6, %v4674_v20, %v6664_v17 }
 0x404   : > { %v4922_v3 = vpack.c.bf16 %v4892_v29, %v4891_v22  ;;  %v6892_v5 = vpop.permute.xlu0 %6891  ;;  %v10121_v43 = vpop.permute.xlu1 %6876  ;;  %v4746_v7 = vsel %vm2498_vm8, %v4710_v53, %v6874_v31  ;;  %v4745_v62 = vsel %vm2498_vm8, %v4709_v46, %v6873_v36  ;;  %v6669_v63 = vunpack.i.h.bf16 %v9787_v4  ;;  %v11089_v46 = vld [vmem:[#allocation86_spill] sm:$0xff] }
 0x405   : > { %v6894_v38 = vunpack.i.h.bf16 %v6892_v5  ;;  %v6893_v45 = vunpack.i.l.bf16 %v6892_v5  ;;  %v4782_v56 = vsel %vm4769_vm11, %v4745_v62, %v6883_v6  ;;  %v4783_v55 = vsel %vm4769_vm11, %v4746_v7, %v6884_v48 }
 0x406   : > { %7166 = vrot.lane.b32.xlu1 %v7165_v30, %s7201_s9  ;;  %5676 = vmatmul.mubr.msk.bf16.gmra.mrb[8].mxu1 %vm4971_vm15, %v4922_v3  ;;  %v6668_v41 = vunpack.i.l.bf16 %v9787_v4  ;;  %v6879_v11 = vunpack.i.h.bf16 %v10121_v43  ;;  %v6878_v8 = vunpack.i.l.bf16 %v10121_v43  ;;  %v4640_v18 = vsel %vm780_vm1, %v3300_v26, %v6489_v57  ;;  %v3301_v57 = vld [vmem:[#allocation3 + $0x85] sm:$0xff] }
 0x407   : > { %v4819_v33 = vsel %vm4806_vm12, %v4782_v56, %v6893_v45  ;;  %v4820_v34 = vsel %vm4806_vm12, %v4783_v55, %v6894_v38  ;;  %v4676_v21 = vsel %vm2350_vm4, %v4640_v18, %v6579_v60  ;;  %v4675_v30 = vsel %vm2350_vm4, %v4639_v14, %v6578_v23  ;;  %v11090_v14 = vld [vmem:[#allocation69_spill] sm:$0xff] }
 0x408   : > { %v6902_v0 = vpop.permute.xlu0 %6901  ;;  %v6887_v35 = vpop.permute.xlu1 %6886  ;;  %v4711_v24 = vsel %vm2424_vm6, %v4675_v30, %v6668_v41  ;;  %v4712_v15 = vsel %vm2424_vm6, %v4676_v21, %v6669_v63  ;;  %v6584_v45 = vunpack.i.h.bf16 %v9725_v10  ;;  %v6583_v59 = vunpack.i.l.bf16 %v9725_v10 }
 0x409   : > { %v6904_v40 = vunpack.i.h.bf16 %v6902_v0  ;;  %v6903_v9 = vunpack.i.l.bf16 %v6902_v0  ;;  %v6889_v58 = vunpack.i.h.bf16 %v6887_v35  ;;  %v6888_v12 = vunpack.i.l.bf16 %v6887_v35 }
 0x40a   : > { %v4747_v43 = vsel %vm2498_vm8, %v4711_v24, %v6878_v8  ;;  %v4748_v37 = vsel %vm2498_vm8, %v4712_v15, %v6879_v11  ;;  %v6494_v0 = vunpack.i.h.bf16 %v9673_v1  ;;  %v6493_v35 = vunpack.i.l.bf16 %v9673_v1  ;;  %v11092_v24 = vld [vmem:[#allocation89_spill] sm:$0xff] }
 0x40b   : > { %v4856_v61 = vsel %vm4843_vm13, %v4819_v33, %v6903_v9  ;;  %v4857_v51 = vsel %vm4843_vm13, %v4820_v34, %v6904_v40  ;;  %v4784_v52 = vsel %vm4769_vm11, %v4747_v43, %v6888_v12  ;;  %v4785_v17 = vsel %vm4769_vm11, %v4748_v37, %v6889_v58  ;;  %v3302_v9 = vld [vmem:[#allocation3 + $0x8d] sm:$0xff]  ;;  %v3304_v37 = vld [vmem:[#allocation3 + $0x9d] sm:$0xff] }
 0x40c   : > { %v6912_v27 = vpop.permute.xlu0 %6911  ;;  %v6897_v50 = vpop.permute.xlu1 %6896  ;;  %v6674_v53 = vunpack.i.h.bf16 %v11089_v46  ;;  %v6673_v40 = vunpack.i.l.bf16 %v11089_v46  ;;  %v6498_v7 = vunpack.i.l.bf16 %v11090_v14  ;;  %v4642_v60 = vsel %vm780_vm1, %v3302_v9, %v6494_v0 }
 0x40d   : > { %v6914_v13 = vunpack.i.h.bf16 %v6912_v27  ;;  %v6913_v44 = vunpack.i.l.bf16 %v6912_v27  ;;  %v6899_v22 = vunpack.i.h.bf16 %v6897_v50  ;;  %v6898_v29 = vunpack.i.l.bf16 %v6897_v50 }
 0x40e   : > { %v4641_v23 = vsel %vm780_vm1, %v3301_v57, %v6493_v35  ;;  %v4678_v50 = vsel %vm2350_vm4, %v4642_v60, %v6584_v45  ;;  %v6499_v26 = vunpack.i.h.bf16 %v11090_v14  ;;  %v6679_v15 = vunpack.i.h.bf16 %v11092_v24 }
 0x40f   : > { %v4893_v39 = vsel %vm4880_vm14, %v4856_v61, %v6913_v44  ;;  %v4894_v32 = vsel %vm4880_vm14, %v4857_v51, %v6914_v13  ;;  %v4821_v19 = vsel %vm4806_vm12, %v4784_v52, %v6898_v29  ;;  %v4822_v42 = vsel %vm4806_vm12, %v4785_v17, %v6899_v22  ;;  %v3303_v44 = vld [vmem:[#allocation3 + $0x95] sm:$0xff] }
 0x410   : > { %v4923_v28 = vpack.c.bf16 %v4894_v32, %v4893_v39  ;;  %v6922_v49 = vpop.permute.xlu0 %6921  ;;  %v6907_v4 = vpop.permute.xlu1 %6906  ;;  %v4677_v33 = vsel %vm2350_vm4, %v4641_v23, %v6583_v59  ;;  %v4714_v41 = vsel %vm2424_vm6, %v4678_v50, %v6674_v53  ;;  %v4643_v11 = vsel %vm780_vm1, %v3303_v44, %v6498_v7  ;;  %v11091_v32 = vld [vmem:[#allocation79_spill] sm:$0xff]  ;;  %v11094_v44 = vld [vmem:[#allocation77_spill] sm:$0xff] }
 0x411   : > { %v6909_v3 = vunpack.i.h.bf16 %v6907_v4  ;;  %v6908_v5 = vunpack.i.l.bf16 %v6907_v4  ;;  %v6924_v62 = vunpack.i.h.bf16 %v6922_v49  ;;  %v6923_v1 = vunpack.i.l.bf16 %v6922_v49 }
 0x412   : > { %5679 = vmatprep.mubr.msk.bf16.mxu1 %vm4971_vm15, %v4923_v28  ;;  %v4713_v63 = vsel %vm2424_vm6, %v4677_v33, %v6673_v40  ;;  %v6589_v18 = vunpack.i.h.bf16 %v11091_v32  ;;  %v6588_v58 = vunpack.i.l.bf16 %v11091_v32 }
 0x413   : > { %v4858_v2 = vsel %vm4843_vm13, %v4821_v19, %v6908_v5  ;;  %v4859_v54 = vsel %vm4843_vm13, %v4822_v42, %v6909_v3  ;;  %v4750_v8 = vsel %vm2498_vm8, %v4714_v41, %v6924_v62  ;;  %v4749_v39 = vsel %vm2498_vm8, %v4713_v63, %v6923_v1 }
 0x414   : > { %v6932_v25 = vpop.permute.xlu0 %6931  ;;  %v6917_v47 = vpop.permute.xlu1 %6916  ;;  %v6678_v3 = vunpack.i.l.bf16 %v11092_v24  ;;  %v4644_v19 = vsel %vm780_vm1, %v3304_v37, %v6499_v26  ;;  %v6594_v63 = vunpack.i.h.bf16 %v11094_v44  ;;  %v6593_v41 = vunpack.i.l.bf16 %v11094_v44 }
 0x415   : > { %v6919_v31 = vunpack.i.h.bf16 %v6917_v47  ;;  %v6918_v36 = vunpack.i.l.bf16 %v6917_v47  ;;  %v6934_v56 = vunpack.i.h.bf16 %v6932_v25  ;;  %v6933_v55 = vunpack.i.l.bf16 %v6932_v25 }
 0x417   : > { %v4895_v48 = vsel %vm4880_vm14, %v4858_v2, %v6918_v36  ;;  %v4896_v6 = vsel %vm4880_vm14, %v4859_v54, %v6919_v31  ;;  %v4786_v12 = vsel %vm4769_vm11, %v4749_v39, %v6933_v55  ;;  %v4787_v28 = vsel %vm4769_vm11, %v4750_v8, %v6934_v56  ;;  %v3305_v8 = vld [vmem:[#allocation3 + $0xa5] sm:$0xff] }
 0x418   : > { %v4924_v20 = vpack.c.bf16 %v4896_v6, %v4895_v48  ;;  %v6942_v16 = vpop.permute.xlu0 %6941  ;;  %v10174_v38 = vpop.permute.xlu1 %6926  ;;  %v4680_v48 = vsel %vm2350_vm4, %v4644_v19, %v6589_v18  ;;  %v4679_v6 = vsel %vm2350_vm4, %v4643_v11, %v6588_v58  ;;  %v3306_v11 = vld [vmem:[#allocation3 + $0xad] sm:$0xff] }
 0x419   : > { %v6944_v34 = vunpack.i.h.bf16 %v6942_v16  ;;  %v6943_v13 = vunpack.i.l.bf16 %v6942_v16  ;;  %v6929_v52 = vunpack.i.h.bf16 %v10174_v38  ;;  %v6928_v17 = vunpack.i.l.bf16 %v10174_v38  ;;  %v11096_v39 = vld [vmem:[#allocation71_spill] sm:$0xff] }
 0x41a   : > { %5680 = vmatmul.mubr.msk.bf16.gmra.mrb[12].mxu1 %vm4971_vm15, %v4924_v20  ;;  %v4715_v20 = vsel %vm2424_vm6, %v4679_v6, %v6678_v3  ;;  %v4716_v16 = vsel %vm2424_vm6, %v4680_v48, %v6679_v15  ;;  %v6508_v32 = vunpack.i.l.bf16 %v11096_v39  ;;  %v3307_v3 = vld [vmem:[#allocation3 + $0xb5] sm:$0xff] }
 0x41b   : > { %v4823_v21 = vsel %vm4806_vm12, %v4786_v12, %v6943_v13  ;;  %v4824_v30 = vsel %vm4806_vm12, %v4787_v28, %v6944_v34  ;;  %v4751_v59 = vsel %vm2498_vm8, %v4715_v20, %v6928_v17  ;;  %v4752_v46 = vsel %vm2498_vm8, %v4716_v16, %v6929_v52 }
 0x41c   : > { %v6952_v27 = vpop.permute.xlu0 %6951  ;;  %v6937_v10 = vpop.permute.xlu1 %6936  ;;  %v6509_v17 = vunpack.i.h.bf16 %v11096_v39 }
 0x41d   : > { %v6954_v61 = vunpack.i.h.bf16 %v6952_v27  ;;  %v6953_v51 = vunpack.i.l.bf16 %v6952_v27  ;;  %v6939_v42 = vunpack.i.h.bf16 %v6937_v10  ;;  %v6938_v31 = vunpack.i.l.bf16 %v6937_v10  ;;  %v11093_v27 = vld [vmem:[#allocation68_spill] sm:$0xff] }
 0x41e   : > { %v6504_v10 = vunpack.i.h.bf16 %v11093_v27  ;;  %v6503_v50 = vunpack.i.l.bf16 %v11093_v27 }
 0x41f   : > { %v4860_v5 = vsel %vm4843_vm13, %v4823_v21, %v6953_v51  ;;  %v4861_v43 = vsel %vm4843_vm13, %v4824_v30, %v6954_v61  ;;  %v4788_v53 = vsel %vm4769_vm11, %v4751_v59, %v6938_v31  ;;  %v4789_v40 = vsel %vm4769_vm11, %v4752_v46, %v6939_v42  ;;  %v11095_v61 = vld [vmem:[#allocation87_spill] sm:$0xff]  ;;  %v11097_v42 = vld [vmem:[#allocation81_spill] sm:$0xff] }
 0x420   : > { %v6962_v49 = vpop.permute.xlu0 %6961  ;;  %v6947_v4 = vpop.permute.xlu1 %6946  ;;  %v6684_v51 = vunpack.i.h.bf16 %v11095_v61  ;;  %v6683_v26 = vunpack.i.l.bf16 %v11095_v61  ;;  %v4646_v12 = vsel %vm780_vm1, %v3306_v11, %v6504_v10  ;;  %v4645_v28 = vsel %vm780_vm1, %v3305_v8, %v6503_v50 }
 0x421   : > { %v6964_v22 = vunpack.i.h.bf16 %v6962_v49  ;;  %v6963_v29 = vunpack.i.l.bf16 %v6962_v49  ;;  %v6949_v0 = vunpack.i.h.bf16 %v6947_v4  ;;  %v6948_v35 = vunpack.i.l.bf16 %v6947_v4 }
 0x422   : > { %v6599_v31 = vunpack.i.h.bf16 %v11097_v42 }
 0x423   : > { %v4897_v25 = vsel %vm4880_vm14, %v4860_v5, %v6963_v29  ;;  %v4898_v47 = vsel %vm4880_vm14, %v4861_v43, %v6964_v22  ;;  %v4825_v14 = vsel %vm4806_vm12, %v4788_v53, %v6948_v35  ;;  %v4826_v7 = vsel %vm4806_vm12, %v4789_v40, %v6949_v0  ;;  %v3308_v40 = vld [vmem:[#allocation3 + $0xbd] sm:$0xff] }
 0x424   : > { %v4925_v36 = vpack.c.bf16 %v4898_v47, %v4897_v25  ;;  %v6972_v2 = vpop.permute.xlu0 %6971  ;;  %v6957_v54 = vpop.permute.xlu1 %6956  ;;  %v4682_v22 = vsel %vm2350_vm4, %v4646_v12, %v6594_v63  ;;  %v4681_v29 = vsel %vm2350_vm4, %v4645_v28, %v6593_v41  ;;  %v4647_v25 = vsel %vm780_vm1, %v3307_v3, %v6508_v32  ;;  %v11100_v3 = vld [vmem:[#allocation78_spill] sm:$0xff] }
 0x425   : > { %v6959_v38 = vunpack.i.h.bf16 %v6957_v54  ;;  %v6958_v45 = vunpack.i.l.bf16 %v6957_v54  ;;  %v6974_v18 = vunpack.i.h.bf16 %v6972_v2  ;;  %v6973_v58 = vunpack.i.l.bf16 %v6972_v2 }
 0x426   : > { %5683 = vmatprep.mubr.msk.bf16.mxu1 %vm4971_vm15, %v4925_v36  ;;  %v4717_v5 = vsel %vm2424_vm6, %v4681_v29, %v6683_v26  ;;  %v4718_v43 = vsel %vm2424_vm6, %v4682_v22, %v6684_v51  ;;  %v6598_v36 = vunpack.i.l.bf16 %v11097_v42 }
 0x427   : > { %v4862_v60 = vsel %vm4843_vm13, %v4825_v14, %v6958_v45  ;;  %v4863_v23 = vsel %vm4843_vm13, %v4826_v7, %v6959_v38  ;;  %v4754_v47 = vsel %vm2498_vm8, %v4718_v43, %v6974_v18  ;;  %v4753_v19 = vsel %vm2498_vm8, %v4717_v5, %v6973_v58  ;;  %v11098_v38 = vld [vmem:[#allocation91_spill] sm:$0xff] }
 0x428   : > { %v6982_v9 = vpop.permute.xlu0 %6981  ;;  %v6967_v57 = vpop.permute.xlu1 %6966  ;;  %v6689_v45 = vunpack.i.h.bf16 %v11098_v38  ;;  %v6688_v59 = vunpack.i.l.bf16 %v11098_v38  ;;  %v4683_v10 = vsel %vm2350_vm4, %v4647_v25, %v6598_v36  ;;  %v6604_v5 = vunpack.i.h.bf16 %v11100_v3  ;;  %v3310_v25 = vld [vmem:[#allocation3 + $0xcd] sm:$0xff] }
 0x429   : > { %v6969_v62 = vunpack.i.h.bf16 %v6967_v57  ;;  %v6968_v1 = vunpack.i.l.bf16 %v6967_v57  ;;  %v6984_v49 = vunpack.i.h.bf16 %v6982_v9  ;;  %v6983_v4 = vunpack.i.l.bf16 %v6982_v9 }
 0x42a   : > { %v6603_v43 = vunpack.i.l.bf16 %v11100_v3 }
 0x42b   : > { %v4899_v56 = vsel %vm4880_vm14, %v4862_v60, %v6968_v1  ;;  %v4900_v55 = vsel %vm4880_vm14, %v4863_v23, %v6969_v62  ;;  %v4790_v2 = vsel %vm4769_vm11, %v4753_v19, %v6983_v4  ;;  %v4791_v54 = vsel %vm4769_vm11, %v4754_v47, %v6984_v49  ;;  %v3309_v47 = vld [vmem:[#allocation3 + $0xc5] sm:$0xff]  ;;  %v11102_v19 = vld [vmem:[#allocation73_spill] sm:$0xff] }
 0x42c   : > { %v4926_v33 = vpack.c.bf16 %v4900_v55, %v4899_v56  ;;  %v6992_v34 = vpop.permute.xlu0 %6991  ;;  %v10224_v13 = vpop.permute.xlu1 %6976  ;;  %v4648_v62 = vsel %vm780_vm1, %v3308_v40, %v6509_v17  ;;  %v6518_v42 = vunpack.i.l.bf16 %v11102_v19 }
 0x42d   : > { %v6994_v24 = vunpack.i.h.bf16 %v6992_v34  ;;  %v6993_v15 = vunpack.i.l.bf16 %v6992_v34  ;;  %v6979_v9 = vunpack.i.h.bf16 %v10224_v13  ;;  %v6978_v57 = vunpack.i.l.bf16 %v10224_v13 }
 0x42e   : > { %5684 = vmatmul.mubr.msk.bf16.gmra.mrb[16].mxu1 %vm4971_vm15, %v4926_v33  ;;  %v4684_v27 = vsel %vm2350_vm4, %v4648_v62, %v6599_v31  ;;  %v4719_v34 = vsel %vm2424_vm6, %v4683_v10, %v6688_v59  ;;  %v3311_v59 = vld [vmem:[#allocation3 + $0xd5] sm:$0xff] }
 0x42f   : > { %v4827_v0 = vsel %vm4806_vm12, %v4790_v2, %v6993_v15  ;;  %v4828_v35 = vsel %vm4806_vm12, %v4791_v54, %v6994_v24  ;;  %v4720_v13 = vsel %vm2424_vm6, %v4684_v27, %v6689_v45  ;;  %v4755_v41 = vsel %vm2498_vm8, %v4719_v34, %v6978_v57 }
 0x430   : > { %v7002_v21 = vpop.permute.xlu0 %7001  ;;  %v6987_v30 = vpop.permute.xlu1 %6986  ;;  %v4756_v61 = vsel %vm2498_vm8, %v4720_v13, %v6979_v9  ;;  %v6519_v57 = vunpack.i.h.bf16 %v11102_v19 }
 0x431   : > { %v7004_v37 = vunpack.i.h.bf16 %v7002_v21  ;;  %v7003_v52 = vunpack.i.l.bf16 %v7002_v21  ;;  %v6989_v1 = vunpack.i.h.bf16 %v6987_v30  ;;  %v6988_v60 = vunpack.i.l.bf16 %v6987_v30  ;;  %v11099_v21 = vld [vmem:[#allocation70_spill] sm:$0xff] }
 0x432   : > { %v6514_v30 = vunpack.i.h.bf16 %v11099_v21  ;;  %v6513_v22 = vunpack.i.l.bf16 %v11099_v21 }
 0x433   : > { %v4864_v46 = vsel %vm4843_vm13, %v4827_v0, %v7003_v52  ;;  %v4865_v53 = vsel %vm4843_vm13, %v4828_v35, %v7004_v37  ;;  %v4792_v51 = vsel %vm4769_vm11, %v4755_v41, %v6988_v60  ;;  %v4793_v26 = vsel %vm4769_vm11, %v4756_v61, %v6989_v1  ;;  %v11101_v37 = vld [vmem:[#allocation88_spill] sm:$0xff]  ;;  %v11103_v1 = vld [vmem:[#allocation83_spill] sm:$0xff] }
 0x434   : > { %v7012_v48 = vpop.permute.xlu0 %7011  ;;  %v6997_v6 = vpop.permute.xlu1 %6996  ;;  %v6694_v52 = vunpack.i.h.bf16 %v11101_v37  ;;  %v6693_v17 = vunpack.i.l.bf16 %v11101_v37  ;;  %v4650_v2 = vsel %vm780_vm1, %v3310_v25, %v6514_v30  ;;  %v4649_v54 = vsel %vm780_vm1, %v3309_v47, %v6513_v22 }
 0x435   : > { %v7014_v20 = vunpack.i.h.bf16 %v7012_v48  ;;  %v7013_v16 = vunpack.i.l.bf16 %v7012_v48  ;;  %v6999_v50 = vunpack.i.h.bf16 %v6997_v6  ;;  %v6998_v33 = vunpack.i.l.bf16 %v6997_v6 }
 0x436   : > { %v6609_v60 = vunpack.i.h.bf16 %v11103_v1 }
 0x437   : > { %v4901_v14 = vsel %vm4880_vm14, %v4864_v46, %v7013_v16  ;;  %v4902_v7 = vsel %vm4880_vm14, %v4865_v53, %v7014_v20  ;;  %v4829_v39 = vsel %vm4806_vm12, %v4792_v51, %v6998_v33  ;;  %v4830_v32 = vsel %vm4806_vm12, %v4793_v26, %v6999_v50  ;;  %v3312_v26 = vld [vmem:[#allocation3 + $0xdd] sm:$0xff] }
 0x438   : > { %v4927_v23 = vpack.c.bf16 %v4902_v7, %v4901_v14  ;;  %v7022_v56 = vpop.permute.xlu0 %7021  ;;  %v7007_v55 = vpop.permute.xlu1 %7006  ;;  %v4686_v20 = vsel %vm2350_vm4, %v4650_v2, %v6604_v5  ;;  %v4685_v16 = vsel %vm2350_vm4, %v4649_v54, %v6603_v43  ;;  %v4651_v14 = vsel %vm780_vm1, %v3311_v59, %v6518_v42  ;;  %v11106_v59 = vld [vmem:[#allocation80_spill] sm:$0xff] }
 0x439   : > { %v7009_v44 = vunpack.i.h.bf16 %v7007_v55  ;;  %v7008_v63 = vunpack.i.l.bf16 %v7007_v55  ;;  %v7024_v31 = vunpack.i.h.bf16 %v7022_v56  ;;  %v7023_v36 = vunpack.i.l.bf16 %v7022_v56 }
 0x43a   : > { %5687 = vmatprep.mubr.msk.bf16.mxu1 %vm4971_vm15, %v4927_v23  ;;  %v4721_v46 = vsel %vm2424_vm6, %v4685_v16, %v6693_v17  ;;  %v4722_v53 = vsel %vm2424_vm6, %v4686_v20, %v6694_v52  ;;  %v6608_v23 = vunpack.i.l.bf16 %v11103_v1 }
 0x43b   : > { %v4866_v12 = vsel %vm4843_vm13, %v4829_v39, %v7008_v63  ;;  %v4867_v28 = vsel %vm4843_vm13, %v4830_v32, %v7009_v44  ;;  %v4758_v7 = vsel %vm2498_vm8, %v4722_v53, %v7024_v31  ;;  %v4757_v62 = vsel %vm2498_vm8, %v4721_v46, %v7023_v36  ;;  %v11104_v44 = vld [vmem:[#allocation103_spill] sm:$0xff] }
 0x43c   : > { %v7032_v11 = vpop.permute.xlu0 %7031  ;;  %v7017_v8 = vpop.permute.xlu1 %7016  ;;  %v6699_v63 = vunpack.i.h.bf16 %v11104_v44  ;;  %v6698_v41 = vunpack.i.l.bf16 %v11104_v44  ;;  %v4687_v30 = vsel %vm2350_vm4, %v4651_v14, %v6608_v23  ;;  %v6614_v46 = vunpack.i.h.bf16 %v11106_v59  ;;  %v3314_v14 = vld [vmem:[#allocation3 + $0xed] sm:$0xff] }
 0x43d   : > { %v7019_v18 = vunpack.i.h.bf16 %v7017_v8  ;;  %v7018_v58 = vunpack.i.l.bf16 %v7017_v8  ;;  %v7034_v48 = vunpack.i.h.bf16 %v7032_v11  ;;  %v7033_v6 = vunpack.i.l.bf16 %v7032_v11 }
 0x43e   : > { %v6613_v53 = vunpack.i.l.bf16 %v11106_v59 }
 0x43f   : > { %v4903_v49 = vsel %vm4880_vm14, %v4866_v12, %v7018_v58  ;;  %v4904_v4 = vsel %vm4880_vm14, %v4867_v28, %v7019_v18  ;;  %v4794_v56 = vsel %vm4769_vm11, %v4757_v62, %v7033_v6  ;;  %v4795_v55 = vsel %vm4769_vm11, %v4758_v7, %v7034_v48  ;;  %v3313_v7 = vld [vmem:[#allocation3 + $0xe5] sm:$0xff] }
 0x440   : > { %v4928_v29 = vpack.c.bf16 %v4904_v4, %v4903_v49  ;;  %v7042_v24 = vpop.permute.xlu0 %7041  ;;  %v10274_v15 = vpop.permute.xlu1 %7026  ;;  %v4652_v18 = vsel %vm780_vm1, %v3312_v26, %v6519_v57  ;;  %v11108_v62 = vld [vmem:[#allocation75_spill] sm:$0xff] }
 0x441   : > { %v7044_v38 = vunpack.i.h.bf16 %v7042_v24  ;;  %v7043_v45 = vunpack.i.l.bf16 %v7042_v24  ;;  %v7029_v11 = vunpack.i.h.bf16 %v10274_v15  ;;  %v7028_v8 = vunpack.i.l.bf16 %v10274_v15 }
 0x442   : > { %5688 = vmatmul.mubr.msk.bf16.gmra.mrb[20].mxu1 %vm4971_vm15, %v4928_v29  ;;  %v4688_v21 = vsel %vm2350_vm4, %v4652_v18, %v6609_v60  ;;  %v4723_v24 = vsel %vm2424_vm6, %v4687_v30, %v6698_v41  ;;  %v6528_v1 = vunpack.i.l.bf16 %v11108_v62  ;;  %v3315_v41 = vld [vmem:[#allocation3 + $0xf5] sm:$0xff] }
 0x443   : > { %v4831_v50 = vsel %vm4806_vm12, %v4794_v56, %v7043_v45  ;;  %v4832_v33 = vsel %vm4806_vm12, %v4795_v55, %v7044_v38  ;;  %v4724_v15 = vsel %vm2424_vm6, %v4688_v21, %v6699_v63  ;;  %v4759_v43 = vsel %vm2498_vm8, %v4723_v24, %v7028_v8 }
 0x444   : > { %v7052_v0 = vpop.permute.xlu0 %7051  ;;  %v7037_v35 = vpop.permute.xlu1 %7036  ;;  %v4760_v37 = vsel %vm2498_vm8, %v4724_v15, %v7029_v11  ;;  %v6529_v8 = vunpack.i.h.bf16 %v11108_v62 }
 0x445   : > { %v7054_v40 = vunpack.i.h.bf16 %v7052_v0  ;;  %v7053_v9 = vunpack.i.l.bf16 %v7052_v0  ;;  %v7039_v58 = vunpack.i.h.bf16 %v7037_v35  ;;  %v7038_v12 = vunpack.i.l.bf16 %v7037_v35  ;;  %v11105_v0 = vld [vmem:[#allocation72_spill] sm:$0xff] }
 0x446   : > { %v6524_v35 = vunpack.i.h.bf16 %v11105_v0  ;;  %v6523_v20 = vunpack.i.l.bf16 %v11105_v0 }
 0x447   : > { %v4868_v61 = vsel %vm4843_vm13, %v4831_v50, %v7053_v9  ;;  %v4869_v51 = vsel %vm4843_vm13, %v4832_v33, %v7054_v40  ;;  %v4796_v52 = vsel %vm4769_vm11, %v4759_v43, %v7038_v12  ;;  %v4797_v17 = vsel %vm4769_vm11, %v4760_v37, %v7039_v58  ;;  %v11107_v40 = vld [vmem:[#allocation90_spill] sm:$0xff]  ;;  %v11109_v58 = vld [vmem:[#allocation84_spill] sm:$0xff] }
 0x448   : > { %v7062_v27 = vpop.permute.xlu0 %7061  ;;  %v7047_v10 = vpop.permute.xlu1 %7046  ;;  %v6704_v9 = vunpack.i.h.bf16 %v11107_v40  ;;  %v6703_v57 = vunpack.i.l.bf16 %v11107_v40  ;;  %v4654_v56 = vsel %vm780_vm1, %v3314_v14, %v6524_v35  ;;  %v4653_v55 = vsel %vm780_vm1, %v3313_v7, %v6523_v20 }
 0x449   : > { %v7064_v34 = vunpack.i.h.bf16 %v7062_v27  ;;  %v7063_v13 = vunpack.i.l.bf16 %v7062_v27  ;;  %v7049_v22 = vunpack.i.h.bf16 %v7047_v10  ;;  %v7048_v29 = vunpack.i.l.bf16 %v7047_v10 }
 0x44a   : > { %v6619_v12 = vunpack.i.h.bf16 %v11109_v58 }
 0x44b   : > { %v4905_v39 = vsel %vm4880_vm14, %v4868_v61, %v7063_v13  ;;  %v4906_v32 = vsel %vm4880_vm14, %v4869_v51, %v7064_v34  ;;  %v4833_v19 = vsel %vm4806_vm12, %v4796_v52, %v7048_v29  ;;  %v4834_v42 = vsel %vm4806_vm12, %v4797_v17, %v7049_v22  ;;  %v3316_v17 = vld [vmem:[#allocation3 + $0xfd] sm:$0xff] }
 0x44c   : > { %v4929_v28 = vpack.c.bf16 %v4906_v32, %v4905_v39  ;;  %v7072_v49 = vpop.permute.xlu0 %7071  ;;  %v7057_v4 = vpop.permute.xlu1 %7056  ;;  %v4690_v34 = vsel %vm2350_vm4, %v4654_v56, %v6614_v46  ;;  %v4689_v13 = vsel %vm2350_vm4, %v4653_v55, %v6613_v53  ;;  %v4655_v39 = vsel %vm780_vm1, %v3315_v41, %v6528_v1  ;;  %v11112_v41 = vld [vmem:[#allocation82_spill] sm:$0xff] }
 0x44d   : > { %v7059_v3 = vunpack.i.h.bf16 %v7057_v4  ;;  %v7058_v5 = vunpack.i.l.bf16 %v7057_v4  ;;  %v7074_v60 = vunpack.i.h.bf16 %v7072_v49  ;;  %v7073_v23 = vunpack.i.l.bf16 %v7072_v49 }
 0x44e   : > { %5691 = vmatprep.mubr.msk.bf16.mxu1 %vm4971_vm15, %v4929_v28  ;;  %v4725_v61 = vsel %vm2424_vm6, %v4689_v13, %v6703_v57  ;;  %v4726_v51 = vsel %vm2424_vm6, %v4690_v34, %v6704_v9  ;;  %v6618_v28 = vunpack.i.l.bf16 %v11109_v58 }
 0x44f   : > { %v4870_v2 = vsel %vm4843_vm13, %v4833_v19, %v7058_v5  ;;  %v4871_v54 = vsel %vm4843_vm13, %v4834_v42, %v7059_v3  ;;  %v4762_v32 = vsel %vm2498_vm8, %v4726_v51, %v7074_v60  ;;  %v4761_v18 = vsel %vm2498_vm8, %v4725_v61, %v7073_v23  ;;  %v11110_v3 = vld [vmem:[#allocation92_spill] sm:$0xff] }
 0x450   : > { %v7082_v25 = vpop.permute.xlu0 %7081  ;;  %v7067_v47 = vpop.permute.xlu1 %7066  ;;  %v6709_v5 = vunpack.i.h.bf16 %v11110_v3  ;;  %v6708_v43 = vunpack.i.l.bf16 %v11110_v3  ;;  %v4691_v35 = vsel %vm2350_vm4, %v4655_v39, %v6618_v28  ;;  %v6624_v61 = vunpack.i.h.bf16 %v11112_v41  ;;  %v3318_v39 = vld [vmem:[#allocation3 + $0x10d] sm:$0xff] }
 0x451   : > { %v7069_v31 = vunpack.i.h.bf16 %v7067_v47  ;;  %v7068_v36 = vunpack.i.l.bf16 %v7067_v47  ;;  %v7084_v27 = vunpack.i.h.bf16 %v7082_v25  ;;  %v7083_v10 = vunpack.i.l.bf16 %v7082_v25 }
 0x452   : > { %v6623_v51 = vunpack.i.l.bf16 %v11112_v41 }
 0x453   : > { %v4907_v48 = vsel %vm4880_vm14, %v4870_v2, %v7068_v36  ;;  %v4908_v6 = vsel %vm4880_vm14, %v4871_v54, %v7069_v31  ;;  %v4798_v49 = vsel %vm4769_vm11, %v4761_v18, %v7083_v10  ;;  %v4799_v4 = vsel %vm4769_vm11, %v4762_v32, %v7084_v27  ;;  %v3317_v32 = vld [vmem:[#allocation3 + $0x105] sm:$0xff]  ;;  %v11114_v18 = vld [vmem:[#allocation76_spill] sm:$0xff] }
 0x454   : > { %v4930_v16 = vpack.c.bf16 %v4908_v6, %v4907_v48  ;;  %v7092_v38 = vpop.permute.xlu0 %7091  ;;  %v10324_v45 = vpop.permute.xlu1 %7076  ;;  %v4656_v31 = vsel %vm780_vm1, %v3316_v17, %v6529_v8  ;;  %v6538_v58 = vunpack.i.l.bf16 %v11114_v18 }
 0x455   : > { %v7094_v44 = vunpack.i.h.bf16 %v7092_v38  ;;  %v7093_v63 = vunpack.i.l.bf16 %v7092_v38  ;;  %v7079_v25 = vunpack.i.h.bf16 %v10324_v45  ;;  %v7078_v47 = vunpack.i.l.bf16 %v10324_v45 }
 0x456   : > { %5692 = vmatmul.mubr.msk.bf16.gmra.mrb[24].mxu1 %vm4971_vm15, %v4930_v16  ;;  %v4692_v0 = vsel %vm2350_vm4, %v4656_v31, %v6619_v12  ;;  %v4727_v38 = vsel %vm2424_vm6, %v4691_v35, %v6708_v43  ;;  %v3319_v43 = vld [vmem:[#allocation3 + $0x115] sm:$0xff] }
 0x457   : > { %v4835_v22 = vsel %vm4806_vm12, %v4798_v49, %v7093_v63  ;;  %v4836_v29 = vsel %vm4806_vm12, %v4799_v4, %v7094_v44  ;;  %v4728_v45 = vsel %vm2424_vm6, %v4692_v0, %v6709_v5  ;;  %v4763_v53 = vsel %vm2498_vm8, %v4727_v38, %v7078_v47 }
 0x458   : > { %v7102_v50 = vpop.permute.xlu0 %7101  ;;  %v7087_v33 = vpop.permute.xlu1 %7086  ;;  %v4764_v40 = vsel %vm2498_vm8, %v4728_v45, %v7079_v25  ;;  %v6539_v47 = vunpack.i.h.bf16 %v11114_v18 }
 0x459   : > { %v7104_v26 = vunpack.i.h.bf16 %v7102_v50  ;;  %v7103_v11 = vunpack.i.l.bf16 %v7102_v50  ;;  %v7089_v36 = vunpack.i.h.bf16 %v7087_v33  ;;  %v7088_v2 = vunpack.i.l.bf16 %v7087_v33  ;;  %v11111_v50 = vld [vmem:[#allocation74_spill] sm:$0xff] }
 0x45a   : > { %v6534_v33 = vunpack.i.h.bf16 %v11111_v50  ;;  %v6533_v34 = vunpack.i.l.bf16 %v11111_v50 }
 0x45b   : > { %v4872_v37 = vsel %vm4843_vm13, %v4835_v22, %v7103_v11  ;;  %v4873_v52 = vsel %vm4843_vm13, %v4836_v29, %v7104_v26  ;;  %v4800_v9 = vsel %vm4769_vm11, %v4763_v53, %v7088_v2  ;;  %v4801_v57 = vsel %vm4769_vm11, %v4764_v40, %v7089_v36  ;;  %v11113_v26 = vld [vmem:[#allocation104_spill] sm:$0xff]  ;;  %v11115_v36 = vld [vmem:[#allocation85_spill] sm:$0xff] }
 0x45c   : > { %v7112_v21 = vpop.permute.xlu0 %7111  ;;  %v7097_v30 = vpop.permute.xlu1 %7096  ;;  %v6714_v11 = vunpack.i.h.bf16 %v11113_v26  ;;  %v6713_v8 = vunpack.i.l.bf16 %v11113_v26  ;;  %v4658_v49 = vsel %vm780_vm1, %v3318_v39, %v6534_v33  ;;  %v4657_v4 = vsel %vm780_vm1, %v3317_v32, %v6533_v34 }
 0x45d   : > { %v7114_v24 = vunpack.i.h.bf16 %v7112_v21  ;;  %v7113_v15 = vunpack.i.l.bf16 %v7112_v21  ;;  %v7099_v20 = vunpack.i.h.bf16 %v7097_v30  ;;  %v7098_v16 = vunpack.i.l.bf16 %v7097_v30 }
 0x45e   : > { %v6629_v2 = vunpack.i.h.bf16 %v11115_v36 }
 0x45f   : > { %v4909_v19 = vsel %vm4880_vm14, %v4872_v37, %v7113_v15  ;;  %v4910_v42 = vsel %vm4880_vm14, %v4873_v52, %v7114_v24  ;;  %v4837_v62 = vsel %vm4806_vm12, %v4800_v9, %v7098_v16  ;;  %v4838_v1 = vsel %vm4806_vm12, %v4801_v57, %v7099_v20  ;;  %v3320_v57 = vld [vmem:[#allocation3 + $0x11d] sm:$0xff] }
 0x460   : > { %v4931_v54 = vpack.c.bf16 %v4910_v42, %v4909_v19  ;;  %v7122_v48 = vpop.permute.xlu0 %7121  ;;  %v7107_v6 = vpop.permute.xlu1 %7106  ;;  %v4693_v24 = vsel %vm2350_vm4, %v4657_v4, %v6623_v51  ;;  %v4694_v15 = vsel %vm2350_vm4, %v4658_v49, %v6624_v61  ;;  %v4659_v19 = vsel %vm780_vm1, %v3319_v43, %v6538_v58  ;;  %v11121_v43 = vld [vmem:[#allocation11_spill] sm:$0xff] }
 0x461   : > { %v7109_v59 = vunpack.i.h.bf16 %v7107_v6  ;;  %v7108_v46 = vunpack.i.l.bf16 %v7107_v6  ;;  %v7124_v12 = vunpack.i.h.bf16 %v7122_v48  ;;  %v7123_v28 = vunpack.i.l.bf16 %v7122_v48 }
 0x462   : > { %5695 = vmatprep.mubr.msk.bf16.mxu1 %vm4971_vm15, %v4931_v54  ;;  %v4730_v37 = vsel %vm2424_vm6, %v4694_v15, %v6714_v11  ;;  %v4729_v52 = vsel %vm2424_vm6, %v4693_v24, %v6713_v8  ;;  %v6628_v54 = vunpack.i.l.bf16 %v11115_v36  ;;  %v11119_v24 = vld [vmem:[#allocation9_spill] sm:$0xff] }
 0x463   : > { %v4874_v56 = vsel %vm4843_vm13, %v4837_v62, %v7108_v46  ;;  %v4875_v55 = vsel %vm4843_vm13, %v4838_v1, %v7109_v59  ;;  %v4765_v42 = vsel %vm2498_vm8, %v4729_v52, %v7123_v28  ;;  %v4766_v31 = vsel %vm2498_vm8, %v4730_v37, %v7124_v12  ;;  %v11116_v59 = vld [vmem:[#allocation93_spill] sm:$0xff] }
 0x464   : > { %v7132_v14 = vpop.permute.xlu0 %7131  ;;  %v7117_v7 = vpop.permute.xlu1 %7116  ;;  %v6719_v46 = vunpack.i.h.bf16 %v11116_v59  ;;  %v6718_v53 = vunpack.i.l.bf16 %v11116_v59 }
 0x465   : > { %v7119_v60 = vunpack.i.h.bf16 %v7117_v7  ;;  %v7118_v23 = vunpack.i.l.bf16 %v7117_v7  ;;  %v7134_v21 = vunpack.i.h.bf16 %v7132_v14  ;;  %v7133_v30 = vunpack.i.l.bf16 %v7132_v14 }
 0x467   : > { %v4911_v27 = vsel %vm4880_vm14, %v4874_v56, %v7118_v23  ;;  %v4912_v10 = vsel %vm4880_vm14, %v4875_v55, %v7119_v60  ;;  %v4802_v48 = vsel %vm4769_vm11, %v4765_v42, %v7133_v30  ;;  %v4803_v6 = vsel %vm4769_vm11, %v4766_v31, %v7134_v21  ;;  %v11117_v30 = vld [vmem:[#allocation8_spill] sm:$0xff] }
 0x468   : > { %v4932_v13 = vpack.c.bf16 %v4912_v10, %v4911_v27  ;;  %v7142_v44 = vpop.permute.xlu0 %7141  ;;  %v10374_v63 = vpop.permute.xlu1 %7126  ;;  %v4660_v60 = vsel %vm780_vm1, %v3320_v57, %v6539_v47  ;;  %v4695_v10 = vsel %vm2350_vm4, %v4659_v19, %v6628_v54  ;;  %v11123_v47 = vld [vmem:[#allocation6_spill] sm:$0xff] }
 0x469   : > { %v7144_v3 = vunpack.i.h.bf16 %v7142_v44  ;;  %v7143_v5 = vunpack.i.l.bf16 %v7142_v44  ;;  %v7129_v14 = vunpack.i.h.bf16 %v10374_v63  ;;  %v7128_v7 = vunpack.i.l.bf16 %v10374_v63 }
 0x46a   : > { %5696 = vmatmul.mubr.msk.bf16.gmra.mrb[28].mxu1 %vm4971_vm15, %v4932_v13  ;;  %v4696_v50 = vsel %vm2350_vm4, %v4660_v60, %v6629_v2  ;;  %v4731_v13 = vsel %vm2424_vm6, %v4695_v10, %v6718_v53  ;;  %v11125_v60 = vld [vmem:[#allocation13_spill] sm:$0xff] }
 0x46b   : > { %v4839_v20 = vsel %vm4806_vm12, %v4802_v48, %v7143_v5  ;;  %v4840_v16 = vsel %vm4806_vm12, %v4803_v6, %v7144_v3  ;;  %v4732_v44 = vsel %vm2424_vm6, %v4696_v50, %v6719_v46  ;;  %v4767_v61 = vsel %vm2498_vm8, %v4731_v13, %v7128_v7  ;;  %v11120_v3 = vld [vmem:[#allocation10_spill] sm:$0xff] }
 0x46c   : > { %v7152_v22 = vpop.permute.xlu0 %7151  ;;  %v7137_v29 = vpop.permute.xlu1 %7136  ;;  %v4768_v51 = vsel %vm2498_vm8, %v4732_v44, %v7129_v14 }
 0x46d   : > { %v7154_v17 = vunpack.i.h.bf16 %v7152_v22  ;;  %v7153_v25 = vunpack.i.l.bf16 %v7152_v22  ;;  %v7139_v23 = vunpack.i.h.bf16 %v7137_v29  ;;  %v7138_v56 = vunpack.i.l.bf16 %v7137_v29  ;;  %v11118_v22 = vld [vmem:[#allocation5_spill] sm:$0xff] }
 0x46e   : > { %v699_v29 = vmul.f32 %v11118_v22, %v11117_v30  ;;  %v697_v15 = vmul.f32 %v11118_v22, %v11119_v24  ;;  %v700_v5 = vmul.f32 %v11118_v22, %v11120_v3  ;;  %v698_v37 = vmul.f32 %v11118_v22, %v11121_v43 }
 0x46f   : > { %v4876_v40 = vsel %vm4843_vm13, %v4839_v20, %v7153_v25  ;;  %v4877_v9 = vsel %vm4843_vm13, %v4840_v16, %v7154_v17  ;;  %v4804_v26 = vsel %vm4769_vm11, %v4767_v61, %v7138_v56  ;;  %v4805_v11 = vsel %vm4769_vm11, %v4768_v51, %v7139_v23  ;;  %v11122_v17 = vld [vmem:[#allocation7_spill] sm:$0xff]  ;;  %v11126_v56 = vld [vmem:[#allocation14_spill] sm:$0xff] }
 0x470   : > { %v7162_v0 = vpop.permute.xlu0 %7161  ;;  %v7147_v35 = vpop.permute.xlu1 %7146  ;;  %v739_v25 = vadd.f32 %v11122_v17, %v699_v29  ;;  %v737_v31 = vadd.f32 %v11122_v17, %v697_v15  ;;  %v740_v48 = vadd.f32 %v11122_v17, %v700_v5  ;;  %v738_v20 = vadd.f32 %v11122_v17, %v698_v37  ;;  %v11128_v15 = vld [vmem:[#allocation19_spill] sm:$0xff]  ;;  %v11129_v5 = vld [vmem:[#allocation17_spill] sm:$0xff]  ;;  %v11130_v37 = vld [vmem:[#allocation18_spill] sm:$0xff] }
 0x471   : > { %v7164_v38 = vunpack.i.h.bf16 %v7162_v0  ;;  %v7163_v45 = vunpack.i.l.bf16 %v7162_v0  ;;  %v7149_v33 = vunpack.i.h.bf16 %v7147_v35  ;;  %v7148_v34 = vunpack.i.l.bf16 %v7147_v35 }
 0x472   : > { %v701_v23 = vmul.f32 %v11118_v22, %v11125_v60  ;;  %v707_v3 = vmul.f32 %v11118_v22, %v11128_v15  ;;  %v705_v43 = vmul.f32 %v11118_v22, %v11129_v5 }
 0x473   : > { %v4913_v62 = vsel %vm4880_vm14, %v4876_v40, %v7163_v45  ;;  %v4914_v1 = vsel %vm4880_vm14, %v4877_v9, %v7164_v38  ;;  %v4841_v39 = vsel %vm4806_vm12, %v4804_v26, %v7148_v34  ;;  %v4842_v32 = vsel %vm4806_vm12, %v4805_v11, %v7149_v33 }
 0x474   : > { %v4933_v55 = vpack.c.bf16 %v4914_v1, %v4913_v62  ;;  %v7157_v27 = vpop.permute.xlu1 %7156  ;;  %v11124_v62 = vld [vmem:[#allocation15_spill] sm:$0xff]  ;;  %v741_v44 = vadd.f32 %v11122_v17, %v701_v23 }
 0x475   : > { %v7159_v63 = vunpack.i.h.bf16 %v7157_v27  ;;  %v7158_v41 = vunpack.i.l.bf16 %v7157_v27  ;;  %v703_v1 = vmul.f32 %v11118_v22, %v11124_v62  ;;  %v11127_v27 = vld [vmem:[#allocation12_spill] sm:$0xff]  ;;  %v11132_v23 = vld [vmem:[#allocation23_spill] sm:$0xff] }
 0x476   : > { %5699 = vmatprep.mubr.msk.bf16.mxu1 %vm4971_vm15, %v4933_v55  ;;  %v704_v55 = vmul.f32 %v11118_v22, %v11126_v56  ;;  %v702_v10 = vmul.f32 %v11118_v22, %v11127_v27  ;;  %v711_v56 = vmul.f32 %v11118_v22, %v11132_v23 }
 0x477   : > { %v4878_v12 = vsel %vm4843_vm13, %v4841_v39, %v7158_v41  ;;  %v4879_v28 = vsel %vm4843_vm13, %v4842_v32, %v7159_v63  ;;  %v743_v33 = vadd.f32 %v11122_v17, %v703_v1 }
 0x478   : > { %v7167_v8 = vpop.permute.xlu1 %7166  ;;  %v744_v51 = vadd.f32 %v11122_v17, %v704_v55  ;;  %v742_v39 = vadd.f32 %v11122_v17, %v702_v10  ;;  %v11133_v55 = vld [vmem:[#allocation21_spill] sm:$0xff]  ;;  %v11134_v10 = vld [vmem:[#allocation22_spill] sm:$0xff] }
 0x479   : > { %v7169_v18 = vunpack.i.h.bf16 %v7167_v8  ;;  %v7168_v58 = vunpack.i.l.bf16 %v7167_v8  ;;  %v709_v27 = vmul.f32 %v11118_v22, %v11133_v55 }
 0x47b   : > { %v4915_v49 = vsel %vm4880_vm14, %v4878_v12, %v7168_v58  ;;  %v4916_v4 = vsel %vm4880_vm14, %v4879_v28, %v7169_v18 }
 0x47c   : > { %v4934_v21 = vpack.c.bf16 %v4916_v4, %v4915_v49 }
 0x47e   : > { %5700 = vmatmul.mubr.msk.bf16.gmra.mrb[32].mxu1 %vm4971_vm15, %v4934_v21 }
 0x4b3   : > { %v5669_v52 = vpop.f32.mrb[0].mxu1 }
 0x4b4   : > { %v5213_v19 = vmul.f32 %v5669_v52, %v11123_v47  ;;  %v5064_v42 = vpop.f32.mrb[1].mxu1  ;;  %v708_v52 = vmul.f32 %v11118_v22, %v11130_v37 }
 0x4b5   : > { %v5211_v36 = vmul.f32 %v11123_v47, %v5064_v42  ;;  %v5670_v2 = vpop.f32.mrb[2].mxu1 }
 0x4b6   : > { %v5249_v54 = vadd.f32 %v5213_v19, %v739_v25  ;;  %v5214_v6 = vmul.f32 %v5670_v2, %v11123_v47  ;;  %v5067_v0 = vpop.f32.mrb[3].mxu1  ;;  %v11131_v25 = vld [vmem:[#allocation16_spill] sm:$0xff] }
 0x4b7   : > { %v5247_v35 = vadd.f32 %v5211_v36, %v737_v31  ;;  %v5212_v16 = vmul.f32 %v11123_v47, %v5067_v0  ;;  %v706_v19 = vmul.f32 %v11118_v22, %v11131_v25  ;;  %v747_v31 = vadd.f32 %v11122_v17, %v707_v3 }
 0x4b8   : > { %vm5285_vm4 = vcmp.ge.f32.partialorder %v5249_v54, 0.0  ;;  %v5321_v38 = vmul.f32 0.2, %v5249_v54  ;;  %v5250_v45 = vadd.f32 %v5214_v6, %v740_v48 }
 0x4b9   : > { %vm5283_vm6 = vcmp.ge.f32.partialorder %v5247_v35, 0.0  ;;  %v5319_v59 = vmul.f32 0.2, %v5247_v35  ;;  %v5248_v46 = vadd.f32 %v5212_v16, %v738_v20 }
 0x4ba   : > { %v5357_v53 = vsel %vm5285_vm4, %v5249_v54, %v5321_v38  ;;  %vm5286_vm8 = vcmp.ge.f32.partialorder %v5250_v45, 0.0  ;;  %v5322_v40 = vmul.f32 0.2, %v5250_v45  ;;  %v745_v54 = vadd.f32 %v11122_v17, %v705_v43  ;;  %v11136_v43 = vld [vmem:[#allocation27_spill] sm:$0xff] }
 0x4bb   : > { %5393 = vst.msk [vmem:[%s10443_s11 + $0x10] sm:$0xff] %vm780_vm1, %v5357_v53  ;;  %v5355_v9 = vsel %vm5283_vm6, %v5247_v35, %v5319_v59  ;;  %vm5284_vm0 = vcmp.ge.f32.partialorder %v5248_v46, 0.0  ;;  %v5320_v57 = vmul.f32 0.2, %v5248_v46  ;;  %v748_v35 = vadd.f32 %v11122_v17, %v708_v52  ;;  %v11137_v52 = vld [vmem:[#allocation25_spill] sm:$0xff] }
 0x4bc   : > { %5391 = vst.msk [vmem:[%s10443_s11] sm:$0xff] %vm780_vm1, %v5355_v9  ;;  %v5358_v14 = vsel %vm5286_vm8, %v5250_v45, %v5322_v40  ;;  %v746_v45 = vadd.f32 %v11122_v17, %v706_v19  ;;  %v715_v37 = vmul.f32 %v11118_v22, %v11136_v43  ;;  %v713_v25 = vmul.f32 %v11118_v22, %v11137_v52  ;;  %v11138_v19 = vld [vmem:[#allocation26_spill] sm:$0xff] }
 0x4bd   : > { %5394 = vst.msk [vmem:[%s10443_s11 + $0x18] sm:$0xff] %vm780_vm1, %v5358_v14  ;;  %v5356_v7 = vsel %vm5284_vm0, %v5248_v46, %v5320_v57 }
 0x4be   : > { %5392 = vst.msk [vmem:[%s10443_s11 + $0x8] sm:$0xff] %vm780_vm1, %v5356_v7 }
 0x4c6   : > { %v5673_v50 = vpop.f32.mrb[4].mxu1 }
 0x4c7   : > { %v5217_v34 = vmul.f32 %v5673_v50, %v11123_v47  ;;  %v5080_v13 = vpop.f32.mrb[5].mxu1  ;;  %v712_v50 = vmul.f32 %v11118_v22, %v11134_v10 }
 0x4c8   : > { %v5215_v63 = vmul.f32 %v11123_v47, %v5080_v13  ;;  %v5674_v41 = vpop.f32.mrb[6].mxu1 }
 0x4c9   : > { %v5253_v61 = vadd.f32 %v5217_v34, %v743_v33  ;;  %v5218_v26 = vmul.f32 %v5674_v41, %v11123_v47  ;;  %v5083_v11 = vpop.f32.mrb[7].mxu1  ;;  %v11135_v33 = vld [vmem:[#allocation20_spill] sm:$0xff] }
 0x4ca   : > { %v5251_v8 = vadd.f32 %v5215_v63, %v741_v44  ;;  %v5216_v32 = vmul.f32 %v11123_v47, %v5083_v11  ;;  %v710_v34 = vmul.f32 %v11118_v22, %v11135_v33  ;;  %v751_v44 = vadd.f32 %v11122_v17, %v711_v56 }
 0x4cb   : > { %vm5289_vm2 = vcmp.ge.f32.partialorder %v5253_v61, 0.0  ;;  %v5325_v18 = vmul.f32 0.2, %v5253_v61  ;;  %v5254_v58 = vadd.f32 %v5218_v26, %v744_v51 }
 0x4cc   : > { %vm5287_vm3 = vcmp.ge.f32.partialorder %v5251_v8, 0.0  ;;  %v5323_v12 = vmul.f32 0.2, %v5251_v8  ;;  %v5252_v28 = vadd.f32 %v5216_v32, %v742_v39 }
 0x4cd   : > { %v5361_v49 = vsel %vm5289_vm2, %v5253_v61, %v5325_v18  ;;  %vm5290_vm5 = vcmp.ge.f32.partialorder %v5254_v58, 0.0  ;;  %v5326_v4 = vmul.f32 0.2, %v5254_v58  ;;  %v749_v61 = vadd.f32 %v11122_v17, %v709_v27  ;;  %v11140_v27 = vld [vmem:[#allocation31_spill] sm:$0xff] }
 0x4ce   : > { %5397 = vst.msk [vmem:[%s10443_s11 + $0x30] sm:$0xff] %vm780_vm1, %v5361_v49  ;;  %v5359_v21 = vsel %vm5287_vm3, %v5251_v8, %v5323_v12  ;;  %vm5288_vm7 = vcmp.ge.f32.partialorder %v5252_v28, 0.0  ;;  %v5324_v30 = vmul.f32 0.2, %v5252_v28  ;;  %v752_v8 = vadd.f32 %v11122_v17, %v712_v50  ;;  %v11141_v50 = vld [vmem:[#allocation29_spill] sm:$0xff] }
 0x4cf   : > { %5395 = vst.msk [vmem:[%s10443_s11 + $0x20] sm:$0xff] %vm780_vm1, %v5359_v21  ;;  %v5362_v29 = vsel %vm5290_vm5, %v5254_v58, %v5326_v4  ;;  %v750_v58 = vadd.f32 %v11122_v17, %v710_v34  ;;  %v719_v10 = vmul.f32 %v11118_v22, %v11140_v27  ;;  %v717_v33 = vmul.f32 %v11118_v22, %v11141_v50  ;;  %v11142_v34 = vld [vmem:[#allocation30_spill] sm:$0xff] }
 0x4d0   : > { %5398 = vst.msk [vmem:[%s10443_s11 + $0x38] sm:$0xff] %vm780_vm1, %v5362_v29  ;;  %v5360_v24 = vsel %vm5288_vm7, %v5252_v28, %v5324_v30 }
 0x4d1   : > { %5396 = vst.msk [vmem:[%s10443_s11 + $0x28] sm:$0xff] %vm780_vm1, %v5360_v24 }
 0x4d9   : > { %v5677_v42 = vpop.f32.mrb[8].mxu1 }
 0x4da   : > { %v5221_v36 = vmul.f32 %v5677_v42, %v11123_v47  ;;  %v5096_v2 = vpop.f32.mrb[9].mxu1  ;;  %v716_v42 = vmul.f32 %v11118_v22, %v11138_v19 }
 0x4db   : > { %v5219_v48 = vmul.f32 %v11123_v47, %v5096_v2  ;;  %v5678_v6 = vpop.f32.mrb[10].mxu1 }
 0x4dc   : > { %v5257_v0 = vadd.f32 %v5221_v36, %v747_v31  ;;  %v5222_v20 = vmul.f32 %v5678_v6, %v11123_v47  ;;  %v5099_v16 = vpop.f32.mrb[11].mxu1  ;;  %v11139_v31 = vld [vmem:[#allocation24_spill] sm:$0xff] }
 0x4dd   : > { %v5255_v38 = vadd.f32 %v5219_v48, %v745_v54  ;;  %v5220_v59 = vmul.f32 %v11123_v47, %v5099_v16  ;;  %v714_v36 = vmul.f32 %v11118_v22, %v11139_v31  ;;  %v755_v54 = vadd.f32 %v11122_v17, %v715_v37 }
 0x4de   : > { %vm5293_vm9 = vcmp.ge.f32.partialorder %v5257_v0, 0.0  ;;  %v5329_v46 = vmul.f32 0.2, %v5257_v0  ;;  %v5258_v53 = vadd.f32 %v5222_v20, %v748_v35 }
 0x4df   : > { %vm5291_vm10 = vcmp.ge.f32.partialorder %v5255_v38, 0.0  ;;  %v5327_v40 = vmul.f32 0.2, %v5255_v38  ;;  %v5256_v9 = vadd.f32 %v5220_v59, %v746_v45 }
 0x4e0   : > { %v5365_v57 = vsel %vm5293_vm9, %v5257_v0, %v5329_v46  ;;  %vm5294_vm11 = vcmp.ge.f32.partialorder %v5258_v53, 0.0  ;;  %v5330_v14 = vmul.f32 0.2, %v5258_v53  ;;  %v753_v0 = vadd.f32 %v11122_v17, %v713_v25  ;;  %v11144_v25 = vld [vmem:[#allocation35_spill] sm:$0xff] }
 0x4e1   : > { %5401 = vst.msk [vmem:[%s10443_s11 + $0x50] sm:$0xff] %vm780_vm1, %v5365_v57  ;;  %v5363_v7 = vsel %vm5291_vm10, %v5255_v38, %v5327_v40  ;;  %vm5292_vm12 = vcmp.ge.f32.partialorder %v5256_v9, 0.0  ;;  %v5328_v62 = vmul.f32 0.2, %v5256_v9  ;;  %v756_v38 = vadd.f32 %v11122_v17, %v716_v42  ;;  %v11145_v42 = vld [vmem:[#allocation33_spill] sm:$0xff] }
 0x4e2   : > { %5399 = vst.msk [vmem:[%s10443_s11 + $0x40] sm:$0xff] %vm780_vm1, %v5363_v7  ;;  %v5366_v1 = vsel %vm5294_vm11, %v5258_v53, %v5330_v14  ;;  %v754_v53 = vadd.f32 %v11122_v17, %v714_v36  ;;  %v723_v19 = vmul.f32 %v11118_v22, %v11144_v25  ;;  %v721_v31 = vmul.f32 %v11118_v22, %v11145_v42  ;;  %v11146_v36 = vld [vmem:[#allocation34_spill] sm:$0xff] }
 0x4e3   : > { %5402 = vst.msk [vmem:[%s10443_s11 + $0x58] sm:$0xff] %vm780_vm1, %v5366_v1  ;;  %v5364_v60 = vsel %vm5292_vm12, %v5256_v9, %v5328_v62 }
 0x4e4   : > { %5400 = vst.msk [vmem:[%s10443_s11 + $0x48] sm:$0xff] %vm780_vm1, %v5364_v60 }
 0x4ed   : > { %v5681_v13 = vpop.f32.mrb[12].mxu1 }
 0x4ee   : > { %v5225_v63 = vmul.f32 %v5681_v13, %v11123_v47  ;;  %v5112_v41 = vpop.f32.mrb[13].mxu1  ;;  %v720_v13 = vmul.f32 %v11118_v22, %v11142_v34 }
 0x4ef   : > { %v5223_v51 = vmul.f32 %v11123_v47, %v5112_v41  ;;  %v5682_v26 = vpop.f32.mrb[14].mxu1 }
 0x4f0   : > { %v5261_v11 = vadd.f32 %v5225_v63, %v751_v44  ;;  %v5226_v39 = vmul.f32 %v5682_v26, %v11123_v47  ;;  %v5115_v32 = vpop.f32.mrb[15].mxu1  ;;  %v11143_v44 = vld [vmem:[#allocation28_spill] sm:$0xff] }
 0x4f1   : > { %v5259_v18 = vadd.f32 %v5223_v51, %v749_v61  ;;  %v5224_v12 = vmul.f32 %v11123_v47, %v5115_v32  ;;  %v718_v63 = vmul.f32 %v11118_v22, %v11143_v44  ;;  %v759_v61 = vadd.f32 %v11122_v17, %v719_v10 }
 0x4f2   : > { %vm5297_vm13 = vcmp.ge.f32.partialorder %v5261_v11, 0.0  ;;  %v5333_v28 = vmul.f32 0.2, %v5261_v11  ;;  %v5262_v49 = vadd.f32 %v5226_v39, %v752_v8 }
 0x4f3   : > { %vm5295_vm14 = vcmp.ge.f32.partialorder %v5259_v18, 0.0  ;;  %v5331_v4 = vmul.f32 0.2, %v5259_v18  ;;  %v5260_v21 = vadd.f32 %v5224_v12, %v750_v58 }
 0x4f4   : > { %v5369_v30 = vsel %vm5297_vm13, %v5261_v11, %v5333_v28  ;;  %vm5298_vm15 = vcmp.ge.f32.partialorder %v5262_v49, 0.0  ;;  %v5334_v29 = vmul.f32 0.2, %v5262_v49  ;;  %v757_v11 = vadd.f32 %v11122_v17, %v717_v33  ;;  %v11148_v33 = vld [vmem:[#allocation39_spill] sm:$0xff] }
 0x4f5   : > { %5405 = vst.msk [vmem:[%s10443_s11 + $0x70] sm:$0xff] %vm780_vm1, %v5369_v30  ;;  %v5367_v24 = vsel %vm5295_vm14, %v5259_v18, %v5331_v4  ;;  %vm5296_vm4 = vcmp.ge.f32.partialorder %v5260_v21, 0.0  ;;  %v5332_v15 = vmul.f32 0.2, %v5260_v21  ;;  %v760_v18 = vadd.f32 %v11122_v17, %v720_v13  ;;  %v11149_v13 = vld [vmem:[#allocation37_spill] sm:$0xff] }
 0x4f6   : > { %5403 = vst.msk [vmem:[%s10443_s11 + $0x60] sm:$0xff] %vm780_vm1, %v5367_v24  ;;  %v5370_v3 = vsel %vm5298_vm15, %v5262_v49, %v5334_v29  ;;  %v758_v49 = vadd.f32 %v11122_v17, %v718_v63  ;;  %v727_v34 = vmul.f32 %v11118_v22, %v11148_v33  ;;  %v725_v44 = vmul.f32 %v11118_v22, %v11149_v13  ;;  %v11150_v63 = vld [vmem:[#allocation38_spill] sm:$0xff] }
 0x4f7   : > { %5406 = vst.msk [vmem:[%s10443_s11 + $0x78] sm:$0xff] %vm780_vm1, %v5370_v3  ;;  %v5368_v5 = vsel %vm5296_vm4, %v5260_v21, %v5332_v15 }
 0x4f8   : > { %5404 = vst.msk [vmem:[%s10443_s11 + $0x68] sm:$0xff] %vm780_vm1, %v5368_v5 }
 0x501   : > { %v5685_v2 = vpop.f32.mrb[16].mxu1 }
 0x502   : > { %v5229_v48 = vmul.f32 %v5685_v2, %v11123_v47  ;;  %v5128_v6 = vpop.f32.mrb[17].mxu1  ;;  %v724_v2 = vmul.f32 %v11118_v22, %v11146_v36 }
 0x503   : > { %v5227_v35 = vmul.f32 %v11123_v47, %v5128_v6  ;;  %v5686_v20 = vpop.f32.mrb[18].mxu1 }
 0x504   : > { %v5265_v16 = vadd.f32 %v5229_v48, %v755_v54  ;;  %v5230_v45 = vmul.f32 %v5686_v20, %v11123_v47  ;;  %v5131_v59 = vpop.f32.mrb[19].mxu1  ;;  %v11147_v54 = vld [vmem:[#allocation32_spill] sm:$0xff] }
 0x505   : > { %v5263_v46 = vadd.f32 %v5227_v35, %v753_v0  ;;  %v5228_v40 = vmul.f32 %v11123_v47, %v5131_v59  ;;  %v722_v48 = vmul.f32 %v11118_v22, %v11147_v54  ;;  %v763_v0 = vadd.f32 %v11122_v17, %v723_v19 }
 0x506   : > { %vm5301_vm6 = vcmp.ge.f32.partialorder %v5265_v16, 0.0  ;;  %v5337_v9 = vmul.f32 0.2, %v5265_v16  ;;  %v5266_v57 = vadd.f32 %v5230_v45, %v756_v38 }
 0x507   : > { %vm5299_vm8 = vcmp.ge.f32.partialorder %v5263_v46, 0.0  ;;  %v5335_v14 = vmul.f32 0.2, %v5263_v46  ;;  %v5264_v7 = vadd.f32 %v5228_v40, %v754_v53 }
 0x508   : > { %v5373_v62 = vsel %vm5301_vm6, %v5265_v16, %v5337_v9  ;;  %vm5302_vm0 = vcmp.ge.f32.partialorder %v5266_v57, 0.0  ;;  %v5338_v1 = vmul.f32 0.2, %v5266_v57  ;;  %v761_v16 = vadd.f32 %v11122_v17, %v721_v31  ;;  %v11152_v31 = vld [vmem:[#allocation43_spill] sm:$0xff] }
 0x509   : > { %5409 = vst.msk [vmem:[%s10443_s11 + $0x90] sm:$0xff] %vm780_vm1, %v5373_v62  ;;  %v5371_v60 = vsel %vm5299_vm8, %v5263_v46, %v5335_v14  ;;  %vm5300_vm2 = vcmp.ge.f32.partialorder %v5264_v7, 0.0  ;;  %v5336_v23 = vmul.f32 0.2, %v5264_v7  ;;  %v764_v46 = vadd.f32 %v11122_v17, %v724_v2  ;;  %v11153_v2 = vld [vmem:[#allocation41_spill] sm:$0xff] }
 0x50a   : > { %5407 = vst.msk [vmem:[%s10443_s11 + $0x80] sm:$0xff] %vm780_vm1, %v5371_v60  ;;  %v5374_v56 = vsel %vm5302_vm0, %v5266_v57, %v5338_v1  ;;  %v762_v57 = vadd.f32 %v11122_v17, %v722_v48  ;;  %v731_v36 = vmul.f32 %v11118_v22, %v11152_v31  ;;  %v729_v54 = vmul.f32 %v11118_v22, %v11153_v2  ;;  %v11154_v48 = vld [vmem:[#allocation42_spill] sm:$0xff] }
 0x50b   : > { %5410 = vst.msk [vmem:[%s10443_s11 + $0x98] sm:$0xff] %vm780_vm1, %v5374_v56  ;;  %v5372_v55 = vsel %vm5300_vm2, %v5264_v7, %v5336_v23 }
 0x50c   : > { %5408 = vst.msk [vmem:[%s10443_s11 + $0x88] sm:$0xff] %vm780_vm1, %v5372_v55 }
 0x515   : > { %v5689_v41 = vpop.f32.mrb[20].mxu1 }
 0x516   : > { %v5233_v51 = vmul.f32 %v5689_v41, %v11123_v47  ;;  %v5144_v26 = vpop.f32.mrb[21].mxu1  ;;  %v728_v41 = vmul.f32 %v11118_v22, %v11150_v63 }
 0x517   : > { %v5231_v8 = vmul.f32 %v11123_v47, %v5144_v26  ;;  %v5690_v39 = vpop.f32.mrb[22].mxu1 }
 0x518   : > { %v5269_v32 = vadd.f32 %v5233_v51, %v759_v61  ;;  %v5234_v58 = vmul.f32 %v5690_v39, %v11123_v47  ;;  %v5147_v12 = vpop.f32.mrb[23].mxu1  ;;  %v11151_v61 = vld [vmem:[#allocation36_spill] sm:$0xff] }
 0x519   : > { %v5267_v28 = vadd.f32 %v5231_v8, %v757_v11  ;;  %v5232_v4 = vmul.f32 %v11123_v47, %v5147_v12  ;;  %v726_v51 = vmul.f32 %v11118_v22, %v11151_v61  ;;  %v767_v11 = vadd.f32 %v11122_v17, %v727_v34 }
 0x51a   : > { %vm5305_vm3 = vcmp.ge.f32.partialorder %v5269_v32, 0.0  ;;  %v5341_v21 = vmul.f32 0.2, %v5269_v32  ;;  %v5270_v30 = vadd.f32 %v5234_v58, %v760_v18 }
 0x51b   : > { %vm5303_vm5 = vcmp.ge.f32.partialorder %v5267_v28, 0.0  ;;  %v5339_v29 = vmul.f32 0.2, %v5267_v28  ;;  %v5268_v24 = vadd.f32 %v5232_v4, %v758_v49 }
 0x51c   : > { %v5377_v15 = vsel %vm5305_vm3, %v5269_v32, %v5341_v21  ;;  %vm5306_vm7 = vcmp.ge.f32.partialorder %v5270_v30, 0.0  ;;  %v5342_v3 = vmul.f32 0.2, %v5270_v30  ;;  %v765_v32 = vadd.f32 %v11122_v17, %v725_v44 }
 0x51d   : > { %5413 = vst.msk [vmem:[%s10443_s11 + $0xb0] sm:$0xff] %vm780_vm1, %v5377_v15  ;;  %v5375_v5 = vsel %vm5303_vm5, %v5267_v28, %v5339_v29  ;;  %vm5304_vm9 = vcmp.ge.f32.partialorder %v5268_v24, 0.0  ;;  %v5340_v43 = vmul.f32 0.2, %v5268_v24  ;;  %v768_v28 = vadd.f32 %v11122_v17, %v728_v41 }
 0x51e   : > { %5411 = vst.msk [vmem:[%s10443_s11 + $0xa0] sm:$0xff] %vm780_vm1, %v5375_v5  ;;  %v5378_v37 = vsel %vm5306_vm7, %v5270_v30, %v5342_v3  ;;  %v766_v30 = vadd.f32 %v11122_v17, %v726_v51 }
 0x51f   : > { %5414 = vst.msk [vmem:[%s10443_s11 + $0xb8] sm:$0xff] %vm780_vm1, %v5378_v37  ;;  %v5376_v52 = vsel %vm5304_vm9, %v5268_v24, %v5340_v43 }
 0x520   : > { %5412 = vst.msk [vmem:[%s10443_s11 + $0xa8] sm:$0xff] %vm780_vm1, %v5376_v52 }
 0x529   : > { %v5693_v6 = vpop.f32.mrb[24].mxu1 }
 0x52a   : > { %v5237_v35 = vmul.f32 %v5693_v6, %v11123_v47  ;;  %v5160_v20 = vpop.f32.mrb[25].mxu1  ;;  %v732_v6 = vmul.f32 %v11118_v22, %v11154_v48 }
 0x52b   : > { %v5235_v38 = vmul.f32 %v11123_v47, %v5160_v20  ;;  %v5694_v45 = vpop.f32.mrb[26].mxu1 }
 0x52c   : > { %v5273_v59 = vadd.f32 %v5237_v35, %v763_v0  ;;  %v5238_v53 = vmul.f32 %v5694_v45, %v11123_v47  ;;  %v5163_v40 = vpop.f32.mrb[27].mxu1  ;;  %v11155_v0 = vld [vmem:[#allocation40_spill] sm:$0xff] }
 0x52d   : > { %v5271_v9 = vadd.f32 %v5235_v38, %v761_v16  ;;  %v5236_v14 = vmul.f32 %v11123_v47, %v5163_v40  ;;  %v730_v35 = vmul.f32 %v11118_v22, %v11155_v0  ;;  %v771_v16 = vadd.f32 %v11122_v17, %v731_v36 }
 0x52e   : > { %vm5309_vm10 = vcmp.ge.f32.partialorder %v5273_v59, 0.0  ;;  %v5345_v7 = vmul.f32 0.2, %v5273_v59  ;;  %v5274_v62 = vadd.f32 %v5238_v53, %v764_v46 }
 0x52f   : > { %vm5307_vm11 = vcmp.ge.f32.partialorder %v5271_v9, 0.0  ;;  %v5343_v1 = vmul.f32 0.2, %v5271_v9  ;;  %v5272_v60 = vadd.f32 %v5236_v14, %v762_v57  ;;  %v770_v22 = vadd.f32 %v11122_v17, %v730_v35 }
 0x530   : > { %v5381_v23 = vsel %vm5309_vm10, %v5273_v59, %v5345_v7  ;;  %vm5310_vm12 = vcmp.ge.f32.partialorder %v5274_v62, 0.0  ;;  %v5346_v56 = vmul.f32 0.2, %v5274_v62  ;;  %v769_v59 = vadd.f32 %v11122_v17, %v729_v54 }
 0x531   : > { %5417 = vst.msk [vmem:[%s10443_s11 + $0xd0] sm:$0xff] %vm780_vm1, %v5381_v23  ;;  %v5379_v55 = vsel %vm5307_vm11, %v5271_v9, %v5343_v1  ;;  %vm5308_vm13 = vcmp.ge.f32.partialorder %v5272_v60, 0.0  ;;  %v5344_v27 = vmul.f32 0.2, %v5272_v60  ;;  %v772_v9 = vadd.f32 %v11122_v17, %v732_v6 }
 0x532   : > { %5415 = vst.msk [vmem:[%s10443_s11 + $0xc0] sm:$0xff] %vm780_vm1, %v5379_v55  ;;  %v5382_v10 = vsel %vm5310_vm12, %v5274_v62, %v5346_v56 }
 0x533   : > { %5418 = vst.msk [vmem:[%s10443_s11 + $0xd8] sm:$0xff] %vm780_vm1, %v5382_v10  ;;  %v5380_v50 = vsel %vm5308_vm13, %v5272_v60, %v5344_v27 }
 0x534   : > { %5416 = vst.msk [vmem:[%s10443_s11 + $0xc8] sm:$0xff] %vm780_vm1, %v5380_v50 }
 0x53d   : > { %v5697_v26 = vpop.f32.mrb[28].mxu1 }
 0x53e   : > { %v5241_v8 = vmul.f32 %v5697_v26, %v11123_v47  ;;  %v5176_v39 = vpop.f32.mrb[29].mxu1 }
 0x53f   : > { %v5239_v18 = vmul.f32 %v11123_v47, %v5176_v39  ;;  %v5698_v58 = vpop.f32.mrb[30].mxu1 }
 0x540   : > { %v5277_v12 = vadd.f32 %v5241_v8, %v767_v11  ;;  %v5242_v49 = vmul.f32 %v5698_v58, %v11123_v47  ;;  %v5179_v4 = vpop.f32.mrb[31].mxu1 }
 0x541   : > { %v5275_v21 = vadd.f32 %v5239_v18, %v765_v32  ;;  %v5240_v29 = vmul.f32 %v11123_v47, %v5179_v4 }
 0x542   : > { %vm5313_vm14 = vcmp.ge.f32.partialorder %v5277_v12, 0.0  ;;  %v5349_v24 = vmul.f32 0.2, %v5277_v12  ;;  %v5278_v15 = vadd.f32 %v5242_v49, %v768_v28 }
 0x543   : > { %vm5311_vm15 = vcmp.ge.f32.partialorder %v5275_v21, 0.0  ;;  %v5347_v3 = vmul.f32 0.2, %v5275_v21  ;;  %v5276_v5 = vadd.f32 %v5240_v29, %v766_v30 }
 0x544   : > { %v5385_v43 = vsel %vm5313_vm14, %v5277_v12, %v5349_v24  ;;  %vm5314_vm4 = vcmp.ge.f32.partialorder %v5278_v15, 0.0  ;;  %v5350_v37 = vmul.f32 0.2, %v5278_v15 }
 0x545   : > { %5421 = vst.msk [vmem:[%s10443_s11 + $0xf0] sm:$0xff] %vm780_vm1, %v5385_v43  ;;  %v5383_v52 = vsel %vm5311_vm15, %v5275_v21, %v5347_v3  ;;  %vm5312_vm6 = vcmp.ge.f32.partialorder %v5276_v5, 0.0  ;;  %v5348_v25 = vmul.f32 0.2, %v5276_v5 }
 0x546   : > { %5419 = vst.msk [vmem:[%s10443_s11 + $0xe0] sm:$0xff] %vm780_vm1, %v5383_v52  ;;  %v5386_v19 = vsel %vm5314_vm4, %v5278_v15, %v5350_v37 }
 0x547   : > { %5422 = vst.msk [vmem:[%s10443_s11 + $0xf8] sm:$0xff] %vm780_vm1, %v5386_v19  ;;  %v5384_v42 = vsel %vm5312_vm6, %v5276_v5, %v5348_v25 }
 0x548   : > { %5420 = vst.msk [vmem:[%s10443_s11 + $0xe8] sm:$0xff] %vm780_vm1, %v5384_v42 }
 0x551   : > { %v5701_v20 = vpop.f32.mrb[32].mxu1 }
 0x552   : > { %v5245_v38 = vmul.f32 %v5701_v20, %v11123_v47  ;;  %v5192_v45 = vpop.f32.mrb[33].mxu1 }
 0x553   : > { %v5243_v46 = vmul.f32 %v11123_v47, %v5192_v45  ;;  %v5702_v53 = vpop.f32.mrb[34].mxu1 }
 0x554   : > { %v5281_v40 = vadd.f32 %v5245_v38, %v771_v16  ;;  %v5246_v57 = vmul.f32 %v5702_v53, %v11123_v47  ;;  %v5195_v14 = vpop.f32.mrb[35].mxu1 }
 0x555   : > { %v5279_v7 = vadd.f32 %v5243_v46, %v769_v59  ;;  %v5244_v62 = vmul.f32 %v11123_v47, %v5195_v14 }
 0x556   : > { %vm5317_vm8 = vcmp.ge.f32.partialorder %v5281_v40, 0.0  ;;  %v5353_v1 = vmul.f32 0.2, %v5281_v40  ;;  %v5282_v60 = vadd.f32 %v5246_v57, %v772_v9 }
 0x557   : > { %vm5315_vm0 = vcmp.ge.f32.partialorder %v5279_v7, 0.0  ;;  %v5351_v23 = vmul.f32 0.2, %v5279_v7  ;;  %v5280_v56 = vadd.f32 %v5244_v62, %v770_v22 }
 0x558   : > { %v5389_v55 = vsel %vm5317_vm8, %v5281_v40, %v5353_v1  ;;  %vm5318_vm2 = vcmp.ge.f32.partialorder %v5282_v60, 0.0  ;;  %v5354_v27 = vmul.f32 0.2, %v5282_v60 }
 0x559   : > { %5425 = vst.msk [vmem:[%s10443_s11 + $0x110] sm:$0xff] %vm780_vm1, %v5389_v55  ;;  %v5387_v10 = vsel %vm5315_vm0, %v5279_v7, %v5351_v23  ;;  %vm5316_vm3 = vcmp.ge.f32.partialorder %v5280_v56, 0.0  ;;  %v5352_v50 = vmul.f32 0.2, %v5280_v56 }
 0x55a   : > { %5423 = vst.msk [vmem:[%s10443_s11 + $0x100] sm:$0xff] %vm780_vm1, %v5387_v10  ;;  %v5390_v17 = vsel %vm5318_vm2, %v5282_v60, %v5354_v27 }
 0x55b   : > { %5426 = vst.msk [vmem:[%s10443_s11 + $0x118] sm:$0xff] %vm780_vm1, %v5390_v17  ;;  %v5388_v47 = vsel %vm5316_vm3, %v5280_v56, %v5352_v50 }
 0x55c   : > { %5424 = vst.msk [vmem:[%s10443_s11 + $0x108] sm:$0xff] %vm780_vm1, %v5388_v47 }
 0x55d PF: > { %s18_s27 = sadd.s32 1, %s7186_s27  }
 0x55e   : > { %p15_p4 = scmp.ge.s32.totalorder %s18_s27, 4  }
 0x560   :  { %17 = sbr.rel (!%p15_p4) target bundleno = 1 (0x1), region = 91 }

</bundles_post_ra>
